<compile_context>
chip_gen: v7x
topology: tpu7x:2x2x1
jax: 0.10.0
libtpu: 0.0.40
codegen_flags: <defaults>
</compile_context>

<pallas_src>
import functools

import jax
import jax.numpy as jnp
from jax.experimental import pallas as pl
from jax.experimental.pallas import tpu as pltpu


# ---------------------------------------------------------------------------
# Kernels
# ---------------------------------------------------------------------------
def _backbone_kernel(*refs, apply_trans, relu_last):
    """Shared-MLP (3 pointwise conv layers, BN folded) + max-pool over points.

    Grid = (batch, point-tiles).  The point axis is a reduction: a running max
    lives in an f32 VMEM scratch, initialized at the first point-tile and
    written back at the last.  All matmuls are bf16 x bf16 -> f32 on the MXU.
    """
    if apply_trans:
        (x_ref, trans_ref, w1_ref, b1_ref, w2_ref, b2_ref, w3_ref, b3_ref,
         out_ref, acc_ref) = refs
    else:
        (x_ref, w1_ref, b1_ref, w2_ref, b2_ref, w3_ref, b3_ref,
         out_ref, acc_ref) = refs

    n = pl.program_id(1)

    @pl.when(n == 0)
    def _():
        acc_ref[...] = jnp.full(acc_ref.shape, -jnp.inf, acc_ref.dtype)

    w1 = w1_ref[...]                                           # (Cin, C1) bf16
    if apply_trans:
        # Fold the 3x3 input transform into the first layer's weight:
        #   (x @ T) @ W1 == x @ (T @ W1).   (3,3)@(3,64) is negligible.
        w1 = jnp.dot(trans_ref[0], w1,
                     preferred_element_type=jnp.float32).astype(jnp.bfloat16)

    x = x_ref[0]                                               # (TN, Cin) bf16
    h = jnp.dot(x, w1, preferred_element_type=jnp.float32) + b1_ref[...]
    h = jnp.maximum(h, 0.0).astype(jnp.bfloat16)
    h = jnp.dot(h, w2_ref[...], preferred_element_type=jnp.float32) + b2_ref[...]
    h = jnp.maximum(h, 0.0).astype(jnp.bfloat16)
    h = jnp.dot(h, w3_ref[...], preferred_element_type=jnp.float32) + b3_ref[...]
    if relu_last:
        h = jnp.maximum(h, 0.0)

    # Running max over point tiles (f32).
    acc_ref[...] = jnp.maximum(acc_ref[...], jnp.max(h, axis=0, keepdims=True))

    @pl.when(n == pl.num_programs(1) - 1)
    def _():
        out_ref[0] = acc_ref[...]


def _dense3_kernel(g_ref, w1_ref, b1_ref, w2_ref, b2_ref, w3_ref, b3_ref,
                   out_ref):
    """3-layer MLP: relu, relu, linear.  Tiny; whole arrays resident in VMEM.
    Last layer's output dim is zero-padded to 128 lanes (unmasked stores)."""
    h = jnp.dot(g_ref[...].astype(jnp.bfloat16), w1_ref[...],
                preferred_element_type=jnp.float32) + b1_ref[...]
    h = jnp.maximum(h, 0.0).astype(jnp.bfloat16)
    h = jnp.dot(h, w2_ref[...], preferred_element_type=jnp.float32) + b2_ref[...]
    h = jnp.maximum(h, 0.0).astype(jnp.bfloat16)
    out_ref[...] = (jnp.dot(h, w3_ref[...], preferred_element_type=jnp.float32)
                    + b3_ref[...])


# ---------------------------------------------------------------------------
# Wrappers
# ---------------------------------------------------------------------------
def backbone(x_bnc, trans, conv_params, *, relu_last):
    """x_bnc: (B, N, Cin) bf16; trans: (B, Cin, Cin) bf16 or None.
    Returns the (B, C3) f32 global feature (max over points)."""
    w1, b1, w2, b2, w3, b3 = conv_params
    B, N, Cin = x_bnc.shape
    C1, C2, C3 = w1.shape[1], w2.shape[1], w3.shape[1]

    # Point tile: 256 rows fills the MXU on v6e/v7x (2x128 on v5e) and keeps
    # the per-step (TN, 1024) f32 intermediate ~1 MiB regardless of N.
    if N >= 256:
        TN = 256
        pad = (-N) % TN
        if pad:
            # Duplicate point 0 to pad N to a multiple of TN; duplicates do not
            # change the max-pool result.
            x_bnc = jnp.concatenate(
                [x_bnc, jnp.broadcast_to(x_bnc[:, :1, :], (B, pad, Cin))], axis=1)
            N = N + pad
    else:
        TN = N  # whole-N block for small clouds

    apply_trans = trans is not None
    kernel = functools.partial(_backbone_kernel,
                               apply_trans=apply_trans, relu_last=relu_last)

    idx_w = lambda b, n: (0, 0)
    in_specs = [pl.BlockSpec((1, TN, Cin), lambda b, n: (b, n, 0))]
    operands = [x_bnc]
    if apply_trans:
        in_specs.append(pl.BlockSpec((1, Cin, Cin), lambda b, n: (b, 0, 0)))
        operands.append(trans)
    in_specs += [
        pl.BlockSpec((Cin, C1), idx_w), pl.BlockSpec((1, C1), idx_w),
        pl.BlockSpec((C1, C2), idx_w), pl.BlockSpec((1, C2), idx_w),
        pl.BlockSpec((C2, C3), idx_w), pl.BlockSpec((1, C3), idx_w),
    ]
    operands += [w1, b1, w2, b2, w3, b3]

    out3 = pl.pallas_call(
        kernel,
        out_shape=jax.ShapeDtypeStruct((B, 1, C3), jnp.float32),
        grid=(B, N // TN),
        in_specs=in_specs,
        out_specs=pl.BlockSpec((1, 1, C3), lambda b, n: (b, 0, 0)),
        scratch_shapes=[pltpu.VMEM((1, C3), jnp.float32)],
        compiler_params=pltpu.CompilerParams(
            dimension_semantics=("parallel", "arbitrary")),
    )(*operands)
    return out3.reshape(B, C3)


def dense3(g, fc_params, out_dim):
    """(B, 1024) -> (B, out_dim) 3-layer MLP; whole arrays in VMEM."""
    w1, b1, w2, b2, w3p, b3p = fc_params
    B, Cpad = g.shape[0], w3p.shape[1]
    vmem = pl.BlockSpec(memory_space=pltpu.MemorySpace.VMEM)
    out = pl.pallas_call(
        _dense3_kernel,
        out_shape=jax.ShapeDtypeStruct((B, Cpad), jnp.float32),
        in_specs=[vmem] * 7,
        out_specs=vmem,
    )(g, w1, b1, w2, b2, w3p, b3p)
    return out[:, :out_dim]


# ---------------------------------------------------------------------------
# Parameter construction (deterministic, eval-mode BN folded in)
# ---------------------------------------------------------------------------
def fold_bn(w, b, gamma, beta, mean, var, eps=1e-5):
    scale = gamma / jnp.sqrt(var + eps)
    return w * scale[None, :], (b - mean) * scale + beta


_LANE = 128


def _pad_lanes(w, b):
    """Zero-pad the output dim of a final dense layer to 128 lanes."""
    pad = _LANE - w.shape[1]
    return jnp.pad(w, ((0, 0), (0, pad))), jnp.pad(b, ((0, 0), (0, pad)))


def init_params(key):
    keys = iter(jax.random.split(key, 64))
    nk = lambda: next(keys)

    def lin(cin, cout):
        w = 0.1 * jax.random.normal(nk(), (cin, cout), jnp.float32)
        b = 0.1 * jax.random.normal(nk(), (cout,), jnp.float32)
        return w, b

    def bn(c):
        gamma = 1.0 + 0.1 * jax.random.normal(nk(), (c,), jnp.float32)
        beta = 0.1 * jax.random.normal(nk(), (c,), jnp.float32)
        return gamma, beta, jnp.zeros((c,), jnp.float32), jnp.ones((c,), jnp.float32)

    def lin_bn(cin, cout):
        w, b = fold_bn(*lin(cin, cout), *bn(cout))
        # bf16 weights (MXU throughput); f32 bias added after f32 accumulation.
        return w.astype(jnp.bfloat16), b.reshape(1, cout)

    # ----- STN3d -----
    stn_conv = (*lin_bn(3, 64), *lin_bn(64, 128), *lin_bn(128, 1024))
    sw1, sb1 = lin_bn(1024, 512)
    sw2, sb2 = lin_bn(512, 256)
    sw3, sb3 = lin(256, 9)
    sb3 = (sb3 + jnp.eye(3, dtype=jnp.float32).reshape(-1)).reshape(1, 9)  # + iden
    sw3p, sb3p = _pad_lanes(sw3, sb3)
    stn_fc = (sw1, sb1, sw2, sb2, sw3p.astype(jnp.bfloat16), sb3p)

    # ----- PointNetfeat backbone -----
    feat_conv = (*lin_bn(3, 64), *lin_bn(64, 128), *lin_bn(128, 1024))

    # ----- PointNetPlane head (fc3 & fc4 fused along output channels) -----
    hw1, hb1 = lin_bn(1024, 512)
    hw2, hb2 = lin_bn(512, 256)
    w3, b3 = lin(256, 3)
    w4, b4 = lin(256, 3)
    hw34 = jnp.concatenate([w3, w4], axis=1)                 # (256, 6)
    hb34 = jnp.concatenate([b3, b4], axis=0).reshape(1, 6)
    hw34p, hb34p = _pad_lanes(hw34, hb34)
    head_fc = (hw1, hb1, hw2, hb2, hw34p.astype(jnp.bfloat16), hb34p)

    return dict(stn_conv=stn_conv, stn_fc=stn_fc,
                feat_conv=feat_conv, head_fc=head_fc)


# ---------------------------------------------------------------------------
# Full forward pass
# ---------------------------------------------------------------------------
def pointnet_plane_forward(x_bcn, params):
    """x_bcn: (B, 3, N) float32 (PyTorch NCW).  Returns (normal, point)."""
    B, _, N = x_bcn.shape
    # Conv1d(kernel=1) is a per-point matmul over channels: transpose once to
    # (B, N, 3) and cast activations to bf16 (f32 accumulation in-kernel).
    x_bnc = jnp.transpose(x_bcn, (0, 2, 1)).astype(jnp.bfloat16)

    # STN3d: no input transform (skip the identity bmm), relu after bn3.
    g_stn = backbone(x_bnc, None, params["stn_conv"], relu_last=True)   # (B,1024)
    trans = dense3(g_stn, params["stn_fc"], 9).reshape(B, 3, 3)         # (B,3,3)

    # PointNetfeat: 3x3 transform folded into conv1's weight inside the kernel,
    # shared-MLP (no relu after bn3) + max-pool -> global feature.
    g = backbone(x_bnc, trans.astype(jnp.bfloat16), params["feat_conv"],
                 relu_last=False)                                       # (B,1024)

    # PointNetPlane head: fc1+bn1+relu, (dropout=id)+fc2+bn2+relu, fc3 | fc4.
    out = dense3(g, params["head_fc"], 6)                               # (B, 6)
    normal, point = out[:, :3], out[:, 3:]
    return normal, point


# ---------------------------------------------------------------------------
if __name__ == "__main__":
    key = jax.random.PRNGKey(0)
    pkey, xkey = jax.random.split(key)
    params = init_params(pkey)

    B, N = 2, 512
    x = jax.random.normal(xkey, (B, 3, N), jnp.float32)   # PyTorch NCW input

    fwd = jax.jit(lambda xx: pointnet_plane_forward(xx, params))
    normal, point = fwd(x)
    jax.block_until_ready((normal, point))

    assert normal.shape == (B, 3) and point.shape == (B, 3)
    assert bool(jnp.all(jnp.isfinite(normal))) and bool(jnp.all(jnp.isfinite(point)))
    print("KERNEL_OK")
</pallas_src>

<mosaic_0001>
module attributes {stable_mosaic.version = 11 : i64} {
  func.func @_backbone_kernel(%arg0: i32, %arg1: i32, %arg2: memref<1x256x3xbf16, #tpu.memory_space<vmem>>, %arg3: memref<3x64xbf16, #tpu.memory_space<vmem>>, %arg4: memref<1x64xf32, #tpu.memory_space<vmem>>, %arg5: memref<64x128xbf16, #tpu.memory_space<vmem>>, %arg6: memref<1x128xf32, #tpu.memory_space<vmem>>, %arg7: memref<128x1024xbf16, #tpu.memory_space<vmem>>, %arg8: memref<1x1024xf32, #tpu.memory_space<vmem>>, %arg9: memref<1x1x1024xf32, #tpu.memory_space<vmem>>, %arg10: memref<1x1024xf32, #tpu.memory_space<vmem>>) attributes {dimension_semantics = [#tpu.dimension_semantics<parallel>, #tpu.dimension_semantics<arbitrary>], iteration_bounds = array<i64: 2, 2>, scalar_prefetch = 0 : i64, scratch_operands = 1 : i64, tpu.core_type = #tpu.core_type<tc>, window_params = [{transform_indices = @transform_0, window_bounds = array<i64: 1, 256, 3>}, {pipeline_mode = #tpu.pipeline_mode<synchronous>, transform_indices = @transform_1, window_bounds = array<i64: 3, 64>}, {pipeline_mode = #tpu.pipeline_mode<synchronous>, transform_indices = @transform_2, window_bounds = array<i64: 1, 64>}, {pipeline_mode = #tpu.pipeline_mode<synchronous>, transform_indices = @transform_3, window_bounds = array<i64: 64, 128>}, {pipeline_mode = #tpu.pipeline_mode<synchronous>, transform_indices = @transform_4, window_bounds = array<i64: 1, 128>}, {pipeline_mode = #tpu.pipeline_mode<synchronous>, transform_indices = @transform_5, window_bounds = array<i64: 128, 1024>}, {pipeline_mode = #tpu.pipeline_mode<synchronous>, transform_indices = @transform_6, window_bounds = array<i64: 1, 1024>}, {transform_indices = @transform_7, window_bounds = array<i64: 1, 1, 1024>}]} {
    %c0_i32 = arith.constant 0 : i32
    %0 = arith.cmpi eq, %arg1, %c0_i32 : i32
    %1 = arith.extui %0 : i1 to i32
    %c0_i32_0 = arith.constant 0 : i32
    %2 = arith.cmpi ne, %1, %c0_i32_0 : i32
    scf.if %2 {
      %cst_26 = arith.constant 0xFF800000 : f32
      %36 = vector.broadcast %cst_26 : f32 to vector<1x1024xf32>
      %c0_27 = arith.constant 0 : index
      %c0_28 = arith.constant 0 : index
      %37 = vector.load %arg10[%c0_27, %c0_28] : memref<1x1024xf32, #tpu.memory_space<vmem>>, vector<1x1024xf32>
      tpu.vector_store %arg10[%c0_27, %c0_28], %36 {strides = array<i32>} : memref<1x1024xf32, #tpu.memory_space<vmem>>, vector<1x1024xf32>,
    } else {
    }
    %c0 = arith.constant 0 : index
    %c0_1 = arith.constant 0 : index
    %3 = vector.load %arg3[%c0, %c0_1] : memref<3x64xbf16, #tpu.memory_space<vmem>>, vector<3x64xbf16>
    %c0_2 = arith.constant 0 : index
    %c0_3 = arith.constant 0 : index
    %c0_4 = arith.constant 0 : index
    %4 = vector.load %arg2[%c0_2, %c0_3, %c0_4] : memref<1x256x3xbf16, #tpu.memory_space<vmem>>, vector<1x256x3xbf16>
    %5 = vector.shape_cast %4 : vector<1x256x3xbf16> to vector<256x3xbf16>
    %cst = arith.constant dense<0.000000e+00> : vector<256x64xf32>
    %6 = tpu.matmul %5, %3, %cst {dimension_numbers = #tpu.dot_dimension_numbers<[1], [0], [0], [1], [0, 0, 1, 1], [], []>} : vector<256x3xbf16>, vector<3x64xbf16>, vector<256x64xf32> -> vector<256x64xf32>
    %c0_5 = arith.constant 0 : index
    %c0_6 = arith.constant 0 : index
    %7 = vector.load %arg4[%c0_5, %c0_6] : memref<1x64xf32, #tpu.memory_space<vmem>>, vector<1x64xf32>
    %8 = vector.broadcast %7 : vector<1x64xf32> to vector<256x64xf32>
    %9 = arith.addf %6, %8 : vector<256x64xf32>
    %cst_7 = arith.constant 0.000000e+00 : f32
    %10 = vector.broadcast %cst_7 : f32 to vector<256x64xf32>
    %11 = arith.maximumf %9, %10 : vector<256x64xf32>
    %12 = arith.truncf %11 : vector<256x64xf32> to vector<256x64xbf16>
    %c0_8 = arith.constant 0 : index
    %c0_9 = arith.constant 0 : index
    %13 = vector.load %arg5[%c0_8, %c0_9] : memref<64x128xbf16, #tpu.memory_space<vmem>>, vector<64x128xbf16>
    %cst_10 = arith.constant dense<0.000000e+00> : vector<256x128xf32>
    %14 = tpu.matmul %12, %13, %cst_10 {dimension_numbers = #tpu.dot_dimension_numbers<[1], [0], [0], [1], [0, 0, 1, 1], [], []>} : vector<256x64xbf16>, vector<64x128xbf16>, vector<256x128xf32> -> vector<256x128xf32>
    %c0_11 = arith.constant 0 : index
    %c0_12 = arith.constant 0 : index
    %15 = vector.load %arg6[%c0_11, %c0_12] : memref<1x128xf32, #tpu.memory_space<vmem>>, vector<1x128xf32>
    %16 = vector.broadcast %15 : vector<1x128xf32> to vector<256x128xf32>
    %17 = arith.addf %14, %16 : vector<256x128xf32>
    %cst_13 = arith.constant 0.000000e+00 : f32
    %18 = vector.broadcast %cst_13 : f32 to vector<256x128xf32>
    %19 = arith.maximumf %17, %18 : vector<256x128xf32>
    %20 = arith.truncf %19 : vector<256x128xf32> to vector<256x128xbf16>
    %c0_14 = arith.constant 0 : index
    %c0_15 = arith.constant 0 : index
    %21 = vector.load %arg7[%c0_14, %c0_15] : memref<128x1024xbf16, #tpu.memory_space<vmem>>, vector<128x1024xbf16>
    %cst_16 = arith.constant dense<0.000000e+00> : vector<256x1024xf32>
    %22 = tpu.matmul %20, %21, %cst_16 {dimension_numbers = #tpu.dot_dimension_numbers<[1], [0], [0], [1], [0, 0, 1, 1], [], []>} : vector<256x128xbf16>, vector<128x1024xbf16>, vector<256x1024xf32> -> vector<256x1024xf32>
    %c0_17 = arith.constant 0 : index
    %c0_18 = arith.constant 0 : index
    %23 = vector.load %arg8[%c0_17, %c0_18] : memref<1x1024xf32, #tpu.memory_space<vmem>>, vector<1x1024xf32>
    %24 = vector.broadcast %23 : vector<1x1024xf32> to vector<256x1024xf32>
    %25 = arith.addf %22, %24 : vector<256x1024xf32>
    %cst_19 = arith.constant 0.000000e+00 : f32
    %26 = vector.broadcast %cst_19 : f32 to vector<256x1024xf32>
    %27 = arith.maximumf %25, %26 : vector<256x1024xf32>
    %c0_20 = arith.constant 0 : index
    %c0_21 = arith.constant 0 : index
    %28 = vector.load %arg10[%c0_20, %c0_21] : memref<1x1024xf32, #tpu.memory_space<vmem>>, vector<1x1024xf32>
    %cst_22 = arith.constant dense<0xFF800000> : vector<1024xf32>
    %29 = vector.multi_reduction <maximumf>, %27, %cst_22 [0] : vector<256x1024xf32> to vector<1024xf32>
    %30 = vector.shape_cast %29 : vector<1024xf32> to vector<1x1024xf32>
    %31 = arith.maximumf %28, %30 : vector<1x1024xf32>
    %c0_23 = arith.constant 0 : index
    %c0_24 = arith.constant 0 : index
    %32 = vector.load %arg10[%c0_23, %c0_24] : memref<1x1024xf32, #tpu.memory_space<vmem>>, vector<1x1024xf32>
    tpu.vector_store %arg10[%c0_23, %c0_24], %31 {strides = array<i32>} : memref<1x1024xf32, #tpu.memory_space<vmem>>, vector<1x1024xf32>,
    %c1_i32 = arith.constant 1 : i32
    %33 = arith.cmpi eq, %arg1, %c1_i32 : i32
    %34 = arith.extui %33 : i1 to i32
    %c0_i32_25 = arith.constant 0 : i32
    %35 = arith.cmpi ne, %34, %c0_i32_25 : i32
    scf.if %35 {
      %c0_26 = arith.constant 0 : index
      %c0_27 = arith.constant 0 : index
      %36 = vector.load %arg10[%c0_26, %c0_27] : memref<1x1024xf32, #tpu.memory_space<vmem>>, vector<1x1024xf32>
      %c0_28 = arith.constant 0 : index
      %c0_29 = arith.constant 0 : index
      %c0_30 = arith.constant 0 : index
      %37 = vector.load %arg9[%c0_28, %c0_29, %c0_30] : memref<1x1x1024xf32, #tpu.memory_space<vmem>>, vector<1x1x1024xf32>
      %38 = vector.shape_cast %37 : vector<1x1x1024xf32> to vector<1x1024xf32>
      %39 = vector.shape_cast %36 : vector<1x1024xf32> to vector<1x1x1024xf32>
      tpu.vector_store %arg9[%c0_28, %c0_29, %c0_30], %39 {strides = array<i32>} : memref<1x1x1024xf32, #tpu.memory_space<vmem>>, vector<1x1x1024xf32>,
    } else {
    }
    return
  }
  func.func @transform_0(%arg0: i32, %arg1: i32) -> (i32, i32, i32) {
    %c0_i32 = arith.constant 0 : i32
    %c0_i32_0 = arith.constant 0 : i32
    return %arg0, %arg1, %c0_i32 : i32, i32, i32
  }
  func.func @transform_1(%arg0: i32, %arg1: i32) -> (i32, i32) {
    %c0_i32 = arith.constant 0 : i32
    %c0_i32_0 = arith.constant 0 : i32
    %c0_i32_1 = arith.constant 0 : i32
    return %c0_i32, %c0_i32_0 : i32, i32
  }
  func.func @transform_2(%arg0: i32, %arg1: i32) -> (i32, i32) {
    %c0_i32 = arith.constant 0 : i32
    %c0_i32_0 = arith.constant 0 : i32
    %c0_i32_1 = arith.constant 0 : i32
    return %c0_i32, %c0_i32_0 : i32, i32
  }
  func.func @transform_3(%arg0: i32, %arg1: i32) -> (i32, i32) {
    %c0_i32 = arith.constant 0 : i32
    %c0_i32_0 = arith.constant 0 : i32
    %c0_i32_1 = arith.constant 0 : i32
    return %c0_i32, %c0_i32_0 : i32, i32
  }
  func.func @transform_4(%arg0: i32, %arg1: i32) -> (i32, i32) {
    %c0_i32 = arith.constant 0 : i32
    %c0_i32_0 = arith.constant 0 : i32
    %c0_i32_1 = arith.constant 0 : i32
    return %c0_i32, %c0_i32_0 : i32, i32
  }
  func.func @transform_5(%arg0: i32, %arg1: i32) -> (i32, i32) {
    %c0_i32 = arith.constant 0 : i32
    %c0_i32_0 = arith.constant 0 : i32
    %c0_i32_1 = arith.constant 0 : i32
    return %c0_i32, %c0_i32_0 : i32, i32
  }
  func.func @transform_6(%arg0: i32, %arg1: i32) -> (i32, i32) {
    %c0_i32 = arith.constant 0 : i32
    %c0_i32_0 = arith.constant 0 : i32
    %c0_i32_1 = arith.constant 0 : i32
    return %c0_i32, %c0_i32_0 : i32, i32
  }
  func.func @transform_7(%arg0: i32, %arg1: i32) -> (i32, i32, i32) {
    %c0_i32 = arith.constant 0 : i32
    %c0_i32_0 = arith.constant 0 : i32
    %c0_i32_1 = arith.constant 0 : i32
    return %arg0, %c0_i32, %c0_i32_0 : i32, i32, i32
  }
}

module attributes {stable_mosaic.version = 11 : i64} {
  func.func @_dense3_kernel(%arg0: memref<2x1024xf32, #tpu.memory_space<vmem>>, %arg1: memref<1024x512xbf16, #tpu.memory_space<vmem>>, %arg2: memref<1x512xf32, #tpu.memory_space<vmem>>, %arg3: memref<512x256xbf16, #tpu.memory_space<vmem>>, %arg4: memref<1x256xf32, #tpu.memory_space<vmem>>, %arg5: memref<256x128xbf16, #tpu.memory_space<vmem>>, %arg6: memref<1x128xf32, #tpu.memory_space<vmem>>, %arg7: memref<2x128xf32, #tpu.memory_space<vmem>>) attributes {dimension_semantics = [], scalar_prefetch = 0 : i64, scratch_operands = 0 : i64, tpu.core_type = #tpu.core_type<tc>} {
    %c0 = arith.constant 0 : index
    %c0_0 = arith.constant 0 : index
    %0 = vector.load %arg0[%c0, %c0_0] : memref<2x1024xf32, #tpu.memory_space<vmem>>, vector<2x1024xf32>
    %1 = arith.truncf %0 : vector<2x1024xf32> to vector<2x1024xbf16>
    %c0_1 = arith.constant 0 : index
    %c0_2 = arith.constant 0 : index
    %2 = vector.load %arg1[%c0_1, %c0_2] : memref<1024x512xbf16, #tpu.memory_space<vmem>>, vector<1024x512xbf16>
    %cst = arith.constant dense<0.000000e+00> : vector<2x512xf32>
    %3 = tpu.matmul %1, %2, %cst {dimension_numbers = #tpu.dot_dimension_numbers<[1], [0], [0], [1], [0, 0, 1, 1], [], []>} : vector<2x1024xbf16>, vector<1024x512xbf16>, vector<2x512xf32> -> vector<2x512xf32>
    %c0_3 = arith.constant 0 : index
    %c0_4 = arith.constant 0 : index
    %4 = vector.load %arg2[%c0_3, %c0_4] : memref<1x512xf32, #tpu.memory_space<vmem>>, vector<1x512xf32>
    %5 = vector.broadcast %4 : vector<1x512xf32> to vector<2x512xf32>
    %6 = arith.addf %3, %5 : vector<2x512xf32>
    %cst_5 = arith.constant 0.000000e+00 : f32
    %7 = vector.broadcast %cst_5 : f32 to vector<2x512xf32>
    %8 = arith.maximumf %6, %7 : vector<2x512xf32>
    %9 = arith.truncf %8 : vector<2x512xf32> to vector<2x512xbf16>
    %c0_6 = arith.constant 0 : index
    %c0_7 = arith.constant 0 : index
    %10 = vector.load %arg3[%c0_6, %c0_7] : memref<512x256xbf16, #tpu.memory_space<vmem>>, vector<512x256xbf16>
    %cst_8 = arith.constant dense<0.000000e+00> : vector<2x256xf32>
    %11 = tpu.matmul %9, %10, %cst_8 {dimension_numbers = #tpu.dot_dimension_numbers<[1], [0], [0], [1], [0, 0, 1, 1], [], []>} : vector<2x512xbf16>, vector<512x256xbf16>, vector<2x256xf32> -> vector<2x256xf32>
    %c0_9 = arith.constant 0 : index
    %c0_10 = arith.constant 0 : index
    %12 = vector.load %arg4[%c0_9, %c0_10] : memref<1x256xf32, #tpu.memory_space<vmem>>, vector<1x256xf32>
    %13 = vector.broadcast %12 : vector<1x256xf32> to vector<2x256xf32>
    %14 = arith.addf %11, %13 : vector<2x256xf32>
    %cst_11 = arith.constant 0.000000e+00 : f32
    %15 = vector.broadcast %cst_11 : f32 to vector<2x256xf32>
    %16 = arith.maximumf %14, %15 : vector<2x256xf32>
    %17 = arith.truncf %16 : vector<2x256xf32> to vector<2x256xbf16>
    %c0_12 = arith.constant 0 : index
    %c0_13 = arith.constant 0 : index
    %18 = vector.load %arg5[%c0_12, %c0_13] : memref<256x128xbf16, #tpu.memory_space<vmem>>, vector<256x128xbf16>
    %cst_14 = arith.constant dense<0.000000e+00> : vector<2x128xf32>
    %19 = tpu.matmul %17, %18, %cst_14 {dimension_numbers = #tpu.dot_dimension_numbers<[1], [0], [0], [1], [0, 0, 1, 1], [], []>} : vector<2x256xbf16>, vector<256x128xbf16>, vector<2x128xf32> -> vector<2x128xf32>
    %c0_15 = arith.constant 0 : index
    %c0_16 = arith.constant 0 : index
    %20 = vector.load %arg6[%c0_15, %c0_16] : memref<1x128xf32, #tpu.memory_space<vmem>>, vector<1x128xf32>
    %21 = vector.broadcast %20 : vector<1x128xf32> to vector<2x128xf32>
    %22 = arith.addf %19, %21 : vector<2x128xf32>
    %c0_17 = arith.constant 0 : index
    %c0_18 = arith.constant 0 : index
    %23 = vector.load %arg7[%c0_17, %c0_18] : memref<2x128xf32, #tpu.memory_space<vmem>>, vector<2x128xf32>
    tpu.vector_store %arg7[%c0_17, %c0_18], %22 {strides = array<i32>} : memref<2x128xf32, #tpu.memory_space<vmem>>, vector<2x128xf32>,
    return
  }
}

module attributes {stable_mosaic.version = 11 : i64} {
  func.func @_backbone_kernel(%arg0: i32, %arg1: i32, %arg2: memref<1x256x3xbf16, #tpu.memory_space<vmem>>, %arg3: memref<1x3x3xbf16, #tpu.memory_space<vmem>>, %arg4: memref<3x64xbf16, #tpu.memory_space<vmem>>, %arg5: memref<1x64xf32, #tpu.memory_space<vmem>>, %arg6: memref<64x128xbf16, #tpu.memory_space<vmem>>, %arg7: memref<1x128xf32, #tpu.memory_space<vmem>>, %arg8: memref<128x1024xbf16, #tpu.memory_space<vmem>>, %arg9: memref<1x1024xf32, #tpu.memory_space<vmem>>, %arg10: memref<1x1x1024xf32, #tpu.memory_space<vmem>>, %arg11: memref<1x1024xf32, #tpu.memory_space<vmem>>) attributes {dimension_semantics = [#tpu.dimension_semantics<parallel>, #tpu.dimension_semantics<arbitrary>], iteration_bounds = array<i64: 2, 2>, scalar_prefetch = 0 : i64, scratch_operands = 1 : i64, tpu.core_type = #tpu.core_type<tc>, window_params = [{transform_indices = @transform_0, window_bounds = array<i64: 1, 256, 3>}, {transform_indices = @transform_1, window_bounds = array<i64: 1, 3, 3>}, {pipeline_mode = #tpu.pipeline_mode<synchronous>, transform_indices = @transform_2, window_bounds = array<i64: 3, 64>}, {pipeline_mode = #tpu.pipeline_mode<synchronous>, transform_indices = @transform_3, window_bounds = array<i64: 1, 64>}, {pipeline_mode = #tpu.pipeline_mode<synchronous>, transform_indices = @transform_4, window_bounds = array<i64: 64, 128>}, {pipeline_mode = #tpu.pipeline_mode<synchronous>, transform_indices = @transform_5, window_bounds = array<i64: 1, 128>}, {pipeline_mode = #tpu.pipeline_mode<synchronous>, transform_indices = @transform_6, window_bounds = array<i64: 128, 1024>}, {pipeline_mode = #tpu.pipeline_mode<synchronous>, transform_indices = @transform_7, window_bounds = array<i64: 1, 1024>}, {transform_indices = @transform_8, window_bounds = array<i64: 1, 1, 1024>}]} {
    %c0_i32 = arith.constant 0 : i32
    %0 = arith.cmpi eq, %arg1, %c0_i32 : i32
    %1 = arith.extui %0 : i1 to i32
    %c0_i32_0 = arith.constant 0 : i32
    %2 = arith.cmpi ne, %1, %c0_i32_0 : i32
    scf.if %2 {
      %cst_29 = arith.constant 0xFF800000 : f32
      %38 = vector.broadcast %cst_29 : f32 to vector<1x1024xf32>
      %c0_30 = arith.constant 0 : index
      %c0_31 = arith.constant 0 : index
      %39 = vector.load %arg11[%c0_30, %c0_31] : memref<1x1024xf32, #tpu.memory_space<vmem>>, vector<1x1024xf32>
      tpu.vector_store %arg11[%c0_30, %c0_31], %38 {strides = array<i32>} : memref<1x1024xf32, #tpu.memory_space<vmem>>, vector<1x1024xf32>,
    } else {
    }
    %c0 = arith.constant 0 : index
    %c0_1 = arith.constant 0 : index
    %3 = vector.load %arg4[%c0, %c0_1] : memref<3x64xbf16, #tpu.memory_space<vmem>>, vector<3x64xbf16>
    %c0_2 = arith.constant 0 : index
    %c0_3 = arith.constant 0 : index
    %c0_4 = arith.constant 0 : index
    %4 = vector.load %arg3[%c0_2, %c0_3, %c0_4] : memref<1x3x3xbf16, #tpu.memory_space<vmem>>, vector<1x3x3xbf16>
    %5 = vector.shape_cast %4 : vector<1x3x3xbf16> to vector<3x3xbf16>
    %cst = arith.constant dense<0.000000e+00> : vector<3x64xf32>
    %6 = tpu.matmul %5, %3, %cst {dimension_numbers = #tpu.dot_dimension_numbers<[1], [0], [0], [1], [0, 0, 1, 1], [], []>} : vector<3x3xbf16>, vector<3x64xbf16>, vector<3x64xf32> -> vector<3x64xf32>
    %7 = arith.truncf %6 : vector<3x64xf32> to vector<3x64xbf16>
    %c0_5 = arith.constant 0 : index
    %c0_6 = arith.constant 0 : index
    %c0_7 = arith.constant 0 : index
    %8 = vector.load %arg2[%c0_5, %c0_6, %c0_7] : memref<1x256x3xbf16, #tpu.memory_space<vmem>>, vector<1x256x3xbf16>
    %9 = vector.shape_cast %8 : vector<1x256x3xbf16> to vector<256x3xbf16>
    %cst_8 = arith.constant dense<0.000000e+00> : vector<256x64xf32>
    %10 = tpu.matmul %9, %7, %cst_8 {dimension_numbers = #tpu.dot_dimension_numbers<[1], [0], [0], [1], [0, 0, 1, 1], [], []>} : vector<256x3xbf16>, vector<3x64xbf16>, vector<256x64xf32> -> vector<256x64xf32>
    %c0_9 = arith.constant 0 : index
    %c0_10 = arith.constant 0 : index
    %11 = vector.load %arg5[%c0_9, %c0_10] : memref<1x64xf32, #tpu.memory_space<vmem>>, vector<1x64xf32>
    %12 = vector.broadcast %11 : vector<1x64xf32> to vector<256x64xf32>
    %13 = arith.addf %10, %12 : vector<256x64xf32>
    %cst_11 = arith.constant 0.000000e+00 : f32
    %14 = vector.broadcast %cst_11 : f32 to vector<256x64xf32>
    %15 = arith.maximumf %13, %14 : vector<256x64xf32>
    %16 = arith.truncf %15 : vector<256x64xf32> to vector<256x64xbf16>
    %c0_12 = arith.constant 0 : index
    %c0_13 = arith.constant 0 : index
    %17 = vector.load %arg6[%c0_12, %c0_13] : memref<64x128xbf16, #tpu.memory_space<vmem>>, vector<64x128xbf16>
    %cst_14 = arith.constant dense<0.000000e+00> : vector<256x128xf32>
    %18 = tpu.matmul %16, %17, %cst_14 {dimension_numbers = #tpu.dot_dimension_numbers<[1], [0], [0], [1], [0, 0, 1, 1], [], []>} : vector<256x64xbf16>, vector<64x128xbf16>, vector<256x128xf32> -> vector<256x128xf32>
    %c0_15 = arith.constant 0 : index
    %c0_16 = arith.constant 0 : index
    %19 = vector.load %arg7[%c0_15, %c0_16] : memref<1x128xf32, #tpu.memory_space<vmem>>, vector<1x128xf32>
    %20 = vector.broadcast %19 : vector<1x128xf32> to vector<256x128xf32>
    %21 = arith.addf %18, %20 : vector<256x128xf32>
    %cst_17 = arith.constant 0.000000e+00 : f32
    %22 = vector.broadcast %cst_17 : f32 to vector<256x128xf32>
    %23 = arith.maximumf %21, %22 : vector<256x128xf32>
    %24 = arith.truncf %23 : vector<256x128xf32> to vector<256x128xbf16>
    %c0_18 = arith.constant 0 : index
    %c0_19 = arith.constant 0 : index
    %25 = vector.load %arg8[%c0_18, %c0_19] : memref<128x1024xbf16, #tpu.memory_space<vmem>>, vector<128x1024xbf16>
    %cst_20 = arith.constant dense<0.000000e+00> : vector<256x1024xf32>
    %26 = tpu.matmul %24, %25, %cst_20 {dimension_numbers = #tpu.dot_dimension_numbers<[1], [0], [0], [1], [0, 0, 1, 1], [], []>} : vector<256x128xbf16>, vector<128x1024xbf16>, vector<256x1024xf32> -> vector<256x1024xf32>
    %c0_21 = arith.constant 0 : index
    %c0_22 = arith.constant 0 : index
    %27 = vector.load %arg9[%c0_21, %c0_22] : memref<1x1024xf32, #tpu.memory_space<vmem>>, vector<1x1024xf32>
    %28 = vector.broadcast %27 : vector<1x1024xf32> to vector<256x1024xf32>
    %29 = arith.addf %26, %28 : vector<256x1024xf32>
    %c0_23 = arith.constant 0 : index
    %c0_24 = arith.constant 0 : index
    %30 = vector.load %arg11[%c0_23, %c0_24] : memref<1x1024xf32, #tpu.memory_space<vmem>>, vector<1x1024xf32>
    %cst_25 = arith.constant dense<0xFF800000> : vector<1024xf32>
    %31 = vector.multi_reduction <maximumf>, %29, %cst_25 [0] : vector<256x1024xf32> to vector<1024xf32>
    %32 = vector.shape_cast %31 : vector<1024xf32> to vector<1x1024xf32>
    %33 = arith.maximumf %30, %32 : vector<1x1024xf32>
    %c0_26 = arith.constant 0 : index
    %c0_27 = arith.constant 0 : index
    %34 = vector.load %arg11[%c0_26, %c0_27] : memref<1x1024xf32, #tpu.memory_space<vmem>>, vector<1x1024xf32>
    tpu.vector_store %arg11[%c0_26, %c0_27], %33 {strides = array<i32>} : memref<1x1024xf32, #tpu.memory_space<vmem>>, vector<1x1024xf32>,
    %c1_i32 = arith.constant 1 : i32
    %35 = arith.cmpi eq, %arg1, %c1_i32 : i32
    %36 = arith.extui %35 : i1 to i32
    %c0_i32_28 = arith.constant 0 : i32
    %37 = arith.cmpi ne, %36, %c0_i32_28 : i32
    scf.if %37 {
      %c0_29 = arith.constant 0 : index
      %c0_30 = arith.constant 0 : index
      %38 = vector.load %arg11[%c0_29, %c0_30] : memref<1x1024xf32, #tpu.memory_space<vmem>>, vector<1x1024xf32>
      %c0_31 = arith.constant 0 : index
      %c0_32 = arith.constant 0 : index
      %c0_33 = arith.constant 0 : index
      %39 = vector.load %arg10[%c0_31, %c0_32, %c0_33] : memref<1x1x1024xf32, #tpu.memory_space<vmem>>, vector<1x1x1024xf32>
      %40 = vector.shape_cast %39 : vector<1x1x1024xf32> to vector<1x1024xf32>
      %41 = vector.shape_cast %38 : vector<1x1024xf32> to vector<1x1x1024xf32>
      tpu.vector_store %arg10[%c0_31, %c0_32, %c0_33], %41 {strides = array<i32>} : memref<1x1x1024xf32, #tpu.memory_space<vmem>>, vector<1x1x1024xf32>,
    } else {
    }
    return
  }
  func.func @transform_0(%arg0: i32, %arg1: i32) -> (i32, i32, i32) {
    %c0_i32 = arith.constant 0 : i32
    %c0_i32_0 = arith.constant 0 : i32
    return %arg0, %arg1, %c0_i32 : i32, i32, i32
  }
  func.func @transform_1(%arg0: i32, %arg1: i32) -> (i32, i32, i32) {
    %c0_i32 = arith.constant 0 : i32
    %c0_i32_0 = arith.constant 0 : i32
    %c0_i32_1 = arith.constant 0 : i32
    return %arg0, %c0_i32, %c0_i32_0 : i32, i32, i32
  }
  func.func @transform_2(%arg0: i32, %arg1: i32) -> (i32, i32) {
    %c0_i32 = arith.constant 0 : i32
    %c0_i32_0 = arith.constant 0 : i32
    %c0_i32_1 = arith.constant 0 : i32
    return %c0_i32, %c0_i32_0 : i32, i32
  }
  func.func @transform_3(%arg0: i32, %arg1: i32) -> (i32, i32) {
    %c0_i32 = arith.constant 0 : i32
    %c0_i32_0 = arith.constant 0 : i32
    %c0_i32_1 = arith.constant 0 : i32
    return %c0_i32, %c0_i32_0 : i32, i32
  }
  func.func @transform_4(%arg0: i32, %arg1: i32) -> (i32, i32) {
    %c0_i32 = arith.constant 0 : i32
    %c0_i32_0 = arith.constant 0 : i32
    %c0_i32_1 = arith.constant 0 : i32
    return %c0_i32, %c0_i32_0 : i32, i32
  }
  func.func @transform_5(%arg0: i32, %arg1: i32) -> (i32, i32) {
    %c0_i32 = arith.constant 0 : i32
    %c0_i32_0 = arith.constant 0 : i32
    %c0_i32_1 = arith.constant 0 : i32
    return %c0_i32, %c0_i32_0 : i32, i32
  }
  func.func @transform_6(%arg0: i32, %arg1: i32) -> (i32, i32) {
    %c0_i32 = arith.constant 0 : i32
    %c0_i32_0 = arith.constant 0 : i32
    %c0_i32_1 = arith.constant 0 : i32
    return %c0_i32, %c0_i32_0 : i32, i32
  }
  func.func @transform_7(%arg0: i32, %arg1: i32) -> (i32, i32) {
    %c0_i32 = arith.constant 0 : i32
    %c0_i32_0 = arith.constant 0 : i32
    %c0_i32_1 = arith.constant 0 : i32
    return %c0_i32, %c0_i32_0 : i32, i32
  }
  func.func @transform_8(%arg0: i32, %arg1: i32) -> (i32, i32, i32) {
    %c0_i32 = arith.constant 0 : i32
    %c0_i32_0 = arith.constant 0 : i32
    %c0_i32_1 = arith.constant 0 : i32
    return %arg0, %c0_i32, %c0_i32_0 : i32, i32, i32
  }
}

</mosaic_0001>

<bundles_post_ra>
// kernel: _lambda_.4
= control target key start
LH: loop header
LB: loop body
LE: loop exit
PB: predicated region body
PF: predicated region fallthrough
CT: control target
= control target key end

     0   :  { %12 = vsyncpa [#allocation4], 0  ;;  %s3343_s24 = smov 0   ;;  %s3345_s25 = smov 0   ;;  %s4247_s0 = inlined_call_operand.vmem [shape: bf16[2,512,3], index: 0, kind: input, shape index: {}]   ;;  %s4248_s1 = inlined_call_operand.vmem [shape: bf16[3,64], index: 1, kind: input, shape index: {}]   ;;  %s4249_s2 = inlined_call_operand.vmem [shape: f32[1,64], index: 2, kind: input, shape index: {}]   ;;  %s4250_s3 = inlined_call_operand.vmem [shape: bf16[64,128], index: 3, kind: input, shape index: {}]   ;;  %s4251_s4 = inlined_call_operand.vmem [shape: f32[1,128], index: 4, kind: input, shape index: {}]   ;;  %s4252_s5 = inlined_call_operand.vmem [shape: bf16[128,1024], index: 5, kind: input, shape index: {}]   ;;  %s4253_s6 = inlined_call_operand.hbm [shape: f32[1,1024], index: 6, kind: input, shape index: {}]   ;;  %s4254_s7 = inlined_call_operand.vmem [shape: f32[2,1,1024], index: 7, kind: output, shape index: {}]  }
   0x1   :  { %s3347_s26 = smov 0   ;;  %s3349_s27 = smov 0  }
   0x2   :  { %s3351_s28 = smov 0  }
   0x3 LB: > { %s2906_s29 = sadd.s32 4294967295, %s3296_s28   ;;  %s27_s30 = sadd.s32 1, %s3288_s26  ;;  %s3296_s28 = sphi %s3351_s28, %s18_s28   ;;  %s3292_s27 = sphi %s3349_s27, %s4266_s27   ;;  %s3288_s26 = sphi %s3347_s26, %s4265_s26   ;;  %s3284_s25 = sphi %s3345_s25, %s4264_s25   ;;  %s3280_s24 = sphi %s3343_s24, %s4263_s24  }
   0x4   : > { %p28_p0 = scmp.ge.s32.totalorder %s27_s30, 2  ;;  %s30_s8 = sadd.s32 1, %s3292_s27 }
   0x5   : > { %p2908_p1 = scmp.ge.s32.totalorder %s3296_s28, 1  ;;  %p215_p2 = scmp.lt.s32.totalorder %s3296_s28, 5 }
   0x6   : > { %s4268_s30 = smov (%p28_p0, %s27_s30), 0  ;;  %s4270_s8 = smov (!%p28_p0, %s30_s8), %s3292_s27 }
   0x7   : > { %p3376_p3 = pnand %p2908_p1, %p215_p2  ;;  %p32_p4 = scmp.ge.s32.totalorder %s4270_s8, 2 }
   0x8   : > { %p3380_p5 = scmp.eq.s32.totalorder %s2906_s29, 0  ;;  %s3298_s11 = smov [#allocation3]  }
   0x9   : > { %s4258_s9 = scalar_select %p3376_p3, 1, 0 }
   0xa   : > { %s4259_s10 = scalar_select %p3380_p5, 1, 0 }
   0xb   : > { %p3154_p6 = pneg %p3376_p3  ;;  %s4272_s8 = smov (%p32_p4, %s4270_s8), 0 }
   0xc   : > { %s243_s12 = sshll.u32 %s3298_s11, 4  ;;  %s3226_s16 = scalar_lea.hbm %s4253_s6, 128  ;;  %s244_s12 = int_to_ptr.vmem [resolvable:$true] %s243_s12 }
   0xd   : > { %p3390_p7 = pnand %p3380_p5, %p3154_p6  ;;  %p3227_p8 = scmp.ne.s32.totalorder %s4253_s6, %s3226_s16 }
   0xe   : > { %p3233_p12 = scmp.lt.u32.totalorder %s3226_s16, %s4253_s6 }
   0xf   : > { %p3228_p9 = pneg %p3390_p7 }
  0x11   : > { %p3229_p10 = pnand %p3228_p9, %p3227_p8 }
  0x13   : > { %p3230_p11 = pneg %p3229_p10 }
  0x15   : > { %p3235_p13 = pnand %p3233_p12, %p3230_p11 }
  0x17   : > { %3238 = shalt.err (!%p3235_p13)
}
  0x18   : > { %s3239_s21 = scalar_lea.vmem %s244_s12, 128  ;;  %p3247_p4 = scmp.lt.s32.totalorder %s244_s12, %s244_s12 }
  0x19   : > { %p3240_p0 = scmp.ne.s32.totalorder %s244_s12, %s3239_s21  ;;  %p3248_p6 = scmp.lt.s32.totalorder %s3239_s21, %s3239_s21 }
  0x1b   : > { %p3242_p1 = pnand %p3240_p0, %p3228_p9  ;;  %p3249_p5 = por %p3248_p6, %p3247_p4 }
  0x1d   : > { %p3243_p2 = pneg %p3242_p1 }
  0x1f   : > { %p3250_p3 = pnand %p3249_p5, %p3243_p2 }
  0x21   : > { %3253 = shalt.err (!%p3250_p3)
}
  0x22   : > { %3157 = dma.hbm_to_vmem [thread:$0]  (!%p3390_p7), %s4253_s6, 128, %s244_s12, [#allocation4]  }
  0x23   : > { %p4261_p8 = scmp.ne.s32.totalorder %s4258_s9, 0 }
  0x24   : > { %p4262_p10 = scmp.ne.s32.totalorder (!%p4261_p8), %s4259_s10, 0 }
  0x25   : > { %269 = sbr.rel (%p4261_p8) target bundleno = 1012 (0x3f4), region = 48 }
  0x2c   : > { %3275 = dma.done.wait (%p4262_p10), [#allocation4], 128  }
  0x2d   : > { %3277 = vsyncadd (%p4262_p10), [#allocation4], 4294967168  ;;  %s2913_s29 = sshll.u32 %s3280_s24, 5  ;;  %p305_p3 = scmp.lt.s32.totalorder %s3284_s25, 1 }
  0x2e   : > { %p307_p5 = scmp.lt.s32.totalorder %s2913_s29, 63  ;;  %p2917_p7 = scmp.ne.s32.totalorder %s3280_s24, 0 }
  0x2f   : > { %s4274_s25 = smov (!%p305_p3, %s3284_s25), 1  ;;  %v3299_v0 = vmov (!%p2917_p7), -inf  }
  0x30   : > { %s4276_s29 = smov (!%p307_p5, %s2913_s29), 63  ;;  %s2914_s11 = sshll.u32 %s4274_s25, 6  ;;  %323 = vst [vmem:[#allocation2] sm:$0xff] (!%p2917_p7), %v3299_v0 }
  0x31   : > { %s2916_s13 = sshll.u32 %s4274_s25, 3  ;;  %s310_s12 = sadd.s32 %s2914_s11, %s4276_s29 }
  0x32   : > { %s3422_s15 = scalar_lea.vmem %s4254_s7, %s2916_s13  ;;  %s2915_s16 = sshll.u32 %s310_s12, 2 }
  0x33   : > { %s3427_s18 = scalar_lea.vmem %s4247_s0, %s2915_s16  ;;  %322 = sbr.rel (%p2917_p7) target bundleno = 58 (0x3a), region = 56 }
  0x3a PF: > { %v324_v1 = vld [vmem:[%s4248_s1] sm:$0x3]  ;;  %vm493_vm0 = vcmask 1040384   ;;  %vm494_vm1 = vcmask 1041408   ;;  %v3300_v3 = vmov 65535   ;;  %vm444_vm2 = vcmask 23552  }
  0x3b   : > { %v3205_v2 = vld [vmem:[%s3427_s18] sm:$0xff]   ;;  %v495_v4 = vsel %vm493_vm0, 4294967295, %v3300_v3  ;;  %v3206_v7 = vld [vmem:[%s3427_s18 + $0x8] sm:$0xff]   ;;  %v3207_v8 = vld [vmem:[%s3427_s18 + $0x10] sm:$0xff]   ;;  %vm748_vm3 = vcmask 523264   ;;  %p3036_p9 = scmp.ne.s32.totalorder %s3280_s24, 1 }
  0x3c   : > { %v496_v5 = vsel %vm494_vm1, %v495_v4, 0  ;;  %3078 = vmatprep.mubr.msk.bf16.mxu0 %vm444_vm2, %v3205_v2  ;;  %v3208_v9 = vld [vmem:[%s3427_s18 + $0x18] sm:$0xff]   ;;  %v3209_v10 = vld [vmem:[%s3427_s18 + $0x20] sm:$0xff]   ;;  %v3222_v12 = vld [vmem:[%s4250_s3 + $0x8] sm:$0xff]  }
  0x3d   : > { %v498_v6 = vand.u32 %v496_v5, %v324_v1  ;;  %v3221_v11 = vld [vmem:[%s4250_s3] sm:$0xff]   ;;  %v3210_v13 = vld [vmem:[%s3427_s18 + $0x28] sm:$0xff]   ;;  %v3211_v14 = vld [vmem:[%s3427_s18 + $0x30] sm:$0xff]  }
  0x3e   : > { %3110 = vmatprep.subr.bf16.mxu1 %v3221_v11  ;;  %v3212_v15 = vld [vmem:[%s3427_s18 + $0x38] sm:$0xff]   ;;  %v3213_v16 = vld [vmem:[%s3427_s18 + $0x40] sm:$0xff]   ;;  %v3214_v17 = vld [vmem:[%s3427_s18 + $0x48] sm:$0xff]  }
  0x3f   : > { %3076 = vmatprep.subr.bf16.mxu0 %v498_v6  ;;  %3111 = vmatpush3.bf16.msra.mxu1 %v3221_v11  ;;  %v3215_v18 = vld [vmem:[%s3427_s18 + $0x50] sm:$0xff]   ;;  %v3216_v19 = vld [vmem:[%s3427_s18 + $0x58] sm:$0xff]   ;;  %v3217_v20 = vld [vmem:[%s3427_s18 + $0x60] sm:$0xff]  }
  0x40   : > { %3077 = vmatpush3.bf16.msra.mxu0 %v498_v6  ;;  %3112 = vmatprep.subr.bf16.mxu1 %v3222_v12  ;;  %v3218_v21 = vld [vmem:[%s3427_s18 + $0x68] sm:$0xff]   ;;  %v3219_v22 = vld [vmem:[%s3427_s18 + $0x70] sm:$0xff]   ;;  %v3220_v23 = vld [vmem:[%s3427_s18 + $0x78] sm:$0xff]  }
  0x41   : > { %v3223_v24 = vld [vmem:[%s4250_s3 + $0x10] sm:$0xff]   ;;  %v3224_v25 = vld [vmem:[%s4250_s3 + $0x18] sm:$0xff]   ;;  %v1006_v26 = vld [vmem:[%s4252_s5] sm:$0xff] }
  0x42   : > { %v1010_v27 = vld [vmem:[%s4252_s5 + $0x20] sm:$0xff]  ;;  %v3486_v28 = vld [vmem:[%s4252_s5 + $0x8] sm:$0xff] }
  0x43   : > { %3079 = vmatmul.mubr.msk.bf16.vlgmr.msra.gmra.mrb[0].mxu0 %vm444_vm2, %v3206_v7  ;;  %3113 = vmatpush3.bf16.msra.mxu1 %v3222_v12  ;;  %v2972_v29 = vcombine.low %v1006_v26, %v1010_v27  ;;  %v2973_v30 = vcombine.high %v1006_v26, %v1010_v27  ;;  %v3491_v31 = vld [vmem:[%s4252_s5 + $0x28] sm:$0xff]  ;;  %v1014_v32 = vld [vmem:[%s4252_s5 + $0x40] sm:$0xff] }
  0x44   : > { %3082 = vmatprep.mubr.msk.bf16.mxu0 %vm444_vm2, %v3207_v8  ;;  %3114 = vmatprep.subr.bf16.mxu1 %v3223_v24  ;;  %v1018_v33 = vld [vmem:[%s4252_s5 + $0x60] sm:$0xff]  ;;  %v2974_v34 = vcombine.low %v3486_v28, %v3491_v31  ;;  %v2975_v35 = vcombine.high %v3486_v28, %v3491_v31  ;;  %v1015_v7 = vld [vmem:[%s4252_s5 + $0x48] sm:$0xff] }
  0x45   : > { %v2981_v36 = vcombine.high %v1014_v32, %v1018_v33  ;;  %v1022_v37 = vld [vmem:[%s4252_s5 + $0x80] sm:$0xff]  ;;  %1432 = vmatprep.subr.bf16.mxu0 %v2973_v30  ;;  %v2980_v39 = vcombine.low %v1014_v32, %v1018_v33  ;;  %v1019_v8 = vld [vmem:[%s4252_s5 + $0x68] sm:$0xff] }
  0x46   : > { %v1026_v38 = vld [vmem:[%s4252_s5 + $0xa0] sm:$0xff]  ;;  %1433 = vmatpush1.bf16.msra.mxu0 %v2972_v29  ;;  %v1031_v29 = vld [vmem:[%s4252_s5 + $0xc8] sm:$0xff] }
  0x47   : > { %3115 = vmatpush3.bf16.msra.mxu1 %v3223_v24  ;;  %1434 = vmatprep.subr.bf16.mxu0 %v2981_v36  ;;  %v2989_v40 = vcombine.high %v1022_v37, %v1026_v38  ;;  %v1030_v41 = vld [vmem:[%s4252_s5 + $0xc0] sm:$0xff]  ;;  %v2988_v43 = vcombine.low %v1022_v37, %v1026_v38  ;;  %v2982_v24 = vcombine.low %v1015_v7, %v1019_v8  ;;  %v1035_v30 = vld [vmem:[%s4252_s5 + $0xe8] sm:$0xff] }
  0x48   : > { %3116 = vmatprep.subr.bf16.mxu1 %v3224_v25  ;;  %v1034_v42 = vld [vmem:[%s4252_s5 + $0xe0] sm:$0xff] }
  0x49   : > { %v2997_v44 = vcombine.high %v1030_v41, %v1034_v42  ;;  %v1038_v45 = vld [vmem:[%s4252_s5 + $0x100] sm:$0xff]  ;;  %v2996_v47 = vcombine.low %v1030_v41, %v1034_v42 }
  0x4a   : > { %1435 = vmatpush1.bf16.msra.mxu0 %v2980_v39  ;;  %v1042_v46 = vld [vmem:[%s4252_s5 + $0x120] sm:$0xff]  ;;  %v1039_v39 = vld [vmem:[%s4252_s5 + $0x108] sm:$0xff] }
  0x4b   : > { %3083 = vmatmul.mubr.msk.bf16.gmra.mrb[4].mxu0 %vm444_vm2, %v3208_v9  ;;  %3117 = vmatpush3.bf16.msra.mxu1 %v3224_v25  ;;  %v3005_v48 = vcombine.high %v1038_v45, %v1042_v46  ;;  %v1046_v49 = vld [vmem:[%s4252_s5 + $0x140] sm:$0xff]  ;;  %v3004_v51 = vcombine.low %v1038_v45, %v1042_v46  ;;  %v2998_v46 = vcombine.low %v1031_v29, %v1035_v30 }
  0x4c   : > { %3086 = vmatprep.mubr.msk.bf16.mxu0 %vm444_vm2, %v3209_v10  ;;  %1625 = vmatprep.subr.bf16.mxu1 %v2975_v35  ;;  %v1050_v50 = vld [vmem:[%s4252_s5 + $0x160] sm:$0xff] }
  0x4d   : > { %1436 = vmatprep.subr.bf16.mxu0 %v2989_v40  ;;  %v3013_v52 = vcombine.high %v1046_v49, %v1050_v50  ;;  %v1054_v53 = vld [vmem:[%s4252_s5 + $0x180] sm:$0xff]  ;;  %v3012_v55 = vcombine.low %v1046_v49, %v1050_v50  ;;  %v1043_v40 = vld [vmem:[%s4252_s5 + $0x128] sm:$0xff] }
  0x4e   : > { %1437 = vmatpush1.bf16.msra.mxu0 %v2988_v43  ;;  %v1058_v54 = vld [vmem:[%s4252_s5 + $0x1a0] sm:$0xff]  ;;  %v1047_v50 = vld [vmem:[%s4252_s5 + $0x148] sm:$0xff] }
  0x4f   : > { %1438 = vmatprep.subr.bf16.mxu0 %v2997_v44  ;;  %v3021_v56 = vcombine.high %v1054_v53, %v1058_v54  ;;  %v3020_v57 = vcombine.low %v1054_v53, %v1058_v54  ;;  %v3536_v58 = vld [vmem:[%s4249_s2] ss:$0 sm:$0xff] }
  0x52   : > { %1439 = vmatpush1.bf16.msra.mxu0 %v2996_v47 }
  0x53   : > { %3087 = vmatmul.mubr.msk.bf16.gmra.mrb[8].mxu0 %vm444_vm2, %v3210_v13  ;;  %1440 = vmatprep.subr.bf16.mxu0 %v3005_v48  ;;  %v3007_v48 = vcombine.high %v1039_v39, %v1043_v40 }
  0x54   : > { %3090 = vmatprep.mubr.msk.bf16.mxu0 %vm444_vm2, %v3211_v14  ;;  %v2983_v14 = vcombine.high %v1015_v7, %v1019_v8 }
  0x56   : > { %1441 = vmatpush1.bf16.msra.mxu0 %v3004_v51  ;;  %v1051_v51 = vld [vmem:[%s4252_s5 + $0x168] sm:$0xff] }
  0x57   : > { %1442 = vmatprep.subr.bf16.mxu0 %v3013_v52 }
  0x5a   : > { %1443 = vmatpush1.bf16.msra.mxu0 %v3012_v55  ;;  %v3006_v55 = vcombine.low %v1039_v39, %v1043_v40 }
  0x5b   : > { %3091 = vmatmul.mubr.msk.bf16.gmra.mrb[12].mxu0 %vm444_vm2, %v3212_v15  ;;  %1444 = vmatprep.subr.bf16.mxu0 %v3021_v56 }
  0x5c   : > { %3094 = vmatprep.mubr.msk.bf16.mxu0 %vm444_vm2, %v3213_v16 }
  0x5e   : > { %1445 = vmatpush1.bf16.msra.mxu0 %v3020_v57 }
  0x63   : > { %3095 = vmatmul.mubr.msk.bf16.gmra.mrb[16].mxu0 %vm444_vm2, %v3214_v17  ;;  %v1023_v17 = vld [vmem:[%s4252_s5 + $0x88] sm:$0xff] }
  0x64   : > { %3098 = vmatprep.mubr.msk.bf16.mxu0 %vm444_vm2, %v3215_v18  ;;  %v1027_v18 = vld [vmem:[%s4252_s5 + $0xa8] sm:$0xff] }
  0x65   : > { %v2991_v26 = vcombine.high %v1023_v17, %v1027_v18  ;;  %v2990_v36 = vcombine.low %v1023_v17, %v1027_v18 }
  0x6b   : > { %3099 = vmatmul.mubr.msk.bf16.gmra.mrb[20].mxu0 %vm444_vm2, %v3216_v19 }
  0x6c   : > { %3102 = vmatprep.mubr.msk.bf16.mxu0 %vm444_vm2, %v3217_v20 }
  0x73   : > { %3103 = vmatmul.mubr.msk.bf16.gmra.mrb[24].mxu0 %vm444_vm2, %v3218_v21 }
  0x74   : > { %3106 = vmatprep.mubr.msk.bf16.mxu0 %vm444_vm2, %v3219_v22 }
  0x7b   : > { %3107 = vmatmul.mubr.msk.bf16.gmra.mrb[28].mxu0 %vm444_vm2, %v3220_v23 }
 0x116   : > { %v3080_v59 = vpop.f32.mrb[0].mxu0 }
 0x117   : > { %v543_v60 = vadd.f32 %v3080_v59, %v3536_v58  ;;  %v534_v61 = vpop.f32.mrb[1].mxu0  ;;  %v3015_v59 = vcombine.high %v1047_v50, %v1051_v51 }
 0x118   : > { %v535_v62 = vadd.f32 %v3536_v58, %v534_v61  ;;  %v3081_v63 = vpop.f32.mrb[2].mxu0 }
 0x119   : > { %v546_v0 = vadd.f32 %v3081_v63, %v3536_v58  ;;  %v537_v1 = vpop.f32.mrb[3].mxu0  ;;  %v663_v3 = vmax.f32 %v543_v60, 0.0  ;;  %v1059_v63 = vld [vmem:[%s4252_s5 + $0x1a8] sm:$0xff] }
 0x11a   : > { %v538_v2 = vadd.f32 %v3536_v58, %v537_v1  ;;  %v661_v5 = vmax.f32 %v535_v62, 0.0  ;;  %v1055_v62 = vld [vmem:[%s4252_s5 + $0x188] sm:$0xff] }
 0x11b   : > { %v664_v4 = vmax.f32 %v546_v0, 0.0  ;;  %v3023_v7 = vcombine.high %v1055_v62, %v1059_v63 }
 0x11c   : > { %v662_v6 = vmax.f32 %v538_v2, 0.0 }
 0x11d   : > { %v694_v9 = vpack.c.bf16 %v664_v4, %v663_v3 }
 0x11e   : > { %v3084_v10 = vpop.f32.mrb[4].mxu0  ;;  %v693_v11 = vpack.c.bf16 %v662_v6, %v661_v5  ;;  %v3014_v5 = vcombine.low %v1047_v50, %v1051_v51 }
 0x11f   : > { %v559_v12 = vadd.f32 %v3084_v10, %v3536_v58  ;;  %v550_v13 = vpop.f32.mrb[5].mxu0 }
 0x120   : > { %v551_v15 = vadd.f32 %v3536_v58, %v550_v13  ;;  %3118 = vmatprep.mubr.msk.bf16.mxu1 %vm748_vm3, %v693_v11  ;;  %v3085_v16 = vpop.f32.mrb[6].mxu0 }
 0x121   : > { %v667_v19 = vmax.f32 %v559_v12, 0.0  ;;  %v562_v20 = vadd.f32 %v3085_v16, %v3536_v58  ;;  %3119 = vmatmul.mubr.msk.bf16.vlgmr.msra.gmra.mrb[0].mxu1 %vm748_vm3, %v694_v9  ;;  %v553_v21 = vpop.f32.mrb[7].mxu0  ;;  %v3022_v12 = vcombine.low %v1055_v62, %v1059_v63 }
 0x122   : > { %v665_v22 = vmax.f32 %v551_v15, 0.0  ;;  %v554_v23 = vadd.f32 %v3536_v58, %v553_v21  ;;  %1626 = vmatpush1.bf16.msra.mxu1 %v2974_v34  ;;  %v2999_v34 = vcombine.high %v1031_v29, %v1035_v30 }
 0x123   : > { %v668_v25 = vmax.f32 %v562_v20, 0.0  ;;  %1627 = vmatprep.subr.bf16.mxu1 %v2983_v14 }
 0x124   : > { %v666_v27 = vmax.f32 %v554_v23, 0.0 }
 0x125   : > { %v696_v32 = vpack.c.bf16 %v668_v25, %v667_v19 }
 0x126   : > { %v695_v33 = vpack.c.bf16 %v666_v27, %v665_v22  ;;  %v3088_v35 = vpop.f32.mrb[8].mxu0  ;;  %1628 = vmatpush1.bf16.msra.mxu1 %v2982_v24 }
 0x127   : > { %v575_v28 = vadd.f32 %v3088_v35, %v3536_v58  ;;  %v566_v31 = vpop.f32.mrb[9].mxu0  ;;  %1629 = vmatprep.subr.bf16.mxu1 %v2991_v26 }
 0x128   : > { %3122 = vmatprep.mubr.msk.bf16.mxu1 %vm748_vm3, %v695_v33  ;;  %v567_v37 = vadd.f32 %v3536_v58, %v566_v31  ;;  %v3089_v38 = vpop.f32.mrb[10].mxu0 }
 0x129   : > { %3123 = vmatmul.mubr.msk.bf16.gmra.mrb[4].mxu1 %vm748_vm3, %v696_v32  ;;  %v671_v41 = vmax.f32 %v575_v28, 0.0  ;;  %v578_v42 = vadd.f32 %v3089_v38, %v3536_v58  ;;  %v569_v43 = vpop.f32.mrb[11].mxu0 }
 0x12a   : > { %v669_v44 = vmax.f32 %v567_v37, 0.0  ;;  %v570_v45 = vadd.f32 %v3536_v58, %v569_v43  ;;  %1630 = vmatpush1.bf16.msra.mxu1 %v2990_v36 }
 0x12b   : > { %v672_v47 = vmax.f32 %v578_v42, 0.0  ;;  %1631 = vmatprep.subr.bf16.mxu1 %v2999_v34 }
 0x12c   : > { %v670_v49 = vmax.f32 %v570_v45, 0.0 }
 0x12d   : > { %v698_v52 = vpack.c.bf16 %v672_v47, %v671_v41 }
 0x12e   : > { %v697_v53 = vpack.c.bf16 %v670_v49, %v669_v44  ;;  %v3092_v54 = vpop.f32.mrb[12].mxu0  ;;  %1632 = vmatpush1.bf16.msra.mxu1 %v2998_v46 }
 0x12f   : > { %v591_v56 = vadd.f32 %v3092_v54, %v3536_v58  ;;  %v582_v57 = vpop.f32.mrb[13].mxu0  ;;  %1633 = vmatprep.subr.bf16.mxu1 %v3007_v48 }
 0x130   : > { %3126 = vmatprep.mubr.msk.bf16.mxu1 %vm748_vm3, %v697_v53  ;;  %v583_v60 = vadd.f32 %v3536_v58, %v582_v57  ;;  %v3093_v61 = vpop.f32.mrb[14].mxu0 }
 0x131   : > { %3127 = vmatmul.mubr.msk.bf16.gmra.mrb[8].mxu1 %vm748_vm3, %v698_v52  ;;  %v675_v0 = vmax.f32 %v591_v56, 0.0  ;;  %v594_v1 = vadd.f32 %v3093_v61, %v3536_v58  ;;  %v585_v2 = vpop.f32.mrb[15].mxu0 }
 0x132   : > { %v673_v3 = vmax.f32 %v583_v60, 0.0  ;;  %v586_v4 = vadd.f32 %v3536_v58, %v585_v2  ;;  %1634 = vmatpush1.bf16.msra.mxu1 %v3006_v55 }
 0x133   : > { %v676_v6 = vmax.f32 %v594_v1, 0.0  ;;  %1635 = vmatprep.subr.bf16.mxu1 %v3015_v59 }
 0x134   : > { %v674_v8 = vmax.f32 %v586_v4, 0.0 }
 0x135   : > { %v700_v9 = vpack.c.bf16 %v676_v6, %v675_v0  ;;  %v1066_v6 = vld [vmem:[%s4252_s5 + $0x1e0] sm:$0xff] }
 0x136   : > { %v699_v10 = vpack.c.bf16 %v674_v8, %v673_v3  ;;  %v3096_v11 = vpop.f32.mrb[16].mxu0  ;;  %1636 = vmatpush1.bf16.msra.mxu1 %v3014_v5  ;;  %v1062_v5 = vld [vmem:[%s4252_s5 + $0x1c0] sm:$0xff] }
 0x137   : > { %v607_v13 = vadd.f32 %v3096_v11, %v3536_v58  ;;  %v598_v14 = vpop.f32.mrb[17].mxu0  ;;  %1637 = vmatprep.subr.bf16.mxu1 %v3023_v7  ;;  %v3028_v7 = vcombine.low %v1062_v5, %v1066_v6  ;;  %v3029_v8 = vcombine.high %v1062_v5, %v1066_v6 }
 0x138   : > { %3130 = vmatprep.mubr.msk.bf16.mxu1 %vm748_vm3, %v699_v10  ;;  %v599_v15 = vadd.f32 %v3536_v58, %v598_v14  ;;  %v3097_v16 = vpop.f32.mrb[18].mxu0  ;;  %v1012_v14 = vld [vmem:[%s4252_s5 + $0x30] sm:$0xff] }
 0x139   : > { %3131 = vmatmul.mubr.msk.bf16.gmra.mrb[12].mxu1 %vm748_vm3, %v700_v9  ;;  %v679_v17 = vmax.f32 %v607_v13, 0.0  ;;  %v610_v18 = vadd.f32 %v3097_v16, %v3536_v58  ;;  %v601_v19 = vpop.f32.mrb[19].mxu0  ;;  %v1067_v9 = vld [vmem:[%s4252_s5 + $0x1e8] sm:$0xff]  ;;  %1446 = vmatprep.subr.bf16.mxu0 %v3029_v8  ;;  %v1008_v13 = vld [vmem:[%s4252_s5 + $0x10] sm:$0xff] }
 0x13a   : > { %v677_v20 = vmax.f32 %v599_v15, 0.0  ;;  %v602_v21 = vadd.f32 %v3536_v58, %v601_v19  ;;  %1638 = vmatpush1.bf16.msra.mxu1 %v3022_v12  ;;  %1447 = vmatpush1.bf16.msra.mxu0 %v3028_v7  ;;  %v3301_v12 = vmov 0   ;;  %v1009_v15 = vld [vmem:[%s4252_s5 + $0x18] sm:$0xff]  ;;  %v2976_v16 = vcombine.low %v1008_v13, %v1012_v14 }
 0x13b   : > { %v680_v22 = vmax.f32 %v610_v18, 0.0  ;;  %1464 = vmatprep.mubr.bf16.mxu0 %v3301_v12  ;;  %v1013_v18 = vld [vmem:[%s4252_s5 + $0x38] sm:$0xff] }
 0x13c   : > { %v678_v23 = vmax.f32 %v602_v21, 0.0  ;;  %v2978_v19 = vcombine.low %v1009_v15, %v1013_v18  ;;  %v3654_v21 = vld [vmem:[%s4251_s4] ss:$0 sm:$0xff] }
 0x13d   : > { %v702_v24 = vpack.c.bf16 %v680_v22, %v679_v17  ;;  %v2977_v17 = vcombine.high %v1008_v13, %v1012_v14 }
 0x13e   : > { %v701_v25 = vpack.c.bf16 %v678_v23, %v677_v20  ;;  %v3100_v26 = vpop.f32.mrb[20].mxu0  ;;  %v2979_v20 = vcombine.high %v1009_v15, %v1013_v18  ;;  %v1044_v15 = vld [vmem:[%s4252_s5 + $0x130] sm:$0xff] }
 0x13f   : > { %v623_v27 = vadd.f32 %v3100_v26, %v3536_v58  ;;  %v614_v29 = vpop.f32.mrb[21].mxu0  ;;  %1818 = vmatprep.subr.bf16.mxu0 %v2977_v17  ;;  %v1045_v17 = vld [vmem:[%s4252_s5 + $0x138] sm:$0xff] }
 0x140   : > { %3134 = vmatprep.mubr.msk.bf16.mxu1 %vm748_vm3, %v701_v25  ;;  %v615_v30 = vadd.f32 %v3536_v58, %v614_v29  ;;  %v3101_v32 = vpop.f32.mrb[22].mxu0 }
 0x141   : > { %3135 = vmatmul.mubr.msk.bf16.gmra.mrb[16].mxu1 %vm748_vm3, %v702_v24  ;;  %v683_v33 = vmax.f32 %v623_v27, 0.0  ;;  %v626_v35 = vadd.f32 %v3101_v32, %v3536_v58  ;;  %v617_v36 = vpop.f32.mrb[23].mxu0 }
 0x142   : > { %v681_v28 = vmax.f32 %v615_v30, 0.0  ;;  %v618_v31 = vadd.f32 %v3536_v58, %v617_v36 }
 0x143   : > { %v684_v34 = vmax.f32 %v626_v35, 0.0  ;;  %v1016_v35 = vld [vmem:[%s4252_s5 + $0x50] sm:$0xff] }
 0x144   : > { %v682_v37 = vmax.f32 %v618_v31, 0.0  ;;  %v1020_v31 = vld [vmem:[%s4252_s5 + $0x70] sm:$0xff] }
 0x145   : > { %v704_v38 = vpack.c.bf16 %v684_v34, %v683_v33  ;;  %v1017_v34 = vld [vmem:[%s4252_s5 + $0x58] sm:$0xff] }
 0x146   : > { %v703_v39 = vpack.c.bf16 %v682_v37, %v681_v28  ;;  %v3104_v40 = vpop.f32.mrb[24].mxu0  ;;  %v1021_v37 = vld [vmem:[%s4252_s5 + $0x78] sm:$0xff] }
 0x147   : > { %v639_v41 = vadd.f32 %v3104_v40, %v3536_v58  ;;  %v630_v42 = vpop.f32.mrb[25].mxu0 }
 0x148   : > { %3138 = vmatprep.mubr.msk.bf16.mxu1 %vm748_vm3, %v703_v39  ;;  %v631_v43 = vadd.f32 %v3536_v58, %v630_v42  ;;  %v3105_v44 = vpop.f32.mrb[26].mxu0 }
 0x149   : > { %3139 = vmatmul.mubr.msk.bf16.gmra.mrb[20].mxu1 %vm748_vm3, %v704_v38  ;;  %v687_v45 = vmax.f32 %v639_v41, 0.0  ;;  %v642_v46 = vadd.f32 %v3105_v44, %v3536_v58  ;;  %v633_v47 = vpop.f32.mrb[27].mxu0  ;;  %v1024_v41 = vld [vmem:[%s4252_s5 + $0x90] sm:$0xff]  ;;  %v2985_v44 = vcombine.high %v1016_v35, %v1020_v31 }
 0x14a   : > { %v685_v48 = vmax.f32 %v631_v43, 0.0  ;;  %v634_v49 = vadd.f32 %v3536_v58, %v633_v47  ;;  %v1025_v47 = vld [vmem:[%s4252_s5 + $0x98] sm:$0xff] }
 0x14b   : > { %v688_v50 = vmax.f32 %v642_v46, 0.0  ;;  %v1028_v46 = vld [vmem:[%s4252_s5 + $0xb0] sm:$0xff] }
 0x14c   : > { %v686_v51 = vmax.f32 %v634_v49, 0.0  ;;  %v2992_v6 = vcombine.low %v1024_v41, %v1028_v46 }
 0x14d   : > { %v706_v52 = vpack.c.bf16 %v688_v50, %v687_v45  ;;  %v2987_v45 = vcombine.high %v1017_v34, %v1021_v37 }
 0x14e   : > { %v705_v53 = vpack.c.bf16 %v686_v51, %v685_v48  ;;  %v3108_v54 = vpop.f32.mrb[28].mxu0  ;;  %v1029_v48 = vld [vmem:[%s4252_s5 + $0xb8] sm:$0xff] }
 0x14f   : > { %v655_v55 = vadd.f32 %v3108_v54, %v3536_v58  ;;  %v646_v56 = vpop.f32.mrb[29].mxu0  ;;  %v2984_v54 = vcombine.low %v1016_v35, %v1020_v31  ;;  %v1049_v35 = vld [vmem:[%s4252_s5 + $0x158] sm:$0xff] }
 0x150   : > { %3142 = vmatprep.mubr.msk.bf16.mxu1 %vm748_vm3, %v705_v53  ;;  %v647_v57 = vadd.f32 %v3536_v58, %v646_v56  ;;  %v3109_v59 = vpop.f32.mrb[30].mxu0 }
 0x151   : > { %3143 = vmatmul.mubr.msk.bf16.gmra.mrb[24].mxu1 %vm748_vm3, %v706_v52  ;;  %v691_v60 = vmax.f32 %v655_v55, 0.0  ;;  %v658_v61 = vadd.f32 %v3109_v59, %v3536_v58  ;;  %v649_v62 = vpop.f32.mrb[31].mxu0  ;;  %v2986_v55 = vcombine.low %v1017_v34, %v1021_v37  ;;  %v2993_v59 = vcombine.high %v1024_v41, %v1028_v46 }
 0x152   : > { %v689_v63 = vmax.f32 %v647_v57, 0.0  ;;  %v650_v0 = vadd.f32 %v3536_v58, %v649_v62  ;;  %v1063_v58 = vld [vmem:[%s4252_s5 + $0x1c8] sm:$0xff]  ;;  %v1032_v62 = vld [vmem:[%s4252_s5 + $0xd0] sm:$0xff] }
 0x153   : > { %v692_v1 = vmax.f32 %v658_v61, 0.0  ;;  %v3030_v10 = vcombine.low %v1063_v58, %v1067_v9  ;;  %v3031_v11 = vcombine.high %v1063_v58, %v1067_v9  ;;  %v2994_v58 = vcombine.low %v1025_v47, %v1029_v48 }
 0x154   : > { %v690_v2 = vmax.f32 %v650_v0, 0.0  ;;  %v1036_v0 = vld [vmem:[%s4252_s5 + $0xf0] sm:$0xff] }
 0x155   : > { %v708_v3 = vpack.c.bf16 %v692_v1, %v691_v60  ;;  %1639 = vmatprep.subr.bf16.mxu1 %v3031_v11  ;;  %v2995_v60 = vcombine.high %v1025_v47, %v1029_v48  ;;  %v1033_v1 = vld [vmem:[%s4252_s5 + $0xd8] sm:$0xff]  ;;  %v3001_v9 = vcombine.high %v1032_v62, %v1036_v0  ;;  %v1040_v11 = vld [vmem:[%s4252_s5 + $0x110] sm:$0xff] }
 0x156   : > { %v707_v4 = vpack.c.bf16 %v690_v2, %v689_v63  ;;  %1640 = vmatpush1.bf16.msra.mxu1 %v3030_v10  ;;  %v1037_v2 = vld [vmem:[%s4252_s5 + $0xf8] sm:$0xff]  ;;  %v3008_v37 = vcombine.low %v1040_v11, %v1044_v15  ;;  %v1060_v48 = vld [vmem:[%s4252_s5 + $0x1b0] sm:$0xff] }
 0x157   : > { %2011 = vmatprep.subr.bf16.mxu1 %v2979_v20  ;;  %v3003_v10 = vcombine.high %v1033_v1, %v1037_v2 }
 0x158   : > { %3146 = vmatprep.mubr.msk.bf16.mxu1 %vm748_vm3, %v707_v4 }
 0x159   : > { %3147 = vmatmul.mubr.msk.bf16.gmra.mrb[28].mxu1 %vm748_vm3, %v708_v3 }
 0x15a   : > { %1657 = vmatprep.mubr.bf16.mxu1 %v3301_v12 }
 0x1f4   : > { %v3120_v22 = vpop.f32.mrb[0].mxu1 }
 0x1f5   : > { %v840_v23 = vadd.f32 %v3120_v22, %v3654_v21  ;;  %v831_v24 = vpop.f32.mrb[1].mxu1 }
 0x1f6   : > { %v832_v25 = vadd.f32 %v3654_v21, %v831_v24  ;;  %v3121_v26 = vpop.f32.mrb[2].mxu1  ;;  %v3000_v24 = vcombine.low %v1032_v62, %v1036_v0  ;;  %v1064_v62 = vld [vmem:[%s4252_s5 + $0x1d0] sm:$0xff] }
 0x1f7   : > { %v843_v27 = vadd.f32 %v3121_v26, %v3654_v21  ;;  %v834_v29 = vpop.f32.mrb[3].mxu1  ;;  %v960_v32 = vmax.f32 %v840_v23, 0.0  ;;  %v1068_v0 = vld [vmem:[%s4252_s5 + $0x1f0] sm:$0xff] }
 0x1f8   : > { %v835_v30 = vadd.f32 %v3654_v21, %v834_v29  ;;  %v958_v36 = vmax.f32 %v832_v25, 0.0  ;;  %v3002_v25 = vcombine.low %v1033_v1, %v1037_v2  ;;  %v1065_v1 = vld [vmem:[%s4252_s5 + $0x1d8] sm:$0xff] }
 0x1f9   : > { %v961_v33 = vmax.f32 %v843_v27, 0.0  ;;  %v3009_v27 = vcombine.high %v1040_v11, %v1044_v15  ;;  %v1069_v2 = vld [vmem:[%s4252_s5 + $0x1f8] sm:$0xff]  ;;  %v3033_v11 = vcombine.high %v1064_v62, %v1068_v0 }
 0x1fa   : > { %v959_v28 = vmax.f32 %v835_v30, 0.0  ;;  %v1048_v30 = vld [vmem:[%s4252_s5 + $0x150] sm:$0xff] }
 0x1fb   : > { %v3672_v38 = vpack.c.bf16 %v961_v33, %v960_v32  ;;  %v1052_v33 = vld [vmem:[%s4252_s5 + $0x170] sm:$0xff] }
 0x1fc   : > { %v3674_v39 = vpack.c.bf16 %v959_v28, %v958_v36  ;;  %v3124_v40 = vpop.f32.mrb[4].mxu1  ;;  %v1053_v36 = vld [vmem:[%s4252_s5 + $0x178] sm:$0xff] }
 0x1fd   : > { %v856_v42 = vadd.f32 %v3124_v40, %v3654_v21  ;;  %v847_v43 = vpop.f32.mrb[5].mxu1 }
 0x1fe   : > { %v848_v49 = vadd.f32 %v3654_v21, %v847_v43  ;;  %1465 = vmatmul.mubr.bf16.vlgmr.msra.gmra.mrb[32].mxu0 %v3674_v39  ;;  %1658 = vmatmul.mubr.bf16.vlgmr.msra.gmra.mrb[32].mxu1 %v3674_v39  ;;  %v3125_v50 = vpop.f32.mrb[6].mxu1  ;;  %v3017_v43 = vcombine.high %v1048_v30, %v1052_v33 }
 0x1ff   : > { %v964_v51 = vmax.f32 %v856_v42, 0.0  ;;  %1819 = vmatpush1.bf16.msra.mxu0 %v2976_v16  ;;  %2012 = vmatpush1.bf16.msra.mxu1 %v2978_v19  ;;  %v859_v52 = vadd.f32 %v3125_v50, %v3654_v21  ;;  %v850_v53 = vpop.f32.mrb[7].mxu1  ;;  %v1041_v16 = vld [vmem:[%s4252_s5 + $0x118] sm:$0xff] }
 0x200   : > { %v962_v56 = vmax.f32 %v848_v49, 0.0  ;;  %v851_v57 = vadd.f32 %v3654_v21, %v850_v53  ;;  %1474 = vmatprep.mubr.bf16.mxu0 %v3301_v12  ;;  %1667 = vmatprep.mubr.bf16.mxu1 %v3301_v12  ;;  %v3011_v29 = vcombine.high %v1041_v16, %v1045_v17  ;;  %v3010_v40 = vcombine.low %v1041_v16, %v1045_v17  ;;  %v1057_v49 = vld [vmem:[%s4252_s5 + $0x198] sm:$0xff] }
 0x201   : > { %v965_v61 = vmax.f32 %v859_v52, 0.0  ;;  %1820 = vmatprep.subr.bf16.mxu0 %v2985_v44  ;;  %2013 = vmatprep.subr.bf16.mxu1 %v2987_v45  ;;  %v3019_v44 = vcombine.high %v1049_v35, %v1053_v36  ;;  %v1056_v45 = vld [vmem:[%s4252_s5 + $0x190] sm:$0xff]  ;;  %v1061_v50 = vld [vmem:[%s4252_s5 + $0x1b8] sm:$0xff] }
 0x202   : > { %v963_v63 = vmax.f32 %v851_v57, 0.0  ;;  %v3018_v57 = vcombine.low %v1049_v35, %v1053_v36 }
 0x203   : > { %v3708_v3 = vpack.c.bf16 %v965_v61, %v964_v51  ;;  %1821 = vmatpush1.bf16.msra.mxu0 %v2984_v54  ;;  %2014 = vmatpush1.bf16.msra.mxu1 %v2986_v55  ;;  %v3027_v61 = vcombine.high %v1057_v49, %v1061_v50 }
 0x204   : > { %v3710_v4 = vpack.c.bf16 %v963_v63, %v962_v56  ;;  %v3128_v5 = vpop.f32.mrb[8].mxu1  ;;  %1822 = vmatprep.subr.bf16.mxu0 %v2993_v59  ;;  %2015 = vmatprep.subr.bf16.mxu1 %v2995_v60  ;;  %v3016_v56 = vcombine.low %v1048_v30, %v1052_v33  ;;  %v3025_v60 = vcombine.high %v1056_v45, %v1060_v48 }
 0x205   : > { %v872_v7 = vadd.f32 %v3128_v5, %v3654_v21  ;;  %v863_v8 = vpop.f32.mrb[9].mxu1 }
 0x206   : > { %1475 = vmatmul.mubr.bf16.gmra.mrb[36].mxu0 %v3672_v38  ;;  %1668 = vmatmul.mubr.bf16.gmra.mrb[36].mxu1 %v3672_v38  ;;  %v864_v13 = vadd.f32 %v3654_v21, %v863_v8  ;;  %v3129_v14 = vpop.f32.mrb[10].mxu1  ;;  %v3026_v8 = vcombine.low %v1057_v49, %v1061_v50 }
 0x207   : > { %v968_v18 = vmax.f32 %v872_v7, 0.0  ;;  %1484 = vmatprep.mubr.bf16.mxu0 %v3301_v12  ;;  %1677 = vmatprep.mubr.bf16.mxu1 %v3301_v12  ;;  %v875_v19 = vadd.f32 %v3129_v14, %v3654_v21  ;;  %v866_v20 = vpop.f32.mrb[11].mxu1  ;;  %v3024_v7 = vcombine.low %v1056_v45, %v1060_v48 }
 0x208   : > { %v966_v22 = vmax.f32 %v864_v13, 0.0  ;;  %v867_v23 = vadd.f32 %v3654_v21, %v866_v20  ;;  %1823 = vmatpush1.bf16.msra.mxu0 %v2992_v6  ;;  %2016 = vmatpush1.bf16.msra.mxu1 %v2994_v58  ;;  %v3035_v13 = vcombine.high %v1065_v1, %v1069_v2 }
 0x209   : > { %v969_v26 = vmax.f32 %v875_v19, 0.0  ;;  %1824 = vmatprep.subr.bf16.mxu0 %v3001_v9  ;;  %2017 = vmatprep.subr.bf16.mxu1 %v3003_v10 }
 0x20a   : > { %v967_v32 = vmax.f32 %v867_v23, 0.0  ;;  %v3034_v23 = vcombine.low %v1065_v1, %v1069_v2 }
 0x20b   : > { %v3744_v28 = vpack.c.bf16 %v969_v26, %v968_v18 }
 0x20c   : > { %v3746_v31 = vpack.c.bf16 %v967_v32, %v966_v22  ;;  %v3132_v34 = vpop.f32.mrb[12].mxu1  ;;  %1825 = vmatpush1.bf16.msra.mxu0 %v3000_v24  ;;  %2018 = vmatpush1.bf16.msra.mxu1 %v3002_v25  ;;  %v3032_v22 = vcombine.low %v1064_v62, %v1068_v0 }
 0x20d   : > { %v888_v41 = vadd.f32 %v3132_v34, %v3654_v21  ;;  %v879_v42 = vpop.f32.mrb[13].mxu1  ;;  %1826 = vmatprep.subr.bf16.mxu0 %v3009_v27  ;;  %2019 = vmatprep.subr.bf16.mxu1 %v3011_v29 }
 0x20e   : > { %1485 = vmatmul.mubr.bf16.gmra.mrb[40].mxu0 %v3710_v4  ;;  %1678 = vmatmul.mubr.bf16.gmra.mrb[40].mxu1 %v3710_v4  ;;  %v880_v46 = vadd.f32 %v3654_v21, %v879_v42  ;;  %v3133_v47 = vpop.f32.mrb[14].mxu1 }
 0x20f   : > { %1494 = vmatprep.mubr.bf16.mxu0 %v3301_v12  ;;  %1687 = vmatprep.mubr.bf16.mxu1 %v3301_v12  ;;  %v972_v51 = vmax.f32 %v888_v41, 0.0  ;;  %v891_v52 = vadd.f32 %v3133_v47, %v3654_v21  ;;  %v882_v53 = vpop.f32.mrb[15].mxu1 }
 0x210   : > { %v970_v54 = vmax.f32 %v880_v46, 0.0  ;;  %v883_v55 = vadd.f32 %v3654_v21, %v882_v53  ;;  %1827 = vmatpush1.bf16.msra.mxu0 %v3008_v37  ;;  %2020 = vmatpush1.bf16.msra.mxu1 %v3010_v40 }
 0x211   : > { %v973_v59 = vmax.f32 %v891_v52, 0.0  ;;  %1828 = vmatprep.subr.bf16.mxu0 %v3017_v43  ;;  %2021 = vmatprep.subr.bf16.mxu1 %v3019_v44 }
 0x212   : > { %v971_v63 = vmax.f32 %v883_v55, 0.0 }
 0x213   : > { %v3780_v5 = vpack.c.bf16 %v973_v59, %v972_v51 }
 0x214   : > { %v3782_v6 = vpack.c.bf16 %v971_v63, %v970_v54  ;;  %v3136_v58 = vpop.f32.mrb[16].mxu1  ;;  %1829 = vmatpush1.bf16.msra.mxu0 %v3016_v56  ;;  %2022 = vmatpush1.bf16.msra.mxu1 %v3018_v57 }
 0x215   : > { %v904_v9 = vadd.f32 %v3136_v58, %v3654_v21  ;;  %v895_v10 = vpop.f32.mrb[17].mxu1  ;;  %1830 = vmatprep.subr.bf16.mxu0 %v3025_v60  ;;  %2023 = vmatprep.subr.bf16.mxu1 %v3027_v61 }
 0x216   : > { %1495 = vmatmul.mubr.bf16.gmra.mrb[44].mxu0 %v3708_v3  ;;  %1688 = vmatmul.mubr.bf16.gmra.mrb[44].mxu1 %v3708_v3  ;;  %v896_v14 = vadd.f32 %v3654_v21, %v895_v10  ;;  %v3137_v15 = vpop.f32.mrb[18].mxu1 }
 0x217   : > { %1504 = vmatprep.mubr.bf16.mxu0 %v3301_v12  ;;  %1697 = vmatprep.mubr.bf16.mxu1 %v3301_v12  ;;  %v976_v16 = vmax.f32 %v904_v9, 0.0  ;;  %v907_v17 = vadd.f32 %v3137_v15, %v3654_v21  ;;  %v898_v18 = vpop.f32.mrb[19].mxu1 }
 0x218   : > { %v974_v19 = vmax.f32 %v896_v14, 0.0  ;;  %v899_v20 = vadd.f32 %v3654_v21, %v898_v18  ;;  %1831 = vmatpush1.bf16.msra.mxu0 %v3024_v7  ;;  %2024 = vmatpush1.bf16.msra.mxu1 %v3026_v8 }
 0x219   : > { %v977_v24 = vmax.f32 %v907_v17, 0.0  ;;  %1832 = vmatprep.subr.bf16.mxu0 %v3033_v11  ;;  %2025 = vmatprep.subr.bf16.mxu1 %v3035_v13 }
 0x21a   : > { %v975_v25 = vmax.f32 %v899_v20, 0.0 }
 0x21b   : > { %v3792_v26 = vpack.c.bf16 %v977_v24, %v976_v16 }
 0x21c   : > { %v3794_v27 = vpack.c.bf16 %v975_v25, %v974_v19  ;;  %v3140_v29 = vpop.f32.mrb[20].mxu1  ;;  %1833 = vmatpush1.bf16.msra.mxu0 %v3032_v22  ;;  %2026 = vmatpush1.bf16.msra.mxu1 %v3034_v23 }
 0x21d   : > { %v920_v30 = vadd.f32 %v3140_v29, %v3654_v21  ;;  %v911_v32 = vpop.f32.mrb[21].mxu1 }
 0x21e   : > { %1505 = vmatmul.mubr.bf16.gmra.mrb[48].mxu0 %v3746_v31  ;;  %1698 = vmatmul.mubr.bf16.gmra.mrb[48].mxu1 %v3746_v31  ;;  %v912_v33 = vadd.f32 %v3654_v21, %v911_v32  ;;  %v3141_v35 = vpop.f32.mrb[22].mxu1 }
 0x21f   : > { %1514 = vmatprep.mubr.bf16.mxu0 %v3301_v12  ;;  %1707 = vmatprep.mubr.bf16.mxu1 %v3301_v12  ;;  %v980_v36 = vmax.f32 %v920_v30, 0.0  ;;  %v923_v34 = vadd.f32 %v3141_v35, %v3654_v21  ;;  %v914_v37 = vpop.f32.mrb[23].mxu1 }
 0x220   : > { %v978_v40 = vmax.f32 %v912_v33, 0.0  ;;  %v915_v41 = vadd.f32 %v3654_v21, %v914_v37 }
 0x221   : > { %v981_v42 = vmax.f32 %v923_v34, 0.0 }
 0x222   : > { %v979_v43 = vmax.f32 %v915_v41, 0.0 }
 0x223   : > { %v3804_v44 = vpack.c.bf16 %v981_v42, %v980_v36 }
 0x224   : > { %v3806_v45 = vpack.c.bf16 %v979_v43, %v978_v40  ;;  %v3144_v46 = vpop.f32.mrb[24].mxu1 }
 0x225   : > { %v936_v47 = vadd.f32 %v3144_v46, %v3654_v21  ;;  %v927_v48 = vpop.f32.mrb[25].mxu1 }
 0x226   : > { %1515 = vmatmul.mubr.bf16.gmra.mrb[52].mxu0 %v3744_v28  ;;  %1708 = vmatmul.mubr.bf16.gmra.mrb[52].mxu1 %v3744_v28  ;;  %v928_v49 = vadd.f32 %v3654_v21, %v927_v48  ;;  %v3145_v50 = vpop.f32.mrb[26].mxu1 }
 0x227   : > { %1524 = vmatprep.mubr.bf16.mxu0 %v3301_v12  ;;  %1717 = vmatprep.mubr.bf16.mxu1 %v3301_v12  ;;  %v984_v51 = vmax.f32 %v936_v47, 0.0  ;;  %v939_v52 = vadd.f32 %v3145_v50, %v3654_v21  ;;  %v930_v53 = vpop.f32.mrb[27].mxu1 }
 0x228   : > { %v982_v54 = vmax.f32 %v928_v49, 0.0  ;;  %v931_v55 = vadd.f32 %v3654_v21, %v930_v53 }
 0x229   : > { %v985_v56 = vmax.f32 %v939_v52, 0.0 }
 0x22a   : > { %v983_v57 = vmax.f32 %v931_v55, 0.0 }
 0x22b   : > { %v3816_v59 = vpack.c.bf16 %v985_v56, %v984_v51 }
 0x22c   : > { %v3818_v60 = vpack.c.bf16 %v983_v57, %v982_v54  ;;  %v3148_v61 = vpop.f32.mrb[28].mxu1 }
 0x22d   : > { %v952_v62 = vadd.f32 %v3148_v61, %v3654_v21  ;;  %v943_v63 = vpop.f32.mrb[29].mxu1 }
 0x22e   : > { %1525 = vmatmul.mubr.bf16.gmra.mrb[56].mxu0 %v3782_v6  ;;  %1718 = vmatmul.mubr.bf16.gmra.mrb[56].mxu1 %v3782_v6  ;;  %v944_v0 = vadd.f32 %v3654_v21, %v943_v63  ;;  %v3149_v1 = vpop.f32.mrb[30].mxu1 }
 0x22f   : > { %1534 = vmatprep.mubr.bf16.mxu0 %v3301_v12  ;;  %1727 = vmatprep.mubr.bf16.mxu1 %v3301_v12  ;;  %v988_v2 = vmax.f32 %v952_v62, 0.0  ;;  %v955_v58 = vadd.f32 %v3149_v1, %v3654_v21  ;;  %v946_v7 = vpop.f32.mrb[31].mxu1 }
 0x230   : > { %v986_v8 = vmax.f32 %v944_v0, 0.0  ;;  %v947_v9 = vadd.f32 %v3654_v21, %v946_v7  ;;  %v1072_v21 = vlaneseq }
 0x231   : > { %v989_v10 = vmax.f32 %v955_v58, 0.0 }
 0x232   : > { %v987_v11 = vmax.f32 %v947_v9, 0.0 }
 0x233   : > { %v3828_v13 = vpack.c.bf16 %v989_v10, %v988_v2 }
 0x234   : > { %v3830_v14 = vpack.c.bf16 %v987_v11, %v986_v8 }
 0x236   : > { %1535 = vmatmul.mubr.bf16.gmra.mrb[60].mxu0 %v3780_v5  ;;  %1728 = vmatmul.mubr.bf16.gmra.mrb[60].mxu1 %v3780_v5 }
 0x237   : > { %1544 = vmatprep.mubr.bf16.mxu0 %v3301_v12  ;;  %1737 = vmatprep.mubr.bf16.mxu1 %v3301_v12 }
 0x23e   : > { %1545 = vmatmul.mubr.bf16.gmra.mrb[64].mxu0 %v3794_v27  ;;  %1738 = vmatmul.mubr.bf16.gmra.mrb[64].mxu1 %v3794_v27 }
 0x23f   : > { %1554 = vmatprep.mubr.bf16.mxu0 %v3301_v12  ;;  %1747 = vmatprep.mubr.bf16.mxu1 %v3301_v12 }
 0x246   : > { %1555 = vmatmul.mubr.bf16.gmra.mrb[68].mxu0 %v3792_v26  ;;  %1748 = vmatmul.mubr.bf16.gmra.mrb[68].mxu1 %v3792_v26 }
 0x247   : > { %1564 = vmatprep.mubr.bf16.mxu0 %v3301_v12  ;;  %1757 = vmatprep.mubr.bf16.mxu1 %v3301_v12 }
 0x24e   : > { %1565 = vmatmul.mubr.bf16.gmra.mrb[72].mxu0 %v3806_v45  ;;  %1758 = vmatmul.mubr.bf16.gmra.mrb[72].mxu1 %v3806_v45 }
 0x24f   : > { %1574 = vmatprep.mubr.bf16.mxu0 %v3301_v12  ;;  %1767 = vmatprep.mubr.bf16.mxu1 %v3301_v12 }
 0x256   : > { %1575 = vmatmul.mubr.bf16.gmra.mrb[76].mxu0 %v3804_v44  ;;  %1768 = vmatmul.mubr.bf16.gmra.mrb[76].mxu1 %v3804_v44 }
 0x257   : > { %1584 = vmatprep.mubr.bf16.mxu0 %v3301_v12  ;;  %1777 = vmatprep.mubr.bf16.mxu1 %v3301_v12 }
 0x25e   : > { %1585 = vmatmul.mubr.bf16.gmra.mrb[80].mxu0 %v3818_v60  ;;  %1778 = vmatmul.mubr.bf16.gmra.mrb[80].mxu1 %v3818_v60 }
 0x25f   : > { %1594 = vmatprep.mubr.bf16.mxu0 %v3301_v12  ;;  %1787 = vmatprep.mubr.bf16.mxu1 %v3301_v12 }
 0x266   : > { %1595 = vmatmul.mubr.bf16.gmra.mrb[84].mxu0 %v3816_v59  ;;  %1788 = vmatmul.mubr.bf16.gmra.mrb[84].mxu1 %v3816_v59 }
 0x267   : > { %1604 = vmatprep.mubr.bf16.mxu0 %v3301_v12  ;;  %1797 = vmatprep.mubr.bf16.mxu1 %v3301_v12 }
 0x26e   : > { %1605 = vmatmul.mubr.bf16.gmra.mrb[88].mxu0 %v3830_v14  ;;  %1798 = vmatmul.mubr.bf16.gmra.mrb[88].mxu1 %v3830_v14 }
 0x26f   : > { %1614 = vmatprep.mubr.bf16.mxu0 %v3301_v12  ;;  %1807 = vmatprep.mubr.bf16.mxu1 %v3301_v12 }
 0x276   : > { %1615 = vmatmul.mubr.bf16.gmra.mrb[92].mxu0 %v3828_v13  ;;  %1808 = vmatmul.mubr.bf16.gmra.mrb[92].mxu1 %v3828_v13 }
 0x277   : > { %1850 = vmatprep.mubr.bf16.mxu0 %v3301_v12  ;;  %2043 = vmatprep.mubr.bf16.mxu1 %v3301_v12 }
 0x27e   : > { %1851 = vmatmul.mubr.bf16.vlgmr.msra.gmra.mrb[96].mxu0 %v3674_v39  ;;  %2044 = vmatmul.mubr.bf16.vlgmr.msra.gmra.mrb[96].mxu1 %v3674_v39 }
 0x27f   : > { %1860 = vmatprep.mubr.bf16.mxu0 %v3301_v12  ;;  %2053 = vmatprep.mubr.bf16.mxu1 %v3301_v12 }
 0x286   : > { %1861 = vmatmul.mubr.bf16.gmra.mrb[100].mxu0 %v3672_v38  ;;  %2054 = vmatmul.mubr.bf16.gmra.mrb[100].mxu1 %v3672_v38  ;;  %v3906_v38 = vshrl.u32 %v1072_v21, 7 }
 0x287   : > { %1870 = vmatprep.mubr.bf16.mxu0 %v3301_v12  ;;  %2063 = vmatprep.mubr.bf16.mxu1 %v3301_v12 }
 0x288   : > { %v1074_v39 = vsub.s32 0, %v3906_v38 }
 0x28e   : > { %1871 = vmatmul.mubr.bf16.gmra.mrb[104].mxu0 %v3710_v4  ;;  %2064 = vmatmul.mubr.bf16.gmra.mrb[104].mxu1 %v3710_v4  ;;  %v1070_v4 = vld [vmem:[#allocation3] sm:$0xff] }
 0x28f   : > { %1880 = vmatprep.mubr.bf16.mxu0 %v3301_v12  ;;  %2073 = vmatprep.mubr.bf16.mxu1 %v3301_v12 }
 0x296   : > { %1881 = vmatmul.mubr.bf16.gmra.mrb[108].mxu0 %v3708_v3  ;;  %2074 = vmatmul.mubr.bf16.gmra.mrb[108].mxu1 %v3708_v3  ;;  %v1082_v3 = vsub.s32 2, %v3906_v38 }
 0x297   : > { %1890 = vmatprep.mubr.bf16.mxu0 %v3301_v12  ;;  %2083 = vmatprep.mubr.bf16.mxu1 %v3301_v12 }
 0x29e   : > { %1891 = vmatmul.mubr.bf16.gmra.mrb[112].mxu0 %v3746_v31  ;;  %2084 = vmatmul.mubr.bf16.gmra.mrb[112].mxu1 %v3746_v31  ;;  %v1086_v31 = vsub.s32 3, %v3906_v38 }
 0x29f   : > { %1900 = vmatprep.mubr.bf16.mxu0 %v3301_v12  ;;  %2093 = vmatprep.mubr.bf16.mxu1 %v3301_v12 }
 0x2a0   : > { %v3922_v16 = vrot.slane %v1070_v4, %v1086_v31 }
 0x2a6   : > { %1901 = vmatmul.mubr.bf16.gmra.mrb[116].mxu0 %v3744_v28  ;;  %2094 = vmatmul.mubr.bf16.gmra.mrb[116].mxu1 %v3744_v28  ;;  %v1078_v28 = vsub.s32 1, %v3906_v38 }
 0x2a7   : > { %1910 = vmatprep.mubr.bf16.mxu0 %v3301_v12  ;;  %2103 = vmatprep.mubr.bf16.mxu1 %v3301_v12 }
 0x2a8   : > { %v3920_v15 = vrot.slane %v1070_v4, %v1078_v28 }
 0x2ae   : > { %1911 = vmatmul.mubr.bf16.gmra.mrb[120].mxu0 %v3782_v6  ;;  %2104 = vmatmul.mubr.bf16.gmra.mrb[120].mxu1 %v3782_v6  ;;  %v3918_v6 = vrot.slane %v1070_v4, %v1082_v3 }
 0x2af   : > { %1920 = vmatprep.mubr.bf16.mxu0 %v3301_v12  ;;  %2113 = vmatprep.mubr.bf16.mxu1 %v3301_v12 }
 0x2b6   : > { %1921 = vmatmul.mubr.bf16.gmra.mrb[124].mxu0 %v3780_v5  ;;  %2114 = vmatmul.mubr.bf16.gmra.mrb[124].mxu1 %v3780_v5  ;;  %v3916_v5 = vrot.slane %v1070_v4, %v1074_v39 }
 0x2b7   : > { %1930 = vmatprep.mubr.bf16.mxu0 %v3301_v12  ;;  %2123 = vmatprep.mubr.bf16.mxu1 %v3301_v12 }
 0x2be   : > { %1931 = vmatmul.mubr.bf16.gmra.mrb[128].mxu0 %v3794_v27  ;;  %2124 = vmatmul.mubr.bf16.gmra.mrb[128].mxu1 %v3794_v27 }
 0x2bf   : > { %1940 = vmatprep.mubr.bf16.mxu0 %v3301_v12  ;;  %2133 = vmatprep.mubr.bf16.mxu1 %v3301_v12 }
 0x2c6   : > { %1941 = vmatmul.mubr.bf16.gmra.mrb[132].mxu0 %v3792_v26  ;;  %2134 = vmatmul.mubr.bf16.gmra.mrb[132].mxu1 %v3792_v26 }
 0x2c7   : > { %1950 = vmatprep.mubr.bf16.mxu0 %v3301_v12  ;;  %2143 = vmatprep.mubr.bf16.mxu1 %v3301_v12 }
 0x2ce   : > { %1951 = vmatmul.mubr.bf16.gmra.mrb[136].mxu0 %v3806_v45  ;;  %2144 = vmatmul.mubr.bf16.gmra.mrb[136].mxu1 %v3806_v45 }
 0x2cf   : > { %1960 = vmatprep.mubr.bf16.mxu0 %v3301_v12  ;;  %2153 = vmatprep.mubr.bf16.mxu1 %v3301_v12 }
 0x2d1   : > { %v1466_v17 = vpop.f32.mrb[32].mxu0  ;;  %v1659_v18 = vpop.f32.mrb[32].mxu1 }
 0x2d2   : > { %v1467_v19 = vadd.f32 %v1466_v17, %v3916_v5  ;;  %v1660_v20 = vadd.f32 %v1659_v18, %v3918_v6  ;;  %v1468_v22 = vpop.f32.mrb[33].mxu0  ;;  %v1661_v23 = vpop.f32.mrb[33].mxu1 }
 0x2d3   : > { %v1469_v24 = vadd.f32 %v1468_v22, %v3920_v15  ;;  %v1662_v25 = vadd.f32 %v1661_v23, %v3922_v16  ;;  %v1470_v26 = vpop.f32.mrb[34].mxu0  ;;  %v1663_v27 = vpop.f32.mrb[34].mxu1 }
 0x2d4   : > { %v1471_v29 = vadd.f32 %v1470_v26, %v3916_v5  ;;  %v1664_v30 = vadd.f32 %v1663_v27, %v3918_v6  ;;  %v1472_v32 = vpop.f32.mrb[35].mxu0  ;;  %v1665_v33 = vpop.f32.mrb[35].mxu1  ;;  %v2204_v34 = vmax.f32 %v1467_v19, 0.0  ;;  %v2206_v37 = vmax.f32 %v1660_v20, 0.0 }
 0x2d5   : > { %v1473_v35 = vadd.f32 %v1472_v32, %v3920_v15  ;;  %v1666_v36 = vadd.f32 %v1665_v33, %v3922_v16  ;;  %v2205_v42 = vmax.f32 %v1469_v24, 0.0  ;;  %v2207_v43 = vmax.f32 %v1662_v25, 0.0 }
 0x2d6   : > { %v2212_v40 = vmax.f32 %v1471_v29, 0.0  ;;  %v2214_v41 = vmax.f32 %v1664_v30, 0.0  ;;  %1961 = vmatmul.mubr.bf16.gmra.mrb[140].mxu0 %v3804_v44  ;;  %2154 = vmatmul.mubr.bf16.gmra.mrb[140].mxu1 %v3804_v44 }
 0x2d7   : > { %v2213_v45 = vmax.f32 %v1473_v35, 0.0  ;;  %v2215_v46 = vmax.f32 %v1666_v36, 0.0  ;;  %1970 = vmatprep.mubr.bf16.mxu0 %v3301_v12  ;;  %2163 = vmatprep.mubr.bf16.mxu1 %v3301_v12 }
 0x2d8   : > { %v2461_v47 = vmax.f32 %v2204_v34, %v2212_v40  ;;  %v2535_v48 = vmax.f32 %v2206_v37, %v2214_v41 }
 0x2d9   : > { %v2498_v49 = vmax.f32 %v2205_v42, %v2213_v45  ;;  %v2572_v50 = vmax.f32 %v2207_v43, %v2215_v46  ;;  %v1476_v51 = vpop.f32.mrb[36].mxu0  ;;  %v1669_v52 = vpop.f32.mrb[36].mxu1 }
 0x2da   : > { %v1477_v53 = vadd.f32 %v1476_v51, %v3916_v5  ;;  %v1670_v54 = vadd.f32 %v1669_v52, %v3918_v6  ;;  %v1478_v55 = vpop.f32.mrb[37].mxu0  ;;  %v1671_v44 = vpop.f32.mrb[37].mxu1 }
 0x2db   : > { %v1479_v56 = vadd.f32 %v1478_v55, %v3920_v15  ;;  %v1672_v57 = vadd.f32 %v1671_v44, %v3922_v16  ;;  %v1480_v61 = vpop.f32.mrb[38].mxu0  ;;  %v1673_v62 = vpop.f32.mrb[38].mxu1 }
 0x2dc   : > { %v2220_v63 = vmax.f32 %v1477_v53, 0.0  ;;  %v2222_v0 = vmax.f32 %v1670_v54, 0.0  ;;  %v1481_v1 = vadd.f32 %v1480_v61, %v3916_v5  ;;  %v1674_v2 = vadd.f32 %v1673_v62, %v3918_v6  ;;  %v1482_v58 = vpop.f32.mrb[39].mxu0  ;;  %v1675_v7 = vpop.f32.mrb[39].mxu1 }
 0x2dd   : > { %v2221_v8 = vmax.f32 %v1479_v56, 0.0  ;;  %v2223_v9 = vmax.f32 %v1672_v57, 0.0  ;;  %v1483_v10 = vadd.f32 %v1482_v58, %v3920_v15  ;;  %v1676_v11 = vadd.f32 %v1675_v7, %v3922_v16 }
 0x2de   : > { %v2462_v21 = vmax.f32 %v2461_v47, %v2220_v63  ;;  %v2536_v39 = vmax.f32 %v2535_v48, %v2222_v0  ;;  %v2228_v3 = vmax.f32 %v1481_v1, 0.0  ;;  %v2230_v4 = vmax.f32 %v1674_v2, 0.0  ;;  %1971 = vmatmul.mubr.bf16.gmra.mrb[144].mxu0 %v3818_v60  ;;  %2164 = vmatmul.mubr.bf16.gmra.mrb[144].mxu1 %v3818_v60 }
 0x2df   : > { %v2499_v28 = vmax.f32 %v2498_v49, %v2221_v8  ;;  %v2573_v31 = vmax.f32 %v2572_v50, %v2223_v9  ;;  %v2229_v17 = vmax.f32 %v1483_v10, 0.0  ;;  %v2231_v18 = vmax.f32 %v1676_v11, 0.0  ;;  %1980 = vmatprep.mubr.bf16.mxu0 %v3301_v12  ;;  %2173 = vmatprep.mubr.bf16.mxu1 %v3301_v12 }
 0x2e0   : > { %v2463_v19 = vmax.f32 %v2462_v21, %v2228_v3  ;;  %v2537_v20 = vmax.f32 %v2536_v39, %v2230_v4 }
 0x2e1   : > { %v2500_v22 = vmax.f32 %v2499_v28, %v2229_v17  ;;  %v2574_v23 = vmax.f32 %v2573_v31, %v2231_v18  ;;  %v1486_v24 = vpop.f32.mrb[40].mxu0  ;;  %v1679_v25 = vpop.f32.mrb[40].mxu1 }
 0x2e2   : > { %v1487_v26 = vadd.f32 %v1486_v24, %v3916_v5  ;;  %v1680_v27 = vadd.f32 %v1679_v25, %v3918_v6  ;;  %v1488_v29 = vpop.f32.mrb[41].mxu0  ;;  %v1681_v60 = vpop.f32.mrb[41].mxu1 }
 0x2e3   : > { %v1489_v30 = vadd.f32 %v1488_v29, %v3920_v15  ;;  %v1682_v32 = vadd.f32 %v1681_v60, %v3922_v16  ;;  %v1490_v33 = vpop.f32.mrb[42].mxu0  ;;  %v1683_v35 = vpop.f32.mrb[42].mxu1 }
 0x2e4   : > { %v2236_v36 = vmax.f32 %v1487_v26, 0.0  ;;  %v2238_v34 = vmax.f32 %v1680_v27, 0.0  ;;  %v1491_v37 = vadd.f32 %v1490_v33, %v3916_v5  ;;  %v1684_v40 = vadd.f32 %v1683_v35, %v3918_v6  ;;  %v1492_v41 = vpop.f32.mrb[43].mxu0  ;;  %v1685_v42 = vpop.f32.mrb[43].mxu1 }
 0x2e5   : > { %v2237_v43 = vmax.f32 %v1489_v30, 0.0  ;;  %v2239_v45 = vmax.f32 %v1682_v32, 0.0  ;;  %v1493_v46 = vadd.f32 %v1492_v41, %v3920_v15  ;;  %v1686_v47 = vadd.f32 %v1685_v42, %v3922_v16 }
 0x2e6   : > { %v2464_v48 = vmax.f32 %v2463_v19, %v2236_v36  ;;  %v2538_v49 = vmax.f32 %v2537_v20, %v2238_v34  ;;  %v2244_v50 = vmax.f32 %v1491_v37, 0.0  ;;  %v2246_v51 = vmax.f32 %v1684_v40, 0.0  ;;  %1981 = vmatmul.mubr.bf16.gmra.mrb[148].mxu0 %v3816_v59  ;;  %2174 = vmatmul.mubr.bf16.gmra.mrb[148].mxu1 %v3816_v59 }
 0x2e7   : > { %v2501_v52 = vmax.f32 %v2500_v22, %v2237_v43  ;;  %v2575_v53 = vmax.f32 %v2574_v23, %v2239_v45  ;;  %v2245_v54 = vmax.f32 %v1493_v46, 0.0  ;;  %v2247_v55 = vmax.f32 %v1686_v47, 0.0  ;;  %1990 = vmatprep.mubr.bf16.mxu0 %v3301_v12  ;;  %2183 = vmatprep.mubr.bf16.mxu1 %v3301_v12 }
 0x2e8   : > { %v2465_v44 = vmax.f32 %v2464_v48, %v2244_v50  ;;  %v2539_v56 = vmax.f32 %v2538_v49, %v2246_v51 }
 0x2e9   : > { %v2502_v57 = vmax.f32 %v2501_v52, %v2245_v54  ;;  %v2576_v61 = vmax.f32 %v2575_v53, %v2247_v55  ;;  %v1496_v62 = vpop.f32.mrb[44].mxu0  ;;  %v1689_v63 = vpop.f32.mrb[44].mxu1 }
 0x2ea   : > { %v1497_v0 = vadd.f32 %v1496_v62, %v3916_v5  ;;  %v1690_v1 = vadd.f32 %v1689_v63, %v3918_v6  ;;  %v1498_v2 = vpop.f32.mrb[45].mxu0  ;;  %v1691_v59 = vpop.f32.mrb[45].mxu1 }
 0x2eb   : > { %v1499_v58 = vadd.f32 %v1498_v2, %v3920_v15  ;;  %v1692_v7 = vadd.f32 %v1691_v59, %v3922_v16  ;;  %v1500_v8 = vpop.f32.mrb[46].mxu0  ;;  %v1693_v9 = vpop.f32.mrb[46].mxu1 }
 0x2ec   : > { %v2252_v10 = vmax.f32 %v1497_v0, 0.0  ;;  %v2254_v11 = vmax.f32 %v1690_v1, 0.0  ;;  %v1501_v21 = vadd.f32 %v1500_v8, %v3916_v5  ;;  %v1694_v39 = vadd.f32 %v1693_v9, %v3918_v6  ;;  %v1502_v3 = vpop.f32.mrb[47].mxu0  ;;  %v1695_v4 = vpop.f32.mrb[47].mxu1 }
 0x2ed   : > { %v2253_v28 = vmax.f32 %v1499_v58, 0.0  ;;  %v2255_v31 = vmax.f32 %v1692_v7, 0.0  ;;  %v1503_v17 = vadd.f32 %v1502_v3, %v3920_v15  ;;  %v1696_v18 = vadd.f32 %v1695_v4, %v3922_v16 }
 0x2ee   : > { %v2466_v19 = vmax.f32 %v2465_v44, %v2252_v10  ;;  %v2540_v20 = vmax.f32 %v2539_v56, %v2254_v11  ;;  %v2260_v22 = vmax.f32 %v1501_v21, 0.0  ;;  %v2262_v23 = vmax.f32 %v1694_v39, 0.0  ;;  %1991 = vmatmul.mubr.bf16.gmra.mrb[152].mxu0 %v3830_v14  ;;  %2184 = vmatmul.mubr.bf16.gmra.mrb[152].mxu1 %v3830_v14 }
 0x2ef   : > { %v2503_v24 = vmax.f32 %v2502_v57, %v2253_v28  ;;  %v2577_v25 = vmax.f32 %v2576_v61, %v2255_v31  ;;  %v2261_v26 = vmax.f32 %v1503_v17, 0.0  ;;  %v2263_v27 = vmax.f32 %v1696_v18, 0.0  ;;  %2000 = vmatprep.mubr.bf16.mxu0 %v3301_v12  ;;  %2193 = vmatprep.mubr.bf16.mxu1 %v3301_v12 }
 0x2f0   : > { %v2467_v29 = vmax.f32 %v2466_v19, %v2260_v22  ;;  %v2541_v60 = vmax.f32 %v2540_v20, %v2262_v23 }
 0x2f1   : > { %v2504_v30 = vmax.f32 %v2503_v24, %v2261_v26  ;;  %v2578_v32 = vmax.f32 %v2577_v25, %v2263_v27  ;;  %v1506_v33 = vpop.f32.mrb[48].mxu0  ;;  %v1699_v35 = vpop.f32.mrb[48].mxu1 }
 0x2f2   : > { %v1507_v36 = vadd.f32 %v1506_v33, %v3916_v5  ;;  %v1700_v34 = vadd.f32 %v1699_v35, %v3918_v6  ;;  %v1508_v37 = vpop.f32.mrb[49].mxu0  ;;  %v1701_v14 = vpop.f32.mrb[49].mxu1 }
 0x2f3   : > { %v1509_v40 = vadd.f32 %v1508_v37, %v3920_v15  ;;  %v1702_v41 = vadd.f32 %v1701_v14, %v3922_v16  ;;  %v1510_v42 = vpop.f32.mrb[50].mxu0  ;;  %v1703_v43 = vpop.f32.mrb[50].mxu1 }
 0x2f4   : > { %v2268_v45 = vmax.f32 %v1507_v36, 0.0  ;;  %v2270_v12 = vmax.f32 %v1700_v34, 0.0  ;;  %v1511_v46 = vadd.f32 %v1510_v42, %v3916_v5  ;;  %v1704_v47 = vadd.f32 %v1703_v43, %v3918_v6  ;;  %v1512_v48 = vpop.f32.mrb[51].mxu0  ;;  %v1705_v49 = vpop.f32.mrb[51].mxu1 }
 0x2f5   : > { %v2269_v50 = vmax.f32 %v1509_v40, 0.0  ;;  %v2271_v51 = vmax.f32 %v1702_v41, 0.0  ;;  %v1513_v52 = vadd.f32 %v1512_v48, %v3920_v15  ;;  %v1706_v53 = vadd.f32 %v1705_v49, %v3922_v16 }
 0x2f6   : > { %v2468_v54 = vmax.f32 %v2467_v29, %v2268_v45  ;;  %v2542_v55 = vmax.f32 %v2541_v60, %v2270_v12  ;;  %v2276_v44 = vmax.f32 %v1511_v46, 0.0  ;;  %v2278_v56 = vmax.f32 %v1704_v47, 0.0  ;;  %2001 = vmatmul.mubr.bf16.gmra.mrb[156].mxu0 %v3828_v13  ;;  %2194 = vmatmul.mubr.bf16.gmra.mrb[156].mxu1 %v3828_v13 }
 0x2f7   : > { %v2505_v57 = vmax.f32 %v2504_v30, %v2269_v50  ;;  %v2579_v61 = vmax.f32 %v2578_v32, %v2271_v51  ;;  %v2277_v62 = vmax.f32 %v1513_v52, 0.0  ;;  %v2279_v63 = vmax.f32 %v1706_v53, 0.0 }
 0x2f8   : > { %v2469_v0 = vmax.f32 %v2468_v54, %v2276_v44  ;;  %v2543_v1 = vmax.f32 %v2542_v55, %v2278_v56 }
 0x2f9   : > { %v2506_v2 = vmax.f32 %v2505_v57, %v2277_v62  ;;  %v2580_v59 = vmax.f32 %v2579_v61, %v2279_v63  ;;  %v1516_v58 = vpop.f32.mrb[52].mxu0  ;;  %v1709_v7 = vpop.f32.mrb[52].mxu1 }
 0x2fa   : > { %v1517_v8 = vadd.f32 %v1516_v58, %v3916_v5  ;;  %v1710_v9 = vadd.f32 %v1709_v7, %v3918_v6  ;;  %v1518_v10 = vpop.f32.mrb[53].mxu0  ;;  %v1711_v11 = vpop.f32.mrb[53].mxu1 }
 0x2fb   : > { %v1519_v21 = vadd.f32 %v1518_v10, %v3920_v15  ;;  %v1712_v13 = vadd.f32 %v1711_v11, %v3922_v16  ;;  %v1520_v39 = vpop.f32.mrb[54].mxu0  ;;  %v1713_v3 = vpop.f32.mrb[54].mxu1 }
 0x2fc   : > { %v2284_v4 = vmax.f32 %v1517_v8, 0.0  ;;  %v2286_v28 = vmax.f32 %v1710_v9, 0.0  ;;  %v1521_v31 = vadd.f32 %v1520_v39, %v3916_v5  ;;  %v1714_v17 = vadd.f32 %v1713_v3, %v3918_v6  ;;  %v1522_v18 = vpop.f32.mrb[55].mxu0  ;;  %v1715_v19 = vpop.f32.mrb[55].mxu1 }
 0x2fd   : > { %v2285_v20 = vmax.f32 %v1519_v21, 0.0  ;;  %v2287_v22 = vmax.f32 %v1712_v13, 0.0  ;;  %v1523_v23 = vadd.f32 %v1522_v18, %v3920_v15  ;;  %v1716_v24 = vadd.f32 %v1715_v19, %v3922_v16 }
 0x2fe   : > { %v2470_v25 = vmax.f32 %v2469_v0, %v2284_v4  ;;  %v2544_v26 = vmax.f32 %v2543_v1, %v2286_v28  ;;  %v2292_v27 = vmax.f32 %v1521_v31, 0.0  ;;  %v2294_v29 = vmax.f32 %v1714_v17, 0.0 }
 0x2ff   : > { %v2507_v60 = vmax.f32 %v2506_v2, %v2285_v20  ;;  %v2581_v30 = vmax.f32 %v2580_v59, %v2287_v22  ;;  %v2293_v32 = vmax.f32 %v1523_v23, 0.0  ;;  %v2295_v33 = vmax.f32 %v1716_v24, 0.0 }
 0x300   : > { %v2471_v35 = vmax.f32 %v2470_v25, %v2292_v27  ;;  %v2545_v36 = vmax.f32 %v2544_v26, %v2294_v29 }
 0x301   : > { %v2508_v34 = vmax.f32 %v2507_v60, %v2293_v32  ;;  %v2582_v37 = vmax.f32 %v2581_v30, %v2295_v33  ;;  %v1526_v14 = vpop.f32.mrb[56].mxu0  ;;  %v1719_v40 = vpop.f32.mrb[56].mxu1 }
 0x302   : > { %v1527_v41 = vadd.f32 %v1526_v14, %v3916_v5  ;;  %v1720_v42 = vadd.f32 %v1719_v40, %v3918_v6  ;;  %v1528_v43 = vpop.f32.mrb[57].mxu0  ;;  %v1721_v45 = vpop.f32.mrb[57].mxu1 }
 0x303   : > { %v1529_v12 = vadd.f32 %v1528_v43, %v3920_v15  ;;  %v1722_v46 = vadd.f32 %v1721_v45, %v3922_v16  ;;  %v1530_v47 = vpop.f32.mrb[58].mxu0  ;;  %v1723_v48 = vpop.f32.mrb[58].mxu1 }
 0x304   : > { %v2300_v49 = vmax.f32 %v1527_v41, 0.0  ;;  %v2302_v50 = vmax.f32 %v1720_v42, 0.0  ;;  %v1531_v51 = vadd.f32 %v1530_v47, %v3916_v5  ;;  %v1724_v52 = vadd.f32 %v1723_v48, %v3918_v6  ;;  %v1532_v53 = vpop.f32.mrb[59].mxu0  ;;  %v1725_v54 = vpop.f32.mrb[59].mxu1 }
 0x305   : > { %v2301_v55 = vmax.f32 %v1529_v12, 0.0  ;;  %v2303_v44 = vmax.f32 %v1722_v46, 0.0  ;;  %v1533_v56 = vadd.f32 %v1532_v53, %v3920_v15  ;;  %v1726_v57 = vadd.f32 %v1725_v54, %v3922_v16 }
 0x306   : > { %v2472_v61 = vmax.f32 %v2471_v35, %v2300_v49  ;;  %v2546_v62 = vmax.f32 %v2545_v36, %v2302_v50  ;;  %v2308_v63 = vmax.f32 %v1531_v51, 0.0  ;;  %v2310_v0 = vmax.f32 %v1724_v52, 0.0 }
 0x307   : > { %v2509_v1 = vmax.f32 %v2508_v34, %v2301_v55  ;;  %v2583_v2 = vmax.f32 %v2582_v37, %v2303_v44  ;;  %v2309_v59 = vmax.f32 %v1533_v56, 0.0  ;;  %v2311_v58 = vmax.f32 %v1726_v57, 0.0 }
 0x308   : > { %v2473_v7 = vmax.f32 %v2472_v61, %v2308_v63  ;;  %v2547_v8 = vmax.f32 %v2546_v62, %v2310_v0 }
 0x309   : > { %v2510_v9 = vmax.f32 %v2509_v1, %v2309_v59  ;;  %v2584_v10 = vmax.f32 %v2583_v2, %v2311_v58  ;;  %v1536_v11 = vpop.f32.mrb[60].mxu0  ;;  %v1729_v21 = vpop.f32.mrb[60].mxu1 }
 0x30a   : > { %v1537_v13 = vadd.f32 %v1536_v11, %v3916_v5  ;;  %v1730_v39 = vadd.f32 %v1729_v21, %v3918_v6  ;;  %v1538_v3 = vpop.f32.mrb[61].mxu0  ;;  %v1731_v4 = vpop.f32.mrb[61].mxu1 }
 0x30b   : > { %v1539_v28 = vadd.f32 %v1538_v3, %v3920_v15  ;;  %v1732_v31 = vadd.f32 %v1731_v4, %v3922_v16  ;;  %v1540_v17 = vpop.f32.mrb[62].mxu0  ;;  %v1733_v18 = vpop.f32.mrb[62].mxu1 }
 0x30c   : > { %v2316_v19 = vmax.f32 %v1537_v13, 0.0  ;;  %v2318_v20 = vmax.f32 %v1730_v39, 0.0  ;;  %v1541_v22 = vadd.f32 %v1540_v17, %v3916_v5  ;;  %v1734_v23 = vadd.f32 %v1733_v18, %v3918_v6  ;;  %v1542_v24 = vpop.f32.mrb[63].mxu0  ;;  %v1735_v25 = vpop.f32.mrb[63].mxu1 }
 0x30d   : > { %v2317_v26 = vmax.f32 %v1539_v28, 0.0  ;;  %v2319_v27 = vmax.f32 %v1732_v31, 0.0  ;;  %v1543_v29 = vadd.f32 %v1542_v24, %v3920_v15  ;;  %v1736_v60 = vadd.f32 %v1735_v25, %v3922_v16 }
 0x30e   : > { %v2474_v30 = vmax.f32 %v2473_v7, %v2316_v19  ;;  %v2548_v32 = vmax.f32 %v2547_v8, %v2318_v20  ;;  %v2324_v33 = vmax.f32 %v1541_v22, 0.0  ;;  %v2326_v35 = vmax.f32 %v1734_v23, 0.0 }
 0x30f   : > { %v2511_v36 = vmax.f32 %v2510_v9, %v2317_v26  ;;  %v2585_v34 = vmax.f32 %v2584_v10, %v2319_v27  ;;  %v2325_v37 = vmax.f32 %v1543_v29, 0.0  ;;  %v2327_v14 = vmax.f32 %v1736_v60, 0.0 }
 0x310   : > { %v2475_v40 = vmax.f32 %v2474_v30, %v2324_v33  ;;  %v2549_v41 = vmax.f32 %v2548_v32, %v2326_v35 }
 0x311   : > { %v2512_v42 = vmax.f32 %v2511_v36, %v2325_v37  ;;  %v2586_v43 = vmax.f32 %v2585_v34, %v2327_v14  ;;  %v1546_v45 = vpop.f32.mrb[64].mxu0  ;;  %v1739_v12 = vpop.f32.mrb[64].mxu1 }
 0x312   : > { %v1547_v46 = vadd.f32 %v1546_v45, %v3916_v5  ;;  %v1740_v47 = vadd.f32 %v1739_v12, %v3918_v6  ;;  %v1548_v48 = vpop.f32.mrb[65].mxu0  ;;  %v1741_v49 = vpop.f32.mrb[65].mxu1 }
 0x313   : > { %v1549_v50 = vadd.f32 %v1548_v48, %v3920_v15  ;;  %v1742_v51 = vadd.f32 %v1741_v49, %v3922_v16  ;;  %v1550_v52 = vpop.f32.mrb[66].mxu0  ;;  %v1743_v53 = vpop.f32.mrb[66].mxu1 }
 0x314   : > { %v2332_v54 = vmax.f32 %v1547_v46, 0.0  ;;  %v2334_v55 = vmax.f32 %v1740_v47, 0.0  ;;  %v1551_v44 = vadd.f32 %v1550_v52, %v3916_v5  ;;  %v1744_v56 = vadd.f32 %v1743_v53, %v3918_v6  ;;  %v1552_v57 = vpop.f32.mrb[67].mxu0  ;;  %v1745_v61 = vpop.f32.mrb[67].mxu1 }
 0x315   : > { %v2333_v62 = vmax.f32 %v1549_v50, 0.0  ;;  %v2335_v63 = vmax.f32 %v1742_v51, 0.0  ;;  %v1553_v0 = vadd.f32 %v1552_v57, %v3920_v15  ;;  %v1746_v1 = vadd.f32 %v1745_v61, %v3922_v16 }
 0x316   : > { %v2476_v2 = vmax.f32 %v2475_v40, %v2332_v54  ;;  %v2550_v59 = vmax.f32 %v2549_v41, %v2334_v55  ;;  %v2340_v58 = vmax.f32 %v1551_v44, 0.0  ;;  %v2342_v7 = vmax.f32 %v1744_v56, 0.0 }
 0x317   : > { %v2513_v8 = vmax.f32 %v2512_v42, %v2333_v62  ;;  %v2587_v9 = vmax.f32 %v2586_v43, %v2335_v63  ;;  %v2341_v10 = vmax.f32 %v1553_v0, 0.0  ;;  %v2343_v11 = vmax.f32 %v1746_v1, 0.0 }
 0x318   : > { %v2477_v21 = vmax.f32 %v2476_v2, %v2340_v58  ;;  %v2551_v13 = vmax.f32 %v2550_v59, %v2342_v7 }
 0x319   : > { %v2514_v39 = vmax.f32 %v2513_v8, %v2341_v10  ;;  %v2588_v3 = vmax.f32 %v2587_v9, %v2343_v11  ;;  %v1556_v4 = vpop.f32.mrb[68].mxu0  ;;  %v1749_v28 = vpop.f32.mrb[68].mxu1 }
 0x31a   : > { %v1557_v31 = vadd.f32 %v1556_v4, %v3916_v5  ;;  %v1750_v17 = vadd.f32 %v1749_v28, %v3918_v6  ;;  %v1558_v18 = vpop.f32.mrb[69].mxu0  ;;  %v1751_v19 = vpop.f32.mrb[69].mxu1 }
 0x31b   : > { %v1559_v20 = vadd.f32 %v1558_v18, %v3920_v15  ;;  %v1752_v22 = vadd.f32 %v1751_v19, %v3922_v16  ;;  %v1560_v23 = vpop.f32.mrb[70].mxu0  ;;  %v1753_v24 = vpop.f32.mrb[70].mxu1 }
 0x31c   : > { %v2348_v25 = vmax.f32 %v1557_v31, 0.0  ;;  %v2350_v26 = vmax.f32 %v1750_v17, 0.0  ;;  %v1561_v27 = vadd.f32 %v1560_v23, %v3916_v5  ;;  %v1754_v29 = vadd.f32 %v1753_v24, %v3918_v6  ;;  %v1562_v60 = vpop.f32.mrb[71].mxu0  ;;  %v1755_v30 = vpop.f32.mrb[71].mxu1 }
 0x31d   : > { %v2349_v32 = vmax.f32 %v1559_v20, 0.0  ;;  %v2351_v33 = vmax.f32 %v1752_v22, 0.0  ;;  %v1563_v35 = vadd.f32 %v1562_v60, %v3920_v15  ;;  %v1756_v36 = vadd.f32 %v1755_v30, %v3922_v16 }
 0x31e   : > { %v2478_v34 = vmax.f32 %v2477_v21, %v2348_v25  ;;  %v2552_v37 = vmax.f32 %v2551_v13, %v2350_v26  ;;  %v2356_v14 = vmax.f32 %v1561_v27, 0.0  ;;  %v2358_v40 = vmax.f32 %v1754_v29, 0.0 }
 0x31f   : > { %v2515_v41 = vmax.f32 %v2514_v39, %v2349_v32  ;;  %v2589_v42 = vmax.f32 %v2588_v3, %v2351_v33  ;;  %v2357_v43 = vmax.f32 %v1563_v35, 0.0  ;;  %v2359_v45 = vmax.f32 %v1756_v36, 0.0 }
 0x320   : > { %v2479_v12 = vmax.f32 %v2478_v34, %v2356_v14  ;;  %v2553_v46 = vmax.f32 %v2552_v37, %v2358_v40 }
 0x321   : > { %v2516_v47 = vmax.f32 %v2515_v41, %v2357_v43  ;;  %v2590_v48 = vmax.f32 %v2589_v42, %v2359_v45  ;;  %v1566_v49 = vpop.f32.mrb[72].mxu0  ;;  %v1759_v50 = vpop.f32.mrb[72].mxu1 }
 0x322   : > { %v1567_v51 = vadd.f32 %v1566_v49, %v3916_v5  ;;  %v1760_v52 = vadd.f32 %v1759_v50, %v3918_v6  ;;  %v1568_v53 = vpop.f32.mrb[73].mxu0  ;;  %v1761_v54 = vpop.f32.mrb[73].mxu1 }
 0x323   : > { %v1569_v55 = vadd.f32 %v1568_v53, %v3920_v15  ;;  %v1762_v44 = vadd.f32 %v1761_v54, %v3922_v16  ;;  %v1570_v56 = vpop.f32.mrb[74].mxu0  ;;  %v1763_v57 = vpop.f32.mrb[74].mxu1 }
 0x324   : > { %v2364_v61 = vmax.f32 %v1567_v51, 0.0  ;;  %v2366_v62 = vmax.f32 %v1760_v52, 0.0  ;;  %v1571_v63 = vadd.f32 %v1570_v56, %v3916_v5  ;;  %v1764_v0 = vadd.f32 %v1763_v57, %v3918_v6  ;;  %v1572_v1 = vpop.f32.mrb[75].mxu0  ;;  %v1765_v2 = vpop.f32.mrb[75].mxu1 }
 0x325   : > { %v2365_v59 = vmax.f32 %v1569_v55, 0.0  ;;  %v2367_v58 = vmax.f32 %v1762_v44, 0.0  ;;  %v1573_v7 = vadd.f32 %v1572_v1, %v3920_v15  ;;  %v1766_v8 = vadd.f32 %v1765_v2, %v3922_v16 }
 0x326   : > { %v2480_v9 = vmax.f32 %v2479_v12, %v2364_v61  ;;  %v2554_v10 = vmax.f32 %v2553_v46, %v2366_v62  ;;  %v2372_v11 = vmax.f32 %v1571_v63, 0.0  ;;  %v2374_v21 = vmax.f32 %v1764_v0, 0.0 }
 0x327   : > { %v2517_v13 = vmax.f32 %v2516_v47, %v2365_v59  ;;  %v2591_v39 = vmax.f32 %v2590_v48, %v2367_v58  ;;  %v2373_v3 = vmax.f32 %v1573_v7, 0.0  ;;  %v2375_v4 = vmax.f32 %v1766_v8, 0.0 }
 0x328   : > { %v2481_v28 = vmax.f32 %v2480_v9, %v2372_v11  ;;  %v2555_v31 = vmax.f32 %v2554_v10, %v2374_v21 }
 0x329   : > { %v2518_v17 = vmax.f32 %v2517_v13, %v2373_v3  ;;  %v2592_v18 = vmax.f32 %v2591_v39, %v2375_v4  ;;  %v1576_v19 = vpop.f32.mrb[76].mxu0  ;;  %v1769_v20 = vpop.f32.mrb[76].mxu1 }
 0x32a   : > { %v1577_v22 = vadd.f32 %v1576_v19, %v3916_v5  ;;  %v1770_v23 = vadd.f32 %v1769_v20, %v3918_v6  ;;  %v1578_v24 = vpop.f32.mrb[77].mxu0  ;;  %v1771_v25 = vpop.f32.mrb[77].mxu1 }
 0x32b   : > { %v1579_v26 = vadd.f32 %v1578_v24, %v3920_v15  ;;  %v1772_v27 = vadd.f32 %v1771_v25, %v3922_v16  ;;  %v1580_v29 = vpop.f32.mrb[78].mxu0  ;;  %v1773_v60 = vpop.f32.mrb[78].mxu1 }
 0x32c   : > { %v2380_v30 = vmax.f32 %v1577_v22, 0.0  ;;  %v2382_v32 = vmax.f32 %v1770_v23, 0.0  ;;  %v1581_v33 = vadd.f32 %v1580_v29, %v3916_v5  ;;  %v1774_v35 = vadd.f32 %v1773_v60, %v3918_v6  ;;  %v1582_v36 = vpop.f32.mrb[79].mxu0  ;;  %v1775_v34 = vpop.f32.mrb[79].mxu1 }
 0x32d   : > { %v2381_v37 = vmax.f32 %v1579_v26, 0.0  ;;  %v2383_v14 = vmax.f32 %v1772_v27, 0.0  ;;  %v1583_v40 = vadd.f32 %v1582_v36, %v3920_v15  ;;  %v1776_v41 = vadd.f32 %v1775_v34, %v3922_v16 }
 0x32e   : > { %v2482_v42 = vmax.f32 %v2481_v28, %v2380_v30  ;;  %v2556_v43 = vmax.f32 %v2555_v31, %v2382_v32  ;;  %v2388_v45 = vmax.f32 %v1581_v33, 0.0  ;;  %v2390_v12 = vmax.f32 %v1774_v35, 0.0 }
 0x32f   : > { %v2519_v46 = vmax.f32 %v2518_v17, %v2381_v37  ;;  %v2593_v47 = vmax.f32 %v2592_v18, %v2383_v14  ;;  %v2389_v48 = vmax.f32 %v1583_v40, 0.0  ;;  %v2391_v49 = vmax.f32 %v1776_v41, 0.0 }
 0x330   : > { %v2483_v50 = vmax.f32 %v2482_v42, %v2388_v45  ;;  %v2557_v51 = vmax.f32 %v2556_v43, %v2390_v12 }
 0x331   : > { %v2520_v52 = vmax.f32 %v2519_v46, %v2389_v48  ;;  %v2594_v53 = vmax.f32 %v2593_v47, %v2391_v49  ;;  %v1586_v54 = vpop.f32.mrb[80].mxu0  ;;  %v1779_v55 = vpop.f32.mrb[80].mxu1 }
 0x332   : > { %v1587_v44 = vadd.f32 %v1586_v54, %v3916_v5  ;;  %v1780_v56 = vadd.f32 %v1779_v55, %v3918_v6  ;;  %v1588_v57 = vpop.f32.mrb[81].mxu0  ;;  %v1781_v61 = vpop.f32.mrb[81].mxu1 }
 0x333   : > { %v1589_v62 = vadd.f32 %v1588_v57, %v3920_v15  ;;  %v1782_v63 = vadd.f32 %v1781_v61, %v3922_v16  ;;  %v1590_v0 = vpop.f32.mrb[82].mxu0  ;;  %v1783_v1 = vpop.f32.mrb[82].mxu1 }
 0x334   : > { %v2396_v2 = vmax.f32 %v1587_v44, 0.0  ;;  %v2398_v59 = vmax.f32 %v1780_v56, 0.0  ;;  %v1591_v58 = vadd.f32 %v1590_v0, %v3916_v5  ;;  %v1784_v7 = vadd.f32 %v1783_v1, %v3918_v6  ;;  %v1592_v8 = vpop.f32.mrb[83].mxu0  ;;  %v1785_v9 = vpop.f32.mrb[83].mxu1 }
 0x335   : > { %v2397_v10 = vmax.f32 %v1589_v62, 0.0  ;;  %v2399_v11 = vmax.f32 %v1782_v63, 0.0  ;;  %v1593_v21 = vadd.f32 %v1592_v8, %v3920_v15  ;;  %v1786_v13 = vadd.f32 %v1785_v9, %v3922_v16 }
 0x336   : > { %v2484_v39 = vmax.f32 %v2483_v50, %v2396_v2  ;;  %v2558_v3 = vmax.f32 %v2557_v51, %v2398_v59  ;;  %v2404_v4 = vmax.f32 %v1591_v58, 0.0  ;;  %v2406_v28 = vmax.f32 %v1784_v7, 0.0 }
 0x337   : > { %v2521_v31 = vmax.f32 %v2520_v52, %v2397_v10  ;;  %v2595_v17 = vmax.f32 %v2594_v53, %v2399_v11  ;;  %v2405_v18 = vmax.f32 %v1593_v21, 0.0  ;;  %v2407_v19 = vmax.f32 %v1786_v13, 0.0 }
 0x338   : > { %v2485_v20 = vmax.f32 %v2484_v39, %v2404_v4  ;;  %v2559_v22 = vmax.f32 %v2558_v3, %v2406_v28  ;;  %v1090_v63 = vsub.s32 4, %v3906_v38  ;;  %v1098_v58 = vsub.s32 6, %v3906_v38 }
 0x339   : > { %v2522_v23 = vmax.f32 %v2521_v31, %v2405_v18  ;;  %v2596_v24 = vmax.f32 %v2595_v17, %v2407_v19  ;;  %v1596_v25 = vpop.f32.mrb[84].mxu0  ;;  %v1789_v26 = vpop.f32.mrb[84].mxu1  ;;  %v1094_v7 = vsub.s32 5, %v3906_v38  ;;  %v3302_v21 = vmov 1966171168  }
 0x33a   : > { %v1597_v27 = vadd.f32 %v1596_v25, %v3916_v5  ;;  %v1790_v29 = vadd.f32 %v1789_v26, %v3918_v6  ;;  %v1598_v60 = vpop.f32.mrb[85].mxu0  ;;  %v1791_v30 = vpop.f32.mrb[85].mxu1  ;;  %v2770_v13 = vunpack.c.l.s4 %v3302_v21  ;;  %v1102_v39 = vsub.s32 7, %v3906_v38 }
 0x33b   : > { %v1599_v32 = vadd.f32 %v1598_v60, %v3920_v15  ;;  %v1792_v33 = vadd.f32 %v1791_v30, %v3922_v16  ;;  %v1600_v35 = vpop.f32.mrb[86].mxu0  ;;  %v1793_v36 = vpop.f32.mrb[86].mxu1 }
 0x33c   : > { %v2412_v34 = vmax.f32 %v1597_v27, 0.0  ;;  %v2414_v37 = vmax.f32 %v1790_v29, 0.0  ;;  %v1601_v14 = vadd.f32 %v1600_v35, %v3916_v5  ;;  %v1794_v40 = vadd.f32 %v1793_v36, %v3918_v6  ;;  %v1602_v41 = vpop.f32.mrb[87].mxu0  ;;  %v1795_v42 = vpop.f32.mrb[87].mxu1 }
 0x33d   : > { %v2413_v43 = vmax.f32 %v1599_v32, 0.0  ;;  %v2415_v45 = vmax.f32 %v1792_v33, 0.0  ;;  %v1603_v12 = vadd.f32 %v1602_v41, %v3920_v15  ;;  %v1796_v46 = vadd.f32 %v1795_v42, %v3922_v16 }
 0x33e   : > { %v2486_v47 = vmax.f32 %v2485_v20, %v2412_v34  ;;  %v2560_v48 = vmax.f32 %v2559_v22, %v2414_v37  ;;  %v2420_v49 = vmax.f32 %v1601_v14, 0.0  ;;  %v2422_v50 = vmax.f32 %v1794_v40, 0.0  ;;  %v3225_v40 = vld [vmem:[#allocation3] sm:$0xff] }
 0x33f   : > { %v2523_v51 = vmax.f32 %v2522_v23, %v2413_v43  ;;  %v2597_v52 = vmax.f32 %v2596_v24, %v2415_v45  ;;  %v2421_v53 = vmax.f32 %v1603_v12, 0.0  ;;  %v2423_v54 = vmax.f32 %v1796_v46, 0.0 }
 0x340   : > { %v2487_v55 = vmax.f32 %v2486_v47, %v2420_v49  ;;  %v2561_v44 = vmax.f32 %v2560_v48, %v2422_v50  ;;  %v4068_v41 = vrot.slane %v3225_v40, %v1090_v63  ;;  %v4072_v46 = vrot.slane %v3225_v40, %v1098_v58 }
 0x341   : > { %v2524_v56 = vmax.f32 %v2523_v51, %v2421_v53  ;;  %v2598_v57 = vmax.f32 %v2597_v52, %v2423_v54  ;;  %v1606_v61 = vpop.f32.mrb[88].mxu0  ;;  %v1799_v62 = vpop.f32.mrb[88].mxu1  ;;  %v4074_v47 = vrot.slane %v3225_v40, %v1094_v7  ;;  %v2771_v52 = vunpack.c.0.s8 %v2770_v13 }
 0x342   : > { %v1607_v0 = vadd.f32 %v1606_v61, %v3916_v5  ;;  %v1800_v1 = vadd.f32 %v1799_v62, %v3918_v6  ;;  %v1608_v2 = vpop.f32.mrb[89].mxu0  ;;  %v1801_v59 = vpop.f32.mrb[89].mxu1  ;;  %v4078_v53 = vrot.slane %v3225_v40, %v1102_v39 }
 0x343   : > { %v1609_v8 = vadd.f32 %v1608_v2, %v3920_v15  ;;  %v1802_v9 = vadd.f32 %v1801_v59, %v3922_v16  ;;  %v1610_v10 = vpop.f32.mrb[90].mxu0  ;;  %v1803_v11 = vpop.f32.mrb[90].mxu1 }
 0x344   : > { %v2428_v3 = vmax.f32 %v1607_v0, 0.0  ;;  %v2430_v4 = vmax.f32 %v1800_v1, 0.0  ;;  %v1611_v28 = vadd.f32 %v1610_v10, %v3916_v5  ;;  %v1804_v31 = vadd.f32 %v1803_v11, %v3918_v6  ;;  %v1612_v17 = vpop.f32.mrb[91].mxu0  ;;  %v1805_v18 = vpop.f32.mrb[91].mxu1 }
 0x345   : > { %v2429_v19 = vmax.f32 %v1609_v8, 0.0  ;;  %v2431_v20 = vmax.f32 %v1802_v9, 0.0  ;;  %v1613_v22 = vadd.f32 %v1612_v17, %v3920_v15  ;;  %v1806_v23 = vadd.f32 %v1805_v18, %v3922_v16 }
 0x346   : > { %v2488_v24 = vmax.f32 %v2487_v55, %v2428_v3  ;;  %v2562_v25 = vmax.f32 %v2561_v44, %v2430_v4  ;;  %v2436_v26 = vmax.f32 %v1611_v28, 0.0  ;;  %v2438_v27 = vmax.f32 %v1804_v31, 0.0 }
 0x347   : > { %v2525_v29 = vmax.f32 %v2524_v56, %v2429_v19  ;;  %v2599_v60 = vmax.f32 %v2598_v57, %v2431_v20  ;;  %v2437_v30 = vmax.f32 %v1613_v22, 0.0  ;;  %v2439_v32 = vmax.f32 %v1806_v23, 0.0 }
 0x348   : > { %v2489_v33 = vmax.f32 %v2488_v24, %v2436_v26  ;;  %v2563_v35 = vmax.f32 %v2562_v25, %v2438_v27 }
 0x349   : > { %v2526_v36 = vmax.f32 %v2525_v29, %v2437_v30  ;;  %v2600_v34 = vmax.f32 %v2599_v60, %v2439_v32  ;;  %v1616_v37 = vpop.f32.mrb[92].mxu0  ;;  %v1809_v14 = vpop.f32.mrb[92].mxu1 }
 0x34a   : > { %v1617_v42 = vadd.f32 %v1616_v37, %v3916_v5  ;;  %v1810_v43 = vadd.f32 %v1809_v14, %v3918_v6  ;;  %v1618_v45 = vpop.f32.mrb[93].mxu0  ;;  %v1811_v12 = vpop.f32.mrb[93].mxu1 }
 0x34b   : > { %v1619_v48 = vadd.f32 %v1618_v45, %v3920_v15  ;;  %v1812_v49 = vadd.f32 %v1811_v12, %v3922_v16  ;;  %v1620_v50 = vpop.f32.mrb[94].mxu0  ;;  %v1813_v51 = vpop.f32.mrb[94].mxu1 }
 0x34c   : > { %v2444_v54 = vmax.f32 %v1617_v42, 0.0  ;;  %v2446_v55 = vmax.f32 %v1810_v43, 0.0  ;;  %v1621_v44 = vadd.f32 %v1620_v50, %v3916_v5  ;;  %v1814_v56 = vadd.f32 %v1813_v51, %v3918_v6  ;;  %v1622_v57 = vpop.f32.mrb[95].mxu0  ;;  %v1815_v61 = vpop.f32.mrb[95].mxu1 }
 0x34d   : > { %v2445_v62 = vmax.f32 %v1619_v48, 0.0  ;;  %v2447_v63 = vmax.f32 %v1812_v49, 0.0  ;;  %v1623_v0 = vadd.f32 %v1622_v57, %v3920_v15  ;;  %v1816_v1 = vadd.f32 %v1815_v61, %v3922_v16 }
 0x34e   : > { %v2490_v2 = vmax.f32 %v2489_v33, %v2444_v54  ;;  %v2564_v59 = vmax.f32 %v2563_v35, %v2446_v55  ;;  %v2452_v58 = vmax.f32 %v1621_v44, 0.0  ;;  %v2454_v7 = vmax.f32 %v1814_v56, 0.0 }
 0x34f   : > { %v2527_v8 = vmax.f32 %v2526_v36, %v2445_v62  ;;  %v2601_v9 = vmax.f32 %v2600_v34, %v2447_v63  ;;  %v2453_v10 = vmax.f32 %v1623_v0, 0.0  ;;  %v2455_v11 = vmax.f32 %v1816_v1, 0.0 }
 0x350   : > { %v2491_v21 = vmax.f32 %v2490_v2, %v2452_v58  ;;  %v2565_v5 = vmax.f32 %v2564_v59, %v2454_v7  ;;  %v4085_v6 = vsub.s32 %v2771_v52, %v3906_v38 }
 0x351   : > { %v2528_v13 = vmax.f32 %v2527_v8, %v2453_v10  ;;  %v2602_v39 = vmax.f32 %v2601_v9, %v2455_v11  ;;  %v1852_v3 = vpop.f32.mrb[96].mxu0  ;;  %v2045_v4 = vpop.f32.mrb[96].mxu1 }
 0x352   : > { %v2492_v15 = vrot.slane %v2491_v21, 4  ;;  %v2566_v28 = vrot.slane %v2565_v5, 4  ;;  %v1853_v16 = vadd.f32 %v1852_v3, %v4068_v41  ;;  %v2046_v31 = vadd.f32 %v2045_v4, %v4072_v46  ;;  %v1854_v17 = vpop.f32.mrb[97].mxu0  ;;  %v2047_v18 = vpop.f32.mrb[97].mxu1 }
 0x353   : > { %v2529_v19 = vrot.slane %v2528_v13, 4  ;;  %v2603_v20 = vrot.slane %v2602_v39, 4  ;;  %v1855_v22 = vadd.f32 %v1854_v17, %v4074_v47  ;;  %v2048_v23 = vadd.f32 %v2047_v18, %v4078_v53  ;;  %v1856_v24 = vpop.f32.mrb[98].mxu0  ;;  %v2049_v38 = vpop.f32.mrb[98].mxu1 }
 0x354   : > { %v2493_v25 = vmax.f32 %v2491_v21, %v2492_v15  ;;  %v2567_v26 = vmax.f32 %v2565_v5, %v2566_v28  ;;  %v2208_v27 = vmax.f32 %v1853_v16, 0.0  ;;  %v2210_v29 = vmax.f32 %v2046_v31, 0.0  ;;  %v1858_v60 = vpop.f32.mrb[99].mxu0  ;;  %v2051_v30 = vpop.f32.mrb[99].mxu1 }
 0x355   : > { %v2530_v32 = vmax.f32 %v2528_v13, %v2529_v19  ;;  %v2604_v33 = vmax.f32 %v2602_v39, %v2603_v20  ;;  %v2209_v35 = vmax.f32 %v1855_v22, 0.0  ;;  %v2211_v36 = vmax.f32 %v2048_v23, 0.0 }
 0x356   : > { %v2494_v34 = vrot.slane %v2493_v25, 2  ;;  %v2568_v37 = vrot.slane %v2567_v26, 2  ;;  %v1857_v14 = vadd.f32 %v1856_v24, %v4068_v41  ;;  %v2050_v40 = vadd.f32 %v2049_v38, %v4072_v46 }
 0x357   : > { %v2531_v42 = vrot.slane %v2530_v32, 2  ;;  %v2605_v43 = vrot.slane %v2604_v33, 2  ;;  %v1859_v45 = vadd.f32 %v1858_v60, %v4074_v47  ;;  %v2052_v12 = vadd.f32 %v2051_v30, %v4078_v53 }
 0x358   : > { %v2495_v48 = vmax.f32 %v2493_v25, %v2494_v34  ;;  %v2569_v49 = vmax.f32 %v2567_v26, %v2568_v37  ;;  %v2216_v50 = vmax.f32 %v1857_v14, 0.0  ;;  %v2218_v51 = vmax.f32 %v2050_v40, 0.0 }
 0x359   : > { %v2532_v52 = vmax.f32 %v2530_v32, %v2531_v42  ;;  %v2606_v54 = vmax.f32 %v2604_v33, %v2605_v43  ;;  %v2217_v55 = vmax.f32 %v1859_v45, 0.0  ;;  %v2219_v44 = vmax.f32 %v2052_v12, 0.0  ;;  %v1862_v56 = vpop.f32.mrb[100].mxu0  ;;  %v2055_v57 = vpop.f32.mrb[100].mxu1 }
 0x35a   : > { %v2496_v61 = vrot.slane %v2495_v48, 1  ;;  %v2570_v62 = vrot.slane %v2569_v49, 1  ;;  %v2609_v63 = vmax.f32 %v2208_v27, %v2216_v50  ;;  %v2683_v0 = vmax.f32 %v2210_v29, %v2218_v51  ;;  %v1864_v1 = vpop.f32.mrb[101].mxu0  ;;  %v2057_v2 = vpop.f32.mrb[101].mxu1 }
 0x35b   : > { %v2533_v59 = vrot.slane %v2532_v52, 1  ;;  %v2607_v58 = vrot.slane %v2606_v54, 1  ;;  %v2646_v7 = vmax.f32 %v2209_v35, %v2217_v55  ;;  %v2720_v8 = vmax.f32 %v2211_v36, %v2219_v44  ;;  %v1866_v9 = vpop.f32.mrb[102].mxu0  ;;  %v2059_v10 = vpop.f32.mrb[102].mxu1 }
 0x35c   : > { %v2497_v11 = vmax.f32 %v2495_v48, %v2496_v61  ;;  %v2571_v21 = vmax.f32 %v2569_v49, %v2570_v62  ;;  %v1863_v5 = vadd.f32 %v1862_v56, %v4068_v41  ;;  %v2056_v13 = vadd.f32 %v2055_v57, %v4072_v46  ;;  %v1868_v39 = vpop.f32.mrb[103].mxu0  ;;  %v2061_v3 = vpop.f32.mrb[103].mxu1 }
 0x35d   : > { %v2534_v4 = vmax.f32 %v2532_v52, %v2533_v59  ;;  %v2608_v15 = vmax.f32 %v2606_v54, %v2607_v58  ;;  %v1865_v28 = vadd.f32 %v1864_v1, %v4074_v47  ;;  %v2058_v16 = vadd.f32 %v2057_v2, %v4078_v53 }
 0x35e   : > { %v2224_v31 = vmax.f32 %v1863_v5, 0.0  ;;  %v2226_v17 = vmax.f32 %v2056_v13, 0.0  ;;  %v1867_v18 = vadd.f32 %v1866_v9, %v4068_v41  ;;  %v2060_v19 = vadd.f32 %v2059_v10, %v4072_v46 }
 0x35f   : > { %v2765_v20 = vcombine.low %v2497_v11, %v2534_v4  ;;  %v2766_v22 = vcombine.low %v2571_v21, %v2608_v15  ;;  %v2225_v23 = vmax.f32 %v1865_v28, 0.0  ;;  %v2227_v24 = vmax.f32 %v2058_v16, 0.0 }
 0x360   : > { %v2610_v38 = vmax.f32 %v2609_v63, %v2224_v31  ;;  %v2684_v25 = vmax.f32 %v2683_v0, %v2226_v17  ;;  %v2232_v26 = vmax.f32 %v1867_v18, 0.0  ;;  %v2234_v27 = vmax.f32 %v2060_v19, 0.0 }
 0x361   : > { %v4102_v29 = vrot.slane %v2765_v20, %v4085_v6  ;;  %v4105_v60 = vrot.slane %v2766_v22, %v4085_v6  ;;  %v2647_v30 = vmax.f32 %v2646_v7, %v2225_v23  ;;  %v2721_v32 = vmax.f32 %v2720_v8, %v2227_v24  ;;  %v1872_v33 = vpop.f32.mrb[104].mxu0  ;;  %v2065_v35 = vpop.f32.mrb[104].mxu1 }
 0x362   : > { %v2611_v36 = vmax.f32 %v2610_v38, %v2232_v26  ;;  %v2685_v34 = vmax.f32 %v2684_v25, %v2234_v27  ;;  %v1869_v37 = vadd.f32 %v1868_v39, %v4074_v47  ;;  %v2062_v14 = vadd.f32 %v2061_v3, %v4078_v53  ;;  %v1874_v40 = vpop.f32.mrb[105].mxu0  ;;  %v2067_v42 = vpop.f32.mrb[105].mxu1 }
 0x363   : > { %v2797_v43 = vcombine.low %v4102_v29, %v4105_v60  ;;  %v1873_v45 = vadd.f32 %v1872_v33, %v4068_v41  ;;  %v2066_v12 = vadd.f32 %v2065_v35, %v4072_v46  ;;  %v1875_v48 = vadd.f32 %v1874_v40, %v4074_v47  ;;  %v1876_v49 = vpop.f32.mrb[106].mxu0  ;;  %v2069_v50 = vpop.f32.mrb[106].mxu1 }
 0x364   : > { %v2233_v51 = vmax.f32 %v1869_v37, 0.0  ;;  %v2235_v52 = vmax.f32 %v2062_v14, 0.0  ;;  %v2068_v54 = vadd.f32 %v2067_v42, %v4078_v53  ;;  %v1877_v55 = vadd.f32 %v1876_v49, %v4068_v41  ;;  %v1878_v44 = vpop.f32.mrb[107].mxu0  ;;  %v2071_v56 = vpop.f32.mrb[107].mxu1 }
 0x365   : > { %v2240_v57 = vmax.f32 %v1873_v45, 0.0  ;;  %v2242_v61 = vmax.f32 %v2066_v12, 0.0  ;;  %v2241_v62 = vmax.f32 %v1875_v48, 0.0  ;;  %v2070_v7 = vadd.f32 %v2069_v50, %v4072_v46 }
 0x366   : > { %v2648_v63 = vmax.f32 %v2647_v30, %v2233_v51  ;;  %v2722_v0 = vmax.f32 %v2721_v32, %v2235_v52  ;;  %v2243_v1 = vmax.f32 %v2068_v54, 0.0  ;;  %v2248_v2 = vmax.f32 %v1877_v55, 0.0 }
 0x367   : > { %v2612_v59 = vmax.f32 %v2611_v36, %v2240_v57  ;;  %v2686_v58 = vmax.f32 %v2685_v34, %v2242_v61  ;;  %v1879_v8 = vadd.f32 %v1878_v44, %v4074_v47  ;;  %v2072_v11 = vadd.f32 %v2071_v56, %v4078_v53 }
 0x368   : > { %v2649_v9 = vmax.f32 %v2648_v63, %v2241_v62  ;;  %v2723_v10 = vmax.f32 %v2722_v0, %v2243_v1  ;;  %v2250_v5 = vmax.f32 %v2070_v7, 0.0 }
 0x369   : > { %v2613_v21 = vmax.f32 %v2612_v59, %v2248_v2  ;;  %v2249_v13 = vmax.f32 %v1879_v8, 0.0  ;;  %v1882_v39 = vpop.f32.mrb[108].mxu0  ;;  %v2075_v3 = vpop.f32.mrb[108].mxu1  ;;  %v2251_v4 = vmax.f32 %v2072_v11, 0.0 }
 0x36a   : > { %v1883_v15 = vadd.f32 %v1882_v39, %v4068_v41  ;;  %v2076_v28 = vadd.f32 %v2075_v3, %v4072_v46  ;;  %v1884_v16 = vpop.f32.mrb[109].mxu0  ;;  %v2077_v31 = vpop.f32.mrb[109].mxu1  ;;  %v2687_v17 = vmax.f32 %v2686_v58, %v2250_v5 }
 0x36b   : > { %v2650_v18 = vmax.f32 %v2649_v9, %v2249_v13  ;;  %v1885_v19 = vadd.f32 %v1884_v16, %v4074_v47  ;;  %v2078_v20 = vadd.f32 %v2077_v31, %v4078_v53  ;;  %v1886_v22 = vpop.f32.mrb[110].mxu0  ;;  %v2079_v23 = vpop.f32.mrb[110].mxu1  ;;  %v2724_v24 = vmax.f32 %v2723_v10, %v2251_v4 }
 0x36c   : > { %v2256_v38 = vmax.f32 %v1883_v15, 0.0  ;;  %v2258_v25 = vmax.f32 %v2076_v28, 0.0  ;;  %v1887_v26 = vadd.f32 %v1886_v22, %v4068_v41  ;;  %v1888_v27 = vpop.f32.mrb[111].mxu0  ;;  %v2081_v30 = vpop.f32.mrb[111].mxu1  ;;  %v2080_v35 = vadd.f32 %v2079_v23, %v4072_v46 }
 0x36d   : > { %v2257_v32 = vmax.f32 %v1885_v19, 0.0  ;;  %v2259_v33 = vmax.f32 %v2078_v20, 0.0  ;;  %v1889_v36 = vadd.f32 %v1888_v27, %v4074_v47  ;;  %v2082_v40 = vadd.f32 %v2081_v30, %v4078_v53 }
 0x36e   : > { %v2614_v34 = vmax.f32 %v2613_v21, %v2256_v38  ;;  %v2688_v37 = vmax.f32 %v2687_v17, %v2258_v25  ;;  %v2264_v14 = vmax.f32 %v1887_v26, 0.0  ;;  %v2266_v12 = vmax.f32 %v2080_v35, 0.0 }
 0x36f   : > { %v2651_v42 = vmax.f32 %v2650_v18, %v2257_v32  ;;  %v2725_v45 = vmax.f32 %v2724_v24, %v2259_v33  ;;  %v2265_v48 = vmax.f32 %v1889_v36, 0.0  ;;  %v2267_v50 = vmax.f32 %v2082_v40, 0.0 }
 0x370   : > { %v2615_v49 = vmax.f32 %v2614_v34, %v2264_v14  ;;  %v2689_v51 = vmax.f32 %v2688_v37, %v2266_v12 }
 0x371   : > { %v2652_v52 = vmax.f32 %v2651_v42, %v2265_v48  ;;  %v1892_v54 = vpop.f32.mrb[112].mxu0  ;;  %v2085_v55 = vpop.f32.mrb[112].mxu1  ;;  %v2726_v44 = vmax.f32 %v2725_v45, %v2267_v50 }
 0x372   : > { %v1893_v56 = vadd.f32 %v1892_v54, %v4068_v41  ;;  %v2086_v57 = vadd.f32 %v2085_v55, %v4072_v46  ;;  %v1894_v61 = vpop.f32.mrb[113].mxu0  ;;  %v2087_v62 = vpop.f32.mrb[113].mxu1 }
 0x373   : > { %v1895_v63 = vadd.f32 %v1894_v61, %v4074_v47  ;;  %v2088_v0 = vadd.f32 %v2087_v62, %v4078_v53  ;;  %v1896_v1 = vpop.f32.mrb[114].mxu0  ;;  %v2089_v2 = vpop.f32.mrb[114].mxu1 }
 0x374   : > { %v2272_v59 = vmax.f32 %v1893_v56, 0.0  ;;  %v2274_v58 = vmax.f32 %v2086_v57, 0.0  ;;  %v1897_v7 = vadd.f32 %v1896_v1, %v4068_v41  ;;  %v2090_v8 = vadd.f32 %v2089_v2, %v4072_v46  ;;  %v1898_v9 = vpop.f32.mrb[115].mxu0  ;;  %v2091_v10 = vpop.f32.mrb[115].mxu1 }
 0x375   : > { %v2273_v11 = vmax.f32 %v1895_v63, 0.0  ;;  %v2275_v21 = vmax.f32 %v2088_v0, 0.0  ;;  %v1899_v5 = vadd.f32 %v1898_v9, %v4074_v47  ;;  %v2092_v13 = vadd.f32 %v2091_v10, %v4078_v53 }
 0x376   : > { %v2616_v39 = vmax.f32 %v2615_v49, %v2272_v59  ;;  %v2690_v3 = vmax.f32 %v2689_v51, %v2274_v58  ;;  %v2280_v4 = vmax.f32 %v1897_v7, 0.0  ;;  %v2282_v15 = vmax.f32 %v2090_v8, 0.0 }
 0x377   : > { %v2653_v28 = vmax.f32 %v2652_v52, %v2273_v11  ;;  %v2727_v16 = vmax.f32 %v2726_v44, %v2275_v21  ;;  %v2281_v31 = vmax.f32 %v1899_v5, 0.0  ;;  %v2283_v17 = vmax.f32 %v2092_v13, 0.0 }
 0x378   : > { %v2617_v18 = vmax.f32 %v2616_v39, %v2280_v4  ;;  %v2691_v19 = vmax.f32 %v2690_v3, %v2282_v15 }
 0x379   : > { %v2654_v20 = vmax.f32 %v2653_v28, %v2281_v31  ;;  %v2728_v22 = vmax.f32 %v2727_v16, %v2283_v17  ;;  %v1902_v23 = vpop.f32.mrb[116].mxu0  ;;  %v2095_v24 = vpop.f32.mrb[116].mxu1 }
 0x37a   : > { %v1903_v38 = vadd.f32 %v1902_v23, %v4068_v41  ;;  %v2096_v25 = vadd.f32 %v2095_v24, %v4072_v46  ;;  %v1904_v26 = vpop.f32.mrb[117].mxu0  ;;  %v2097_v27 = vpop.f32.mrb[117].mxu1 }
 0x37b   : > { %v1905_v30 = vadd.f32 %v1904_v26, %v4074_v47  ;;  %v2098_v32 = vadd.f32 %v2097_v27, %v4078_v53  ;;  %v1906_v33 = vpop.f32.mrb[118].mxu0  ;;  %v2099_v35 = vpop.f32.mrb[118].mxu1 }
 0x37c   : > { %v2288_v36 = vmax.f32 %v1903_v38, 0.0  ;;  %v2290_v34 = vmax.f32 %v2096_v25, 0.0  ;;  %v1907_v37 = vadd.f32 %v1906_v33, %v4068_v41  ;;  %v2100_v14 = vadd.f32 %v2099_v35, %v4072_v46  ;;  %v1908_v40 = vpop.f32.mrb[119].mxu0  ;;  %v2101_v42 = vpop.f32.mrb[119].mxu1 }
 0x37d   : > { %v2289_v45 = vmax.f32 %v1905_v30, 0.0  ;;  %v2291_v12 = vmax.f32 %v2098_v32, 0.0  ;;  %v1909_v48 = vadd.f32 %v1908_v40, %v4074_v47  ;;  %v2102_v49 = vadd.f32 %v2101_v42, %v4078_v53 }
 0x37e   : > { %v2618_v50 = vmax.f32 %v2617_v18, %v2288_v36  ;;  %v2692_v51 = vmax.f32 %v2691_v19, %v2290_v34  ;;  %v2296_v52 = vmax.f32 %v1907_v37, 0.0  ;;  %v2298_v54 = vmax.f32 %v2100_v14, 0.0 }
 0x37f   : > { %v2655_v55 = vmax.f32 %v2654_v20, %v2289_v45  ;;  %v2729_v44 = vmax.f32 %v2728_v22, %v2291_v12  ;;  %v2297_v56 = vmax.f32 %v1909_v48, 0.0  ;;  %v2299_v57 = vmax.f32 %v2102_v49, 0.0 }
 0x380   : > { %v2619_v61 = vmax.f32 %v2618_v50, %v2296_v52  ;;  %v2693_v62 = vmax.f32 %v2692_v51, %v2298_v54 }
 0x381   : > { %v2656_v63 = vmax.f32 %v2655_v55, %v2297_v56  ;;  %v2730_v0 = vmax.f32 %v2729_v44, %v2299_v57  ;;  %v1912_v1 = vpop.f32.mrb[120].mxu0  ;;  %v2105_v2 = vpop.f32.mrb[120].mxu1 }
 0x382   : > { %v1913_v59 = vadd.f32 %v1912_v1, %v4068_v41  ;;  %v2106_v58 = vadd.f32 %v2105_v2, %v4072_v46  ;;  %v1914_v7 = vpop.f32.mrb[121].mxu0  ;;  %v2107_v8 = vpop.f32.mrb[121].mxu1 }
 0x383   : > { %v1915_v9 = vadd.f32 %v1914_v7, %v4074_v47  ;;  %v2108_v10 = vadd.f32 %v2107_v8, %v4078_v53  ;;  %v1916_v11 = vpop.f32.mrb[122].mxu0  ;;  %v2109_v21 = vpop.f32.mrb[122].mxu1 }
 0x384   : > { %v2304_v5 = vmax.f32 %v1913_v59, 0.0  ;;  %v2306_v13 = vmax.f32 %v2106_v58, 0.0  ;;  %v1917_v39 = vadd.f32 %v1916_v11, %v4068_v41  ;;  %v2110_v3 = vadd.f32 %v2109_v21, %v4072_v46  ;;  %v1918_v4 = vpop.f32.mrb[123].mxu0  ;;  %v2111_v15 = vpop.f32.mrb[123].mxu1 }
 0x385   : > { %v2305_v28 = vmax.f32 %v1915_v9, 0.0  ;;  %v2307_v16 = vmax.f32 %v2108_v10, 0.0  ;;  %v1919_v31 = vadd.f32 %v1918_v4, %v4074_v47  ;;  %v2112_v17 = vadd.f32 %v2111_v15, %v4078_v53 }
 0x386   : > { %v2620_v18 = vmax.f32 %v2619_v61, %v2304_v5  ;;  %v2694_v19 = vmax.f32 %v2693_v62, %v2306_v13  ;;  %v2312_v20 = vmax.f32 %v1917_v39, 0.0  ;;  %v2314_v22 = vmax.f32 %v2110_v3, 0.0 }
 0x387   : > { %v2657_v23 = vmax.f32 %v2656_v63, %v2305_v28  ;;  %v2731_v24 = vmax.f32 %v2730_v0, %v2307_v16  ;;  %v2313_v38 = vmax.f32 %v1919_v31, 0.0  ;;  %v2315_v25 = vmax.f32 %v2112_v17, 0.0 }
 0x388   : > { %v2621_v26 = vmax.f32 %v2620_v18, %v2312_v20  ;;  %v2695_v27 = vmax.f32 %v2694_v19, %v2314_v22 }
 0x389   : > { %v2658_v30 = vmax.f32 %v2657_v23, %v2313_v38  ;;  %v2732_v32 = vmax.f32 %v2731_v24, %v2315_v25  ;;  %v1922_v33 = vpop.f32.mrb[124].mxu0  ;;  %v2115_v35 = vpop.f32.mrb[124].mxu1 }
 0x38a   : > { %v1923_v36 = vadd.f32 %v1922_v33, %v4068_v41  ;;  %v2116_v34 = vadd.f32 %v2115_v35, %v4072_v46  ;;  %v1924_v37 = vpop.f32.mrb[125].mxu0  ;;  %v2117_v14 = vpop.f32.mrb[125].mxu1 }
 0x38b   : > { %v1925_v40 = vadd.f32 %v1924_v37, %v4074_v47  ;;  %v2118_v42 = vadd.f32 %v2117_v14, %v4078_v53  ;;  %v1926_v45 = vpop.f32.mrb[126].mxu0  ;;  %v2119_v12 = vpop.f32.mrb[126].mxu1 }
 0x38c   : > { %v2320_v48 = vmax.f32 %v1923_v36, 0.0  ;;  %v2322_v49 = vmax.f32 %v2116_v34, 0.0  ;;  %v1927_v50 = vadd.f32 %v1926_v45, %v4068_v41  ;;  %v2120_v51 = vadd.f32 %v2119_v12, %v4072_v46  ;;  %v1928_v52 = vpop.f32.mrb[127].mxu0  ;;  %v2121_v54 = vpop.f32.mrb[127].mxu1 }
 0x38d   : > { %v2321_v55 = vmax.f32 %v1925_v40, 0.0  ;;  %v2323_v44 = vmax.f32 %v2118_v42, 0.0  ;;  %v1929_v56 = vadd.f32 %v1928_v52, %v4074_v47  ;;  %v2122_v57 = vadd.f32 %v2121_v54, %v4078_v53 }
 0x38e   : > { %v2622_v61 = vmax.f32 %v2621_v26, %v2320_v48  ;;  %v2696_v62 = vmax.f32 %v2695_v27, %v2322_v49  ;;  %v2328_v63 = vmax.f32 %v1927_v50, 0.0  ;;  %v2330_v0 = vmax.f32 %v2120_v51, 0.0 }
 0x38f   : > { %v2659_v1 = vmax.f32 %v2658_v30, %v2321_v55  ;;  %v2733_v2 = vmax.f32 %v2732_v32, %v2323_v44  ;;  %v2329_v59 = vmax.f32 %v1929_v56, 0.0  ;;  %v2331_v58 = vmax.f32 %v2122_v57, 0.0 }
 0x390   : > { %v2623_v7 = vmax.f32 %v2622_v61, %v2328_v63  ;;  %v2697_v8 = vmax.f32 %v2696_v62, %v2330_v0 }
 0x391   : > { %v2660_v9 = vmax.f32 %v2659_v1, %v2329_v59  ;;  %v2734_v10 = vmax.f32 %v2733_v2, %v2331_v58  ;;  %v1932_v11 = vpop.f32.mrb[128].mxu0  ;;  %v2125_v21 = vpop.f32.mrb[128].mxu1 }
 0x392   : > { %v1933_v5 = vadd.f32 %v1932_v11, %v4068_v41  ;;  %v2126_v13 = vadd.f32 %v2125_v21, %v4072_v46  ;;  %v1934_v39 = vpop.f32.mrb[129].mxu0  ;;  %v2127_v3 = vpop.f32.mrb[129].mxu1 }
 0x393   : > { %v1935_v4 = vadd.f32 %v1934_v39, %v4074_v47  ;;  %v2128_v15 = vadd.f32 %v2127_v3, %v4078_v53  ;;  %v1936_v28 = vpop.f32.mrb[130].mxu0  ;;  %v2129_v16 = vpop.f32.mrb[130].mxu1 }
 0x394   : > { %v2336_v31 = vmax.f32 %v1933_v5, 0.0  ;;  %v2338_v17 = vmax.f32 %v2126_v13, 0.0  ;;  %v1937_v18 = vadd.f32 %v1936_v28, %v4068_v41  ;;  %v2130_v19 = vadd.f32 %v2129_v16, %v4072_v46  ;;  %v1938_v20 = vpop.f32.mrb[131].mxu0  ;;  %v2131_v22 = vpop.f32.mrb[131].mxu1 }
 0x395   : > { %v2337_v23 = vmax.f32 %v1935_v4, 0.0  ;;  %v2339_v24 = vmax.f32 %v2128_v15, 0.0  ;;  %v1939_v38 = vadd.f32 %v1938_v20, %v4074_v47  ;;  %v2132_v25 = vadd.f32 %v2131_v22, %v4078_v53 }
 0x396   : > { %v2624_v26 = vmax.f32 %v2623_v7, %v2336_v31  ;;  %v2698_v27 = vmax.f32 %v2697_v8, %v2338_v17  ;;  %v2344_v30 = vmax.f32 %v1937_v18, 0.0  ;;  %v2346_v32 = vmax.f32 %v2130_v19, 0.0 }
 0x397   : > { %v2661_v33 = vmax.f32 %v2660_v9, %v2337_v23  ;;  %v2735_v35 = vmax.f32 %v2734_v10, %v2339_v24  ;;  %v2345_v36 = vmax.f32 %v1939_v38, 0.0  ;;  %v2347_v34 = vmax.f32 %v2132_v25, 0.0 }
 0x398   : > { %v2625_v37 = vmax.f32 %v2624_v26, %v2344_v30  ;;  %v2699_v14 = vmax.f32 %v2698_v27, %v2346_v32 }
 0x399   : > { %v2662_v40 = vmax.f32 %v2661_v33, %v2345_v36  ;;  %v2736_v42 = vmax.f32 %v2735_v35, %v2347_v34  ;;  %v1942_v45 = vpop.f32.mrb[132].mxu0  ;;  %v2135_v12 = vpop.f32.mrb[132].mxu1 }
 0x39a   : > { %v1943_v48 = vadd.f32 %v1942_v45, %v4068_v41  ;;  %v2136_v49 = vadd.f32 %v2135_v12, %v4072_v46  ;;  %v1944_v50 = vpop.f32.mrb[133].mxu0  ;;  %v2137_v51 = vpop.f32.mrb[133].mxu1 }
 0x39b   : > { %v1945_v52 = vadd.f32 %v1944_v50, %v4074_v47  ;;  %v2138_v54 = vadd.f32 %v2137_v51, %v4078_v53  ;;  %v1946_v55 = vpop.f32.mrb[134].mxu0  ;;  %v2139_v44 = vpop.f32.mrb[134].mxu1 }
 0x39c   : > { %v2352_v56 = vmax.f32 %v1943_v48, 0.0  ;;  %v2354_v57 = vmax.f32 %v2136_v49, 0.0  ;;  %v1947_v61 = vadd.f32 %v1946_v55, %v4068_v41  ;;  %v2140_v62 = vadd.f32 %v2139_v44, %v4072_v46  ;;  %v1948_v63 = vpop.f32.mrb[135].mxu0  ;;  %v2141_v0 = vpop.f32.mrb[135].mxu1 }
 0x39d   : > { %v2353_v1 = vmax.f32 %v1945_v52, 0.0  ;;  %v2355_v2 = vmax.f32 %v2138_v54, 0.0  ;;  %v1949_v59 = vadd.f32 %v1948_v63, %v4074_v47  ;;  %v2142_v58 = vadd.f32 %v2141_v0, %v4078_v53 }
 0x39e   : > { %v2626_v7 = vmax.f32 %v2625_v37, %v2352_v56  ;;  %v2700_v8 = vmax.f32 %v2699_v14, %v2354_v57  ;;  %v2360_v9 = vmax.f32 %v1947_v61, 0.0  ;;  %v2362_v10 = vmax.f32 %v2140_v62, 0.0 }
 0x39f   : > { %v2663_v11 = vmax.f32 %v2662_v40, %v2353_v1  ;;  %v2737_v21 = vmax.f32 %v2736_v42, %v2355_v2  ;;  %v2361_v5 = vmax.f32 %v1949_v59, 0.0  ;;  %v2363_v13 = vmax.f32 %v2142_v58, 0.0 }
 0x3a0   : > { %v2627_v39 = vmax.f32 %v2626_v7, %v2360_v9  ;;  %v2701_v3 = vmax.f32 %v2700_v8, %v2362_v10 }
 0x3a1   : > { %v2664_v4 = vmax.f32 %v2663_v11, %v2361_v5  ;;  %v2738_v15 = vmax.f32 %v2737_v21, %v2363_v13  ;;  %v1952_v28 = vpop.f32.mrb[136].mxu0  ;;  %v2145_v16 = vpop.f32.mrb[136].mxu1 }
 0x3a2   : > { %v1953_v31 = vadd.f32 %v1952_v28, %v4068_v41  ;;  %v2146_v17 = vadd.f32 %v2145_v16, %v4072_v46  ;;  %v1954_v18 = vpop.f32.mrb[137].mxu0  ;;  %v2147_v19 = vpop.f32.mrb[137].mxu1 }
 0x3a3   : > { %v1955_v20 = vadd.f32 %v1954_v18, %v4074_v47  ;;  %v2148_v22 = vadd.f32 %v2147_v19, %v4078_v53  ;;  %v1956_v23 = vpop.f32.mrb[138].mxu0  ;;  %v2149_v24 = vpop.f32.mrb[138].mxu1 }
 0x3a4   : > { %v2368_v38 = vmax.f32 %v1953_v31, 0.0  ;;  %v2370_v25 = vmax.f32 %v2146_v17, 0.0  ;;  %v1957_v26 = vadd.f32 %v1956_v23, %v4068_v41  ;;  %v2150_v27 = vadd.f32 %v2149_v24, %v4072_v46  ;;  %v1958_v30 = vpop.f32.mrb[139].mxu0  ;;  %v2151_v32 = vpop.f32.mrb[139].mxu1 }
 0x3a5   : > { %v2369_v33 = vmax.f32 %v1955_v20, 0.0  ;;  %v2371_v35 = vmax.f32 %v2148_v22, 0.0  ;;  %v1959_v36 = vadd.f32 %v1958_v30, %v4074_v47  ;;  %v2152_v34 = vadd.f32 %v2151_v32, %v4078_v53 }
 0x3a6   : > { %v2628_v37 = vmax.f32 %v2627_v39, %v2368_v38  ;;  %v2702_v14 = vmax.f32 %v2701_v3, %v2370_v25  ;;  %v2376_v40 = vmax.f32 %v1957_v26, 0.0  ;;  %v2378_v42 = vmax.f32 %v2150_v27, 0.0 }
 0x3a7   : > { %v2665_v45 = vmax.f32 %v2664_v4, %v2369_v33  ;;  %v2739_v12 = vmax.f32 %v2738_v15, %v2371_v35  ;;  %v2377_v48 = vmax.f32 %v1959_v36, 0.0  ;;  %v2379_v49 = vmax.f32 %v2152_v34, 0.0 }
 0x3a8   : > { %v2629_v50 = vmax.f32 %v2628_v37, %v2376_v40  ;;  %v2703_v51 = vmax.f32 %v2702_v14, %v2378_v42 }
 0x3a9   : > { %v2666_v52 = vmax.f32 %v2665_v45, %v2377_v48  ;;  %v2740_v54 = vmax.f32 %v2739_v12, %v2379_v49  ;;  %v1962_v55 = vpop.f32.mrb[140].mxu0  ;;  %v2155_v44 = vpop.f32.mrb[140].mxu1 }
 0x3aa   : > { %v1963_v56 = vadd.f32 %v1962_v55, %v4068_v41  ;;  %v2156_v57 = vadd.f32 %v2155_v44, %v4072_v46  ;;  %v1964_v61 = vpop.f32.mrb[141].mxu0  ;;  %v2157_v62 = vpop.f32.mrb[141].mxu1 }
 0x3ab   : > { %v1965_v63 = vadd.f32 %v1964_v61, %v4074_v47  ;;  %v2158_v0 = vadd.f32 %v2157_v62, %v4078_v53  ;;  %v1966_v1 = vpop.f32.mrb[142].mxu0  ;;  %v2159_v2 = vpop.f32.mrb[142].mxu1 }
 0x3ac   : > { %v2384_v59 = vmax.f32 %v1963_v56, 0.0  ;;  %v2386_v58 = vmax.f32 %v2156_v57, 0.0  ;;  %v1967_v7 = vadd.f32 %v1966_v1, %v4068_v41  ;;  %v2160_v8 = vadd.f32 %v2159_v2, %v4072_v46  ;;  %v1968_v9 = vpop.f32.mrb[143].mxu0  ;;  %v2161_v10 = vpop.f32.mrb[143].mxu1 }
 0x3ad   : > { %v2385_v11 = vmax.f32 %v1965_v63, 0.0  ;;  %v2387_v21 = vmax.f32 %v2158_v0, 0.0  ;;  %v1969_v5 = vadd.f32 %v1968_v9, %v4074_v47  ;;  %v2162_v13 = vadd.f32 %v2161_v10, %v4078_v53 }
 0x3ae   : > { %v2630_v39 = vmax.f32 %v2629_v50, %v2384_v59  ;;  %v2704_v3 = vmax.f32 %v2703_v51, %v2386_v58  ;;  %v2392_v4 = vmax.f32 %v1967_v7, 0.0  ;;  %v2394_v15 = vmax.f32 %v2160_v8, 0.0 }
 0x3af   : > { %v2667_v28 = vmax.f32 %v2666_v52, %v2385_v11  ;;  %v2741_v16 = vmax.f32 %v2740_v54, %v2387_v21  ;;  %v2393_v31 = vmax.f32 %v1969_v5, 0.0  ;;  %v2395_v17 = vmax.f32 %v2162_v13, 0.0 }
 0x3b0   : > { %v2631_v18 = vmax.f32 %v2630_v39, %v2392_v4  ;;  %v2705_v19 = vmax.f32 %v2704_v3, %v2394_v15 }
 0x3b1   : > { %v2668_v20 = vmax.f32 %v2667_v28, %v2393_v31  ;;  %v2742_v22 = vmax.f32 %v2741_v16, %v2395_v17  ;;  %v1972_v23 = vpop.f32.mrb[144].mxu0  ;;  %v2165_v24 = vpop.f32.mrb[144].mxu1 }
 0x3b2   : > { %v1973_v38 = vadd.f32 %v1972_v23, %v4068_v41  ;;  %v2166_v25 = vadd.f32 %v2165_v24, %v4072_v46  ;;  %v1974_v26 = vpop.f32.mrb[145].mxu0  ;;  %v2167_v27 = vpop.f32.mrb[145].mxu1 }
 0x3b3   : > { %v1975_v30 = vadd.f32 %v1974_v26, %v4074_v47  ;;  %v2168_v32 = vadd.f32 %v2167_v27, %v4078_v53  ;;  %v1976_v33 = vpop.f32.mrb[146].mxu0  ;;  %v2169_v35 = vpop.f32.mrb[146].mxu1 }
 0x3b4   : > { %v2400_v36 = vmax.f32 %v1973_v38, 0.0  ;;  %v2402_v34 = vmax.f32 %v2166_v25, 0.0  ;;  %v1977_v37 = vadd.f32 %v1976_v33, %v4068_v41  ;;  %v2170_v14 = vadd.f32 %v2169_v35, %v4072_v46  ;;  %v1978_v40 = vpop.f32.mrb[147].mxu0  ;;  %v2171_v42 = vpop.f32.mrb[147].mxu1 }
 0x3b5   : > { %v2401_v45 = vmax.f32 %v1975_v30, 0.0  ;;  %v2403_v12 = vmax.f32 %v2168_v32, 0.0  ;;  %v1979_v48 = vadd.f32 %v1978_v40, %v4074_v47  ;;  %v2172_v49 = vadd.f32 %v2171_v42, %v4078_v53 }
 0x3b6   : > { %v2632_v50 = vmax.f32 %v2631_v18, %v2400_v36  ;;  %v2706_v51 = vmax.f32 %v2705_v19, %v2402_v34  ;;  %v2408_v52 = vmax.f32 %v1977_v37, 0.0  ;;  %v2410_v54 = vmax.f32 %v2170_v14, 0.0 }
 0x3b7   : > { %v2669_v55 = vmax.f32 %v2668_v20, %v2401_v45  ;;  %v2743_v44 = vmax.f32 %v2742_v22, %v2403_v12  ;;  %v2409_v56 = vmax.f32 %v1979_v48, 0.0  ;;  %v2411_v57 = vmax.f32 %v2172_v49, 0.0 }
 0x3b8   : > { %v2633_v61 = vmax.f32 %v2632_v50, %v2408_v52  ;;  %v2707_v62 = vmax.f32 %v2706_v51, %v2410_v54 }
 0x3b9   : > { %v2670_v63 = vmax.f32 %v2669_v55, %v2409_v56  ;;  %v2744_v0 = vmax.f32 %v2743_v44, %v2411_v57  ;;  %v1982_v1 = vpop.f32.mrb[148].mxu0  ;;  %v2175_v2 = vpop.f32.mrb[148].mxu1 }
 0x3ba   : > { %v1983_v59 = vadd.f32 %v1982_v1, %v4068_v41  ;;  %v2176_v58 = vadd.f32 %v2175_v2, %v4072_v46  ;;  %v1984_v7 = vpop.f32.mrb[149].mxu0  ;;  %v2177_v8 = vpop.f32.mrb[149].mxu1 }
 0x3bb   : > { %v1985_v9 = vadd.f32 %v1984_v7, %v4074_v47  ;;  %v2178_v10 = vadd.f32 %v2177_v8, %v4078_v53  ;;  %v1986_v11 = vpop.f32.mrb[150].mxu0  ;;  %v2179_v21 = vpop.f32.mrb[150].mxu1 }
 0x3bc   : > { %v2416_v5 = vmax.f32 %v1983_v59, 0.0  ;;  %v2418_v13 = vmax.f32 %v2176_v58, 0.0  ;;  %v1987_v39 = vadd.f32 %v1986_v11, %v4068_v41  ;;  %v2180_v3 = vadd.f32 %v2179_v21, %v4072_v46  ;;  %v1988_v4 = vpop.f32.mrb[151].mxu0  ;;  %v2181_v15 = vpop.f32.mrb[151].mxu1 }
 0x3bd   : > { %v2417_v28 = vmax.f32 %v1985_v9, 0.0  ;;  %v2419_v16 = vmax.f32 %v2178_v10, 0.0  ;;  %v1989_v31 = vadd.f32 %v1988_v4, %v4074_v47  ;;  %v2182_v17 = vadd.f32 %v2181_v15, %v4078_v53 }
 0x3be   : > { %v2634_v18 = vmax.f32 %v2633_v61, %v2416_v5  ;;  %v2708_v19 = vmax.f32 %v2707_v62, %v2418_v13  ;;  %v2424_v20 = vmax.f32 %v1987_v39, 0.0  ;;  %v2426_v22 = vmax.f32 %v2180_v3, 0.0 }
 0x3bf   : > { %v2671_v23 = vmax.f32 %v2670_v63, %v2417_v28  ;;  %v2745_v24 = vmax.f32 %v2744_v0, %v2419_v16  ;;  %v2425_v38 = vmax.f32 %v1989_v31, 0.0  ;;  %v2427_v25 = vmax.f32 %v2182_v17, 0.0 }
 0x3c0   : > { %v2635_v26 = vmax.f32 %v2634_v18, %v2424_v20  ;;  %v2709_v27 = vmax.f32 %v2708_v19, %v2426_v22 }
 0x3c1   : > { %v2672_v30 = vmax.f32 %v2671_v23, %v2425_v38  ;;  %v2746_v32 = vmax.f32 %v2745_v24, %v2427_v25  ;;  %v1992_v33 = vpop.f32.mrb[152].mxu0  ;;  %v2185_v35 = vpop.f32.mrb[152].mxu1 }
 0x3c2   : > { %v1993_v36 = vadd.f32 %v1992_v33, %v4068_v41  ;;  %v2186_v34 = vadd.f32 %v2185_v35, %v4072_v46  ;;  %v1994_v37 = vpop.f32.mrb[153].mxu0  ;;  %v2187_v14 = vpop.f32.mrb[153].mxu1 }
 0x3c3   : > { %v1995_v40 = vadd.f32 %v1994_v37, %v4074_v47  ;;  %v2188_v42 = vadd.f32 %v2187_v14, %v4078_v53  ;;  %v1996_v45 = vpop.f32.mrb[154].mxu0  ;;  %v2189_v12 = vpop.f32.mrb[154].mxu1 }
 0x3c4   : > { %v2432_v48 = vmax.f32 %v1993_v36, 0.0  ;;  %v2434_v49 = vmax.f32 %v2186_v34, 0.0  ;;  %v1997_v50 = vadd.f32 %v1996_v45, %v4068_v41  ;;  %v2190_v51 = vadd.f32 %v2189_v12, %v4072_v46  ;;  %v1998_v52 = vpop.f32.mrb[155].mxu0  ;;  %v2191_v54 = vpop.f32.mrb[155].mxu1 }
 0x3c5   : > { %v2433_v55 = vmax.f32 %v1995_v40, 0.0  ;;  %v2435_v44 = vmax.f32 %v2188_v42, 0.0  ;;  %v1999_v56 = vadd.f32 %v1998_v52, %v4074_v47  ;;  %v2192_v57 = vadd.f32 %v2191_v54, %v4078_v53 }
 0x3c6   : > { %v2636_v61 = vmax.f32 %v2635_v26, %v2432_v48  ;;  %v2710_v62 = vmax.f32 %v2709_v27, %v2434_v49  ;;  %v2440_v63 = vmax.f32 %v1997_v50, 0.0  ;;  %v2442_v0 = vmax.f32 %v2190_v51, 0.0 }
 0x3c7   : > { %v2673_v1 = vmax.f32 %v2672_v30, %v2433_v55  ;;  %v2747_v2 = vmax.f32 %v2746_v32, %v2435_v44  ;;  %v2441_v59 = vmax.f32 %v1999_v56, 0.0  ;;  %v2443_v58 = vmax.f32 %v2192_v57, 0.0 }
 0x3c8   : > { %v2637_v7 = vmax.f32 %v2636_v61, %v2440_v63  ;;  %v2711_v8 = vmax.f32 %v2710_v62, %v2442_v0 }
 0x3c9   : > { %v2674_v9 = vmax.f32 %v2673_v1, %v2441_v59  ;;  %v2748_v10 = vmax.f32 %v2747_v2, %v2443_v58  ;;  %v2002_v11 = vpop.f32.mrb[156].mxu0  ;;  %v2195_v21 = vpop.f32.mrb[156].mxu1 }
 0x3ca   : > { %v2003_v5 = vadd.f32 %v2002_v11, %v4068_v41  ;;  %v2196_v13 = vadd.f32 %v2195_v21, %v4072_v46  ;;  %v2004_v39 = vpop.f32.mrb[157].mxu0  ;;  %v2197_v3 = vpop.f32.mrb[157].mxu1  ;;  %v2805_v21 = vrot.slane %v2797_v43, %v4085_v6 }
 0x3cb   : > { %v2005_v4 = vadd.f32 %v2004_v39, %v4074_v47  ;;  %v2198_v15 = vadd.f32 %v2197_v3, %v4078_v53  ;;  %v2006_v28 = vpop.f32.mrb[158].mxu0  ;;  %v2199_v16 = vpop.f32.mrb[158].mxu1 }
 0x3cc   : > { %v2448_v31 = vmax.f32 %v2003_v5, 0.0  ;;  %v2450_v17 = vmax.f32 %v2196_v13, 0.0  ;;  %v2007_v18 = vadd.f32 %v2006_v28, %v4068_v41  ;;  %v2200_v19 = vadd.f32 %v2199_v16, %v4072_v46  ;;  %v2008_v20 = vpop.f32.mrb[159].mxu0  ;;  %v2201_v22 = vpop.f32.mrb[159].mxu1  ;;  %v2460_v13 = vld [vmem:[#allocation2] sm:$0xff] }
 0x3cd   : > { %v2449_v23 = vmax.f32 %v2005_v4, 0.0  ;;  %v2451_v24 = vmax.f32 %v2198_v15, 0.0  ;;  %v2009_v38 = vadd.f32 %v2008_v20, %v4074_v47  ;;  %v2202_v25 = vadd.f32 %v2201_v22, %v4078_v53 }
 0x3ce   : > { %v2638_v26 = vmax.f32 %v2637_v7, %v2448_v31  ;;  %v2712_v27 = vmax.f32 %v2711_v8, %v2450_v17  ;;  %v2456_v30 = vmax.f32 %v2007_v18, 0.0  ;;  %v2458_v32 = vmax.f32 %v2200_v19, 0.0 }
 0x3cf   : > { %v2675_v33 = vmax.f32 %v2674_v9, %v2449_v23  ;;  %v2749_v35 = vmax.f32 %v2748_v10, %v2451_v24  ;;  %v2457_v36 = vmax.f32 %v2009_v38, 0.0  ;;  %v2459_v34 = vmax.f32 %v2202_v25, 0.0 }
 0x3d0   : > { %v2639_v37 = vmax.f32 %v2638_v26, %v2456_v30  ;;  %v2713_v41 = vmax.f32 %v2712_v27, %v2458_v32 }
 0x3d1   : > { %v2676_v14 = vmax.f32 %v2675_v33, %v2457_v36  ;;  %v2750_v46 = vmax.f32 %v2749_v35, %v2459_v34 }
 0x3d2   : > { %v2640_v40 = vrot.slane %v2639_v37, 4  ;;  %v2714_v42 = vrot.slane %v2713_v41, 4 }
 0x3d3   : > { %v2677_v45 = vrot.slane %v2676_v14, 4  ;;  %v2751_v12 = vrot.slane %v2750_v46, 4 }
 0x3d4   : > { %v2641_v48 = vmax.f32 %v2639_v37, %v2640_v40  ;;  %v2715_v47 = vmax.f32 %v2713_v41, %v2714_v42 }
 0x3d5   : > { %v2678_v49 = vmax.f32 %v2676_v14, %v2677_v45  ;;  %v2752_v53 = vmax.f32 %v2750_v46, %v2751_v12 }
 0x3d6   : > { %v2642_v50 = vrot.slane %v2641_v48, 2  ;;  %v2716_v51 = vrot.slane %v2715_v47, 2 }
 0x3d7   : > { %v2679_v52 = vrot.slane %v2678_v49, 2  ;;  %v2753_v54 = vrot.slane %v2752_v53, 2 }
 0x3d8   : > { %v2643_v55 = vmax.f32 %v2641_v48, %v2642_v50  ;;  %v2717_v44 = vmax.f32 %v2715_v47, %v2716_v51 }
 0x3d9   : > { %v2680_v56 = vmax.f32 %v2678_v49, %v2679_v52  ;;  %v2754_v57 = vmax.f32 %v2752_v53, %v2753_v54 }
 0x3da   : > { %v2644_v61 = vrot.slane %v2643_v55, 1  ;;  %v2718_v62 = vrot.slane %v2717_v44, 1 }
 0x3db   : > { %v2681_v63 = vrot.slane %v2680_v56, 1  ;;  %v2755_v0 = vrot.slane %v2754_v57, 1 }
 0x3dc   : > { %v2645_v1 = vmax.f32 %v2643_v55, %v2644_v61  ;;  %v2719_v2 = vmax.f32 %v2717_v44, %v2718_v62 }
 0x3dd   : > { %v2682_v59 = vmax.f32 %v2680_v56, %v2681_v63  ;;  %v2756_v58 = vmax.f32 %v2754_v57, %v2755_v0 }
 0x3df   : > { %v2767_v7 = vcombine.low %v2645_v1, %v2682_v59  ;;  %v2768_v8 = vcombine.low %v2719_v2, %v2756_v58 }
 0x3e1   : > { %v2789_v9 = vrot.slane %v2767_v7, %v4085_v6  ;;  %v2796_v10 = vrot.slane %v2768_v8, %v4085_v6 }
 0x3e3   : > { %v2798_v11 = vcombine.low %v2789_v9, %v2796_v10 }
 0x3e5   : > { %v2812_v5 = vrot.slane %v2798_v11, %v4085_v6  ;;  %2820 = sbr.rel (%p3036_p9) target bundleno = 1012 (0x3f4), region = 60 }
 0x3e7   : > { %v2813_v39 = vcombine.low %v2805_v21, %v2812_v5 }
 0x3e9   : > { %v2815_v3 = vmax.f32 %v2460_v13, %v2813_v39 }
 0x3eb   : > { %2816 = vst [vmem:[#allocation2] sm:$0xff] %v2815_v3 }
 0x3f2   : > { %v2821_v4 = vld [vmem:[#allocation2] sm:$0xff] }
 0x3f3   : > { %2822 = vst [vmem:[%s3422_s15] sm:$0xff] %v2821_v4 }
 0x3f4 PF: > { %s18_s28 = sadd.s32 1, %s3296_s28   ;;  %s4263_s24 = smov %s3288_s26 }
 0x3f5   : > { %p15_p11 = scmp.ge.s32.totalorder %s18_s28, 6   ;;  %s4264_s25 = smov %s3292_s27 }
 0x3f6   : > { %s4265_s26 = smov %s4268_s30  ;;  %s4266_s27 = smov %s4272_s8 }
 0x3f7   :  { %17 = sbr.rel (!%p15_p11) target bundleno = 3 (0x3), region = 91 }
 0x3fe   :  { %2842 = vsyncpa [#allocation4], 1 }
 0x3ff   :  { %2844 = vsyncpa [#allocation4 + $0x1], 1 }

// kernel: _lambda_.6
= control target key start
LH: loop header
LB: loop body
LE: loop exit
PB: predicated region body
PF: predicated region fallthrough
CT: control target
= control target key end

     0   :  { %s3153_s27 = smov 0   ;;  %s3155_s28 = smov 0   ;;  %s4095_s0 = inlined_call_operand.vmem [shape: bf16[2,512,3], index: 0, kind: input, shape index: {}]   ;;  %s4096_s1 = inlined_call_operand.vmem [shape: bf16[2,3,3], index: 1, kind: input, shape index: {}]   ;;  %s4097_s2 = inlined_call_operand.vmem [shape: bf16[3,64], index: 2, kind: input, shape index: {}]   ;;  %s4098_s3 = inlined_call_operand.vmem [shape: f32[1,64], index: 3, kind: input, shape index: {}]   ;;  %s4099_s4 = inlined_call_operand.vmem [shape: bf16[64,128], index: 4, kind: input, shape index: {}]   ;;  %s4100_s5 = inlined_call_operand.vmem [shape: f32[1,128], index: 5, kind: input, shape index: {}]   ;;  %s4101_s6 = inlined_call_operand.vmem [shape: bf16[128,1024], index: 6, kind: input, shape index: {}]   ;;  %s4102_s7 = inlined_call_operand.vmem [shape: f32[1,1024], index: 7, kind: input, shape index: {}]   ;;  %s4103_s8 = inlined_call_operand.vmem [shape: f32[2,1,1024], index: 8, kind: output, shape index: {}]  }
   0x1   :  { %s3157_s29 = smov 0   ;;  %s3159_s30 = smov 0  }
   0x2   :  { %s3161_s9 = smov 0  }
   0x3 LB: > { %s27_s10 = sadd.s32 1, %s3092_s29  ;;  %s30_s11 = sadd.s32 1, %s3096_s30  ;;  %s3100_s9 = sphi %s3161_s9, %s18_s9   ;;  %s3096_s30 = sphi %s3159_s30, %s4107_s30   ;;  %s3092_s29 = sphi %s3157_s29, %s4106_s29   ;;  %s3088_s28 = sphi %s3155_s28, %s4105_s28   ;;  %s3084_s27 = sphi %s3153_s27, %s4104_s27  }
   0x4   : > { %p28_p0 = scmp.ge.s32.totalorder %s27_s10, 2  ;;  %p2732_p1 = scmp.ge.s32.totalorder %s3100_s9, 1 }
   0x5   : > { %p290_p2 = scmp.lt.s32.totalorder %s3100_s9, 5 }
   0x6   : > { %s4109_s10 = smov (%p28_p0, %s27_s10), 0  ;;  %s4111_s11 = smov (!%p28_p0, %s30_s11), %s3096_s30 }
   0x7   : > { %p291_p3 = pnand %p2732_p1, %p290_p2  ;;  %p32_p4 = scmp.ge.s32.totalorder %s4111_s11, 2 }
   0x8   : > { %s2733_s12 = sshll.u32 (!%p291_p3), %s3084_s27, 5  ;;  %p332_p5 = scmp.lt.s32.totalorder (!%p291_p3), %s3088_s28, 1 }
   0x9   : > { %s4113_s11 = smov (%p32_p4, %s4111_s11), 0  ;;  %294 = sbr.rel (%p291_p3) target bundleno = 1207 (0x4b7), region = 52 }
   0xa   : > { %p334_p6 = scmp.lt.s32.totalorder (!%p291_p3), %s2733_s12, 63  ;;  %p2738_p7 = scmp.ne.s32.totalorder (!%p291_p3), %s3084_s27, 0 }
  0x10   : > { %s4115_s28 = smov (!%p332_p5, %s3088_s28), 1  ;;  %s4117_s12 = smov (!%p334_p6, %s2733_s12), 63 }
  0x11   : > { %s2734_s13 = sshll.u32 %s4115_s28, 6  ;;  %s2736_s14 = sshll.u32 %s4115_s28, 1  ;;  %v3102_v0 = vmov (!%p2738_p7), -inf  }
  0x12   : > { %s337_s15 = sadd.s32 %s2734_s13, %s4117_s12  ;;  %s344_s18 = scalar_lea.vmem %s4096_s1, %s2736_s14  ;;  %354 = vst [vmem:[#allocation2] sm:$0xff] (!%p2738_p7), %v3102_v0 }
  0x13   : > { %s2735_s19 = sshll.u32 %s337_s15, 2  ;;  %s2737_s20 = sshll.u32 %s4115_s28, 3 }
  0x14   : > { %s3192_s23 = scalar_lea.vmem %s4095_s0, %s2735_s19  ;;  %s3197_s26 = scalar_lea.vmem %s4103_s8, %s2737_s20 }
  0x15   : > { %353 = sbr.rel (%p2738_p7) target bundleno = 28 (0x1c), region = 56 }
  0x1c PF: > { %v355_v1 = vld [vmem:[%s4097_s2] sm:$0x3]  ;;  %vm361_vm0 = vcmask 1040384   ;;  %vm362_vm1 = vcmask 1041408   ;;  %v3103_v2 = vmov 0.0   ;;  %v3104_v3 = vmov 65535  }
  0x1d   : > { %2900 = vmatprep.subr.bf16.mxu0 %v3103_v2  ;;  %v363_v4 = vsel %vm361_vm0, 4294967295, %v3104_v3  ;;  %vm3105_vm2 = vmmov 0   ;;  %vm357_vm3 = vcmask 23552   ;;  %v356_v7 = vld [vmem:[%s344_s18] sm:$0x3]  ;;  %v3059_v10 = vld [vmem:[%s4099_s4 + $0x8] sm:$0xff]  }
  0x1e   : > { %v364_v5 = vsel %vm362_vm1, %v363_v4, 0  ;;  %2902 = vmatprep.mubr.msk.bf16.mxu0 %vm3105_vm2, %v3103_v2  ;;  %v3042_v8 = vld [vmem:[%s3192_s23] sm:$0xff]   ;;  %v3043_v17 = vld [vmem:[%s3192_s23 + $0x8] sm:$0xff]   ;;  %v3044_v18 = vld [vmem:[%s3192_s23 + $0x10] sm:$0xff]   ;;  %vm827_vm4 = vcmask 523264   ;;  %p2858_p8 = scmp.ne.s32.totalorder %s3084_s27, 1 }
  0x1f   : > { %v366_v6 = vand.u32 %v364_v5, %v355_v1  ;;  %2908 = vmatprep.mubr.msk.bf16.mxu1 %vm357_vm3, %v3042_v8  ;;  %v3058_v9 = vld [vmem:[%s4099_s4] sm:$0xff]   ;;  %v3045_v19 = vld [vmem:[%s3192_s23 + $0x18] sm:$0xff]   ;;  %v3047_v21 = vld [vmem:[%s3192_s23 + $0x28] sm:$0xff]  }
  0x20   : > { %v3046_v20 = vld [vmem:[%s3192_s23 + $0x20] sm:$0xff]   ;;  %v3048_v22 = vld [vmem:[%s3192_s23 + $0x30] sm:$0xff]   ;;  %v3049_v23 = vld [vmem:[%s3192_s23 + $0x38] sm:$0xff]  }
  0x21   : > { %2901 = vmatpush3.bf16.msra.mxu0 %v366_v6  ;;  %v3050_v24 = vld [vmem:[%s3192_s23 + $0x40] sm:$0xff]   ;;  %v3051_v25 = vld [vmem:[%s3192_s23 + $0x48] sm:$0xff]   ;;  %v3052_v26 = vld [vmem:[%s3192_s23 + $0x50] sm:$0xff]  }
  0x22   : > { %2940 = vmatprep.subr.bf16.mxu0 %v3058_v9  ;;  %v3053_v27 = vld [vmem:[%s3192_s23 + $0x58] sm:$0xff]   ;;  %v3054_v28 = vld [vmem:[%s3192_s23 + $0x60] sm:$0xff]   ;;  %v3055_v29 = vld [vmem:[%s3192_s23 + $0x68] sm:$0xff]  }
  0x23   : > { %v3056_v30 = vld [vmem:[%s3192_s23 + $0x70] sm:$0xff]   ;;  %v3057_v31 = vld [vmem:[%s3192_s23 + $0x78] sm:$0xff]   ;;  %v1085_v34 = vld [vmem:[%s4101_s6] sm:$0xff] }
  0x24   : > { %2903 = vmatmul.mubr.msk.bf16.vlgmr.msra.gmra.mrb[0].mxu0 %vm357_vm3, %v356_v7  ;;  %v3060_v32 = vld [vmem:[%s4099_s4 + $0x10] sm:$0xff]   ;;  %v3061_v33 = vld [vmem:[%s4099_s4 + $0x18] sm:$0xff]   ;;  %v1089_v35 = vld [vmem:[%s4101_s6 + $0x20] sm:$0xff] }
  0x25   : > { %2941 = vmatpush3.bf16.msra.mxu0 %v3058_v9  ;;  %v1093_v36 = vld [vmem:[%s4101_s6 + $0x40] sm:$0xff]  ;;  %v2794_v37 = vcombine.low %v1085_v34, %v1089_v35  ;;  %v2795_v38 = vcombine.high %v1085_v34, %v1089_v35  ;;  %v3263_v40 = vld [vmem:[%s4101_s6 + $0x8] sm:$0xff] }
  0x26   : > { %2942 = vmatprep.subr.bf16.mxu0 %v3059_v10  ;;  %v1097_v39 = vld [vmem:[%s4101_s6 + $0x60] sm:$0xff]  ;;  %v3268_v41 = vld [vmem:[%s4101_s6 + $0x28] sm:$0xff] }
  0x27   : > { %v2803_v42 = vcombine.high %v1093_v36, %v1097_v39  ;;  %v2796_v43 = vcombine.low %v3263_v40, %v3268_v41  ;;  %v2797_v44 = vcombine.high %v3263_v40, %v3268_v41  ;;  %v1101_v45 = vld [vmem:[%s4101_s6 + $0x80] sm:$0xff]  ;;  %v2802_v47 = vcombine.low %v1093_v36, %v1097_v39  ;;  %v1110_v36 = vld [vmem:[%s4101_s6 + $0xc8] sm:$0xff] }
  0x28   : > { %v1105_v46 = vld [vmem:[%s4101_s6 + $0xa0] sm:$0xff] }
  0x29   : > { %2943 = vmatpush3.bf16.msra.mxu0 %v3059_v10  ;;  %v2811_v48 = vcombine.high %v1101_v45, %v1105_v46  ;;  %v1109_v49 = vld [vmem:[%s4101_s6 + $0xc0] sm:$0xff]  ;;  %v2810_v51 = vcombine.low %v1101_v45, %v1105_v46 }
  0x2a   : > { %2944 = vmatprep.subr.bf16.mxu0 %v3060_v32  ;;  %v1113_v50 = vld [vmem:[%s4101_s6 + $0xe0] sm:$0xff] }
  0x2b   : > { %v2819_v52 = vcombine.high %v1109_v49, %v1113_v50  ;;  %v1117_v53 = vld [vmem:[%s4101_s6 + $0x100] sm:$0xff]  ;;  %v2818_v55 = vcombine.low %v1109_v49, %v1113_v50 }
  0x2c   : > { %v1121_v54 = vld [vmem:[%s4101_s6 + $0x120] sm:$0xff] }
  0x2d   : > { %2945 = vmatpush3.bf16.msra.mxu0 %v3060_v32  ;;  %v2827_v56 = vcombine.high %v1117_v53, %v1121_v54  ;;  %v1125_v57 = vld [vmem:[%s4101_s6 + $0x140] sm:$0xff]  ;;  %v2826_v59 = vcombine.low %v1117_v53, %v1121_v54 }
  0x2e   : > { %2946 = vmatprep.subr.bf16.mxu0 %v3061_v33  ;;  %v1129_v58 = vld [vmem:[%s4101_s6 + $0x160] sm:$0xff] }
  0x2f   : > { %v2835_v60 = vcombine.high %v1125_v57, %v1129_v58  ;;  %v1133_v61 = vld [vmem:[%s4101_s6 + $0x180] sm:$0xff]  ;;  %v2834_v63 = vcombine.low %v1125_v57, %v1129_v58  ;;  %v1126_v58 = vld [vmem:[%s4101_s6 + $0x148] sm:$0xff] }
  0x30   : > { %v1137_v62 = vld [vmem:[%s4101_s6 + $0x1a0] sm:$0xff] }
  0x31   : > { %2947 = vmatpush3.bf16.msra.mxu0 %v3061_v33  ;;  %v2843_v0 = vcombine.high %v1133_v61, %v1137_v62  ;;  %v2842_v1 = vcombine.low %v1133_v61, %v1137_v62  ;;  %v3307_v2 = vld [vmem:[%s4098_s3] ss:$0 sm:$0xff] }
  0x32   : > { %1704 = vmatprep.subr.bf16.mxu0 %v2797_v44 }
  0xf7   : > { %v402_v11 = vpop.f32.mrb[0].mxu0 }
  0xf8   : > { %v408_v12 = vpack.c.bf16 %v402_v11, %v402_v11  ;;  %v2904_v13 = vpop.f32.mrb[1].mxu0 }
  0xf9   : > { %v405_v14 = vpop.f32.mrb[2].mxu0 }
  0xfa   : > { %v2905_v15 = vpop.f32.mrb[3].mxu0  ;;  %v577_v16 = vand.u32 %v408_v12, %v364_v5 }
  0xfb   : > { %v1094_v15 = vld [vmem:[%s4101_s6 + $0x48] sm:$0xff] }
  0xfc   : > { %2906 = vmatprep.subr.bf16.mxu1 %v577_v16 }
  0xfd   : > { %2907 = vmatpush3.bf16.msra.mxu1 %v577_v16  ;;  %v1098_v16 = vld [vmem:[%s4101_s6 + $0x68] sm:$0xff] }
  0xfe   : > { %1511 = vmatprep.subr.bf16.mxu1 %v2795_v38  ;;  %v2804_v32 = vcombine.low %v1094_v15, %v1098_v16 }
 0x100   : > { %2909 = vmatmul.mubr.msk.bf16.vlgmr.msra.gmra.mrb[0].mxu1 %vm357_vm3, %v3043_v17 }
 0x101   : > { %2912 = vmatprep.mubr.msk.bf16.mxu1 %vm357_vm3, %v3044_v18  ;;  %1512 = vmatpush1.bf16.msra.mxu1 %v2794_v37  ;;  %v1114_v37 = vld [vmem:[%s4101_s6 + $0xe8] sm:$0xff] }
 0x102   : > { %1513 = vmatprep.subr.bf16.mxu1 %v2803_v42  ;;  %v2820_v54 = vcombine.low %v1110_v36, %v1114_v37 }
 0x105   : > { %1514 = vmatpush1.bf16.msra.mxu1 %v2802_v47  ;;  %v1118_v47 = vld [vmem:[%s4101_s6 + $0x108] sm:$0xff] }
 0x106   : > { %1515 = vmatprep.subr.bf16.mxu1 %v2811_v48  ;;  %v1122_v48 = vld [vmem:[%s4101_s6 + $0x128] sm:$0xff] }
 0x108   : > { %2913 = vmatmul.mubr.msk.bf16.gmra.mrb[4].mxu1 %vm357_vm3, %v3045_v19 }
 0x109   : > { %2916 = vmatprep.mubr.msk.bf16.mxu1 %vm357_vm3, %v3046_v20  ;;  %1516 = vmatpush1.bf16.msra.mxu1 %v2810_v51 }
 0x10a   : > { %1517 = vmatprep.subr.bf16.mxu1 %v2819_v52 }
 0x10d   : > { %1518 = vmatpush1.bf16.msra.mxu1 %v2818_v55 }
 0x10e   : > { %1519 = vmatprep.subr.bf16.mxu1 %v2827_v56  ;;  %v2829_v56 = vcombine.high %v1118_v47, %v1122_v48 }
 0x110   : > { %2917 = vmatmul.mubr.msk.bf16.gmra.mrb[8].mxu1 %vm357_vm3, %v3047_v21 }
 0x111   : > { %2920 = vmatprep.mubr.msk.bf16.mxu1 %vm357_vm3, %v3048_v22  ;;  %1520 = vmatpush1.bf16.msra.mxu1 %v2826_v59  ;;  %v2805_v22 = vcombine.high %v1094_v15, %v1098_v16  ;;  %v1130_v59 = vld [vmem:[%s4101_s6 + $0x168] sm:$0xff] }
 0x112   : > { %1521 = vmatprep.subr.bf16.mxu1 %v2835_v60 }
 0x115   : > { %1522 = vmatpush1.bf16.msra.mxu1 %v2834_v63  ;;  %v2828_v63 = vcombine.low %v1118_v47, %v1122_v48 }
 0x116   : > { %1523 = vmatprep.subr.bf16.mxu1 %v2843_v0 }
 0x118   : > { %2921 = vmatmul.mubr.msk.bf16.gmra.mrb[12].mxu1 %vm357_vm3, %v3049_v23 }
 0x119   : > { %2924 = vmatprep.mubr.msk.bf16.mxu1 %vm357_vm3, %v3050_v24  ;;  %1524 = vmatpush1.bf16.msra.mxu1 %v2842_v1 }
 0x120   : > { %2925 = vmatmul.mubr.msk.bf16.gmra.mrb[16].mxu1 %vm357_vm3, %v3051_v25  ;;  %v1102_v25 = vld [vmem:[%s4101_s6 + $0x88] sm:$0xff] }
 0x121   : > { %2928 = vmatprep.mubr.msk.bf16.mxu1 %vm357_vm3, %v3052_v26  ;;  %v1106_v26 = vld [vmem:[%s4101_s6 + $0xa8] sm:$0xff] }
 0x122   : > { %v2813_v34 = vcombine.high %v1102_v25, %v1106_v26  ;;  %v2812_v44 = vcombine.low %v1102_v25, %v1106_v26 }
 0x128   : > { %2929 = vmatmul.mubr.msk.bf16.gmra.mrb[20].mxu1 %vm357_vm3, %v3053_v27 }
 0x129   : > { %2932 = vmatprep.mubr.msk.bf16.mxu1 %vm357_vm3, %v3054_v28 }
 0x130   : > { %2933 = vmatmul.mubr.msk.bf16.gmra.mrb[24].mxu1 %vm357_vm3, %v3055_v29 }
 0x131   : > { %2936 = vmatprep.mubr.msk.bf16.mxu1 %vm357_vm3, %v3056_v30 }
 0x138   : > { %2937 = vmatmul.mubr.msk.bf16.gmra.mrb[28].mxu1 %vm357_vm3, %v3057_v31 }
 0x1d3   : > { %v2910_v3 = vpop.f32.mrb[0].mxu1 }
 0x1d4   : > { %v622_v4 = vadd.f32 %v2910_v3, %v3307_v2  ;;  %v613_v5 = vpop.f32.mrb[1].mxu1  ;;  %v2837_v3 = vcombine.high %v1126_v58, %v1130_v59 }
 0x1d5   : > { %v614_v6 = vadd.f32 %v3307_v2, %v613_v5  ;;  %v2911_v7 = vpop.f32.mrb[2].mxu1 }
 0x1d6   : > { %v625_v8 = vadd.f32 %v2911_v7, %v3307_v2  ;;  %v616_v9 = vpop.f32.mrb[3].mxu1  ;;  %v742_v11 = vmax.f32 %v622_v4, 0.0 }
 0x1d7   : > { %v617_v10 = vadd.f32 %v3307_v2, %v616_v9  ;;  %v740_v13 = vmax.f32 %v614_v6, 0.0 }
 0x1d8   : > { %v743_v12 = vmax.f32 %v625_v8, 0.0 }
 0x1d9   : > { %v741_v14 = vmax.f32 %v617_v10, 0.0 }
 0x1da   : > { %v773_v17 = vpack.c.bf16 %v743_v12, %v742_v11  ;;  %v2836_v11 = vcombine.low %v1126_v58, %v1130_v59 }
 0x1db   : > { %v772_v18 = vpack.c.bf16 %v741_v14, %v740_v13  ;;  %v2914_v19 = vpop.f32.mrb[4].mxu1 }
 0x1dc   : > { %v638_v20 = vadd.f32 %v2914_v19, %v3307_v2  ;;  %v629_v21 = vpop.f32.mrb[5].mxu1 }
 0x1dd   : > { %v630_v23 = vadd.f32 %v3307_v2, %v629_v21  ;;  %2948 = vmatprep.mubr.msk.bf16.mxu0 %vm827_vm4, %v772_v18  ;;  %v2915_v24 = vpop.f32.mrb[6].mxu1 }
 0x1de   : > { %v746_v27 = vmax.f32 %v638_v20, 0.0  ;;  %v641_v28 = vadd.f32 %v2915_v24, %v3307_v2  ;;  %2949 = vmatmul.mubr.msk.bf16.vlgmr.msra.gmra.mrb[4].mxu0 %vm827_vm4, %v773_v17  ;;  %v632_v29 = vpop.f32.mrb[7].mxu1 }
 0x1df   : > { %v744_v30 = vmax.f32 %v630_v23, 0.0  ;;  %v633_v31 = vadd.f32 %v3307_v2, %v632_v29  ;;  %1705 = vmatpush1.bf16.msra.mxu0 %v2796_v43  ;;  %v2821_v43 = vcombine.high %v1110_v36, %v1114_v37 }
 0x1e0   : > { %v747_v33 = vmax.f32 %v641_v28, 0.0  ;;  %1706 = vmatprep.subr.bf16.mxu0 %v2805_v22 }
 0x1e1   : > { %v745_v35 = vmax.f32 %v633_v31, 0.0 }
 0x1e2   : > { %v775_v38 = vpack.c.bf16 %v747_v33, %v746_v27 }
 0x1e3   : > { %v774_v39 = vpack.c.bf16 %v745_v35, %v744_v30  ;;  %v2918_v42 = vpop.f32.mrb[8].mxu1  ;;  %1707 = vmatpush1.bf16.msra.mxu0 %v2804_v32 }
 0x1e4   : > { %v654_v40 = vadd.f32 %v2918_v42, %v3307_v2  ;;  %v645_v41 = vpop.f32.mrb[9].mxu1  ;;  %1708 = vmatprep.subr.bf16.mxu0 %v2813_v34 }
 0x1e5   : > { %2952 = vmatprep.mubr.msk.bf16.mxu0 %vm827_vm4, %v774_v39  ;;  %v646_v45 = vadd.f32 %v3307_v2, %v645_v41  ;;  %v2919_v46 = vpop.f32.mrb[10].mxu1 }
 0x1e6   : > { %2953 = vmatmul.mubr.msk.bf16.gmra.mrb[8].mxu0 %vm827_vm4, %v775_v38  ;;  %v750_v49 = vmax.f32 %v654_v40, 0.0  ;;  %v657_v50 = vadd.f32 %v2919_v46, %v3307_v2  ;;  %v648_v51 = vpop.f32.mrb[11].mxu1 }
 0x1e7   : > { %v748_v52 = vmax.f32 %v646_v45, 0.0  ;;  %v649_v53 = vadd.f32 %v3307_v2, %v648_v51  ;;  %1709 = vmatpush1.bf16.msra.mxu0 %v2812_v44 }
 0x1e8   : > { %v751_v55 = vmax.f32 %v657_v50, 0.0  ;;  %1710 = vmatprep.subr.bf16.mxu0 %v2821_v43 }
 0x1e9   : > { %v749_v57 = vmax.f32 %v649_v53, 0.0 }
 0x1ea   : > { %v777_v60 = vpack.c.bf16 %v751_v55, %v750_v49 }
 0x1eb   : > { %v776_v61 = vpack.c.bf16 %v749_v57, %v748_v52  ;;  %v2922_v62 = vpop.f32.mrb[12].mxu1  ;;  %1711 = vmatpush1.bf16.msra.mxu0 %v2820_v54 }
 0x1ec   : > { %v670_v0 = vadd.f32 %v2922_v62, %v3307_v2  ;;  %v661_v1 = vpop.f32.mrb[13].mxu1  ;;  %1712 = vmatprep.subr.bf16.mxu0 %v2829_v56 }
 0x1ed   : > { %2956 = vmatprep.mubr.msk.bf16.mxu0 %vm827_vm4, %v776_v61  ;;  %v662_v4 = vadd.f32 %v3307_v2, %v661_v1  ;;  %v2923_v5 = vpop.f32.mrb[14].mxu1 }
 0x1ee   : > { %2957 = vmatmul.mubr.msk.bf16.gmra.mrb[12].mxu0 %vm827_vm4, %v777_v60  ;;  %v754_v6 = vmax.f32 %v670_v0, 0.0  ;;  %v673_v7 = vadd.f32 %v2923_v5, %v3307_v2  ;;  %v664_v8 = vpop.f32.mrb[15].mxu1 }
 0x1ef   : > { %v752_v9 = vmax.f32 %v662_v4, 0.0  ;;  %v665_v10 = vadd.f32 %v3307_v2, %v664_v8  ;;  %1713 = vmatpush1.bf16.msra.mxu0 %v2828_v63 }
 0x1f0   : > { %v755_v12 = vmax.f32 %v673_v7, 0.0  ;;  %1714 = vmatprep.subr.bf16.mxu0 %v2837_v3 }
 0x1f1   : > { %v753_v13 = vmax.f32 %v665_v10, 0.0  ;;  %v1138_v10 = vld [vmem:[%s4101_s6 + $0x1a8] sm:$0xff] }
 0x1f2   : > { %v779_v14 = vpack.c.bf16 %v755_v12, %v754_v6 }
 0x1f3   : > { %v778_v15 = vpack.c.bf16 %v753_v13, %v752_v9  ;;  %v2926_v16 = vpop.f32.mrb[16].mxu1  ;;  %1715 = vmatpush1.bf16.msra.mxu0 %v2836_v11  ;;  %v1134_v9 = vld [vmem:[%s4101_s6 + $0x188] sm:$0xff]  ;;  %v1145_v13 = vld [vmem:[%s4101_s6 + $0x1e0] sm:$0xff] }
 0x1f4   : > { %v686_v17 = vadd.f32 %v2926_v16, %v3307_v2  ;;  %v677_v18 = vpop.f32.mrb[17].mxu1  ;;  %v2845_v11 = vcombine.high %v1134_v9, %v1138_v10  ;;  %v2844_v12 = vcombine.low %v1134_v9, %v1138_v10  ;;  %v1112_v9 = vld [vmem:[%s4101_s6 + $0xd8] sm:$0xff] }
 0x1f5   : > { %2960 = vmatprep.mubr.msk.bf16.mxu0 %vm827_vm4, %v778_v15  ;;  %v678_v19 = vadd.f32 %v3307_v2, %v677_v18  ;;  %v2927_v20 = vpop.f32.mrb[18].mxu1  ;;  %v1116_v10 = vld [vmem:[%s4101_s6 + $0xf8] sm:$0xff] }
 0x1f6   : > { %2961 = vmatmul.mubr.msk.bf16.gmra.mrb[16].mxu0 %vm827_vm4, %v779_v14  ;;  %v758_v21 = vmax.f32 %v686_v17, 0.0  ;;  %v689_v22 = vadd.f32 %v2927_v20, %v3307_v2  ;;  %v680_v23 = vpop.f32.mrb[19].mxu1  ;;  %1716 = vmatprep.subr.bf16.mxu0 %v2845_v11  ;;  %v1142_v14 = vld [vmem:[%s4101_s6 + $0x1c8] sm:$0xff]  ;;  %v3106_v20 = vmov 0  }
 0x1f7   : > { %v756_v24 = vmax.f32 %v678_v19, 0.0  ;;  %v681_v25 = vadd.f32 %v3307_v2, %v680_v23  ;;  %1717 = vmatpush1.bf16.msra.mxu0 %v2844_v12  ;;  %v1146_v17 = vld [vmem:[%s4101_s6 + $0x1e8] sm:$0xff]  ;;  %1543 = vmatprep.mubr.bf16.mxu1 %v3106_v20 }
 0x1f8   : > { %v759_v26 = vmax.f32 %v689_v22, 0.0  ;;  %v2852_v18 = vcombine.low %v1142_v14, %v1146_v17  ;;  %v2853_v19 = vcombine.high %v1142_v14, %v1146_v17  ;;  %v1091_v22 = vld [vmem:[%s4101_s6 + $0x30] sm:$0xff] }
 0x1f9   : > { %v757_v27 = vmax.f32 %v681_v25, 0.0  ;;  %v1088_v25 = vld [vmem:[%s4101_s6 + $0x18] sm:$0xff] }
 0x1fa   : > { %v781_v28 = vpack.c.bf16 %v759_v26, %v758_v21  ;;  %1718 = vmatprep.subr.bf16.mxu0 %v2853_v19  ;;  %v1087_v21 = vld [vmem:[%s4101_s6 + $0x10] sm:$0xff]  ;;  %v1092_v26 = vld [vmem:[%s4101_s6 + $0x38] sm:$0xff] }
 0x1fb   : > { %v780_v29 = vpack.c.bf16 %v757_v27, %v756_v24  ;;  %v2930_v30 = vpop.f32.mrb[20].mxu1  ;;  %1719 = vmatpush1.bf16.msra.mxu0 %v2852_v18  ;;  %v2798_v23 = vcombine.low %v1087_v21, %v1091_v22  ;;  %v2799_v24 = vcombine.high %v1087_v21, %v1091_v22  ;;  %v3422_v27 = vcombine.low %v1088_v25, %v1092_v26  ;;  %v1119_v19 = vld [vmem:[%s4101_s6 + $0x110] sm:$0xff] }
 0x1fc   : > { %v702_v31 = vadd.f32 %v2930_v30, %v3307_v2  ;;  %v693_v32 = vpop.f32.mrb[21].mxu1  ;;  %v3501_v18 = vcombine.high %v1112_v9, %v1116_v10 }
 0x1fd   : > { %2964 = vmatprep.mubr.msk.bf16.mxu0 %vm827_vm4, %v780_v29  ;;  %v694_v33 = vadd.f32 %v3307_v2, %v693_v32  ;;  %v2931_v34 = vpop.f32.mrb[22].mxu1  ;;  %v3430_v29 = vld [vmem:[%s4100_s5] ss:$0 sm:$0xff] }
 0x1fe   : > { %2965 = vmatmul.mubr.msk.bf16.gmra.mrb[20].mxu0 %vm827_vm4, %v781_v28  ;;  %v762_v35 = vmax.f32 %v702_v31, 0.0  ;;  %v705_v36 = vadd.f32 %v2931_v34, %v3307_v2  ;;  %v696_v37 = vpop.f32.mrb[23].mxu1  ;;  %v3424_v28 = vcombine.high %v1088_v25, %v1092_v26  ;;  %v1124_v25 = vld [vmem:[%s4101_s6 + $0x138] sm:$0xff] }
 0x1ff   : > { %v760_v38 = vmax.f32 %v694_v33, 0.0  ;;  %v697_v39 = vadd.f32 %v3307_v2, %v696_v37 }
 0x200   : > { %v763_v42 = vmax.f32 %v705_v36, 0.0  ;;  %2090 = vmatprep.subr.bf16.mxu0 %v3424_v28 }
 0x201   : > { %v761_v44 = vmax.f32 %v697_v39, 0.0 }
 0x202   : > { %v783_v40 = vpack.c.bf16 %v763_v42, %v762_v35  ;;  %v1095_v42 = vld [vmem:[%s4101_s6 + $0x50] sm:$0xff] }
 0x203   : > { %v782_v41 = vpack.c.bf16 %v761_v44, %v760_v38  ;;  %v2934_v43 = vpop.f32.mrb[24].mxu1 }
 0x204   : > { %v718_v45 = vadd.f32 %v2934_v43, %v3307_v2  ;;  %v709_v46 = vpop.f32.mrb[25].mxu1  ;;  %v1096_v43 = vld [vmem:[%s4101_s6 + $0x58] sm:$0xff] }
 0x205   : > { %2968 = vmatprep.mubr.msk.bf16.mxu0 %vm827_vm4, %v782_v41  ;;  %v710_v47 = vadd.f32 %v3307_v2, %v709_v46  ;;  %v2935_v48 = vpop.f32.mrb[26].mxu1  ;;  %v1099_v41 = vld [vmem:[%s4101_s6 + $0x70] sm:$0xff] }
 0x206   : > { %2969 = vmatmul.mubr.msk.bf16.gmra.mrb[24].mxu0 %vm827_vm4, %v783_v40  ;;  %v766_v49 = vmax.f32 %v718_v45, 0.0  ;;  %v721_v50 = vadd.f32 %v2935_v48, %v3307_v2  ;;  %v712_v51 = vpop.f32.mrb[27].mxu1  ;;  %v1100_v45 = vld [vmem:[%s4101_s6 + $0x78] sm:$0xff] }
 0x207   : > { %v764_v52 = vmax.f32 %v710_v47, 0.0  ;;  %v713_v53 = vadd.f32 %v3307_v2, %v712_v51  ;;  %v2807_v51 = vcombine.high %v1095_v42, %v1099_v41 }
 0x208   : > { %v767_v54 = vmax.f32 %v721_v50, 0.0 }
 0x209   : > { %v765_v55 = vmax.f32 %v713_v53, 0.0  ;;  %v1103_v53 = vld [vmem:[%s4101_s6 + $0x90] sm:$0xff] }
 0x20a   : > { %v785_v56 = vpack.c.bf16 %v767_v54, %v766_v49  ;;  %v1107_v54 = vld [vmem:[%s4101_s6 + $0xb0] sm:$0xff] }
 0x20b   : > { %v784_v57 = vpack.c.bf16 %v765_v55, %v764_v52  ;;  %v2938_v58 = vpop.f32.mrb[28].mxu1  ;;  %v3453_v52 = vcombine.high %v1096_v43, %v1100_v45 }
 0x20c   : > { %v734_v59 = vadd.f32 %v2938_v58, %v3307_v2  ;;  %v725_v60 = vpop.f32.mrb[29].mxu1  ;;  %v1108_v58 = vld [vmem:[%s4101_s6 + $0xb8] sm:$0xff] }
 0x20d   : > { %2972 = vmatprep.mubr.msk.bf16.mxu0 %vm827_vm4, %v784_v57  ;;  %v726_v61 = vadd.f32 %v3307_v2, %v725_v60  ;;  %v2939_v62 = vpop.f32.mrb[30].mxu1  ;;  %v1104_v57 = vld [vmem:[%s4101_s6 + $0x98] sm:$0xff] }
 0x20e   : > { %2973 = vmatmul.mubr.msk.bf16.gmra.mrb[28].mxu0 %vm827_vm4, %v785_v56  ;;  %v770_v63 = vmax.f32 %v734_v59, 0.0  ;;  %v737_v0 = vadd.f32 %v2939_v62, %v3307_v2  ;;  %v728_v1 = vpop.f32.mrb[31].mxu1  ;;  %v2806_v62 = vcombine.low %v1095_v42, %v1099_v41  ;;  %v3497_v14 = vcombine.low %v1104_v57, %v1108_v58  ;;  %v1132_v41 = vld [vmem:[%s4101_s6 + $0x178] sm:$0xff] }
 0x20f   : > { %v768_v3 = vmax.f32 %v726_v61, 0.0  ;;  %v729_v4 = vadd.f32 %v3307_v2, %v728_v1  ;;  %v1141_v2 = vld [vmem:[%s4101_s6 + $0x1c0] sm:$0xff]  ;;  %v3475_v1 = vcombine.low %v1096_v43, %v1100_v45 }
 0x210   : > { %v771_v5 = vmax.f32 %v737_v0, 0.0  ;;  %v2850_v15 = vcombine.low %v1141_v2, %v1145_v13  ;;  %v2851_v16 = vcombine.high %v1141_v2, %v1145_v13  ;;  %v2814_v13 = vcombine.low %v1103_v53, %v1107_v54 }
 0x211   : > { %v769_v6 = vmax.f32 %v729_v4, 0.0 }
 0x212   : > { %v787_v7 = vpack.c.bf16 %v771_v5, %v770_v63  ;;  %1525 = vmatprep.subr.bf16.mxu1 %v2851_v16  ;;  %v3478_v5 = vcombine.high %v1104_v57, %v1108_v58 }
 0x213   : > { %v786_v8 = vpack.c.bf16 %v769_v6, %v768_v3  ;;  %1526 = vmatpush1.bf16.msra.mxu1 %v2850_v15  ;;  %v2815_v3 = vcombine.high %v1103_v53, %v1107_v54  ;;  %v1111_v6 = vld [vmem:[%s4101_s6 + $0xd0] sm:$0xff] }
 0x214   : > { %1897 = vmatprep.subr.bf16.mxu1 %v2799_v24  ;;  %v1120_v24 = vld [vmem:[%s4101_s6 + $0x118] sm:$0xff] }
 0x215   : > { %2976 = vmatprep.mubr.msk.bf16.mxu0 %vm827_vm4, %v786_v8  ;;  %v1115_v8 = vld [vmem:[%s4101_s6 + $0xf0] sm:$0xff] }
 0x216   : > { %2977 = vmatmul.mubr.msk.bf16.gmra.mrb[32].mxu0 %vm827_vm4, %v787_v7  ;;  %v2823_v17 = vcombine.high %v1111_v6, %v1115_v8 }
 0x217   : > { %1736 = vmatprep.mubr.bf16.mxu0 %v3106_v20 }
 0x2b1   : > { %v2950_v30 = vpop.f32.mrb[4].mxu0 }
 0x2b2   : > { %v919_v31 = vadd.f32 %v2950_v30, %v3430_v29  ;;  %v910_v32 = vpop.f32.mrb[5].mxu0 }
 0x2b3   : > { %v911_v33 = vadd.f32 %v3430_v29, %v910_v32  ;;  %v2951_v34 = vpop.f32.mrb[6].mxu0 }
 0x2b4   : > { %v922_v35 = vadd.f32 %v2951_v34, %v3430_v29  ;;  %v913_v36 = vpop.f32.mrb[7].mxu0  ;;  %v1039_v38 = vmax.f32 %v919_v31, 0.0  ;;  %v2822_v34 = vcombine.low %v1111_v6, %v1115_v8 }
 0x2b5   : > { %v914_v37 = vadd.f32 %v3430_v29, %v913_v36  ;;  %v1037_v44 = vmax.f32 %v911_v33, 0.0 }
 0x2b6   : > { %v1040_v39 = vmax.f32 %v922_v35, 0.0  ;;  %v3523_v35 = vcombine.low %v1112_v9, %v1116_v10 }
 0x2b7   : > { %v1038_v40 = vmax.f32 %v914_v37, 0.0 }
 0x2b8   : > { %v3448_v46 = vpack.c.bf16 %v1040_v39, %v1039_v38  ;;  %v3526_v38 = vcombine.high %v1120_v24, %v1124_v25  ;;  %v1127_v39 = vld [vmem:[%s4101_s6 + $0x150] sm:$0xff] }
 0x2b9   : > { %v3450_v47 = vpack.c.bf16 %v1038_v40, %v1037_v44  ;;  %v2954_v48 = vpop.f32.mrb[8].mxu0  ;;  %v1131_v44 = vld [vmem:[%s4101_s6 + $0x170] sm:$0xff]  ;;  %v1128_v40 = vld [vmem:[%s4101_s6 + $0x158] sm:$0xff] }
 0x2ba   : > { %v935_v49 = vadd.f32 %v2954_v48, %v3430_v29  ;;  %v926_v50 = vpop.f32.mrb[9].mxu0  ;;  %v2839_v54 = vcombine.high %v1127_v39, %v1131_v44  ;;  %v2838_v6 = vcombine.low %v1127_v39, %v1131_v44 }
 0x2bb   : > { %v927_v55 = vadd.f32 %v3430_v29, %v926_v50  ;;  %1544 = vmatmul.mubr.bf16.vlgmr.msra.gmra.mrb[32].mxu1 %v3450_v47  ;;  %1737 = vmatmul.mubr.bf16.vlgmr.msra.gmra.mrb[36].mxu0 %v3450_v47  ;;  %v2955_v56 = vpop.f32.mrb[10].mxu0  ;;  %v3545_v50 = vcombine.low %v1120_v24, %v1124_v25 }
 0x2bc   : > { %v1043_v59 = vmax.f32 %v935_v49, 0.0  ;;  %1898 = vmatpush1.bf16.msra.mxu1 %v2798_v23  ;;  %v938_v60 = vadd.f32 %v2955_v56, %v3430_v29  ;;  %v929_v61 = vpop.f32.mrb[11].mxu0  ;;  %1553 = vmatprep.mubr.bf16.mxu1 %v3106_v20  ;;  %v1123_v23 = vld [vmem:[%s4101_s6 + $0x130] sm:$0xff] }
 0x2bd   : > { %v1041_v63 = vmax.f32 %v927_v55, 0.0  ;;  %v930_v0 = vadd.f32 %v3430_v29, %v929_v61  ;;  %1746 = vmatprep.mubr.bf16.mxu0 %v3106_v20  ;;  %2091 = vmatpush1.bf16.msra.mxu0 %v3422_v27  ;;  %v2831_v37 = vcombine.high %v1119_v19, %v1123_v23  ;;  %v2830_v49 = vcombine.low %v1119_v19, %v1123_v23  ;;  %v1135_v56 = vld [vmem:[%s4101_s6 + $0x190] sm:$0xff]  ;;  %v1140_v61 = vld [vmem:[%s4101_s6 + $0x1b8] sm:$0xff] }
 0x2be   : > { %v1044_v4 = vmax.f32 %v938_v60, 0.0  ;;  %1899 = vmatprep.subr.bf16.mxu1 %v2807_v51  ;;  %2092 = vmatprep.subr.bf16.mxu0 %v3453_v52  ;;  %v3549_v55 = vcombine.high %v1128_v40, %v1132_v41  ;;  %v1136_v60 = vld [vmem:[%s4101_s6 + $0x198] sm:$0xff] }
 0x2bf   : > { %v1042_v7 = vmax.f32 %v930_v0, 0.0  ;;  %v3574_v10 = vcombine.high %v1136_v60, %v1140_v61  ;;  %v3593_v24 = vcombine.low %v1136_v60, %v1140_v61 }
 0x2c0   : > { %v3492_v11 = vpack.c.bf16 %v1044_v4, %v1043_v59  ;;  %1900 = vmatpush1.bf16.msra.mxu1 %v2806_v62  ;;  %v1139_v59 = vld [vmem:[%s4101_s6 + $0x1b0] sm:$0xff] }
 0x2c1   : > { %v3494_v12 = vpack.c.bf16 %v1042_v7, %v1041_v63  ;;  %v2958_v2 = vpop.f32.mrb[12].mxu0  ;;  %2093 = vmatpush1.bf16.msra.mxu0 %v3475_v1  ;;  %1901 = vmatprep.subr.bf16.mxu1 %v2815_v3  ;;  %v3571_v7 = vcombine.low %v1128_v40, %v1132_v41  ;;  %v2847_v9 = vcombine.high %v1135_v56, %v1139_v59 }
 0x2c2   : > { %v951_v15 = vadd.f32 %v2958_v2, %v3430_v29  ;;  %v942_v16 = vpop.f32.mrb[13].mxu0  ;;  %2094 = vmatprep.subr.bf16.mxu0 %v3478_v5  ;;  %v1143_v2 = vld [vmem:[%s4101_s6 + $0x1d0] sm:$0xff]  ;;  %v2846_v23 = vcombine.low %v1135_v56, %v1139_v59 }
 0x2c3   : > { %1554 = vmatmul.mubr.bf16.gmra.mrb[36].mxu1 %v3448_v46  ;;  %1747 = vmatmul.mubr.bf16.gmra.mrb[40].mxu0 %v3448_v46  ;;  %v943_v21 = vadd.f32 %v3430_v29, %v942_v16  ;;  %v2959_v22 = vpop.f32.mrb[14].mxu0  ;;  %v1144_v16 = vld [vmem:[%s4101_s6 + $0x1d8] sm:$0xff] }
 0x2c4   : > { %v1047_v26 = vmax.f32 %v951_v15, 0.0  ;;  %1563 = vmatprep.mubr.bf16.mxu1 %v3106_v20  ;;  %1756 = vmatprep.mubr.bf16.mxu0 %v3106_v20  ;;  %v954_v30 = vadd.f32 %v2959_v22, %v3430_v29  ;;  %v945_v31 = vpop.f32.mrb[15].mxu0  ;;  %v1147_v15 = vld [vmem:[%s4101_s6 + $0x1f0] sm:$0xff] }
 0x2c5   : > { %v1045_v32 = vmax.f32 %v943_v21, 0.0  ;;  %v946_v33 = vadd.f32 %v3430_v29, %v945_v31  ;;  %1902 = vmatpush1.bf16.msra.mxu1 %v2814_v13  ;;  %2095 = vmatpush1.bf16.msra.mxu0 %v3497_v14  ;;  %v2854_v44 = vcombine.low %v1143_v2, %v1147_v15 }
 0x2c6   : > { %v1048_v36 = vmax.f32 %v954_v30, 0.0  ;;  %1903 = vmatprep.subr.bf16.mxu1 %v2823_v17  ;;  %2096 = vmatprep.subr.bf16.mxu0 %v3501_v18  ;;  %v1148_v17 = vld [vmem:[%s4101_s6 + $0x1f8] sm:$0xff]  ;;  %v2855_v30 = vcombine.high %v1143_v2, %v1147_v15 }
 0x2c7   : > { %v1046_v42 = vmax.f32 %v946_v33, 0.0  ;;  %v3597_v31 = vcombine.high %v1144_v16, %v1148_v17  ;;  %v3607_v40 = vcombine.low %v1144_v16, %v1148_v17 }
 0x2c8   : > { %v3540_v43 = vpack.c.bf16 %v1048_v36, %v1047_v26 }
 0x2c9   : > { %v3542_v45 = vpack.c.bf16 %v1046_v42, %v1045_v32  ;;  %v2962_v48 = vpop.f32.mrb[16].mxu0  ;;  %1904 = vmatpush1.bf16.msra.mxu1 %v2822_v34  ;;  %2097 = vmatpush1.bf16.msra.mxu0 %v3523_v35 }
 0x2ca   : > { %v967_v51 = vadd.f32 %v2962_v48, %v3430_v29  ;;  %v958_v53 = vpop.f32.mrb[17].mxu0  ;;  %1905 = vmatprep.subr.bf16.mxu1 %v2831_v37  ;;  %2098 = vmatprep.subr.bf16.mxu0 %v3526_v38 }
 0x2cb   : > { %1564 = vmatmul.mubr.bf16.gmra.mrb[40].mxu1 %v3494_v12  ;;  %1757 = vmatmul.mubr.bf16.gmra.mrb[44].mxu0 %v3494_v12  ;;  %v959_v57 = vadd.f32 %v3430_v29, %v958_v53  ;;  %v2963_v58 = vpop.f32.mrb[18].mxu0 }
 0x2cc   : > { %1573 = vmatprep.mubr.bf16.mxu1 %v3106_v20  ;;  %1766 = vmatprep.mubr.bf16.mxu0 %v3106_v20  ;;  %v1051_v62 = vmax.f32 %v967_v51, 0.0  ;;  %v970_v63 = vadd.f32 %v2963_v58, %v3430_v29  ;;  %v961_v0 = vpop.f32.mrb[19].mxu0 }
 0x2cd   : > { %v1049_v3 = vmax.f32 %v959_v57, 0.0  ;;  %v962_v4 = vadd.f32 %v3430_v29, %v961_v0  ;;  %1906 = vmatpush1.bf16.msra.mxu1 %v2830_v49  ;;  %2099 = vmatpush1.bf16.msra.mxu0 %v3545_v50 }
 0x2ce   : > { %v1052_v8 = vmax.f32 %v970_v63, 0.0  ;;  %1907 = vmatprep.subr.bf16.mxu1 %v2839_v54  ;;  %2100 = vmatprep.subr.bf16.mxu0 %v3549_v55 }
 0x2cf   : > { %v1050_v13 = vmax.f32 %v962_v4, 0.0 }
 0x2d0   : > { %v3588_v19 = vpack.c.bf16 %v1052_v8, %v1051_v62 }
 0x2d1   : > { %v3590_v21 = vpack.c.bf16 %v1050_v13, %v1049_v3  ;;  %v2966_v22 = vpop.f32.mrb[20].mxu0  ;;  %1908 = vmatpush1.bf16.msra.mxu1 %v2838_v6  ;;  %2101 = vmatpush1.bf16.msra.mxu0 %v3571_v7 }
 0x2d2   : > { %v983_v25 = vadd.f32 %v2966_v22, %v3430_v29  ;;  %v974_v26 = vpop.f32.mrb[21].mxu0  ;;  %1909 = vmatprep.subr.bf16.mxu1 %v2847_v9  ;;  %2102 = vmatprep.subr.bf16.mxu0 %v3574_v10 }
 0x2d3   : > { %1574 = vmatmul.mubr.bf16.gmra.mrb[44].mxu1 %v3492_v11  ;;  %1767 = vmatmul.mubr.bf16.gmra.mrb[48].mxu0 %v3492_v11  ;;  %v975_v32 = vadd.f32 %v3430_v29, %v974_v26  ;;  %v2967_v33 = vpop.f32.mrb[22].mxu0 }
 0x2d4   : > { %1583 = vmatprep.mubr.bf16.mxu1 %v3106_v20  ;;  %1776 = vmatprep.mubr.bf16.mxu0 %v3106_v20  ;;  %v1055_v34 = vmax.f32 %v983_v25, 0.0  ;;  %v986_v36 = vadd.f32 %v2967_v33, %v3430_v29  ;;  %v977_v37 = vpop.f32.mrb[23].mxu0 }
 0x2d5   : > { %v1053_v39 = vmax.f32 %v975_v32, 0.0  ;;  %v978_v42 = vadd.f32 %v3430_v29, %v977_v37  ;;  %1910 = vmatpush1.bf16.msra.mxu1 %v2846_v23  ;;  %2103 = vmatpush1.bf16.msra.mxu0 %v3593_v24 }
 0x2d6   : > { %v1056_v41 = vmax.f32 %v986_v36, 0.0  ;;  %1911 = vmatprep.subr.bf16.mxu1 %v2855_v30  ;;  %2104 = vmatprep.subr.bf16.mxu0 %v3597_v31 }
 0x2d7   : > { %v1054_v48 = vmax.f32 %v978_v42, 0.0 }
 0x2d8   : > { %v3610_v49 = vpack.c.bf16 %v1056_v41, %v1055_v34 }
 0x2d9   : > { %v3612_v51 = vpack.c.bf16 %v1054_v48, %v1053_v39  ;;  %v2970_v53 = vpop.f32.mrb[24].mxu0  ;;  %1912 = vmatpush1.bf16.msra.mxu1 %v2854_v44  ;;  %2105 = vmatpush1.bf16.msra.mxu0 %v3607_v40 }
 0x2da   : > { %v999_v54 = vadd.f32 %v2970_v53, %v3430_v29  ;;  %v990_v56 = vpop.f32.mrb[25].mxu0  ;;  %2980 = vmatprep.subr.bf16.mxu1 %v3424_v28 }
 0x2db   : > { %1584 = vmatmul.mubr.bf16.gmra.mrb[48].mxu1 %v3542_v45  ;;  %1777 = vmatmul.mubr.bf16.gmra.mrb[52].mxu0 %v3542_v45  ;;  %v991_v57 = vadd.f32 %v3430_v29, %v990_v56  ;;  %v2971_v58 = vpop.f32.mrb[26].mxu0 }
 0x2dc   : > { %1593 = vmatprep.mubr.bf16.mxu1 %v3106_v20  ;;  %1786 = vmatprep.mubr.bf16.mxu0 %v3106_v20  ;;  %v1059_v59 = vmax.f32 %v999_v54, 0.0  ;;  %v1002_v60 = vadd.f32 %v2971_v58, %v3430_v29  ;;  %v993_v61 = vpop.f32.mrb[27].mxu0 }
 0x2dd   : > { %v1057_v62 = vmax.f32 %v991_v57, 0.0  ;;  %v994_v63 = vadd.f32 %v3430_v29, %v993_v61 }
 0x2de   : > { %v1060_v0 = vmax.f32 %v1002_v60, 0.0 }
 0x2df   : > { %v1058_v28 = vmax.f32 %v994_v63, 0.0 }
 0x2e0   : > { %v3624_v3 = vpack.c.bf16 %v1060_v0, %v1059_v59 }
 0x2e1   : > { %v3626_v4 = vpack.c.bf16 %v1058_v28, %v1057_v62  ;;  %v2974_v6 = vpop.f32.mrb[28].mxu0 }
 0x2e2   : > { %v1015_v8 = vadd.f32 %v2974_v6, %v3430_v29  ;;  %v1006_v9 = vpop.f32.mrb[29].mxu0 }
 0x2e3   : > { %1594 = vmatmul.mubr.bf16.gmra.mrb[52].mxu1 %v3540_v43  ;;  %1787 = vmatmul.mubr.bf16.gmra.mrb[56].mxu0 %v3540_v43  ;;  %v1007_v2 = vadd.f32 %v3430_v29, %v1006_v9  ;;  %v2975_v13 = vpop.f32.mrb[30].mxu0 }
 0x2e4   : > { %1603 = vmatprep.mubr.bf16.mxu1 %v3106_v20  ;;  %1796 = vmatprep.mubr.bf16.mxu0 %v3106_v20  ;;  %v1063_v15 = vmax.f32 %v1015_v8, 0.0  ;;  %v1018_v16 = vadd.f32 %v2975_v13, %v3430_v29  ;;  %v1009_v17 = vpop.f32.mrb[31].mxu0 }
 0x2e5   : > { %v1061_v22 = vmax.f32 %v1007_v2, 0.0  ;;  %v1010_v23 = vadd.f32 %v3430_v29, %v1009_v17 }
 0x2e6   : > { %v1064_v25 = vmax.f32 %v1018_v16, 0.0 }
 0x2e7   : > { %v1062_v26 = vmax.f32 %v1010_v23, 0.0 }
 0x2e8   : > { %v3636_v30 = vpack.c.bf16 %v1064_v25, %v1063_v15 }
 0x2e9   : > { %v3638_v32 = vpack.c.bf16 %v1062_v26, %v1061_v22  ;;  %v2978_v33 = vpop.f32.mrb[32].mxu0 }
 0x2ea   : > { %v1031_v34 = vadd.f32 %v2978_v33, %v3430_v29  ;;  %v1022_v36 = vpop.f32.mrb[33].mxu0 }
 0x2eb   : > { %1604 = vmatmul.mubr.bf16.gmra.mrb[56].mxu1 %v3590_v21  ;;  %1797 = vmatmul.mubr.bf16.gmra.mrb[60].mxu0 %v3590_v21  ;;  %v1023_v37 = vadd.f32 %v3430_v29, %v1022_v36  ;;  %v2979_v39 = vpop.f32.mrb[34].mxu0 }
 0x2ec   : > { %1613 = vmatprep.mubr.bf16.mxu1 %v3106_v20  ;;  %1806 = vmatprep.mubr.bf16.mxu0 %v3106_v20  ;;  %v1067_v42 = vmax.f32 %v1031_v34, 0.0  ;;  %v1034_v44 = vadd.f32 %v2979_v39, %v3430_v29  ;;  %v1025_v41 = vpop.f32.mrb[35].mxu0 }
 0x2ed   : > { %v1065_v48 = vmax.f32 %v1023_v37, 0.0  ;;  %v1026_v53 = vadd.f32 %v3430_v29, %v1025_v41 }
 0x2ee   : > { %v1068_v54 = vmax.f32 %v1034_v44, 0.0 }
 0x2ef   : > { %v1066_v56 = vmax.f32 %v1026_v53, 0.0 }
 0x2f0   : > { %v3648_v57 = vpack.c.bf16 %v1068_v54, %v1067_v42 }
 0x2f1   : > { %v3650_v58 = vpack.c.bf16 %v1066_v56, %v1065_v48 }
 0x2f3   : > { %1614 = vmatmul.mubr.bf16.gmra.mrb[60].mxu1 %v3588_v19  ;;  %1807 = vmatmul.mubr.bf16.gmra.mrb[64].mxu0 %v3588_v19 }
 0x2f4   : > { %1623 = vmatprep.mubr.bf16.mxu1 %v3106_v20  ;;  %1816 = vmatprep.mubr.bf16.mxu0 %v3106_v20 }
 0x2fb   : > { %1624 = vmatmul.mubr.bf16.gmra.mrb[64].mxu1 %v3612_v51  ;;  %1817 = vmatmul.mubr.bf16.gmra.mrb[68].mxu0 %v3612_v51 }
 0x2fc   : > { %1633 = vmatprep.mubr.bf16.mxu1 %v3106_v20  ;;  %1826 = vmatprep.mubr.bf16.mxu0 %v3106_v20 }
 0x303   : > { %1634 = vmatmul.mubr.bf16.gmra.mrb[68].mxu1 %v3610_v49  ;;  %1827 = vmatmul.mubr.bf16.gmra.mrb[72].mxu0 %v3610_v49 }
 0x304   : > { %1643 = vmatprep.mubr.bf16.mxu1 %v3106_v20  ;;  %1836 = vmatprep.mubr.bf16.mxu0 %v3106_v20 }
 0x30b   : > { %1644 = vmatmul.mubr.bf16.gmra.mrb[72].mxu1 %v3626_v4  ;;  %1837 = vmatmul.mubr.bf16.gmra.mrb[76].mxu0 %v3626_v4 }
 0x30c   : > { %1653 = vmatprep.mubr.bf16.mxu1 %v3106_v20  ;;  %1846 = vmatprep.mubr.bf16.mxu0 %v3106_v20 }
 0x313   : > { %1654 = vmatmul.mubr.bf16.gmra.mrb[76].mxu1 %v3624_v3  ;;  %1847 = vmatmul.mubr.bf16.gmra.mrb[80].mxu0 %v3624_v3 }
 0x314   : > { %1663 = vmatprep.mubr.bf16.mxu1 %v3106_v20  ;;  %1856 = vmatprep.mubr.bf16.mxu0 %v3106_v20 }
 0x31b   : > { %1664 = vmatmul.mubr.bf16.gmra.mrb[80].mxu1 %v3638_v32  ;;  %1857 = vmatmul.mubr.bf16.gmra.mrb[84].mxu0 %v3638_v32 }
 0x31c   : > { %1673 = vmatprep.mubr.bf16.mxu1 %v3106_v20  ;;  %1866 = vmatprep.mubr.bf16.mxu0 %v3106_v20 }
 0x323   : > { %1674 = vmatmul.mubr.bf16.gmra.mrb[84].mxu1 %v3636_v30  ;;  %1867 = vmatmul.mubr.bf16.gmra.mrb[88].mxu0 %v3636_v30 }
 0x324   : > { %1683 = vmatprep.mubr.bf16.mxu1 %v3106_v20  ;;  %1876 = vmatprep.mubr.bf16.mxu0 %v3106_v20 }
 0x32b   : > { %1684 = vmatmul.mubr.bf16.gmra.mrb[88].mxu1 %v3650_v58  ;;  %1877 = vmatmul.mubr.bf16.gmra.mrb[92].mxu0 %v3650_v58 }
 0x32c   : > { %1693 = vmatprep.mubr.bf16.mxu1 %v3106_v20  ;;  %1886 = vmatprep.mubr.bf16.mxu0 %v3106_v20 }
 0x333   : > { %1694 = vmatmul.mubr.bf16.gmra.mrb[92].mxu1 %v3648_v57  ;;  %1887 = vmatmul.mubr.bf16.gmra.mrb[96].mxu0 %v3648_v57 }
 0x334   : > { %1929 = vmatprep.mubr.bf16.mxu1 %v3106_v20  ;;  %2122 = vmatprep.mubr.bf16.mxu0 %v3106_v20 }
 0x33b   : > { %1930 = vmatmul.mubr.bf16.vlgmr.msra.gmra.mrb[96].mxu1 %v3450_v47  ;;  %2123 = vmatmul.mubr.bf16.vlgmr.msra.gmra.mrb[100].mxu0 %v3450_v47 }
 0x33c   : > { %2988 = vmatpush1.bf16.msra.mxu1 %v3422_v27  ;;  %1939 = vmatprep.mubr.bf16.mxu1 %v3106_v20  ;;  %v1151_v27 = vlaneseq }
 0x33d   : > { %2132 = vmatprep.mubr.bf16.mxu0 %v3106_v20  ;;  %2981 = vmatprep.subr.bf16.mxu1 %v3453_v52  ;;  %v3750_v52 = vld [vmem:[%s4102_s7] sm:$0xff] }
 0x33e   : > { %v3743_v29 = vshrl.u32 %v1151_v27, 7 }
 0x340   : > { %2989 = vmatpush1.bf16.msra.mxu1 %v3475_v1  ;;  %v1161_v47 = vsub.s32 2, %v3743_v29  ;;  %v1157_v1 = vsub.s32 1, %v3743_v29 }
 0x341   : > { %2982 = vmatprep.subr.bf16.mxu1 %v3478_v5  ;;  %v1165_v5 = vsub.s32 3, %v3743_v29 }
 0x343   : > { %1940 = vmatmul.mubr.bf16.gmra.mrb[100].mxu1 %v3448_v46  ;;  %2133 = vmatmul.mubr.bf16.gmra.mrb[104].mxu0 %v3448_v46  ;;  %v1153_v46 = vsub.s32 0, %v3743_v29 }
 0x344   : > { %1949 = vmatprep.mubr.bf16.mxu1 %v3106_v20  ;;  %2142 = vmatprep.mubr.bf16.mxu0 %v3106_v20 }
 0x345   : > { %2990 = vmatpush1.bf16.msra.mxu1 %v3497_v14 }
 0x346   : > { %2983 = vmatprep.subr.bf16.mxu1 %v3501_v18 }
 0x349   : > { %2991 = vmatpush1.bf16.msra.mxu1 %v3523_v35  ;;  %v3765_v35 = vrot.slane %v3750_v52, %v1157_v1 }
 0x34a   : > { %2984 = vmatprep.subr.bf16.mxu1 %v3526_v38  ;;  %v3768_v38 = vrot.slane %v3750_v52, %v1165_v5 }
 0x34b   : > { %1950 = vmatmul.mubr.bf16.gmra.mrb[104].mxu1 %v3494_v12  ;;  %2143 = vmatmul.mubr.bf16.gmra.mrb[108].mxu0 %v3494_v12  ;;  %v3762_v12 = vrot.slane %v3750_v52, %v1161_v47 }
 0x34c   : > { %1959 = vmatprep.mubr.bf16.mxu1 %v3106_v20  ;;  %2152 = vmatprep.mubr.bf16.mxu0 %v3106_v20 }
 0x34d   : > { %2992 = vmatpush1.bf16.msra.mxu1 %v3545_v50 }
 0x34e   : > { %2985 = vmatprep.subr.bf16.mxu1 %v3549_v55 }
 0x351   : > { %2993 = vmatpush1.bf16.msra.mxu1 %v3571_v7 }
 0x352   : > { %2986 = vmatprep.subr.bf16.mxu1 %v3574_v10 }
 0x353   : > { %1960 = vmatmul.mubr.bf16.gmra.mrb[108].mxu1 %v3492_v11  ;;  %2153 = vmatmul.mubr.bf16.gmra.mrb[112].mxu0 %v3492_v11  ;;  %v3759_v11 = vrot.slane %v3750_v52, %v1153_v46 }
 0x354   : > { %1969 = vmatprep.mubr.bf16.mxu1 %v3106_v20  ;;  %2162 = vmatprep.mubr.bf16.mxu0 %v3106_v20 }
 0x355   : > { %2994 = vmatpush1.bf16.msra.mxu1 %v3593_v24 }
 0x356   : > { %2987 = vmatprep.subr.bf16.mxu1 %v3597_v31 }
 0x359   : > { %2995 = vmatpush1.bf16.msra.mxu1 %v3607_v40 }
 0x35b   : > { %1970 = vmatmul.mubr.bf16.gmra.mrb[112].mxu1 %v3542_v45  ;;  %2163 = vmatmul.mubr.bf16.gmra.mrb[116].mxu0 %v3542_v45 }
 0x35c   : > { %1979 = vmatprep.mubr.bf16.mxu1 %v3106_v20  ;;  %2172 = vmatprep.mubr.bf16.mxu0 %v3106_v20 }
 0x363   : > { %1980 = vmatmul.mubr.bf16.gmra.mrb[116].mxu1 %v3540_v43  ;;  %2173 = vmatmul.mubr.bf16.gmra.mrb[120].mxu0 %v3540_v43 }
 0x364   : > { %1989 = vmatprep.mubr.bf16.mxu1 %v3106_v20  ;;  %2182 = vmatprep.mubr.bf16.mxu0 %v3106_v20 }
 0x36b   : > { %1990 = vmatmul.mubr.bf16.gmra.mrb[120].mxu1 %v3590_v21  ;;  %2183 = vmatmul.mubr.bf16.gmra.mrb[124].mxu0 %v3590_v21 }
 0x36c   : > { %1999 = vmatprep.mubr.bf16.mxu1 %v3106_v20  ;;  %2192 = vmatprep.mubr.bf16.mxu0 %v3106_v20 }
 0x373   : > { %2000 = vmatmul.mubr.bf16.gmra.mrb[124].mxu1 %v3588_v19  ;;  %2193 = vmatmul.mubr.bf16.gmra.mrb[128].mxu0 %v3588_v19 }
 0x374   : > { %2009 = vmatprep.mubr.bf16.mxu1 %v3106_v20  ;;  %2202 = vmatprep.mubr.bf16.mxu0 %v3106_v20 }
 0x37b   : > { %2010 = vmatmul.mubr.bf16.gmra.mrb[128].mxu1 %v3612_v51  ;;  %2203 = vmatmul.mubr.bf16.gmra.mrb[132].mxu0 %v3612_v51 }
 0x37c   : > { %2019 = vmatprep.mubr.bf16.mxu1 %v3106_v20  ;;  %2212 = vmatprep.mubr.bf16.mxu0 %v3106_v20 }
 0x383   : > { %2020 = vmatmul.mubr.bf16.gmra.mrb[132].mxu1 %v3610_v49  ;;  %2213 = vmatmul.mubr.bf16.gmra.mrb[136].mxu0 %v3610_v49 }
 0x384   : > { %2029 = vmatprep.mubr.bf16.mxu1 %v3106_v20  ;;  %2222 = vmatprep.mubr.bf16.mxu0 %v3106_v20 }
 0x38b   : > { %2030 = vmatmul.mubr.bf16.gmra.mrb[136].mxu1 %v3626_v4  ;;  %2223 = vmatmul.mubr.bf16.gmra.mrb[140].mxu0 %v3626_v4 }
 0x38c   : > { %2039 = vmatprep.mubr.bf16.mxu1 %v3106_v20  ;;  %2232 = vmatprep.mubr.bf16.mxu0 %v3106_v20 }
 0x38e   : > { %v1545_v14 = vpop.f32.mrb[32].mxu1  ;;  %v1738_v18 = vpop.f32.mrb[36].mxu0 }
 0x38f   : > { %v1547_v43 = vpop.f32.mrb[33].mxu1  ;;  %v1740_v45 = vpop.f32.mrb[37].mxu0  ;;  %v1546_v7 = vadd.f32 %v1545_v14, %v3759_v11  ;;  %v1739_v10 = vadd.f32 %v1738_v18, %v3762_v12 }
 0x390   : > { %v1549_v50 = vpop.f32.mrb[34].mxu1  ;;  %v1742_v55 = vpop.f32.mrb[38].mxu0  ;;  %v1548_v40 = vadd.f32 %v1547_v43, %v3765_v35  ;;  %v1741_v49 = vadd.f32 %v1740_v45, %v3768_v38 }
 0x391   : > { %v1550_v19 = vadd.f32 %v1549_v50, %v3759_v11  ;;  %v1743_v21 = vadd.f32 %v1742_v55, %v3762_v12  ;;  %v1551_v24 = vpop.f32.mrb[35].mxu1  ;;  %v1744_v31 = vpop.f32.mrb[39].mxu0 }
 0x392   : > { %v1552_v51 = vadd.f32 %v1551_v24, %v3765_v35  ;;  %v1745_v59 = vadd.f32 %v1744_v31, %v3768_v38 }
 0x393   : > { %v2284_v60 = vmax.f32 %v1546_v7, %v1550_v19  ;;  %v2358_v61 = vmax.f32 %v1739_v10, %v1743_v21  ;;  %2040 = vmatmul.mubr.bf16.gmra.mrb[140].mxu1 %v3624_v3  ;;  %2233 = vmatmul.mubr.bf16.gmra.mrb[144].mxu0 %v3624_v3 }
 0x394   : > { %v2321_v62 = vmax.f32 %v1548_v40, %v1552_v51  ;;  %v2395_v63 = vmax.f32 %v1741_v49, %v1745_v59  ;;  %2049 = vmatprep.mubr.bf16.mxu1 %v3106_v20  ;;  %2242 = vmatprep.mubr.bf16.mxu0 %v3106_v20 }
 0x396   : > { %v1555_v0 = vpop.f32.mrb[36].mxu1  ;;  %v1748_v28 = vpop.f32.mrb[40].mxu0 }
 0x397   : > { %v1556_v4 = vadd.f32 %v1555_v0, %v3759_v11  ;;  %v1749_v6 = vadd.f32 %v1748_v28, %v3762_v12  ;;  %v1557_v8 = vpop.f32.mrb[37].mxu1  ;;  %v1750_v9 = vpop.f32.mrb[41].mxu0 }
 0x398   : > { %v1558_v2 = vadd.f32 %v1557_v8, %v3765_v35  ;;  %v1751_v13 = vadd.f32 %v1750_v9, %v3768_v38  ;;  %v1559_v15 = vpop.f32.mrb[38].mxu1  ;;  %v1752_v3 = vpop.f32.mrb[42].mxu0 }
 0x399   : > { %v2285_v16 = vmax.f32 %v2284_v60, %v1556_v4  ;;  %v2359_v17 = vmax.f32 %v2358_v61, %v1749_v6  ;;  %v1560_v22 = vadd.f32 %v1559_v15, %v3759_v11  ;;  %v1753_v23 = vadd.f32 %v1752_v3, %v3762_v12  ;;  %v1561_v25 = vpop.f32.mrb[39].mxu1  ;;  %v1754_v26 = vpop.f32.mrb[43].mxu0 }
 0x39a   : > { %v2322_v33 = vmax.f32 %v2321_v62, %v1558_v2  ;;  %v2396_v34 = vmax.f32 %v2395_v63, %v1751_v13  ;;  %v1562_v36 = vadd.f32 %v1561_v25, %v3765_v35  ;;  %v1755_v37 = vadd.f32 %v1754_v26, %v3768_v38 }
 0x39b   : > { %v2286_v39 = vmax.f32 %v2285_v16, %v1560_v22  ;;  %v2360_v42 = vmax.f32 %v2359_v17, %v1753_v23  ;;  %2050 = vmatmul.mubr.bf16.gmra.mrb[144].mxu1 %v3638_v32  ;;  %2243 = vmatmul.mubr.bf16.gmra.mrb[148].mxu0 %v3638_v32 }
 0x39c   : > { %v2323_v44 = vmax.f32 %v2322_v33, %v1562_v36  ;;  %v2397_v41 = vmax.f32 %v2396_v34, %v1755_v37  ;;  %2059 = vmatprep.mubr.bf16.mxu1 %v3106_v20  ;;  %2252 = vmatprep.mubr.bf16.mxu0 %v3106_v20 }
 0x39e   : > { %v1565_v48 = vpop.f32.mrb[40].mxu1  ;;  %v1758_v53 = vpop.f32.mrb[44].mxu0 }
 0x39f   : > { %v1566_v54 = vadd.f32 %v1565_v48, %v3759_v11  ;;  %v1759_v56 = vadd.f32 %v1758_v53, %v3762_v12  ;;  %v1567_v27 = vpop.f32.mrb[41].mxu1  ;;  %v1760_v46 = vpop.f32.mrb[45].mxu0 }
 0x3a0   : > { %v1568_v47 = vadd.f32 %v1567_v27, %v3765_v35  ;;  %v1761_v1 = vadd.f32 %v1760_v46, %v3768_v38  ;;  %v1569_v5 = vpop.f32.mrb[42].mxu1  ;;  %v1762_v32 = vpop.f32.mrb[46].mxu0 }
 0x3a1   : > { %v2287_v14 = vmax.f32 %v2286_v39, %v1566_v54  ;;  %v2361_v18 = vmax.f32 %v2360_v42, %v1759_v56  ;;  %v1570_v43 = vadd.f32 %v1569_v5, %v3759_v11  ;;  %v1763_v45 = vadd.f32 %v1762_v32, %v3762_v12  ;;  %v1571_v50 = vpop.f32.mrb[43].mxu1  ;;  %v1764_v55 = vpop.f32.mrb[47].mxu0 }
 0x3a2   : > { %v2324_v7 = vmax.f32 %v2323_v44, %v1568_v47  ;;  %v2398_v10 = vmax.f32 %v2397_v41, %v1761_v1  ;;  %v1572_v19 = vadd.f32 %v1571_v50, %v3765_v35  ;;  %v1765_v21 = vadd.f32 %v1764_v55, %v3768_v38 }
 0x3a3   : > { %v2288_v24 = vmax.f32 %v2287_v14, %v1570_v43  ;;  %v2362_v31 = vmax.f32 %v2361_v18, %v1763_v45  ;;  %2060 = vmatmul.mubr.bf16.gmra.mrb[148].mxu1 %v3636_v30  ;;  %2253 = vmatmul.mubr.bf16.gmra.mrb[152].mxu0 %v3636_v30 }
 0x3a4   : > { %v2325_v40 = vmax.f32 %v2324_v7, %v1572_v19  ;;  %v2399_v49 = vmax.f32 %v2398_v10, %v1765_v21  ;;  %2069 = vmatprep.mubr.bf16.mxu1 %v3106_v20  ;;  %2262 = vmatprep.mubr.bf16.mxu0 %v3106_v20 }
 0x3a6   : > { %v1575_v51 = vpop.f32.mrb[44].mxu1  ;;  %v1768_v59 = vpop.f32.mrb[48].mxu0 }
 0x3a7   : > { %v1576_v60 = vadd.f32 %v1575_v51, %v3759_v11  ;;  %v1769_v61 = vadd.f32 %v1768_v59, %v3762_v12  ;;  %v1577_v62 = vpop.f32.mrb[45].mxu1  ;;  %v1770_v63 = vpop.f32.mrb[49].mxu0 }
 0x3a8   : > { %v1578_v0 = vadd.f32 %v1577_v62, %v3765_v35  ;;  %v1771_v28 = vadd.f32 %v1770_v63, %v3768_v38  ;;  %v1579_v4 = vpop.f32.mrb[46].mxu1  ;;  %v1772_v30 = vpop.f32.mrb[50].mxu0 }
 0x3a9   : > { %v2289_v6 = vmax.f32 %v2288_v24, %v1576_v60  ;;  %v2363_v8 = vmax.f32 %v2362_v31, %v1769_v61  ;;  %v1580_v9 = vadd.f32 %v1579_v4, %v3759_v11  ;;  %v1773_v2 = vadd.f32 %v1772_v30, %v3762_v12  ;;  %v1581_v13 = vpop.f32.mrb[47].mxu1  ;;  %v1774_v15 = vpop.f32.mrb[51].mxu0 }
 0x3aa   : > { %v2326_v3 = vmax.f32 %v2325_v40, %v1578_v0  ;;  %v2400_v16 = vmax.f32 %v2399_v49, %v1771_v28  ;;  %v1582_v17 = vadd.f32 %v1581_v13, %v3765_v35  ;;  %v1775_v22 = vadd.f32 %v1774_v15, %v3768_v38 }
 0x3ab   : > { %v2290_v23 = vmax.f32 %v2289_v6, %v1580_v9  ;;  %v2364_v25 = vmax.f32 %v2363_v8, %v1773_v2  ;;  %2070 = vmatmul.mubr.bf16.gmra.mrb[152].mxu1 %v3650_v58  ;;  %2263 = vmatmul.mubr.bf16.gmra.mrb[156].mxu0 %v3650_v58 }
 0x3ac   : > { %v2327_v26 = vmax.f32 %v2326_v3, %v1582_v17  ;;  %v2401_v33 = vmax.f32 %v2400_v16, %v1775_v22  ;;  %2079 = vmatprep.mubr.bf16.mxu1 %v3106_v20 }
 0x3ae   : > { %v1585_v34 = vpop.f32.mrb[48].mxu1  ;;  %v1778_v36 = vpop.f32.mrb[52].mxu0 }
 0x3af   : > { %v1586_v37 = vadd.f32 %v1585_v34, %v3759_v11  ;;  %v1779_v39 = vadd.f32 %v1778_v36, %v3762_v12  ;;  %v1587_v42 = vpop.f32.mrb[49].mxu1  ;;  %v1780_v44 = vpop.f32.mrb[53].mxu0 }
 0x3b0   : > { %v1588_v41 = vadd.f32 %v1587_v42, %v3765_v35  ;;  %v1781_v48 = vadd.f32 %v1780_v44, %v3768_v38  ;;  %v1589_v53 = vpop.f32.mrb[50].mxu1  ;;  %v1782_v54 = vpop.f32.mrb[54].mxu0 }
 0x3b1   : > { %v2291_v56 = vmax.f32 %v2290_v23, %v1586_v37  ;;  %v2365_v58 = vmax.f32 %v2364_v25, %v1779_v39  ;;  %v1590_v27 = vadd.f32 %v1589_v53, %v3759_v11  ;;  %v1783_v46 = vadd.f32 %v1782_v54, %v3762_v12  ;;  %v1591_v47 = vpop.f32.mrb[51].mxu1  ;;  %v1784_v1 = vpop.f32.mrb[55].mxu0 }
 0x3b2   : > { %v2328_v5 = vmax.f32 %v2327_v26, %v1588_v41  ;;  %v2402_v32 = vmax.f32 %v2401_v33, %v1781_v48  ;;  %v1592_v14 = vadd.f32 %v1591_v47, %v3765_v35  ;;  %v1785_v18 = vadd.f32 %v1784_v1, %v3768_v38 }
 0x3b3   : > { %v2292_v43 = vmax.f32 %v2291_v56, %v1590_v27  ;;  %v2366_v45 = vmax.f32 %v2365_v58, %v1783_v46  ;;  %2080 = vmatmul.mubr.bf16.gmra.mrb[156].mxu1 %v3648_v57 }
 0x3b4   : > { %v2329_v50 = vmax.f32 %v2328_v5, %v1592_v14  ;;  %v2403_v55 = vmax.f32 %v2402_v32, %v1785_v18  ;;  %2272 = vmatprep.mubr.bf16.mxu1 %v3106_v20 }
 0x3b6   : > { %v1595_v7 = vpop.f32.mrb[52].mxu1  ;;  %v1788_v10 = vpop.f32.mrb[56].mxu0 }
 0x3b7   : > { %v1596_v19 = vadd.f32 %v1595_v7, %v3759_v11  ;;  %v1789_v21 = vadd.f32 %v1788_v10, %v3762_v12  ;;  %v1597_v24 = vpop.f32.mrb[53].mxu1  ;;  %v1790_v31 = vpop.f32.mrb[57].mxu0 }
 0x3b8   : > { %v1598_v40 = vadd.f32 %v1597_v24, %v3765_v35  ;;  %v1791_v49 = vadd.f32 %v1790_v31, %v3768_v38  ;;  %v1599_v51 = vpop.f32.mrb[54].mxu1  ;;  %v1792_v59 = vpop.f32.mrb[58].mxu0 }
 0x3b9   : > { %v2293_v60 = vmax.f32 %v2292_v43, %v1596_v19  ;;  %v2367_v61 = vmax.f32 %v2366_v45, %v1789_v21  ;;  %v1600_v62 = vadd.f32 %v1599_v51, %v3759_v11  ;;  %v1793_v20 = vadd.f32 %v1792_v59, %v3762_v12  ;;  %v1601_v63 = vpop.f32.mrb[55].mxu1  ;;  %v1794_v0 = vpop.f32.mrb[59].mxu0 }
 0x3ba   : > { %v2330_v28 = vmax.f32 %v2329_v50, %v1598_v40  ;;  %v2404_v4 = vmax.f32 %v2403_v55, %v1791_v49  ;;  %v1602_v30 = vadd.f32 %v1601_v63, %v3765_v35  ;;  %v1795_v6 = vadd.f32 %v1794_v0, %v3768_v38 }
 0x3bb   : > { %v2294_v8 = vmax.f32 %v2293_v60, %v1600_v62  ;;  %v2368_v9 = vmax.f32 %v2367_v61, %v1793_v20  ;;  %2273 = vmatmul.mubr.bf16.vlgmr.msra.gmra.mrb[160].mxu1 %v3648_v57 }
 0x3bc   : > { %v2331_v2 = vmax.f32 %v2330_v28, %v1602_v30  ;;  %v2405_v13 = vmax.f32 %v2404_v4, %v1795_v6 }
 0x3be   : > { %v1605_v15 = vpop.f32.mrb[56].mxu1  ;;  %v1798_v3 = vpop.f32.mrb[60].mxu0 }
 0x3bf   : > { %v1606_v16 = vadd.f32 %v1605_v15, %v3759_v11  ;;  %v1799_v17 = vadd.f32 %v1798_v3, %v3762_v12  ;;  %v1607_v22 = vpop.f32.mrb[57].mxu1  ;;  %v1800_v23 = vpop.f32.mrb[61].mxu0 }
 0x3c0   : > { %v1608_v25 = vadd.f32 %v1607_v22, %v3765_v35  ;;  %v1801_v26 = vadd.f32 %v1800_v23, %v3768_v38  ;;  %v1609_v33 = vpop.f32.mrb[58].mxu1  ;;  %v1802_v34 = vpop.f32.mrb[62].mxu0 }
 0x3c1   : > { %v2295_v36 = vmax.f32 %v2294_v8, %v1606_v16  ;;  %v2369_v37 = vmax.f32 %v2368_v9, %v1799_v17  ;;  %v1610_v57 = vadd.f32 %v1609_v33, %v3759_v11  ;;  %v1803_v39 = vadd.f32 %v1802_v34, %v3762_v12  ;;  %v1611_v42 = vpop.f32.mrb[59].mxu1  ;;  %v1804_v44 = vpop.f32.mrb[63].mxu0 }
 0x3c2   : > { %v2332_v41 = vmax.f32 %v2331_v2, %v1608_v25  ;;  %v2406_v48 = vmax.f32 %v2405_v13, %v1801_v26  ;;  %v1612_v53 = vadd.f32 %v1611_v42, %v3765_v35  ;;  %v1805_v54 = vadd.f32 %v1804_v44, %v3768_v38 }
 0x3c3   : > { %v2296_v56 = vmax.f32 %v2295_v36, %v1610_v57  ;;  %v2370_v58 = vmax.f32 %v2369_v37, %v1803_v39 }
 0x3c4   : > { %v2333_v27 = vmax.f32 %v2332_v41, %v1612_v53  ;;  %v2407_v46 = vmax.f32 %v2406_v48, %v1805_v54 }
 0x3c6   : > { %v1615_v47 = vpop.f32.mrb[60].mxu1  ;;  %v1808_v1 = vpop.f32.mrb[64].mxu0 }
 0x3c7   : > { %v1616_v5 = vadd.f32 %v1615_v47, %v3759_v11  ;;  %v1809_v32 = vadd.f32 %v1808_v1, %v3762_v12  ;;  %v1617_v14 = vpop.f32.mrb[61].mxu1  ;;  %v1810_v18 = vpop.f32.mrb[65].mxu0 }
 0x3c8   : > { %v1618_v43 = vadd.f32 %v1617_v14, %v3765_v35  ;;  %v1811_v45 = vadd.f32 %v1810_v18, %v3768_v38  ;;  %v1619_v50 = vpop.f32.mrb[62].mxu1  ;;  %v1812_v55 = vpop.f32.mrb[66].mxu0 }
 0x3c9   : > { %v2297_v7 = vmax.f32 %v2296_v56, %v1616_v5  ;;  %v2371_v10 = vmax.f32 %v2370_v58, %v1809_v32  ;;  %v1620_v19 = vadd.f32 %v1619_v50, %v3759_v11  ;;  %v1813_v21 = vadd.f32 %v1812_v55, %v3762_v12  ;;  %v1621_v24 = vpop.f32.mrb[63].mxu1  ;;  %v1814_v31 = vpop.f32.mrb[67].mxu0 }
 0x3ca   : > { %v2334_v40 = vmax.f32 %v2333_v27, %v1618_v43  ;;  %v2408_v49 = vmax.f32 %v2407_v46, %v1811_v45  ;;  %v1622_v51 = vadd.f32 %v1621_v24, %v3765_v35  ;;  %v1815_v59 = vadd.f32 %v1814_v31, %v3768_v38 }
 0x3cb   : > { %v2298_v60 = vmax.f32 %v2297_v7, %v1620_v19  ;;  %v2372_v61 = vmax.f32 %v2371_v10, %v1813_v21 }
 0x3cc   : > { %v2335_v62 = vmax.f32 %v2334_v40, %v1622_v51  ;;  %v2409_v20 = vmax.f32 %v2408_v49, %v1815_v59 }
 0x3ce   : > { %v1625_v63 = vpop.f32.mrb[64].mxu1  ;;  %v1818_v0 = vpop.f32.mrb[68].mxu0 }
 0x3cf   : > { %v1626_v28 = vadd.f32 %v1625_v63, %v3759_v11  ;;  %v1819_v4 = vadd.f32 %v1818_v0, %v3762_v12  ;;  %v1627_v30 = vpop.f32.mrb[65].mxu1  ;;  %v1820_v6 = vpop.f32.mrb[69].mxu0 }
 0x3d0   : > { %v1628_v8 = vadd.f32 %v1627_v30, %v3765_v35  ;;  %v1821_v9 = vadd.f32 %v1820_v6, %v3768_v38  ;;  %v1629_v2 = vpop.f32.mrb[66].mxu1  ;;  %v1822_v13 = vpop.f32.mrb[70].mxu0 }
 0x3d1   : > { %v2299_v15 = vmax.f32 %v2298_v60, %v1626_v28  ;;  %v2373_v3 = vmax.f32 %v2372_v61, %v1819_v4  ;;  %v1630_v16 = vadd.f32 %v1629_v2, %v3759_v11  ;;  %v1823_v17 = vadd.f32 %v1822_v13, %v3762_v12  ;;  %v1631_v22 = vpop.f32.mrb[67].mxu1  ;;  %v1824_v23 = vpop.f32.mrb[71].mxu0 }
 0x3d2   : > { %v2336_v25 = vmax.f32 %v2335_v62, %v1628_v8  ;;  %v2410_v26 = vmax.f32 %v2409_v20, %v1821_v9  ;;  %v1632_v33 = vadd.f32 %v1631_v22, %v3765_v35  ;;  %v1825_v34 = vadd.f32 %v1824_v23, %v3768_v38 }
 0x3d3   : > { %v2300_v36 = vmax.f32 %v2299_v15, %v1630_v16  ;;  %v2374_v37 = vmax.f32 %v2373_v3, %v1823_v17 }
 0x3d4   : > { %v2337_v57 = vmax.f32 %v2336_v25, %v1632_v33  ;;  %v2411_v39 = vmax.f32 %v2410_v26, %v1825_v34 }
 0x3d6   : > { %v1635_v42 = vpop.f32.mrb[68].mxu1  ;;  %v1828_v44 = vpop.f32.mrb[72].mxu0 }
 0x3d7   : > { %v1636_v41 = vadd.f32 %v1635_v42, %v3759_v11  ;;  %v1829_v48 = vadd.f32 %v1828_v44, %v3762_v12  ;;  %v1637_v53 = vpop.f32.mrb[69].mxu1  ;;  %v1830_v54 = vpop.f32.mrb[73].mxu0 }
 0x3d8   : > { %v1638_v56 = vadd.f32 %v1637_v53, %v3765_v35  ;;  %v1831_v58 = vadd.f32 %v1830_v54, %v3768_v38  ;;  %v1639_v27 = vpop.f32.mrb[70].mxu1  ;;  %v1832_v46 = vpop.f32.mrb[74].mxu0 }
 0x3d9   : > { %v2301_v47 = vmax.f32 %v2300_v36, %v1636_v41  ;;  %v2375_v1 = vmax.f32 %v2374_v37, %v1829_v48  ;;  %v1640_v5 = vadd.f32 %v1639_v27, %v3759_v11  ;;  %v1833_v32 = vadd.f32 %v1832_v46, %v3762_v12  ;;  %v1641_v14 = vpop.f32.mrb[71].mxu1  ;;  %v1834_v18 = vpop.f32.mrb[75].mxu0 }
 0x3da   : > { %v2338_v43 = vmax.f32 %v2337_v57, %v1638_v56  ;;  %v2412_v45 = vmax.f32 %v2411_v39, %v1831_v58  ;;  %v1642_v50 = vadd.f32 %v1641_v14, %v3765_v35  ;;  %v1835_v55 = vadd.f32 %v1834_v18, %v3768_v38 }
 0x3db   : > { %v2302_v7 = vmax.f32 %v2301_v47, %v1640_v5  ;;  %v2376_v10 = vmax.f32 %v2375_v1, %v1833_v32 }
 0x3dc   : > { %v2339_v19 = vmax.f32 %v2338_v43, %v1642_v50  ;;  %v2413_v21 = vmax.f32 %v2412_v45, %v1835_v55 }
 0x3de   : > { %v1645_v24 = vpop.f32.mrb[72].mxu1  ;;  %v1838_v31 = vpop.f32.mrb[76].mxu0 }
 0x3df   : > { %v1646_v40 = vadd.f32 %v1645_v24, %v3759_v11  ;;  %v1839_v49 = vadd.f32 %v1838_v31, %v3762_v12  ;;  %v1647_v51 = vpop.f32.mrb[73].mxu1  ;;  %v1840_v59 = vpop.f32.mrb[77].mxu0 }
 0x3e0   : > { %v1648_v60 = vadd.f32 %v1647_v51, %v3765_v35  ;;  %v1841_v61 = vadd.f32 %v1840_v59, %v3768_v38  ;;  %v1649_v62 = vpop.f32.mrb[74].mxu1  ;;  %v1842_v20 = vpop.f32.mrb[78].mxu0 }
 0x3e1   : > { %v2303_v63 = vmax.f32 %v2302_v7, %v1646_v40  ;;  %v2377_v0 = vmax.f32 %v2376_v10, %v1839_v49  ;;  %v1650_v28 = vadd.f32 %v1649_v62, %v3759_v11  ;;  %v1843_v4 = vadd.f32 %v1842_v20, %v3762_v12  ;;  %v1651_v30 = vpop.f32.mrb[75].mxu1  ;;  %v1844_v6 = vpop.f32.mrb[79].mxu0 }
 0x3e2   : > { %v2340_v8 = vmax.f32 %v2339_v19, %v1648_v60  ;;  %v2414_v9 = vmax.f32 %v2413_v21, %v1841_v61  ;;  %v1652_v2 = vadd.f32 %v1651_v30, %v3765_v35  ;;  %v1845_v13 = vadd.f32 %v1844_v6, %v3768_v38 }
 0x3e3   : > { %v2304_v15 = vmax.f32 %v2303_v63, %v1650_v28  ;;  %v2378_v3 = vmax.f32 %v2377_v0, %v1843_v4 }
 0x3e4   : > { %v2341_v16 = vmax.f32 %v2340_v8, %v1652_v2  ;;  %v2415_v17 = vmax.f32 %v2414_v9, %v1845_v13 }
 0x3e6   : > { %v1655_v22 = vpop.f32.mrb[76].mxu1  ;;  %v1848_v23 = vpop.f32.mrb[80].mxu0 }
 0x3e7   : > { %v1656_v25 = vadd.f32 %v1655_v22, %v3759_v11  ;;  %v1849_v26 = vadd.f32 %v1848_v23, %v3762_v12  ;;  %v1657_v33 = vpop.f32.mrb[77].mxu1  ;;  %v1850_v34 = vpop.f32.mrb[81].mxu0 }
 0x3e8   : > { %v1658_v36 = vadd.f32 %v1657_v33, %v3765_v35  ;;  %v1851_v37 = vadd.f32 %v1850_v34, %v3768_v38  ;;  %v1659_v57 = vpop.f32.mrb[78].mxu1  ;;  %v1852_v39 = vpop.f32.mrb[82].mxu0 }
 0x3e9   : > { %v2305_v42 = vmax.f32 %v2304_v15, %v1656_v25  ;;  %v2379_v44 = vmax.f32 %v2378_v3, %v1849_v26  ;;  %v1660_v41 = vadd.f32 %v1659_v57, %v3759_v11  ;;  %v1853_v48 = vadd.f32 %v1852_v39, %v3762_v12  ;;  %v1661_v53 = vpop.f32.mrb[79].mxu1  ;;  %v1854_v54 = vpop.f32.mrb[83].mxu0 }
 0x3ea   : > { %v2342_v56 = vmax.f32 %v2341_v16, %v1658_v36  ;;  %v2416_v58 = vmax.f32 %v2415_v17, %v1851_v37  ;;  %v1662_v27 = vadd.f32 %v1661_v53, %v3765_v35  ;;  %v1855_v46 = vadd.f32 %v1854_v54, %v3768_v38 }
 0x3eb   : > { %v2306_v47 = vmax.f32 %v2305_v42, %v1660_v41  ;;  %v2380_v1 = vmax.f32 %v2379_v44, %v1853_v48 }
 0x3ec   : > { %v2343_v5 = vmax.f32 %v2342_v56, %v1662_v27  ;;  %v2417_v32 = vmax.f32 %v2416_v58, %v1855_v46 }
 0x3ee   : > { %v1665_v14 = vpop.f32.mrb[80].mxu1  ;;  %v1858_v18 = vpop.f32.mrb[84].mxu0 }
 0x3ef   : > { %v1666_v43 = vadd.f32 %v1665_v14, %v3759_v11  ;;  %v1859_v45 = vadd.f32 %v1858_v18, %v3762_v12  ;;  %v1667_v50 = vpop.f32.mrb[81].mxu1  ;;  %v1860_v55 = vpop.f32.mrb[85].mxu0 }
 0x3f0   : > { %v1668_v7 = vadd.f32 %v1667_v50, %v3765_v35  ;;  %v1861_v10 = vadd.f32 %v1860_v55, %v3768_v38  ;;  %v1669_v19 = vpop.f32.mrb[82].mxu1  ;;  %v1862_v21 = vpop.f32.mrb[86].mxu0 }
 0x3f1   : > { %v2307_v24 = vmax.f32 %v2306_v47, %v1666_v43  ;;  %v2381_v31 = vmax.f32 %v2380_v1, %v1859_v45  ;;  %v1670_v40 = vadd.f32 %v1669_v19, %v3759_v11  ;;  %v1863_v49 = vadd.f32 %v1862_v21, %v3762_v12  ;;  %v1671_v51 = vpop.f32.mrb[83].mxu1  ;;  %v1864_v59 = vpop.f32.mrb[87].mxu0 }
 0x3f2   : > { %v2344_v60 = vmax.f32 %v2343_v5, %v1668_v7  ;;  %v2418_v61 = vmax.f32 %v2417_v32, %v1861_v10  ;;  %v1672_v62 = vadd.f32 %v1671_v51, %v3765_v35  ;;  %v1865_v20 = vadd.f32 %v1864_v59, %v3768_v38 }
 0x3f3   : > { %v2308_v63 = vmax.f32 %v2307_v24, %v1670_v40  ;;  %v2382_v0 = vmax.f32 %v2381_v31, %v1863_v49 }
 0x3f4   : > { %v2345_v28 = vmax.f32 %v2344_v60, %v1672_v62  ;;  %v2419_v4 = vmax.f32 %v2418_v61, %v1865_v20  ;;  %v1169_v60 = vsub.s32 4, %v3743_v29 }
 0x3f6   : > { %v1675_v30 = vpop.f32.mrb[84].mxu1  ;;  %v1868_v6 = vpop.f32.mrb[88].mxu0 }
 0x3f7   : > { %v1676_v8 = vadd.f32 %v1675_v30, %v3759_v11  ;;  %v1869_v9 = vadd.f32 %v1868_v6, %v3762_v12  ;;  %v1677_v2 = vpop.f32.mrb[85].mxu1  ;;  %v1870_v13 = vpop.f32.mrb[89].mxu0 }
 0x3f8   : > { %v1678_v15 = vadd.f32 %v1677_v2, %v3765_v35  ;;  %v1871_v3 = vadd.f32 %v1870_v13, %v3768_v38  ;;  %v1679_v16 = vpop.f32.mrb[86].mxu1  ;;  %v1872_v17 = vpop.f32.mrb[90].mxu0  ;;  %v1181_v13 = vsub.s32 7, %v3743_v29 }
 0x3f9   : > { %v2309_v22 = vmax.f32 %v2308_v63, %v1676_v8  ;;  %v2383_v23 = vmax.f32 %v2382_v0, %v1869_v9  ;;  %v1680_v25 = vadd.f32 %v1679_v16, %v3759_v11  ;;  %v1873_v26 = vadd.f32 %v1872_v17, %v3762_v12  ;;  %v1681_v33 = vpop.f32.mrb[87].mxu1  ;;  %v1874_v34 = vpop.f32.mrb[91].mxu0 }
 0x3fa   : > { %v2346_v36 = vmax.f32 %v2345_v28, %v1678_v15  ;;  %v2420_v37 = vmax.f32 %v2419_v4, %v1871_v3  ;;  %v1682_v57 = vadd.f32 %v1681_v33, %v3765_v35  ;;  %v1875_v39 = vadd.f32 %v1874_v34, %v3768_v38 }
 0x3fb   : > { %v2310_v42 = vmax.f32 %v2309_v22, %v1680_v25  ;;  %v2384_v44 = vmax.f32 %v2383_v23, %v1873_v26  ;;  %v1177_v0 = vsub.s32 6, %v3743_v29  ;;  %v1173_v28 = vsub.s32 5, %v3743_v29 }
 0x3fc   : > { %v2347_v41 = vmax.f32 %v2346_v36, %v1682_v57  ;;  %v2421_v48 = vmax.f32 %v2420_v37, %v1875_v39  ;;  %v3107_v9 = vmov 1966171168   ;;  %v3921_v57 = vrot.slane %v3750_v52, %v1169_v60 }
 0x3fd   : > { %v2593_v2 = vunpack.c.l.s4 %v3107_v9  ;;  %v3924_v39 = vrot.slane %v3750_v52, %v1177_v0 }
 0x3fe   : > { %v1685_v53 = vpop.f32.mrb[88].mxu1  ;;  %v1878_v54 = vpop.f32.mrb[92].mxu0 }
 0x3ff   : > { %v1686_v56 = vadd.f32 %v1685_v53, %v3759_v11  ;;  %v1879_v58 = vadd.f32 %v1878_v54, %v3762_v12  ;;  %v1687_v27 = vpop.f32.mrb[89].mxu1  ;;  %v1880_v46 = vpop.f32.mrb[93].mxu0 }
 0x400   : > { %v1688_v47 = vadd.f32 %v1687_v27, %v3765_v35  ;;  %v1881_v1 = vadd.f32 %v1880_v46, %v3768_v38  ;;  %v1689_v5 = vpop.f32.mrb[90].mxu1  ;;  %v1882_v32 = vpop.f32.mrb[94].mxu0 }
 0x401   : > { %v2311_v14 = vmax.f32 %v2310_v42, %v1686_v56  ;;  %v2385_v18 = vmax.f32 %v2384_v44, %v1879_v58  ;;  %v1690_v43 = vadd.f32 %v1689_v5, %v3759_v11  ;;  %v1883_v45 = vadd.f32 %v1882_v32, %v3762_v12  ;;  %v1691_v50 = vpop.f32.mrb[91].mxu1  ;;  %v1884_v55 = vpop.f32.mrb[95].mxu0 }
 0x402   : > { %v2348_v7 = vmax.f32 %v2347_v41, %v1688_v47  ;;  %v2422_v10 = vmax.f32 %v2421_v48, %v1881_v1  ;;  %v1692_v19 = vadd.f32 %v1691_v50, %v3765_v35  ;;  %v1885_v21 = vadd.f32 %v1884_v55, %v3768_v38 }
 0x403   : > { %v2312_v24 = vmax.f32 %v2311_v14, %v1690_v43  ;;  %v2386_v31 = vmax.f32 %v2385_v18, %v1883_v45  ;;  %v3930_v44 = vrot.slane %v3750_v52, %v1181_v13 }
 0x404   : > { %v2349_v40 = vmax.f32 %v2348_v7, %v1692_v19  ;;  %v2423_v49 = vmax.f32 %v2422_v10, %v1885_v21 }
 0x406   : > { %v1695_v51 = vpop.f32.mrb[92].mxu1  ;;  %v1888_v59 = vpop.f32.mrb[96].mxu0 }
 0x407   : > { %v1696_v61 = vadd.f32 %v1695_v51, %v3759_v11  ;;  %v1889_v62 = vadd.f32 %v1888_v59, %v3762_v12  ;;  %v1697_v20 = vpop.f32.mrb[93].mxu1  ;;  %v1890_v63 = vpop.f32.mrb[97].mxu0 }
 0x408   : > { %v1698_v4 = vadd.f32 %v1697_v20, %v3765_v35  ;;  %v1891_v30 = vadd.f32 %v1890_v63, %v3768_v38  ;;  %v1699_v6 = vpop.f32.mrb[94].mxu1  ;;  %v1892_v8 = vpop.f32.mrb[98].mxu0 }
 0x409   : > { %v2313_v15 = vmax.f32 %v2312_v24, %v1696_v61  ;;  %v2387_v3 = vmax.f32 %v2386_v31, %v1889_v62  ;;  %v1700_v16 = vadd.f32 %v1699_v6, %v3759_v11  ;;  %v1893_v17 = vadd.f32 %v1892_v8, %v3762_v12  ;;  %v1701_v22 = vpop.f32.mrb[95].mxu1  ;;  %v1894_v23 = vpop.f32.mrb[99].mxu0 }
 0x40a   : > { %v2350_v25 = vmax.f32 %v2349_v40, %v1698_v4  ;;  %v2424_v26 = vmax.f32 %v2423_v49, %v1891_v30  ;;  %v1702_v33 = vadd.f32 %v1701_v22, %v3765_v35  ;;  %v1895_v34 = vadd.f32 %v1894_v23, %v3768_v38 }
 0x40b   : > { %v2314_v36 = vmax.f32 %v2313_v15, %v1700_v16  ;;  %v2388_v37 = vmax.f32 %v2387_v3, %v1893_v17  ;;  %v3927_v12 = vrot.slane %v3750_v52, %v1173_v28  ;;  %v2594_v38 = vunpack.c.0.s8 %v2593_v2 }
 0x40c   : > { %v2351_v42 = vmax.f32 %v2350_v25, %v1702_v33  ;;  %v2425_v11 = vmax.f32 %v2424_v26, %v1895_v34 }
 0x40d   : > { %v2315_v41 = vrot.slane %v2314_v36, 4  ;;  %v2389_v35 = vrot.slane %v2388_v37, 4  ;;  %v3941_v6 = vsub.s32 %v2594_v38, %v3743_v29 }
 0x40e   : > { %v2352_v48 = vrot.slane %v2351_v42, 4  ;;  %v2426_v53 = vrot.slane %v2425_v11, 4  ;;  %v1931_v54 = vpop.f32.mrb[96].mxu1  ;;  %v2124_v56 = vpop.f32.mrb[100].mxu0 }
 0x40f   : > { %v2316_v58 = vmax.f32 %v2314_v36, %v2315_v41  ;;  %v2390_v27 = vmax.f32 %v2388_v37, %v2389_v35  ;;  %v1932_v46 = vadd.f32 %v1931_v54, %v3921_v57  ;;  %v2125_v47 = vadd.f32 %v2124_v56, %v3924_v39  ;;  %v1933_v1 = vpop.f32.mrb[97].mxu1  ;;  %v2126_v5 = vpop.f32.mrb[101].mxu0 }
 0x410   : > { %v2353_v32 = vmax.f32 %v2351_v42, %v2352_v48  ;;  %v2427_v14 = vmax.f32 %v2425_v11, %v2426_v53  ;;  %v1934_v52 = vadd.f32 %v1933_v1, %v3927_v12  ;;  %v2127_v18 = vadd.f32 %v2126_v5, %v3930_v44  ;;  %v1935_v43 = vpop.f32.mrb[98].mxu1  ;;  %v2128_v45 = vpop.f32.mrb[102].mxu0 }
 0x411   : > { %v2317_v50 = vrot.slane %v2316_v58, 2  ;;  %v2391_v55 = vrot.slane %v2390_v27, 2  ;;  %v1936_v7 = vadd.f32 %v1935_v43, %v3921_v57  ;;  %v2129_v10 = vadd.f32 %v2128_v45, %v3924_v39  ;;  %v1937_v19 = vpop.f32.mrb[99].mxu1  ;;  %v2130_v21 = vpop.f32.mrb[103].mxu0 }
 0x412   : > { %v2354_v24 = vrot.slane %v2353_v32, 2  ;;  %v2428_v31 = vrot.slane %v2427_v14, 2  ;;  %v1938_v40 = vadd.f32 %v1937_v19, %v3927_v12  ;;  %v2131_v49 = vadd.f32 %v2130_v21, %v3930_v44 }
 0x413   : > { %v2318_v51 = vmax.f32 %v2316_v58, %v2317_v50  ;;  %v2392_v59 = vmax.f32 %v2390_v27, %v2391_v55  ;;  %v2432_v60 = vmax.f32 %v1932_v46, %v1936_v7  ;;  %v2506_v61 = vmax.f32 %v2125_v47, %v2129_v10 }
 0x414   : > { %v2355_v62 = vmax.f32 %v2353_v32, %v2354_v24  ;;  %v2429_v20 = vmax.f32 %v2427_v14, %v2428_v31  ;;  %v2469_v63 = vmax.f32 %v1934_v52, %v1938_v40  ;;  %v2543_v0 = vmax.f32 %v2127_v18, %v2131_v49 }
 0x415   : > { %v2319_v28 = vrot.slane %v2318_v51, 1  ;;  %v2393_v4 = vrot.slane %v2392_v59, 1 }
 0x416   : > { %v2356_v30 = vrot.slane %v2355_v62, 1  ;;  %v2430_v8 = vrot.slane %v2429_v20, 1  ;;  %v1941_v9 = vpop.f32.mrb[100].mxu1  ;;  %v2134_v2 = vpop.f32.mrb[104].mxu0 }
 0x417   : > { %v2320_v13 = vmax.f32 %v2318_v51, %v2319_v28  ;;  %v2394_v15 = vmax.f32 %v2392_v59, %v2393_v4  ;;  %v1942_v3 = vadd.f32 %v1941_v9, %v3921_v57  ;;  %v2135_v16 = vadd.f32 %v2134_v2, %v3924_v39  ;;  %v1943_v17 = vpop.f32.mrb[101].mxu1  ;;  %v2136_v22 = vpop.f32.mrb[105].mxu0 }
 0x418   : > { %v2357_v23 = vmax.f32 %v2355_v62, %v2356_v30  ;;  %v2431_v25 = vmax.f32 %v2429_v20, %v2430_v8  ;;  %v1944_v26 = vadd.f32 %v1943_v17, %v3927_v12  ;;  %v2137_v33 = vadd.f32 %v2136_v22, %v3930_v44  ;;  %v1945_v34 = vpop.f32.mrb[102].mxu1  ;;  %v2138_v29 = vpop.f32.mrb[106].mxu0 }
 0x419   : > { %v2433_v36 = vmax.f32 %v2432_v60, %v1942_v3  ;;  %v2507_v37 = vmax.f32 %v2506_v61, %v2135_v16  ;;  %v1946_v42 = vadd.f32 %v1945_v34, %v3921_v57  ;;  %v2139_v11 = vadd.f32 %v2138_v29, %v3924_v39  ;;  %v1947_v41 = vpop.f32.mrb[103].mxu1  ;;  %v2140_v35 = vpop.f32.mrb[107].mxu0 }
 0x41a   : > { %v2588_v48 = vcombine.low %v2320_v13, %v2357_v23  ;;  %v2589_v38 = vcombine.low %v2394_v15, %v2431_v25  ;;  %v2470_v53 = vmax.f32 %v2469_v63, %v1944_v26  ;;  %v2544_v54 = vmax.f32 %v2543_v0, %v2137_v33 }
 0x41b   : > { %v2434_v56 = vmax.f32 %v2433_v36, %v1946_v42  ;;  %v2508_v58 = vmax.f32 %v2507_v37, %v2139_v11  ;;  %v1948_v27 = vadd.f32 %v1947_v41, %v3927_v12  ;;  %v2141_v46 = vadd.f32 %v2140_v35, %v3930_v44 }
 0x41c   : > { %v3952_v47 = vrot.slane %v2588_v48, %v3941_v6  ;;  %v3955_v1 = vrot.slane %v2589_v38, %v3941_v6 }
 0x41d   : > { %v2471_v5 = vmax.f32 %v2470_v53, %v1948_v27  ;;  %v2545_v32 = vmax.f32 %v2544_v54, %v2141_v46 }
 0x41e   : > { %v2620_v14 = vcombine.low %v3952_v47, %v3955_v1  ;;  %v1951_v52 = vpop.f32.mrb[104].mxu1  ;;  %v2144_v18 = vpop.f32.mrb[108].mxu0 }
 0x41f   : > { %v1952_v43 = vadd.f32 %v1951_v52, %v3921_v57  ;;  %v2145_v45 = vadd.f32 %v2144_v18, %v3924_v39  ;;  %v1953_v50 = vpop.f32.mrb[105].mxu1  ;;  %v2146_v55 = vpop.f32.mrb[109].mxu0 }
 0x420   : > { %v1954_v7 = vadd.f32 %v1953_v50, %v3927_v12  ;;  %v2147_v10 = vadd.f32 %v2146_v55, %v3930_v44  ;;  %v1955_v19 = vpop.f32.mrb[106].mxu1  ;;  %v2148_v21 = vpop.f32.mrb[110].mxu0 }
 0x421   : > { %v2435_v24 = vmax.f32 %v2434_v56, %v1952_v43  ;;  %v2509_v31 = vmax.f32 %v2508_v58, %v2145_v45  ;;  %v1956_v40 = vadd.f32 %v1955_v19, %v3921_v57  ;;  %v2149_v49 = vadd.f32 %v2148_v21, %v3924_v39  ;;  %v1957_v51 = vpop.f32.mrb[107].mxu1  ;;  %v2150_v59 = vpop.f32.mrb[111].mxu0 }
 0x422   : > { %v2472_v60 = vmax.f32 %v2471_v5, %v1954_v7  ;;  %v2546_v61 = vmax.f32 %v2545_v32, %v2147_v10  ;;  %v1958_v62 = vadd.f32 %v1957_v51, %v3927_v12  ;;  %v2151_v20 = vadd.f32 %v2150_v59, %v3930_v44 }
 0x423   : > { %v2436_v63 = vmax.f32 %v2435_v24, %v1956_v40  ;;  %v2510_v0 = vmax.f32 %v2509_v31, %v2149_v49 }
 0x424   : > { %v2473_v28 = vmax.f32 %v2472_v60, %v1958_v62  ;;  %v2547_v4 = vmax.f32 %v2546_v61, %v2151_v20 }
 0x426   : > { %v1961_v30 = vpop.f32.mrb[108].mxu1  ;;  %v2154_v8 = vpop.f32.mrb[112].mxu0 }
 0x427   : > { %v1962_v9 = vadd.f32 %v1961_v30, %v3921_v57  ;;  %v2155_v2 = vadd.f32 %v2154_v8, %v3924_v39  ;;  %v1963_v13 = vpop.f32.mrb[109].mxu1  ;;  %v2156_v15 = vpop.f32.mrb[113].mxu0 }
 0x428   : > { %v1964_v3 = vadd.f32 %v1963_v13, %v3927_v12  ;;  %v2157_v16 = vadd.f32 %v2156_v15, %v3930_v44  ;;  %v1965_v17 = vpop.f32.mrb[110].mxu1  ;;  %v2158_v22 = vpop.f32.mrb[114].mxu0 }
 0x429   : > { %v2437_v23 = vmax.f32 %v2436_v63, %v1962_v9  ;;  %v2511_v25 = vmax.f32 %v2510_v0, %v2155_v2  ;;  %v1966_v26 = vadd.f32 %v1965_v17, %v3921_v57  ;;  %v2159_v33 = vadd.f32 %v2158_v22, %v3924_v39  ;;  %v1967_v34 = vpop.f32.mrb[111].mxu1  ;;  %v2160_v29 = vpop.f32.mrb[115].mxu0 }
 0x42a   : > { %v2474_v36 = vmax.f32 %v2473_v28, %v1964_v3  ;;  %v2548_v37 = vmax.f32 %v2547_v4, %v2157_v16  ;;  %v1968_v42 = vadd.f32 %v1967_v34, %v3927_v12  ;;  %v2161_v11 = vadd.f32 %v2160_v29, %v3930_v44 }
 0x42b   : > { %v2438_v41 = vmax.f32 %v2437_v23, %v1966_v26  ;;  %v2512_v35 = vmax.f32 %v2511_v25, %v2159_v33 }
 0x42c   : > { %v2475_v48 = vmax.f32 %v2474_v36, %v1968_v42  ;;  %v2549_v38 = vmax.f32 %v2548_v37, %v2161_v11 }
 0x42e   : > { %v1971_v53 = vpop.f32.mrb[112].mxu1  ;;  %v2164_v54 = vpop.f32.mrb[116].mxu0 }
 0x42f   : > { %v1972_v56 = vadd.f32 %v1971_v53, %v3921_v57  ;;  %v2165_v58 = vadd.f32 %v2164_v54, %v3924_v39  ;;  %v1973_v27 = vpop.f32.mrb[113].mxu1  ;;  %v2166_v46 = vpop.f32.mrb[117].mxu0 }
 0x430   : > { %v1974_v5 = vadd.f32 %v1973_v27, %v3927_v12  ;;  %v2167_v32 = vadd.f32 %v2166_v46, %v3930_v44  ;;  %v1975_v52 = vpop.f32.mrb[114].mxu1  ;;  %v2168_v18 = vpop.f32.mrb[118].mxu0 }
 0x431   : > { %v2439_v43 = vmax.f32 %v2438_v41, %v1972_v56  ;;  %v2513_v45 = vmax.f32 %v2512_v35, %v2165_v58  ;;  %v1976_v50 = vadd.f32 %v1975_v52, %v3921_v57  ;;  %v2169_v55 = vadd.f32 %v2168_v18, %v3924_v39  ;;  %v1977_v7 = vpop.f32.mrb[115].mxu1  ;;  %v2170_v10 = vpop.f32.mrb[119].mxu0 }
 0x432   : > { %v2476_v19 = vmax.f32 %v2475_v48, %v1974_v5  ;;  %v2550_v21 = vmax.f32 %v2549_v38, %v2167_v32  ;;  %v1978_v24 = vadd.f32 %v1977_v7, %v3927_v12  ;;  %v2171_v31 = vadd.f32 %v2170_v10, %v3930_v44 }
 0x433   : > { %v2440_v40 = vmax.f32 %v2439_v43, %v1976_v50  ;;  %v2514_v49 = vmax.f32 %v2513_v45, %v2169_v55 }
 0x434   : > { %v2477_v51 = vmax.f32 %v2476_v19, %v1978_v24  ;;  %v2551_v59 = vmax.f32 %v2550_v21, %v2171_v31 }
 0x436   : > { %v1981_v60 = vpop.f32.mrb[116].mxu1  ;;  %v2174_v61 = vpop.f32.mrb[120].mxu0 }
 0x437   : > { %v1982_v62 = vadd.f32 %v1981_v60, %v3921_v57  ;;  %v2175_v20 = vadd.f32 %v2174_v61, %v3924_v39  ;;  %v1983_v63 = vpop.f32.mrb[117].mxu1  ;;  %v2176_v0 = vpop.f32.mrb[121].mxu0 }
 0x438   : > { %v1984_v28 = vadd.f32 %v1983_v63, %v3927_v12  ;;  %v2177_v4 = vadd.f32 %v2176_v0, %v3930_v44  ;;  %v1985_v30 = vpop.f32.mrb[118].mxu1  ;;  %v2178_v8 = vpop.f32.mrb[122].mxu0 }
 0x439   : > { %v2441_v9 = vmax.f32 %v2440_v40, %v1982_v62  ;;  %v2515_v2 = vmax.f32 %v2514_v49, %v2175_v20  ;;  %v1986_v13 = vadd.f32 %v1985_v30, %v3921_v57  ;;  %v2179_v15 = vadd.f32 %v2178_v8, %v3924_v39  ;;  %v1987_v3 = vpop.f32.mrb[119].mxu1  ;;  %v2180_v16 = vpop.f32.mrb[123].mxu0 }
 0x43a   : > { %v2478_v17 = vmax.f32 %v2477_v51, %v1984_v28  ;;  %v2552_v22 = vmax.f32 %v2551_v59, %v2177_v4  ;;  %v1988_v23 = vadd.f32 %v1987_v3, %v3927_v12  ;;  %v2181_v25 = vadd.f32 %v2180_v16, %v3930_v44 }
 0x43b   : > { %v2442_v26 = vmax.f32 %v2441_v9, %v1986_v13  ;;  %v2516_v33 = vmax.f32 %v2515_v2, %v2179_v15 }
 0x43c   : > { %v2479_v34 = vmax.f32 %v2478_v17, %v1988_v23  ;;  %v2553_v29 = vmax.f32 %v2552_v22, %v2181_v25 }
 0x43e   : > { %v1991_v36 = vpop.f32.mrb[120].mxu1  ;;  %v2184_v37 = vpop.f32.mrb[124].mxu0 }
 0x43f   : > { %v1992_v42 = vadd.f32 %v1991_v36, %v3921_v57  ;;  %v2185_v11 = vadd.f32 %v2184_v37, %v3924_v39  ;;  %v1993_v41 = vpop.f32.mrb[121].mxu1  ;;  %v2186_v35 = vpop.f32.mrb[125].mxu0 }
 0x440   : > { %v1994_v48 = vadd.f32 %v1993_v41, %v3927_v12  ;;  %v2187_v38 = vadd.f32 %v2186_v35, %v3930_v44  ;;  %v1995_v53 = vpop.f32.mrb[122].mxu1  ;;  %v2188_v54 = vpop.f32.mrb[126].mxu0 }
 0x441   : > { %v2443_v56 = vmax.f32 %v2442_v26, %v1992_v42  ;;  %v2517_v58 = vmax.f32 %v2516_v33, %v2185_v11  ;;  %v1996_v27 = vadd.f32 %v1995_v53, %v3921_v57  ;;  %v2189_v46 = vadd.f32 %v2188_v54, %v3924_v39  ;;  %v1997_v5 = vpop.f32.mrb[123].mxu1  ;;  %v2190_v32 = vpop.f32.mrb[127].mxu0 }
 0x442   : > { %v2480_v52 = vmax.f32 %v2479_v34, %v1994_v48  ;;  %v2554_v18 = vmax.f32 %v2553_v29, %v2187_v38  ;;  %v1998_v43 = vadd.f32 %v1997_v5, %v3927_v12  ;;  %v2191_v45 = vadd.f32 %v2190_v32, %v3930_v44 }
 0x443   : > { %v2444_v50 = vmax.f32 %v2443_v56, %v1996_v27  ;;  %v2518_v55 = vmax.f32 %v2517_v58, %v2189_v46 }
 0x444   : > { %v2481_v7 = vmax.f32 %v2480_v52, %v1998_v43  ;;  %v2555_v10 = vmax.f32 %v2554_v18, %v2191_v45 }
 0x446   : > { %v2001_v19 = vpop.f32.mrb[124].mxu1  ;;  %v2194_v21 = vpop.f32.mrb[128].mxu0 }
 0x447   : > { %v2002_v24 = vadd.f32 %v2001_v19, %v3921_v57  ;;  %v2195_v31 = vadd.f32 %v2194_v21, %v3924_v39  ;;  %v2003_v40 = vpop.f32.mrb[125].mxu1  ;;  %v2196_v49 = vpop.f32.mrb[129].mxu0 }
 0x448   : > { %v2004_v51 = vadd.f32 %v2003_v40, %v3927_v12  ;;  %v2197_v59 = vadd.f32 %v2196_v49, %v3930_v44  ;;  %v2005_v60 = vpop.f32.mrb[126].mxu1  ;;  %v2198_v61 = vpop.f32.mrb[130].mxu0 }
 0x449   : > { %v2445_v62 = vmax.f32 %v2444_v50, %v2002_v24  ;;  %v2519_v20 = vmax.f32 %v2518_v55, %v2195_v31  ;;  %v2006_v63 = vadd.f32 %v2005_v60, %v3921_v57  ;;  %v2199_v0 = vadd.f32 %v2198_v61, %v3924_v39  ;;  %v2007_v28 = vpop.f32.mrb[127].mxu1  ;;  %v2200_v4 = vpop.f32.mrb[131].mxu0 }
 0x44a   : > { %v2482_v30 = vmax.f32 %v2481_v7, %v2004_v51  ;;  %v2556_v8 = vmax.f32 %v2555_v10, %v2197_v59  ;;  %v2008_v9 = vadd.f32 %v2007_v28, %v3927_v12  ;;  %v2201_v2 = vadd.f32 %v2200_v4, %v3930_v44 }
 0x44b   : > { %v2446_v13 = vmax.f32 %v2445_v62, %v2006_v63  ;;  %v2520_v15 = vmax.f32 %v2519_v20, %v2199_v0 }
 0x44c   : > { %v2483_v3 = vmax.f32 %v2482_v30, %v2008_v9  ;;  %v2557_v16 = vmax.f32 %v2556_v8, %v2201_v2 }
 0x44e   : > { %v2011_v17 = vpop.f32.mrb[128].mxu1  ;;  %v2204_v22 = vpop.f32.mrb[132].mxu0 }
 0x44f   : > { %v2012_v23 = vadd.f32 %v2011_v17, %v3921_v57  ;;  %v2205_v25 = vadd.f32 %v2204_v22, %v3924_v39  ;;  %v2013_v26 = vpop.f32.mrb[129].mxu1  ;;  %v2206_v33 = vpop.f32.mrb[133].mxu0 }
 0x450   : > { %v2014_v34 = vadd.f32 %v2013_v26, %v3927_v12  ;;  %v2207_v29 = vadd.f32 %v2206_v33, %v3930_v44  ;;  %v2015_v36 = vpop.f32.mrb[130].mxu1  ;;  %v2208_v37 = vpop.f32.mrb[134].mxu0 }
 0x451   : > { %v2447_v42 = vmax.f32 %v2446_v13, %v2012_v23  ;;  %v2521_v11 = vmax.f32 %v2520_v15, %v2205_v25  ;;  %v2016_v41 = vadd.f32 %v2015_v36, %v3921_v57  ;;  %v2209_v35 = vadd.f32 %v2208_v37, %v3924_v39  ;;  %v2017_v48 = vpop.f32.mrb[131].mxu1  ;;  %v2210_v38 = vpop.f32.mrb[135].mxu0 }
 0x452   : > { %v2484_v53 = vmax.f32 %v2483_v3, %v2014_v34  ;;  %v2558_v54 = vmax.f32 %v2557_v16, %v2207_v29  ;;  %v2018_v56 = vadd.f32 %v2017_v48, %v3927_v12  ;;  %v2211_v58 = vadd.f32 %v2210_v38, %v3930_v44 }
 0x453   : > { %v2448_v27 = vmax.f32 %v2447_v42, %v2016_v41  ;;  %v2522_v46 = vmax.f32 %v2521_v11, %v2209_v35 }
 0x454   : > { %v2485_v5 = vmax.f32 %v2484_v53, %v2018_v56  ;;  %v2559_v32 = vmax.f32 %v2558_v54, %v2211_v58 }
 0x456   : > { %v2021_v52 = vpop.f32.mrb[132].mxu1  ;;  %v2214_v18 = vpop.f32.mrb[136].mxu0 }
 0x457   : > { %v2022_v43 = vadd.f32 %v2021_v52, %v3921_v57  ;;  %v2215_v45 = vadd.f32 %v2214_v18, %v3924_v39  ;;  %v2023_v50 = vpop.f32.mrb[133].mxu1  ;;  %v2216_v55 = vpop.f32.mrb[137].mxu0 }
 0x458   : > { %v2024_v7 = vadd.f32 %v2023_v50, %v3927_v12  ;;  %v2217_v10 = vadd.f32 %v2216_v55, %v3930_v44  ;;  %v2025_v19 = vpop.f32.mrb[134].mxu1  ;;  %v2218_v21 = vpop.f32.mrb[138].mxu0 }
 0x459   : > { %v2449_v24 = vmax.f32 %v2448_v27, %v2022_v43  ;;  %v2523_v31 = vmax.f32 %v2522_v46, %v2215_v45  ;;  %v2026_v40 = vadd.f32 %v2025_v19, %v3921_v57  ;;  %v2219_v49 = vadd.f32 %v2218_v21, %v3924_v39  ;;  %v2027_v51 = vpop.f32.mrb[135].mxu1  ;;  %v2220_v59 = vpop.f32.mrb[139].mxu0 }
 0x45a   : > { %v2486_v60 = vmax.f32 %v2485_v5, %v2024_v7  ;;  %v2560_v61 = vmax.f32 %v2559_v32, %v2217_v10  ;;  %v2028_v62 = vadd.f32 %v2027_v51, %v3927_v12  ;;  %v2221_v20 = vadd.f32 %v2220_v59, %v3930_v44 }
 0x45b   : > { %v2450_v63 = vmax.f32 %v2449_v24, %v2026_v40  ;;  %v2524_v0 = vmax.f32 %v2523_v31, %v2219_v49 }
 0x45c   : > { %v2487_v28 = vmax.f32 %v2486_v60, %v2028_v62  ;;  %v2561_v4 = vmax.f32 %v2560_v61, %v2221_v20 }
 0x45e   : > { %v2031_v30 = vpop.f32.mrb[136].mxu1  ;;  %v2224_v8 = vpop.f32.mrb[140].mxu0 }
 0x45f   : > { %v2032_v9 = vadd.f32 %v2031_v30, %v3921_v57  ;;  %v2225_v2 = vadd.f32 %v2224_v8, %v3924_v39  ;;  %v2033_v13 = vpop.f32.mrb[137].mxu1  ;;  %v2226_v15 = vpop.f32.mrb[141].mxu0 }
 0x460   : > { %v2034_v3 = vadd.f32 %v2033_v13, %v3927_v12  ;;  %v2227_v16 = vadd.f32 %v2226_v15, %v3930_v44  ;;  %v2035_v17 = vpop.f32.mrb[138].mxu1  ;;  %v2228_v22 = vpop.f32.mrb[142].mxu0 }
 0x461   : > { %v2451_v23 = vmax.f32 %v2450_v63, %v2032_v9  ;;  %v2525_v25 = vmax.f32 %v2524_v0, %v2225_v2  ;;  %v2036_v26 = vadd.f32 %v2035_v17, %v3921_v57  ;;  %v2229_v33 = vadd.f32 %v2228_v22, %v3924_v39  ;;  %v2037_v34 = vpop.f32.mrb[139].mxu1  ;;  %v2230_v29 = vpop.f32.mrb[143].mxu0 }
 0x462   : > { %v2488_v36 = vmax.f32 %v2487_v28, %v2034_v3  ;;  %v2562_v37 = vmax.f32 %v2561_v4, %v2227_v16  ;;  %v2038_v42 = vadd.f32 %v2037_v34, %v3927_v12  ;;  %v2231_v11 = vadd.f32 %v2230_v29, %v3930_v44 }
 0x463   : > { %v2452_v41 = vmax.f32 %v2451_v23, %v2036_v26  ;;  %v2526_v35 = vmax.f32 %v2525_v25, %v2229_v33 }
 0x464   : > { %v2489_v48 = vmax.f32 %v2488_v36, %v2038_v42  ;;  %v2563_v38 = vmax.f32 %v2562_v37, %v2231_v11 }
 0x466   : > { %v2041_v53 = vpop.f32.mrb[140].mxu1  ;;  %v2234_v54 = vpop.f32.mrb[144].mxu0 }
 0x467   : > { %v2042_v56 = vadd.f32 %v2041_v53, %v3921_v57  ;;  %v2235_v58 = vadd.f32 %v2234_v54, %v3924_v39  ;;  %v2043_v27 = vpop.f32.mrb[141].mxu1  ;;  %v2236_v46 = vpop.f32.mrb[145].mxu0 }
 0x468   : > { %v2044_v5 = vadd.f32 %v2043_v27, %v3927_v12  ;;  %v2237_v32 = vadd.f32 %v2236_v46, %v3930_v44  ;;  %v2045_v52 = vpop.f32.mrb[142].mxu1  ;;  %v2238_v18 = vpop.f32.mrb[146].mxu0 }
 0x469   : > { %v2453_v43 = vmax.f32 %v2452_v41, %v2042_v56  ;;  %v2527_v45 = vmax.f32 %v2526_v35, %v2235_v58  ;;  %v2046_v50 = vadd.f32 %v2045_v52, %v3921_v57  ;;  %v2239_v55 = vadd.f32 %v2238_v18, %v3924_v39  ;;  %v2047_v7 = vpop.f32.mrb[143].mxu1  ;;  %v2240_v10 = vpop.f32.mrb[147].mxu0 }
 0x46a   : > { %v2490_v19 = vmax.f32 %v2489_v48, %v2044_v5  ;;  %v2564_v21 = vmax.f32 %v2563_v38, %v2237_v32  ;;  %v2048_v24 = vadd.f32 %v2047_v7, %v3927_v12  ;;  %v2241_v31 = vadd.f32 %v2240_v10, %v3930_v44 }
 0x46b   : > { %v2454_v40 = vmax.f32 %v2453_v43, %v2046_v50  ;;  %v2528_v49 = vmax.f32 %v2527_v45, %v2239_v55 }
 0x46c   : > { %v2491_v51 = vmax.f32 %v2490_v19, %v2048_v24  ;;  %v2565_v59 = vmax.f32 %v2564_v21, %v2241_v31 }
 0x46e   : > { %v2051_v60 = vpop.f32.mrb[144].mxu1  ;;  %v2244_v61 = vpop.f32.mrb[148].mxu0 }
 0x46f   : > { %v2052_v62 = vadd.f32 %v2051_v60, %v3921_v57  ;;  %v2245_v20 = vadd.f32 %v2244_v61, %v3924_v39  ;;  %v2053_v63 = vpop.f32.mrb[145].mxu1  ;;  %v2246_v0 = vpop.f32.mrb[149].mxu0 }
 0x470   : > { %v2054_v28 = vadd.f32 %v2053_v63, %v3927_v12  ;;  %v2247_v4 = vadd.f32 %v2246_v0, %v3930_v44  ;;  %v2055_v30 = vpop.f32.mrb[146].mxu1  ;;  %v2248_v8 = vpop.f32.mrb[150].mxu0 }
 0x471   : > { %v2455_v9 = vmax.f32 %v2454_v40, %v2052_v62  ;;  %v2529_v2 = vmax.f32 %v2528_v49, %v2245_v20  ;;  %v2056_v13 = vadd.f32 %v2055_v30, %v3921_v57  ;;  %v2249_v15 = vadd.f32 %v2248_v8, %v3924_v39  ;;  %v2057_v3 = vpop.f32.mrb[147].mxu1  ;;  %v2250_v16 = vpop.f32.mrb[151].mxu0 }
 0x472   : > { %v2492_v17 = vmax.f32 %v2491_v51, %v2054_v28  ;;  %v2566_v22 = vmax.f32 %v2565_v59, %v2247_v4  ;;  %v2058_v23 = vadd.f32 %v2057_v3, %v3927_v12  ;;  %v2251_v25 = vadd.f32 %v2250_v16, %v3930_v44 }
 0x473   : > { %v2456_v26 = vmax.f32 %v2455_v9, %v2056_v13  ;;  %v2530_v33 = vmax.f32 %v2529_v2, %v2249_v15 }
 0x474   : > { %v2493_v34 = vmax.f32 %v2492_v17, %v2058_v23  ;;  %v2567_v29 = vmax.f32 %v2566_v22, %v2251_v25 }
 0x476   : > { %v2061_v36 = vpop.f32.mrb[148].mxu1  ;;  %v2254_v37 = vpop.f32.mrb[152].mxu0 }
 0x477   : > { %v2062_v42 = vadd.f32 %v2061_v36, %v3921_v57  ;;  %v2255_v11 = vadd.f32 %v2254_v37, %v3924_v39  ;;  %v2063_v41 = vpop.f32.mrb[149].mxu1  ;;  %v2256_v35 = vpop.f32.mrb[153].mxu0 }
 0x478   : > { %v2064_v48 = vadd.f32 %v2063_v41, %v3927_v12  ;;  %v2257_v38 = vadd.f32 %v2256_v35, %v3930_v44  ;;  %v2065_v53 = vpop.f32.mrb[150].mxu1  ;;  %v2258_v54 = vpop.f32.mrb[154].mxu0 }
 0x479   : > { %v2457_v56 = vmax.f32 %v2456_v26, %v2062_v42  ;;  %v2531_v58 = vmax.f32 %v2530_v33, %v2255_v11  ;;  %v2066_v27 = vadd.f32 %v2065_v53, %v3921_v57  ;;  %v2259_v46 = vadd.f32 %v2258_v54, %v3924_v39  ;;  %v2067_v5 = vpop.f32.mrb[151].mxu1  ;;  %v2260_v32 = vpop.f32.mrb[155].mxu0 }
 0x47a   : > { %v2494_v52 = vmax.f32 %v2493_v34, %v2064_v48  ;;  %v2568_v18 = vmax.f32 %v2567_v29, %v2257_v38  ;;  %v2068_v43 = vadd.f32 %v2067_v5, %v3927_v12  ;;  %v2261_v45 = vadd.f32 %v2260_v32, %v3930_v44 }
 0x47b   : > { %v2458_v50 = vmax.f32 %v2457_v56, %v2066_v27  ;;  %v2532_v55 = vmax.f32 %v2531_v58, %v2259_v46 }
 0x47c   : > { %v2495_v7 = vmax.f32 %v2494_v52, %v2068_v43  ;;  %v2569_v10 = vmax.f32 %v2568_v18, %v2261_v45 }
 0x47e   : > { %v2071_v19 = vpop.f32.mrb[152].mxu1  ;;  %v2264_v21 = vpop.f32.mrb[156].mxu0 }
 0x47f   : > { %v2072_v24 = vadd.f32 %v2071_v19, %v3921_v57  ;;  %v2265_v31 = vadd.f32 %v2264_v21, %v3924_v39  ;;  %v2073_v40 = vpop.f32.mrb[153].mxu1  ;;  %v2266_v49 = vpop.f32.mrb[157].mxu0 }
 0x480   : > { %v2074_v51 = vadd.f32 %v2073_v40, %v3927_v12  ;;  %v2267_v59 = vadd.f32 %v2266_v49, %v3930_v44  ;;  %v2075_v60 = vpop.f32.mrb[154].mxu1  ;;  %v2268_v61 = vpop.f32.mrb[158].mxu0 }
 0x481   : > { %v2459_v62 = vmax.f32 %v2458_v50, %v2072_v24  ;;  %v2533_v20 = vmax.f32 %v2532_v55, %v2265_v31  ;;  %v2076_v63 = vadd.f32 %v2075_v60, %v3921_v57  ;;  %v2269_v0 = vadd.f32 %v2268_v61, %v3924_v39  ;;  %v2077_v28 = vpop.f32.mrb[155].mxu1  ;;  %v2270_v4 = vpop.f32.mrb[159].mxu0 }
 0x482   : > { %v2496_v30 = vmax.f32 %v2495_v7, %v2074_v51  ;;  %v2570_v8 = vmax.f32 %v2569_v10, %v2267_v59  ;;  %v2078_v9 = vadd.f32 %v2077_v28, %v3927_v12  ;;  %v2271_v2 = vadd.f32 %v2270_v4, %v3930_v44 }
 0x483   : > { %v2460_v13 = vmax.f32 %v2459_v62, %v2076_v63  ;;  %v2534_v15 = vmax.f32 %v2533_v20, %v2269_v0 }
 0x484   : > { %v2497_v3 = vmax.f32 %v2496_v30, %v2078_v9  ;;  %v2571_v16 = vmax.f32 %v2570_v8, %v2271_v2  ;;  %v2628_v8 = vrot.slane %v2620_v14, %v3941_v6  ;;  %v2283_v2 = vld [vmem:[#allocation2] sm:$0xff] }
 0x486   : > { %v2081_v17 = vpop.f32.mrb[156].mxu1 }
 0x487   : > { %v2082_v22 = vadd.f32 %v2081_v17, %v3921_v57  ;;  %v2083_v23 = vpop.f32.mrb[157].mxu1 }
 0x488   : > { %v2084_v25 = vadd.f32 %v2083_v23, %v3927_v12  ;;  %v2085_v26 = vpop.f32.mrb[158].mxu1 }
 0x489   : > { %v2461_v33 = vmax.f32 %v2460_v13, %v2082_v22  ;;  %v2086_v34 = vadd.f32 %v2085_v26, %v3921_v57  ;;  %v2087_v29 = vpop.f32.mrb[159].mxu1 }
 0x48a   : > { %v2498_v36 = vmax.f32 %v2497_v3, %v2084_v25  ;;  %v2088_v37 = vadd.f32 %v2087_v29, %v3927_v12 }
 0x48b   : > { %v2462_v42 = vmax.f32 %v2461_v33, %v2086_v34 }
 0x48c   : > { %v2499_v11 = vmax.f32 %v2498_v36, %v2088_v37 }
 0x48d   : > { %v2463_v41 = vrot.slane %v2462_v42, 4 }
 0x48e   : > { %v2500_v35 = vrot.slane %v2499_v11, 4  ;;  %v2274_v48 = vpop.f32.mrb[160].mxu1 }
 0x48f   : > { %v2464_v38 = vmax.f32 %v2462_v42, %v2463_v41  ;;  %v2275_v53 = vadd.f32 %v2274_v48, %v3924_v39  ;;  %v2276_v54 = vpop.f32.mrb[161].mxu1 }
 0x490   : > { %v2501_v56 = vmax.f32 %v2499_v11, %v2500_v35  ;;  %v2277_v58 = vadd.f32 %v2276_v54, %v3930_v44  ;;  %v2278_v27 = vpop.f32.mrb[162].mxu1 }
 0x491   : > { %v2465_v46 = vrot.slane %v2464_v38, 2  ;;  %v2535_v5 = vmax.f32 %v2534_v15, %v2275_v53  ;;  %v2279_v57 = vadd.f32 %v2278_v27, %v3924_v39  ;;  %v2280_v32 = vpop.f32.mrb[163].mxu1 }
 0x492   : > { %v2502_v52 = vrot.slane %v2501_v56, 2  ;;  %v2572_v12 = vmax.f32 %v2571_v16, %v2277_v58  ;;  %v2281_v18 = vadd.f32 %v2280_v32, %v3930_v44 }
 0x493   : > { %v2466_v43 = vmax.f32 %v2464_v38, %v2465_v46  ;;  %v2536_v45 = vmax.f32 %v2535_v5, %v2279_v57 }
 0x494   : > { %v2503_v50 = vmax.f32 %v2501_v56, %v2502_v52  ;;  %v2573_v55 = vmax.f32 %v2572_v12, %v2281_v18 }
 0x495   : > { %v2467_v7 = vrot.slane %v2466_v43, 1  ;;  %v2537_v10 = vrot.slane %v2536_v45, 4 }
 0x496   : > { %v2504_v19 = vrot.slane %v2503_v50, 1  ;;  %v2574_v21 = vrot.slane %v2573_v55, 4 }
 0x497   : > { %v2468_v24 = vmax.f32 %v2466_v43, %v2467_v7  ;;  %v2538_v31 = vmax.f32 %v2536_v45, %v2537_v10 }
 0x498   : > { %v2505_v40 = vmax.f32 %v2503_v50, %v2504_v19  ;;  %v2575_v49 = vmax.f32 %v2573_v55, %v2574_v21 }
 0x499   : > { %v2539_v51 = vrot.slane %v2538_v31, 2 }
 0x49a   : > { %v2590_v59 = vcombine.low %v2468_v24, %v2505_v40  ;;  %v2576_v39 = vrot.slane %v2575_v49, 2 }
 0x49b   : > { %v2540_v60 = vmax.f32 %v2538_v31, %v2539_v51 }
 0x49c   : > { %v2577_v61 = vmax.f32 %v2575_v49, %v2576_v39  ;;  %v2612_v28 = vrot.slane %v2590_v59, %v3941_v6 }
 0x49d   : > { %v2541_v62 = vrot.slane %v2540_v60, 1 }
 0x49e   : > { %v2578_v20 = vrot.slane %v2577_v61, 1 }
 0x49f   : > { %v2542_v44 = vmax.f32 %v2540_v60, %v2541_v62 }
 0x4a0   : > { %v2579_v63 = vmax.f32 %v2577_v61, %v2578_v20 }
 0x4a2   : > { %v2591_v0 = vcombine.low %v2542_v44, %v2579_v63 }
 0x4a4   : > { %v2619_v4 = vrot.slane %v2591_v0, %v3941_v6 }
 0x4a6   : > { %v2621_v30 = vcombine.low %v2612_v28, %v2619_v4 }
 0x4a8   : > { %v2635_v9 = vrot.slane %v2621_v30, %v3941_v6  ;;  %2643 = sbr.rel (%p2858_p8) target bundleno = 1207 (0x4b7), region = 60 }
 0x4aa   : > { %v2636_v13 = vcombine.low %v2628_v8, %v2635_v9 }
 0x4ac   : > { %v2638_v15 = vmax.f32 %v2283_v2, %v2636_v13 }
 0x4ae   : > { %2639 = vst [vmem:[#allocation2] sm:$0xff] %v2638_v15 }
 0x4b5   : > { %v2644_v3 = vld [vmem:[#allocation2] sm:$0xff] }
 0x4b6   : > { %2645 = vst [vmem:[%s3197_s26] sm:$0xff] %v2644_v3 }
 0x4b7 PF: > { %s18_s9 = sadd.s32 1, %s3100_s9   ;;  %s4104_s27 = smov %s3092_s29 }
 0x4b8   : > { %p15_p9 = scmp.ge.s32.totalorder %s18_s9, 6   ;;  %s4105_s28 = smov %s3096_s30 }
 0x4b9   : > { %s4106_s29 = smov %s4109_s10  ;;  %s4107_s30 = smov %s4113_s11 }
 0x4ba   :  { %17 = sbr.rel (!%p15_p9) target bundleno = 3 (0x3), region = 93 }

// kernel: _lambda_.5
= control target key start
LH: loop header
LB: loop body
LE: loop exit
PB: predicated region body
PF: predicated region fallthrough
CT: control target
= control target key end

     0   :  { %v3527_v36 = vmov 1983009808   ;;  %v35_v38 = vlaneseq  ;;  %s4666_s1 = inlined_call_operand.vmem [shape: bf16[1024,512], index: 1, kind: input, shape index: {}]   ;;  %s4667_s0 = inlined_call_operand.vmem [shape: f32[2,1024], index: 0, kind: input, shape index: {}]   ;;  %s4668_s3 = inlined_call_operand.vmem [shape: bf16[512,256], index: 3, kind: input, shape index: {}]   ;;  %s4669_s2 = inlined_call_operand.vmem [shape: f32[1,512], index: 2, kind: input, shape index: {}]   ;;  %s4670_s5 = inlined_call_operand.vmem [shape: bf16[256,128], index: 5, kind: input, shape index: {}]   ;;  %s4671_s4 = inlined_call_operand.vmem [shape: f32[1,256], index: 4, kind: input, shape index: {}]   ;;  %s4672_s6 = inlined_call_operand.vmem [shape: f32[1,128], index: 6, kind: input, shape index: {}]   ;;  %s4673_s7 = inlined_call_operand.vmem [shape: f32[2,128], index: 7, kind: output, shape index: {}]  }
   0x1   :  { %v3029_v0 = vld [vmem:[%s4666_s1 + $0x4] ss:$16 sps:$4 sm:$0xff]   ;;  %v3033_v2 = vld [vmem:[%s4666_s1] ss:$16 sps:$4 sm:$0xff]   ;;  %v33_v37 = vunpack.c.l.s4 %v3527_v36 }
   0x2   :  { %v3031_v1 = vld [vmem:[%s4666_s1 + $0x204] ss:$16 sps:$4 sm:$0xff]   ;;  %1639 = vmatprep.subr.bf16.mxu1 %v3029_v0  ;;  %v3034_v3 = vld [vmem:[%s4666_s1 + $0x200] ss:$16 sps:$4 sm:$0xff]   ;;  %v3685_v43 = vshrl.u32 %v35_v38, 7 }
   0x3   :  { %1680 = vmatprep.subr.bf16.mxu0 %v3031_v1  ;;  %v3035_v4 = vld [vmem:[%s4666_s1 + $0x24] ss:$16 sps:$4 sm:$0xff]   ;;  %1640 = vmatpush1.bf16.msra.mxu1 %v3033_v2  ;;  %v3039_v6 = vld [vmem:[%s4666_s1 + $0x20] ss:$16 sps:$4 sm:$0xff]   ;;  %v34_v42 = vunpack.c.0.s8 %v33_v37  ;;  %v3156_v37 = vld [vmem:[%s4666_s1 + $0x8c] ss:$16 sps:$4 sm:$0xff]  }
   0x4   :  { %1681 = vmatpush1.bf16.msra.mxu0 %v3034_v3  ;;  %v3037_v5 = vld [vmem:[%s4666_s1 + $0x224] ss:$16 sps:$4 sm:$0xff]   ;;  %1641 = vmatprep.subr.bf16.mxu1 %v3035_v4  ;;  %v3040_v7 = vld [vmem:[%s4666_s1 + $0x220] ss:$16 sps:$4 sm:$0xff]  }
   0x5   :  { %1682 = vmatprep.subr.bf16.mxu0 %v3037_v5  ;;  %v3041_v8 = vld [vmem:[%s4666_s1 + $0x44] ss:$16 sps:$4 sm:$0xff]   ;;  %v3045_v10 = vld [vmem:[%s4666_s1 + $0x40] ss:$16 sps:$4 sm:$0xff]   ;;  %v3703_v49 = vsub.s32 %v34_v42, %v3685_v43 }
   0x6   :  { %v3043_v9 = vld [vmem:[%s4666_s1 + $0x244] ss:$16 sps:$4 sm:$0xff]   ;;  %v3046_v11 = vld [vmem:[%s4666_s1 + $0x240] ss:$16 sps:$4 sm:$0xff]  }
   0x7   :  { %1642 = vmatpush1.bf16.msra.mxu1 %v3039_v6  ;;  %v3047_v12 = vld [vmem:[%s4666_s1 + $0x64] ss:$16 sps:$4 sm:$0xff]   ;;  %v3051_v14 = vld [vmem:[%s4666_s1 + $0x60] ss:$16 sps:$4 sm:$0xff]  }
   0x8   :  { %1683 = vmatpush1.bf16.msra.mxu0 %v3040_v7  ;;  %1643 = vmatprep.subr.bf16.mxu1 %v3041_v8  ;;  %v3049_v13 = vld [vmem:[%s4666_s1 + $0x264] ss:$16 sps:$4 sm:$0xff]   ;;  %v3052_v15 = vld [vmem:[%s4666_s1 + $0x260] ss:$16 sps:$4 sm:$0xff]   ;;  %v3758_v8 = vld [vmem:[%s4667_s0 + $0x8] sm:$0xff] }
   0x9   :  { %1684 = vmatprep.subr.bf16.mxu0 %v3043_v9  ;;  %v3053_v16 = vld [vmem:[%s4666_s1 + $0x84] ss:$16 sps:$4 sm:$0xff]   ;;  %v3057_v18 = vld [vmem:[%s4666_s1 + $0x80] ss:$16 sps:$4 sm:$0xff]  }
   0xa   :  { %v3055_v17 = vld [vmem:[%s4666_s1 + $0x284] ss:$16 sps:$4 sm:$0xff]   ;;  %v3058_v19 = vld [vmem:[%s4666_s1 + $0x280] ss:$16 sps:$4 sm:$0xff]  }
   0xb   :  { %1644 = vmatpush1.bf16.msra.mxu1 %v3045_v10  ;;  %v3059_v20 = vld [vmem:[%s4666_s1 + $0xa4] ss:$16 sps:$4 sm:$0xff]   ;;  %v3063_v22 = vld [vmem:[%s4666_s1 + $0xa0] ss:$16 sps:$4 sm:$0xff]  }
   0xc   :  { %1685 = vmatpush1.bf16.msra.mxu0 %v3046_v11  ;;  %1645 = vmatprep.subr.bf16.mxu1 %v3047_v12  ;;  %v3061_v21 = vld [vmem:[%s4666_s1 + $0x2a4] ss:$16 sps:$4 sm:$0xff]   ;;  %v3064_v23 = vld [vmem:[%s4666_s1 + $0x2a0] ss:$16 sps:$4 sm:$0xff]  }
   0xd   :  { %1686 = vmatprep.subr.bf16.mxu0 %v3049_v13  ;;  %v3065_v24 = vld [vmem:[%s4666_s1 + $0xc4] ss:$16 sps:$4 sm:$0xff]   ;;  %v3069_v26 = vld [vmem:[%s4666_s1 + $0xc0] ss:$16 sps:$4 sm:$0xff]   ;;  %v3774_v13 = vrot.slane %v3758_v8, %v3703_v49 }
   0xe   :  { %v3067_v25 = vld [vmem:[%s4666_s1 + $0x2c4] ss:$16 sps:$4 sm:$0xff]   ;;  %v3070_v27 = vld [vmem:[%s4666_s1 + $0x2c0] ss:$16 sps:$4 sm:$0xff]  }
   0xf   :  { %1646 = vmatpush1.bf16.msra.mxu1 %v3051_v14  ;;  %v3071_v28 = vld [vmem:[%s4666_s1 + $0xe4] ss:$16 sps:$4 sm:$0xff]   ;;  %v3075_v30 = vld [vmem:[%s4666_s1 + $0xe0] ss:$16 sps:$4 sm:$0xff]  }
  0x10   :  { %1687 = vmatpush1.bf16.msra.mxu0 %v3052_v15  ;;  %1647 = vmatprep.subr.bf16.mxu1 %v3053_v16  ;;  %v3073_v29 = vld [vmem:[%s4666_s1 + $0x2e4] ss:$16 sps:$4 sm:$0xff]   ;;  %v3076_v31 = vld [vmem:[%s4666_s1 + $0x2e0] ss:$16 sps:$4 sm:$0xff]  }
  0x11   :  { %1688 = vmatprep.subr.bf16.mxu0 %v3055_v17  ;;  %v3077_v32 = vld [vmem:[%s4666_s1 + $0x104] ss:$16 sps:$4 sm:$0xff]   ;;  %v3081_v34 = vld [vmem:[%s4666_s1 + $0x100] ss:$16 sps:$4 sm:$0xff]   ;;  %v3132_v17 = vld [vmem:[%s4666_s1 + $0xc] ss:$16 sps:$4 sm:$0xff]  }
  0x12   :  { %v3079_v33 = vld [vmem:[%s4666_s1 + $0x304] ss:$16 sps:$4 sm:$0xff]   ;;  %v3082_v35 = vld [vmem:[%s4666_s1 + $0x300] ss:$16 sps:$4 sm:$0xff]  }
  0x13   :  { %1648 = vmatpush1.bf16.msra.mxu1 %v3057_v18  ;;  %v3083_v39 = vld [vmem:[%s4666_s1 + $0x124] ss:$16 sps:$4 sm:$0xff]   ;;  %v3087_v41 = vld [vmem:[%s4666_s1 + $0x120] ss:$16 sps:$4 sm:$0xff]   ;;  %v63_v18 = vcombine.high %v3774_v13, %v3774_v13 }
  0x14   :  { %1689 = vmatpush1.bf16.msra.mxu0 %v3058_v19  ;;  %1649 = vmatprep.subr.bf16.mxu1 %v3059_v20  ;;  %v3085_v40 = vld [vmem:[%s4666_s1 + $0x324] ss:$16 sps:$4 sm:$0xff]   ;;  %v3088_v44 = vld [vmem:[%s4666_s1 + $0x320] ss:$16 sps:$4 sm:$0xff]  }
  0x15   :  { %1690 = vmatprep.subr.bf16.mxu0 %v3061_v21  ;;  %v3089_v45 = vld [vmem:[%s4666_s1 + $0x144] ss:$16 sps:$4 sm:$0xff]   ;;  %v3093_v47 = vld [vmem:[%s4666_s1 + $0x140] ss:$16 sps:$4 sm:$0xff]  }
  0x16   :  { %v3091_v46 = vld [vmem:[%s4666_s1 + $0x344] ss:$16 sps:$4 sm:$0xff]   ;;  %v3094_v48 = vld [vmem:[%s4666_s1 + $0x340] ss:$16 sps:$4 sm:$0xff]  }
  0x17   :  { %1650 = vmatpush1.bf16.msra.mxu1 %v3063_v22  ;;  %v3095_v50 = vld [vmem:[%s4666_s1 + $0x164] ss:$16 sps:$4 sm:$0xff]   ;;  %v3099_v55 = vld [vmem:[%s4666_s1 + $0x160] ss:$16 sps:$4 sm:$0xff]   ;;  %v3130_v22 = vld [vmem:[%s4666_s1 + $0x8] ss:$16 sps:$4 sm:$0xff]  }
  0x18   :  { %1691 = vmatpush1.bf16.msra.mxu0 %v3064_v23  ;;  %1651 = vmatprep.subr.bf16.mxu1 %v3065_v24  ;;  %v3097_v51 = vld [vmem:[%s4666_s1 + $0x364] ss:$16 sps:$4 sm:$0xff]   ;;  %v3100_v56 = vld [vmem:[%s4666_s1 + $0x360] ss:$16 sps:$4 sm:$0xff]   ;;  %v3138_v24 = vld [vmem:[%s4666_s1 + $0x2c] ss:$16 sps:$4 sm:$0xff]  }
  0x19   :  { %1692 = vmatprep.subr.bf16.mxu0 %v3067_v25  ;;  %v27_v52 = vld [vmem:[%s4667_s0] sm:$0xff]  ;;  %v3806_v25 = vpack.c.bf16 %v63_v18, %v63_v18  ;;  %v3216_v18 = vld [vmem:[%s4666_s1 + $0x1cc] ss:$16 sps:$4 sm:$0xff]  }
  0x1a   :  { %v38_v53 = vrot.slane %v27_v52, %v3703_v49  ;;  %v31_v54 = vcombine.high %v27_v52, %v27_v52  ;;  %v3101_v57 = vld [vmem:[%s4666_s1 + $0x184] ss:$16 sps:$4 sm:$0xff]   ;;  %v3105_v63 = vld [vmem:[%s4666_s1 + $0x180] ss:$16 sps:$4 sm:$0xff]  }
  0x1b   :  { %1652 = vmatpush1.bf16.msra.mxu1 %v3069_v26  ;;  %v3103_v58 = vld [vmem:[%s4666_s1 + $0x384] ss:$16 sps:$4 sm:$0xff]   ;;  %v3106_v0 = vld [vmem:[%s4666_s1 + $0x380] ss:$16 sps:$4 sm:$0xff]  }
  0x1c   :  { %1693 = vmatpush1.bf16.msra.mxu0 %v3070_v27  ;;  %1653 = vmatprep.subr.bf16.mxu1 %v3071_v28  ;;  %v46_v59 = vcombine.high %v38_v53, %v38_v53  ;;  %v45_v60 = vrot.slane %v31_v54, %v3703_v49  ;;  %v3107_v1 = vld [vmem:[%s4666_s1 + $0x1a4] ss:$16 sps:$4 sm:$0xff]   ;;  %v3111_v4 = vld [vmem:[%s4666_s1 + $0x1a0] ss:$16 sps:$4 sm:$0xff]   ;;  %v3790_v19 = vpack.c.bf16 %v38_v53, %v38_v53  ;;  %v3136_v27 = vld [vmem:[%s4666_s1 + $0x28] ss:$16 sps:$4 sm:$0xff]  }
  0x1d   :  { %1694 = vmatprep.subr.bf16.mxu0 %v3073_v29  ;;  %v3109_v2 = vld [vmem:[%s4666_s1 + $0x3a4] ss:$16 sps:$4 sm:$0xff]   ;;  %v3112_v5 = vld [vmem:[%s4666_s1 + $0x3a0] ss:$16 sps:$4 sm:$0xff]   ;;  %v3144_v29 = vld [vmem:[%s4666_s1 + $0x4c] ss:$16 sps:$4 sm:$0xff]  }
  0x1e   :  { %v74_v61 = vpack.c.bf16 %v46_v59, %v46_v59  ;;  %v47_v62 = vcombine.high %v45_v60, %v45_v60  ;;  %v3113_v6 = vld [vmem:[%s4666_s1 + $0x1c4] ss:$16 sps:$4 sm:$0xff]   ;;  %v3117_v9 = vld [vmem:[%s4666_s1 + $0x1c0] ss:$16 sps:$4 sm:$0xff]   ;;  %v3792_v20 = vpack.c.bf16 %v45_v60, %v45_v60  ;;  %v3172_v53 = vld [vmem:[%s4666_s1 + $0xe8] ss:$16 sps:$4 sm:$0xff]  }
  0x1f   :  { %1654 = vmatpush1.bf16.msra.mxu1 %v3075_v30  ;;  %v3115_v7 = vld [vmem:[%s4666_s1 + $0x3c4] ss:$16 sps:$4 sm:$0xff]   ;;  %v3118_v10 = vld [vmem:[%s4666_s1 + $0x3c0] ss:$16 sps:$4 sm:$0xff]   ;;  %v3186_v59 = vld [vmem:[%s4666_s1 + $0x12c] ss:$16 sps:$4 sm:$0xff]  }
  0x20   :  { %1695 = vmatpush1.bf16.msra.mxu0 %v3076_v31  ;;  %1655 = vmatprep.subr.bf16.mxu1 %v3077_v32  ;;  %v3740_v3 = vpack.c.bf16 %v47_v62, %v47_v62  ;;  %v3119_v11 = vld [vmem:[%s4666_s1 + $0x1e4] ss:$16 sps:$4 sm:$0xff]   ;;  %v3123_v14 = vld [vmem:[%s4666_s1 + $0x1e0] ss:$16 sps:$4 sm:$0xff]   ;;  %v3142_v31 = vld [vmem:[%s4666_s1 + $0x48] ss:$16 sps:$4 sm:$0xff]  }
  0x21   :  { %1696 = vmatprep.subr.bf16.mxu0 %v3079_v33  ;;  %1671 = vmatprep.mubr.bf16.mxu1 %v74_v61  ;;  %v3121_v12 = vld [vmem:[%s4666_s1 + $0x3e4] ss:$16 sps:$4 sm:$0xff]   ;;  %v3124_v15 = vld [vmem:[%s4666_s1 + $0x3e0] ss:$16 sps:$4 sm:$0xff]   ;;  %v3150_v33 = vld [vmem:[%s4666_s1 + $0x6c] ss:$16 sps:$4 sm:$0xff]  }
  0x22   :  { %1712 = vmatprep.mubr.bf16.mxu0 %v3740_v3  ;;  %v3129_v16 = vld [vmem:[%s4666_s1 + $0x404] ss:$16 sps:$4 sm:$0xff]   ;;  %v3127_v21 = vld [vmem:[%s4666_s1 + $0x400] ss:$16 sps:$4 sm:$0xff]  }
  0x23   :  { %1656 = vmatpush1.bf16.msra.mxu1 %v3081_v34  ;;  %v3135_v23 = vld [vmem:[%s4666_s1 + $0x424] ss:$16 sps:$4 sm:$0xff]   ;;  %v3133_v26 = vld [vmem:[%s4666_s1 + $0x420] ss:$16 sps:$4 sm:$0xff]  }
  0x24   :  { %1697 = vmatpush1.bf16.msra.mxu0 %v3082_v35  ;;  %1657 = vmatprep.subr.bf16.mxu1 %v3083_v39  ;;  %v3141_v28 = vld [vmem:[%s4666_s1 + $0x444] ss:$16 sps:$4 sm:$0xff]   ;;  %v3139_v30 = vld [vmem:[%s4666_s1 + $0x440] ss:$16 sps:$4 sm:$0xff]   ;;  %v3148_v35 = vld [vmem:[%s4666_s1 + $0x68] ss:$16 sps:$4 sm:$0xff]  }
  0x25   :  { %1698 = vmatprep.subr.bf16.mxu0 %v3085_v40  ;;  %v3147_v32 = vld [vmem:[%s4666_s1 + $0x464] ss:$16 sps:$4 sm:$0xff]   ;;  %v3145_v34 = vld [vmem:[%s4666_s1 + $0x460] ss:$16 sps:$4 sm:$0xff]   ;;  %v3154_v39 = vld [vmem:[%s4666_s1 + $0x88] ss:$16 sps:$4 sm:$0xff]  }
  0x26   :  { %v3153_v36 = vld [vmem:[%s4666_s1 + $0x484] ss:$16 sps:$4 sm:$0xff]   ;;  %v3151_v38 = vld [vmem:[%s4666_s1 + $0x480] ss:$16 sps:$4 sm:$0xff]  }
  0x27   :  { %1658 = vmatpush1.bf16.msra.mxu1 %v3087_v41  ;;  %v3159_v40 = vld [vmem:[%s4666_s1 + $0x4a4] ss:$16 sps:$4 sm:$0xff]   ;;  %v3162_v41 = vld [vmem:[%s4666_s1 + $0xac] ss:$16 sps:$4 sm:$0xff]   ;;  %v3157_v42 = vld [vmem:[%s4666_s1 + $0x4a0] ss:$16 sps:$4 sm:$0xff]  }
  0x28   :  { %1699 = vmatpush1.bf16.msra.mxu0 %v3088_v44  ;;  %1659 = vmatprep.subr.bf16.mxu1 %v3089_v45  ;;  %v3160_v44 = vld [vmem:[%s4666_s1 + $0xa8] ss:$16 sps:$4 sm:$0xff]   ;;  %v3165_v45 = vld [vmem:[%s4666_s1 + $0x4c4] ss:$16 sps:$4 sm:$0xff]   ;;  %v3169_v52 = vld [vmem:[%s4666_s1 + $0x4e0] ss:$16 sps:$4 sm:$0xff]  }
  0x29   :  { %1700 = vmatprep.subr.bf16.mxu0 %v3091_v46  ;;  %v3168_v46 = vld [vmem:[%s4666_s1 + $0xcc] ss:$16 sps:$4 sm:$0xff]   ;;  %v3177_v54 = vld [vmem:[%s4666_s1 + $0x504] ss:$16 sps:$4 sm:$0xff]   ;;  %v3181_v60 = vld [vmem:[%s4666_s1 + $0x520] ss:$16 sps:$4 sm:$0xff]  }
  0x2a   :  { %v3189_v62 = vld [vmem:[%s4666_s1 + $0x544] ss:$16 sps:$4 sm:$0xff]  }
  0x2b   :  { %1660 = vmatpush1.bf16.msra.mxu1 %v3093_v47  ;;  %v3163_v47 = vld [vmem:[%s4666_s1 + $0x4c0] ss:$16 sps:$4 sm:$0xff]  }
  0x2c   :  { %1701 = vmatpush1.bf16.msra.mxu0 %v3094_v48  ;;  %1661 = vmatprep.subr.bf16.mxu1 %v3095_v50  ;;  %v3166_v48 = vld [vmem:[%s4666_s1 + $0xc8] ss:$16 sps:$4 sm:$0xff]   ;;  %v3171_v50 = vld [vmem:[%s4666_s1 + $0x4e4] ss:$16 sps:$4 sm:$0xff]  }
  0x2d   :  { %1702 = vmatprep.subr.bf16.mxu0 %v3097_v51  ;;  %v3174_v51 = vld [vmem:[%s4666_s1 + $0xec] ss:$16 sps:$4 sm:$0xff]  }
  0x2f   :  { %1662 = vmatpush1.bf16.msra.mxu1 %v3099_v55  ;;  %v3180_v55 = vld [vmem:[%s4666_s1 + $0x10c] ss:$16 sps:$4 sm:$0xff]  }
  0x30   :  { %1703 = vmatpush1.bf16.msra.mxu0 %v3100_v56  ;;  %1663 = vmatprep.subr.bf16.mxu1 %v3101_v57  ;;  %v3175_v56 = vld [vmem:[%s4666_s1 + $0x500] ss:$16 sps:$4 sm:$0xff]   ;;  %v3178_v57 = vld [vmem:[%s4666_s1 + $0x108] ss:$16 sps:$4 sm:$0xff]  }
  0x31   :  { %1704 = vmatprep.subr.bf16.mxu0 %v3103_v58  ;;  %v3183_v58 = vld [vmem:[%s4666_s1 + $0x524] ss:$16 sps:$4 sm:$0xff]  }
  0x33   :  { %1664 = vmatpush1.bf16.msra.mxu1 %v3105_v63  ;;  %v3192_v63 = vld [vmem:[%s4666_s1 + $0x14c] ss:$16 sps:$4 sm:$0xff]  }
  0x34   :  { %1705 = vmatpush1.bf16.msra.mxu0 %v3106_v0  ;;  %1665 = vmatprep.subr.bf16.mxu1 %v3107_v1  ;;  %v3187_v0 = vld [vmem:[%s4666_s1 + $0x540] ss:$16 sps:$4 sm:$0xff]   ;;  %v3190_v1 = vld [vmem:[%s4666_s1 + $0x148] ss:$16 sps:$4 sm:$0xff]  }
  0x35   :  { %1706 = vmatprep.subr.bf16.mxu0 %v3109_v2  ;;  %v3195_v2 = vld [vmem:[%s4666_s1 + $0x564] ss:$16 sps:$4 sm:$0xff]  }
  0x37   :  { %1666 = vmatpush1.bf16.msra.mxu1 %v3111_v4  ;;  %v3198_v4 = vld [vmem:[%s4666_s1 + $0x16c] ss:$16 sps:$4 sm:$0xff]  }
  0x38   :  { %1707 = vmatpush1.bf16.msra.mxu0 %v3112_v5  ;;  %1667 = vmatprep.subr.bf16.mxu1 %v3113_v6  ;;  %v3193_v5 = vld [vmem:[%s4666_s1 + $0x560] ss:$16 sps:$4 sm:$0xff]   ;;  %v3196_v6 = vld [vmem:[%s4666_s1 + $0x168] ss:$16 sps:$4 sm:$0xff]  }
  0x39   :  { %1708 = vmatprep.subr.bf16.mxu0 %v3115_v7  ;;  %v3201_v7 = vld [vmem:[%s4666_s1 + $0x584] ss:$16 sps:$4 sm:$0xff]  }
  0x3b   :  { %1668 = vmatpush1.bf16.msra.mxu1 %v3117_v9  ;;  %v3204_v9 = vld [vmem:[%s4666_s1 + $0x18c] ss:$16 sps:$4 sm:$0xff]  }
  0x3c   :  { %1709 = vmatpush1.bf16.msra.mxu0 %v3118_v10  ;;  %1669 = vmatprep.subr.bf16.mxu1 %v3119_v11  ;;  %v3199_v10 = vld [vmem:[%s4666_s1 + $0x580] ss:$16 sps:$4 sm:$0xff]   ;;  %v3202_v11 = vld [vmem:[%s4666_s1 + $0x188] ss:$16 sps:$4 sm:$0xff]  }
  0x3d   :  { %1710 = vmatprep.subr.bf16.mxu0 %v3121_v12  ;;  %v3207_v12 = vld [vmem:[%s4666_s1 + $0x5a4] ss:$16 sps:$4 sm:$0xff]  }
  0x3f   :  { %1670 = vmatpush1.bf16.msra.mxu1 %v3123_v14  ;;  %v3210_v14 = vld [vmem:[%s4666_s1 + $0x1ac] ss:$16 sps:$4 sm:$0xff]  }
  0x40   :  { %1711 = vmatpush1.bf16.msra.mxu0 %v3124_v15  ;;  %1803 = vmatprep.subr.bf16.mxu1 %v3132_v17  ;;  %v3205_v15 = vld [vmem:[%s4666_s1 + $0x5a0] ss:$16 sps:$4 sm:$0xff]   ;;  %v3213_v17 = vld [vmem:[%s4666_s1 + $0x5c4] ss:$16 sps:$4 sm:$0xff]  }
  0x41   :  { %1721 = vmatprep.subr.bf16.mxu0 %v3129_v16  ;;  %v3208_v16 = vld [vmem:[%s4666_s1 + $0x1a8] ss:$16 sps:$4 sm:$0xff]  }
  0x42   :  { %1672 = vmatmul.mubr.bf16.vlgmr.msra.gmra.mrb[0].mxu1 %v3790_v19 }
  0x43   :  { %1713 = vmatmul.mubr.bf16.vlgmr.msra.gmra.mrb[0].mxu0 %v3792_v20  ;;  %1804 = vmatpush1.bf16.msra.mxu1 %v3130_v22  ;;  %v3211_v22 = vld [vmem:[%s4666_s1 + $0x5c0] ss:$16 sps:$4 sm:$0xff]  }
  0x44   :  { %1722 = vmatpush1.bf16.msra.mxu0 %v3127_v21  ;;  %1805 = vmatprep.subr.bf16.mxu1 %v3138_v24  ;;  %v48_v21 = vcombine.high %v3758_v8, %v3758_v8  ;;  %v3219_v24 = vld [vmem:[%s4666_s1 + $0x5e4] ss:$16 sps:$4 sm:$0xff]   ;;  %v3222_v8 = vld [vmem:[%s4666_s1 + $0x1ec] ss:$16 sps:$4 sm:$0xff]  }
  0x45   :  { %1723 = vmatprep.subr.bf16.mxu0 %v3135_v23  ;;  %1753 = vmatprep.mubr.bf16.mxu0 %v3806_v25  ;;  %v3214_v23 = vld [vmem:[%s4666_s1 + $0x1c8] ss:$16 sps:$4 sm:$0xff]  }
  0x46   :  { %1835 = vmatprep.mubr.bf16.mxu1 %v74_v61  ;;  %v3184_v61 = vld [vmem:[%s4666_s1 + $0x128] ss:$16 sps:$4 sm:$0xff]  }
  0x47   :  { %1806 = vmatpush1.bf16.msra.mxu1 %v3136_v27  ;;  %v3217_v27 = vld [vmem:[%s4666_s1 + $0x5e0] ss:$16 sps:$4 sm:$0xff]  }
  0x48   :  { %1724 = vmatpush1.bf16.msra.mxu0 %v3133_v26  ;;  %1807 = vmatprep.subr.bf16.mxu1 %v3144_v29  ;;  %v3982_v26 = vrot.slane %v48_v21, %v3703_v49  ;;  %v3225_v29 = vld [vmem:[%s4666_s1 + $0x604] ss:$16 sps:$4 sm:$0xff]   ;;  %v3228_v49 = vld [vmem:[%s4666_s1 + $0x20c] ss:$16 sps:$4 sm:$0xff]   ;;  %v3295_v21 = vld [vmem:[%s4666_s1 + $0x780] ss:$16 sps:$4 sm:$0xff]  }
  0x49   :  { %1725 = vmatprep.subr.bf16.mxu0 %v3141_v28  ;;  %v3220_v28 = vld [vmem:[%s4666_s1 + $0x1e8] ss:$16 sps:$4 sm:$0xff]  }
  0x4b   :  { %1808 = vmatpush1.bf16.msra.mxu1 %v3142_v31  ;;  %v4000_v31 = vpack.c.bf16 %v3774_v13, %v3774_v13  ;;  %v3234_v13 = vld [vmem:[%s4666_s1 + $0x22c] ss:$16 sps:$4 sm:$0xff]  }
  0x4c   :  { %1726 = vmatpush1.bf16.msra.mxu0 %v3139_v30  ;;  %1809 = vmatprep.subr.bf16.mxu1 %v3150_v33  ;;  %v64_v30 = vcombine.high %v3982_v26, %v3982_v26  ;;  %v3226_v33 = vld [vmem:[%s4666_s1 + $0x208] ss:$16 sps:$4 sm:$0xff]  }
  0x4d   :  { %1727 = vmatprep.subr.bf16.mxu0 %v3147_v32  ;;  %v3223_v32 = vld [vmem:[%s4666_s1 + $0x600] ss:$16 sps:$4 sm:$0xff]  }
  0x4f   :  { %1810 = vmatpush1.bf16.msra.mxu1 %v3148_v35  ;;  %v4014_v35 = vpack.c.bf16 %v64_v30, %v64_v30  ;;  %v3310_v30 = vld [vmem:[%s4666_s1 + $0x3c8] ss:$16 sps:$4 sm:$0xff]  }
  0x50   :  { %1728 = vmatpush1.bf16.msra.mxu0 %v3145_v34  ;;  %1811 = vmatprep.subr.bf16.mxu1 %v3156_v37  ;;  %v3231_v34 = vld [vmem:[%s4666_s1 + $0x624] ss:$16 sps:$4 sm:$0xff]   ;;  %v3232_v37 = vld [vmem:[%s4666_s1 + $0x228] ss:$16 sps:$4 sm:$0xff]  }
  0x51   :  { %1729 = vmatprep.subr.bf16.mxu0 %v3153_v36  ;;  %v3229_v36 = vld [vmem:[%s4666_s1 + $0x620] ss:$16 sps:$4 sm:$0xff]  }
  0x53   :  { %1812 = vmatpush1.bf16.msra.mxu1 %v3154_v39  ;;  %v3235_v39 = vld [vmem:[%s4666_s1 + $0x640] ss:$16 sps:$4 sm:$0xff]  }
  0x54   :  { %1730 = vmatpush1.bf16.msra.mxu0 %v3151_v38  ;;  %1813 = vmatprep.subr.bf16.mxu1 %v3162_v41  ;;  %v3237_v38 = vld [vmem:[%s4666_s1 + $0x644] ss:$16 sps:$4 sm:$0xff]  }
  0x55   :  { %1731 = vmatprep.subr.bf16.mxu0 %v3159_v40  ;;  %v3238_v40 = vld [vmem:[%s4666_s1 + $0x248] ss:$16 sps:$4 sm:$0xff]   ;;  %v3243_v41 = vld [vmem:[%s4666_s1 + $0x664] ss:$16 sps:$4 sm:$0xff]  }
  0x57   :  { %1814 = vmatpush1.bf16.msra.mxu1 %v3160_v44  ;;  %v3244_v44 = vld [vmem:[%s4666_s1 + $0x268] ss:$16 sps:$4 sm:$0xff]  }
  0x58   :  { %1732 = vmatpush1.bf16.msra.mxu0 %v3157_v42  ;;  %1815 = vmatprep.subr.bf16.mxu1 %v3168_v46  ;;  %v3241_v42 = vld [vmem:[%s4666_s1 + $0x660] ss:$16 sps:$4 sm:$0xff]   ;;  %v3252_v46 = vld [vmem:[%s4666_s1 + $0x28c] ss:$16 sps:$4 sm:$0xff]  }
  0x59   :  { %1733 = vmatprep.subr.bf16.mxu0 %v3165_v45  ;;  %v3249_v45 = vld [vmem:[%s4666_s1 + $0x684] ss:$16 sps:$4 sm:$0xff]  }
  0x5b   :  { %1816 = vmatpush1.bf16.msra.mxu1 %v3166_v48  ;;  %v3250_v48 = vld [vmem:[%s4666_s1 + $0x288] ss:$16 sps:$4 sm:$0xff]  }
  0x5c   :  { %1734 = vmatpush1.bf16.msra.mxu0 %v3163_v47  ;;  %1817 = vmatprep.subr.bf16.mxu1 %v3174_v51  ;;  %v3247_v47 = vld [vmem:[%s4666_s1 + $0x680] ss:$16 sps:$4 sm:$0xff]   ;;  %v3258_v51 = vld [vmem:[%s4666_s1 + $0x2ac] ss:$16 sps:$4 sm:$0xff]  }
  0x5d   :  { %1735 = vmatprep.subr.bf16.mxu0 %v3171_v50  ;;  %v3255_v50 = vld [vmem:[%s4666_s1 + $0x6a4] ss:$16 sps:$4 sm:$0xff]  }
  0x5f   :  { %1818 = vmatpush1.bf16.msra.mxu1 %v3172_v53  ;;  %v3256_v53 = vld [vmem:[%s4666_s1 + $0x2a8] ss:$16 sps:$4 sm:$0xff]  }
  0x60   :  { %1736 = vmatpush1.bf16.msra.mxu0 %v3169_v52  ;;  %1819 = vmatprep.subr.bf16.mxu1 %v3180_v55  ;;  %v3253_v52 = vld [vmem:[%s4666_s1 + $0x6a0] ss:$16 sps:$4 sm:$0xff]   ;;  %v3264_v55 = vld [vmem:[%s4666_s1 + $0x2cc] ss:$16 sps:$4 sm:$0xff]  }
  0x61   :  { %1737 = vmatprep.subr.bf16.mxu0 %v3177_v54  ;;  %v3261_v54 = vld [vmem:[%s4666_s1 + $0x6c4] ss:$16 sps:$4 sm:$0xff]  }
  0x63   :  { %1820 = vmatpush1.bf16.msra.mxu1 %v3178_v57  ;;  %v3262_v57 = vld [vmem:[%s4666_s1 + $0x2c8] ss:$16 sps:$4 sm:$0xff]  }
  0x64   :  { %1738 = vmatpush1.bf16.msra.mxu0 %v3175_v56  ;;  %1821 = vmatprep.subr.bf16.mxu1 %v3186_v59  ;;  %v3259_v56 = vld [vmem:[%s4666_s1 + $0x6c0] ss:$16 sps:$4 sm:$0xff]   ;;  %v3270_v59 = vld [vmem:[%s4666_s1 + $0x2ec] ss:$16 sps:$4 sm:$0xff]  }
  0x65   :  { %1739 = vmatprep.subr.bf16.mxu0 %v3183_v58  ;;  %v3267_v58 = vld [vmem:[%s4666_s1 + $0x6e4] ss:$16 sps:$4 sm:$0xff]  }
  0x67   :  { %1822 = vmatpush1.bf16.msra.mxu1 %v3184_v61  ;;  %v3268_v61 = vld [vmem:[%s4666_s1 + $0x2e8] ss:$16 sps:$4 sm:$0xff]  }
  0x68   :  { %1740 = vmatpush1.bf16.msra.mxu0 %v3181_v60  ;;  %1823 = vmatprep.subr.bf16.mxu1 %v3192_v63  ;;  %v3265_v60 = vld [vmem:[%s4666_s1 + $0x6e0] ss:$16 sps:$4 sm:$0xff]   ;;  %v3276_v63 = vld [vmem:[%s4666_s1 + $0x30c] ss:$16 sps:$4 sm:$0xff]  }
  0x69   :  { %1741 = vmatprep.subr.bf16.mxu0 %v3189_v62  ;;  %v3273_v62 = vld [vmem:[%s4666_s1 + $0x704] ss:$16 sps:$4 sm:$0xff]  }
  0x6b   :  { %1824 = vmatpush1.bf16.msra.mxu1 %v3190_v1  ;;  %v3274_v1 = vld [vmem:[%s4666_s1 + $0x308] ss:$16 sps:$4 sm:$0xff]  }
  0x6c   :  { %1742 = vmatpush1.bf16.msra.mxu0 %v3187_v0  ;;  %1825 = vmatprep.subr.bf16.mxu1 %v3198_v4  ;;  %v3271_v0 = vld [vmem:[%s4666_s1 + $0x700] ss:$16 sps:$4 sm:$0xff]   ;;  %v3282_v4 = vld [vmem:[%s4666_s1 + $0x32c] ss:$16 sps:$4 sm:$0xff]  }
  0x6d   :  { %1743 = vmatprep.subr.bf16.mxu0 %v3195_v2  ;;  %v3279_v2 = vld [vmem:[%s4666_s1 + $0x724] ss:$16 sps:$4 sm:$0xff]  }
  0x6f   :  { %1826 = vmatpush1.bf16.msra.mxu1 %v3196_v6  ;;  %v3280_v6 = vld [vmem:[%s4666_s1 + $0x328] ss:$16 sps:$4 sm:$0xff]  }
  0x70   :  { %1744 = vmatpush1.bf16.msra.mxu0 %v3193_v5  ;;  %1827 = vmatprep.subr.bf16.mxu1 %v3204_v9  ;;  %v3277_v5 = vld [vmem:[%s4666_s1 + $0x720] ss:$16 sps:$4 sm:$0xff]   ;;  %v3288_v9 = vld [vmem:[%s4666_s1 + $0x34c] ss:$16 sps:$4 sm:$0xff]  }
  0x71   :  { %1745 = vmatprep.subr.bf16.mxu0 %v3201_v7  ;;  %v3285_v7 = vld [vmem:[%s4666_s1 + $0x744] ss:$16 sps:$4 sm:$0xff]  }
  0x73   :  { %1828 = vmatpush1.bf16.msra.mxu1 %v3202_v11  ;;  %v3286_v11 = vld [vmem:[%s4666_s1 + $0x348] ss:$16 sps:$4 sm:$0xff]  }
  0x74   :  { %1746 = vmatpush1.bf16.msra.mxu0 %v3199_v10  ;;  %1829 = vmatprep.subr.bf16.mxu1 %v3210_v14  ;;  %v3283_v10 = vld [vmem:[%s4666_s1 + $0x740] ss:$16 sps:$4 sm:$0xff]   ;;  %v3294_v14 = vld [vmem:[%s4666_s1 + $0x36c] ss:$16 sps:$4 sm:$0xff]  }
  0x75   :  { %1747 = vmatprep.subr.bf16.mxu0 %v3207_v12  ;;  %v3291_v12 = vld [vmem:[%s4666_s1 + $0x764] ss:$16 sps:$4 sm:$0xff]  }
  0x77   :  { %1830 = vmatpush1.bf16.msra.mxu1 %v3208_v16  ;;  %v3292_v16 = vld [vmem:[%s4666_s1 + $0x368] ss:$16 sps:$4 sm:$0xff]  }
  0x78   :  { %1748 = vmatpush1.bf16.msra.mxu0 %v3205_v15  ;;  %1831 = vmatprep.subr.bf16.mxu1 %v3216_v18  ;;  %v3289_v15 = vld [vmem:[%s4666_s1 + $0x760] ss:$16 sps:$4 sm:$0xff]   ;;  %v3300_v18 = vld [vmem:[%s4666_s1 + $0x38c] ss:$16 sps:$4 sm:$0xff]  }
  0x79   :  { %1749 = vmatprep.subr.bf16.mxu0 %v3213_v17  ;;  %v3297_v17 = vld [vmem:[%s4666_s1 + $0x784] ss:$16 sps:$4 sm:$0xff]  }
  0x7b   :  { %1832 = vmatpush1.bf16.msra.mxu1 %v3214_v23  ;;  %v3303_v23 = vld [vmem:[%s4666_s1 + $0x7a4] ss:$16 sps:$4 sm:$0xff]  }
  0x7c   :  { %1750 = vmatpush1.bf16.msra.mxu0 %v3211_v22  ;;  %1833 = vmatprep.subr.bf16.mxu1 %v3222_v8  ;;  %v3298_v22 = vld [vmem:[%s4666_s1 + $0x388] ss:$16 sps:$4 sm:$0xff]   ;;  %v3301_v8 = vld [vmem:[%s4666_s1 + $0x7a0] ss:$16 sps:$4 sm:$0xff]  }
  0x7d   :  { %1751 = vmatprep.subr.bf16.mxu0 %v3219_v24  ;;  %v3306_v24 = vld [vmem:[%s4666_s1 + $0x3ac] ss:$16 sps:$4 sm:$0xff]  }
  0x7f   :  { %1834 = vmatpush1.bf16.msra.mxu1 %v3220_v28  ;;  %v3309_v28 = vld [vmem:[%s4666_s1 + $0x7c4] ss:$16 sps:$4 sm:$0xff]  }
  0x80   :  { %1752 = vmatpush1.bf16.msra.mxu0 %v3217_v27  ;;  %1844 = vmatprep.subr.bf16.mxu1 %v3228_v49  ;;  %v3304_v27 = vld [vmem:[%s4666_s1 + $0x3a8] ss:$16 sps:$4 sm:$0xff]   ;;  %v3307_v49 = vld [vmem:[%s4666_s1 + $0x7c0] ss:$16 sps:$4 sm:$0xff]  }
  0x81   :  { %1762 = vmatprep.subr.bf16.mxu0 %v3225_v29  ;;  %v3312_v29 = vld [vmem:[%s4666_s1 + $0x3cc] ss:$16 sps:$4 sm:$0xff]  }
  0x82   :  { %1836 = vmatmul.mubr.bf16.vlgmr.msra.gmra.mrb[4].mxu1 %v3790_v19  ;;  %v3240_v19 = vld [vmem:[%s4666_s1 + $0x24c] ss:$16 sps:$4 sm:$0xff]  }
  0x83   :  { %1754 = vmatmul.mubr.bf16.vlgmr.msra.gmra.mrb[0].mxu0 %v4000_v31  ;;  %1845 = vmatpush1.bf16.msra.mxu1 %v3226_v33  ;;  %v3318_v33 = vld [vmem:[%s4666_s1 + $0x3ec] ss:$16 sps:$4 sm:$0xff]  }
  0x84   :  { %1763 = vmatpush1.bf16.msra.mxu0 %v3223_v32  ;;  %1846 = vmatprep.subr.bf16.mxu1 %v3234_v13  ;;  %v3315_v32 = vld [vmem:[%s4666_s1 + $0x7e4] ss:$16 sps:$4 sm:$0xff]   ;;  %v3316_v13 = vld [vmem:[%s4666_s1 + $0x3e8] ss:$16 sps:$4 sm:$0xff]  }
  0x85   :  { %1764 = vmatprep.subr.bf16.mxu0 %v3231_v34  ;;  %1794 = vmatprep.mubr.bf16.mxu0 %v4014_v35  ;;  %v3313_v34 = vld [vmem:[%s4666_s1 + $0x7e0] ss:$16 sps:$4 sm:$0xff]  }
  0x86   :  { %1876 = vmatprep.mubr.bf16.mxu1 %v3740_v3  ;;  %v3246_v3 = vld [vmem:[%s4666_s1 + $0x26c] ss:$16 sps:$4 sm:$0xff]  }
  0x87   :  { %1847 = vmatpush1.bf16.msra.mxu1 %v3232_v37  ;;  %v4199_v37 = vpack.c.bf16 %v3982_v26, %v3982_v26  ;;  %v3322_v26 = vld [vmem:[%s4666_s1 + $0x428] ss:$16 sps:$4 sm:$0xff]  }
  0x88   :  { %1765 = vmatpush1.bf16.msra.mxu0 %v3229_v36  ;;  %1848 = vmatprep.subr.bf16.mxu1 %v3240_v19  ;;  %v3321_v36 = vld [vmem:[%s4666_s1 + $0x40c] ss:$16 sps:$4 sm:$0xff]  }
  0x89   :  { %1766 = vmatprep.subr.bf16.mxu0 %v3237_v38  ;;  %v3319_v38 = vld [vmem:[%s4666_s1 + $0x408] ss:$16 sps:$4 sm:$0xff]   ;;  %v3324_v19 = vld [vmem:[%s4666_s1 + $0x42c] ss:$16 sps:$4 sm:$0xff]  }
  0x8b   :  { %1849 = vmatpush1.bf16.msra.mxu1 %v3238_v40  ;;  %v3415_v40 = vld [vmem:[%s4668_s3] ss:$8 sps:$4 sm:$0xff]  }
  0x8c   :  { %1767 = vmatpush1.bf16.msra.mxu0 %v3235_v39  ;;  %1850 = vmatprep.subr.bf16.mxu1 %v3246_v3  ;;  %v3327_v39 = vld [vmem:[%s4666_s1 + $0x44c] ss:$16 sps:$4 sm:$0xff]   ;;  %v3325_v3 = vld [vmem:[%s4666_s1 + $0x448] ss:$16 sps:$4 sm:$0xff]  }
  0x8d   :  { %1768 = vmatprep.subr.bf16.mxu0 %v3243_v41  ;;  %v3420_v41 = vld [vmem:[%s4668_s3 + $0x14] ss:$8 sps:$4 sm:$0xff]  }
  0x8f   :  { %1851 = vmatpush1.bf16.msra.mxu1 %v3244_v44  ;;  %v3423_v44 = vld [vmem:[%s4668_s3 + $0x24] ss:$8 sps:$4 sm:$0xff]  }
  0x90   :  { %1769 = vmatpush1.bf16.msra.mxu0 %v3241_v42  ;;  %1852 = vmatprep.subr.bf16.mxu1 %v3252_v46  ;;  %v3418_v42 = vld [vmem:[%s4668_s3 + $0x10] ss:$8 sps:$4 sm:$0xff]   ;;  %v3333_v46 = vld [vmem:[%s4666_s1 + $0x48c] ss:$16 sps:$4 sm:$0xff]  }
  0x91   :  { %1770 = vmatprep.subr.bf16.mxu0 %v3249_v45  ;;  %v3328_v45 = vld [vmem:[%s4666_s1 + $0x468] ss:$16 sps:$4 sm:$0xff]  }
  0x93   :  { %1853 = vmatpush1.bf16.msra.mxu1 %v3250_v48  ;;  %v3426_v48 = vld [vmem:[%s4668_s3 + $0x34] ss:$8 sps:$4 sm:$0xff]  }
  0x94   :  { %1771 = vmatpush1.bf16.msra.mxu0 %v3247_v47  ;;  %1854 = vmatprep.subr.bf16.mxu1 %v3258_v51  ;;  %v3421_v47 = vld [vmem:[%s4668_s3 + $0x20] ss:$8 sps:$4 sm:$0xff]   ;;  %v3336_v51 = vld [vmem:[%s4666_s1 + $0x4ac] ss:$16 sps:$4 sm:$0xff]  }
  0x95   :  { %1772 = vmatprep.subr.bf16.mxu0 %v3255_v50  ;;  %v3331_v50 = vld [vmem:[%s4666_s1 + $0x488] ss:$16 sps:$4 sm:$0xff]  }
  0x97   :  { %1855 = vmatpush1.bf16.msra.mxu1 %v3256_v53  ;;  %v3429_v53 = vld [vmem:[%s4668_s3 + $0x44] ss:$8 sps:$4 sm:$0xff]  }
  0x98   :  { %1773 = vmatpush1.bf16.msra.mxu0 %v3253_v52  ;;  %1856 = vmatprep.subr.bf16.mxu1 %v3264_v55  ;;  %v3424_v52 = vld [vmem:[%s4668_s3 + $0x30] ss:$8 sps:$4 sm:$0xff]   ;;  %v3339_v55 = vld [vmem:[%s4666_s1 + $0x4cc] ss:$16 sps:$4 sm:$0xff]  }
  0x99   :  { %1774 = vmatprep.subr.bf16.mxu0 %v3261_v54  ;;  %v3334_v54 = vld [vmem:[%s4666_s1 + $0x4a8] ss:$16 sps:$4 sm:$0xff]  }
  0x9b   :  { %1857 = vmatpush1.bf16.msra.mxu1 %v3262_v57  ;;  %v3432_v57 = vld [vmem:[%s4668_s3 + $0x54] ss:$8 sps:$4 sm:$0xff]  }
  0x9c   :  { %1775 = vmatpush1.bf16.msra.mxu0 %v3259_v56  ;;  %1858 = vmatprep.subr.bf16.mxu1 %v3270_v59  ;;  %v3427_v56 = vld [vmem:[%s4668_s3 + $0x40] ss:$8 sps:$4 sm:$0xff]   ;;  %v3430_v59 = vld [vmem:[%s4668_s3 + $0x50] ss:$8 sps:$4 sm:$0xff]  }
  0x9d   :  { %1776 = vmatprep.subr.bf16.mxu0 %v3267_v58  ;;  %v3337_v58 = vld [vmem:[%s4666_s1 + $0x4c8] ss:$16 sps:$4 sm:$0xff]  }
  0x9f   :  { %1859 = vmatpush1.bf16.msra.mxu1 %v3268_v61  ;;  %v3435_v61 = vld [vmem:[%s4668_s3 + $0x64] ss:$8 sps:$4 sm:$0xff]  }
  0xa0   :  { %1777 = vmatpush1.bf16.msra.mxu0 %v3265_v60  ;;  %1860 = vmatprep.subr.bf16.mxu1 %v3276_v63  ;;  %v3342_v60 = vld [vmem:[%s4666_s1 + $0x4ec] ss:$16 sps:$4 sm:$0xff]   ;;  %v3433_v63 = vld [vmem:[%s4668_s3 + $0x60] ss:$8 sps:$4 sm:$0xff]  }
  0xa1   :  { %1778 = vmatprep.subr.bf16.mxu0 %v3273_v62  ;;  %v3340_v62 = vld [vmem:[%s4666_s1 + $0x4e8] ss:$16 sps:$4 sm:$0xff]  }
  0xa3   :  { %1861 = vmatpush1.bf16.msra.mxu1 %v3274_v1  ;;  %v3438_v1 = vld [vmem:[%s4668_s3 + $0x74] ss:$8 sps:$4 sm:$0xff]  }
  0xa4   :  { %1779 = vmatpush1.bf16.msra.mxu0 %v3271_v0  ;;  %1862 = vmatprep.subr.bf16.mxu1 %v3282_v4  ;;  %v3345_v0 = vld [vmem:[%s4666_s1 + $0x50c] ss:$16 sps:$4 sm:$0xff]   ;;  %v3436_v4 = vld [vmem:[%s4668_s3 + $0x70] ss:$8 sps:$4 sm:$0xff]  }
  0xa5   :  { %1780 = vmatprep.subr.bf16.mxu0 %v3279_v2  ;;  %v3343_v2 = vld [vmem:[%s4666_s1 + $0x508] ss:$16 sps:$4 sm:$0xff]  }
  0xa7   :  { %1863 = vmatpush1.bf16.msra.mxu1 %v3280_v6  ;;  %v3441_v6 = vld [vmem:[%s4668_s3 + $0x84] ss:$8 sps:$4 sm:$0xff]  }
  0xa8   :  { %1781 = vmatpush1.bf16.msra.mxu0 %v3277_v5  ;;  %1864 = vmatprep.subr.bf16.mxu1 %v3288_v9  ;;  %v3348_v5 = vld [vmem:[%s4666_s1 + $0x52c] ss:$16 sps:$4 sm:$0xff]   ;;  %v3439_v9 = vld [vmem:[%s4668_s3 + $0x80] ss:$8 sps:$4 sm:$0xff]  }
  0xa9   :  { %1782 = vmatprep.subr.bf16.mxu0 %v3285_v7  ;;  %v3346_v7 = vld [vmem:[%s4666_s1 + $0x528] ss:$16 sps:$4 sm:$0xff]  }
  0xab   :  { %1865 = vmatpush1.bf16.msra.mxu1 %v3286_v11  ;;  %v3444_v11 = vld [vmem:[%s4668_s3 + $0x94] ss:$8 sps:$4 sm:$0xff]  }
  0xac   :  { %1783 = vmatpush1.bf16.msra.mxu0 %v3283_v10  ;;  %1866 = vmatprep.subr.bf16.mxu1 %v3294_v14  ;;  %v3351_v10 = vld [vmem:[%s4666_s1 + $0x54c] ss:$16 sps:$4 sm:$0xff]   ;;  %v3442_v14 = vld [vmem:[%s4668_s3 + $0x90] ss:$8 sps:$4 sm:$0xff]  }
  0xad   :  { %1784 = vmatprep.subr.bf16.mxu0 %v3291_v12  ;;  %v3349_v12 = vld [vmem:[%s4666_s1 + $0x548] ss:$16 sps:$4 sm:$0xff]  }
  0xaf   :  { %1867 = vmatpush1.bf16.msra.mxu1 %v3292_v16  ;;  %v3447_v16 = vld [vmem:[%s4668_s3 + $0xa4] ss:$8 sps:$4 sm:$0xff]  }
  0xb0   :  { %1785 = vmatpush1.bf16.msra.mxu0 %v3289_v15  ;;  %1868 = vmatprep.subr.bf16.mxu1 %v3300_v18  ;;  %v3354_v15 = vld [vmem:[%s4666_s1 + $0x56c] ss:$16 sps:$4 sm:$0xff]   ;;  %v3445_v18 = vld [vmem:[%s4668_s3 + $0xa0] ss:$8 sps:$4 sm:$0xff]  }
  0xb1   :  { %1786 = vmatprep.subr.bf16.mxu0 %v3297_v17  ;;  %v3352_v17 = vld [vmem:[%s4666_s1 + $0x568] ss:$16 sps:$4 sm:$0xff]  }
  0xb3   :  { %1869 = vmatpush1.bf16.msra.mxu1 %v3298_v22  ;;  %v3450_v22 = vld [vmem:[%s4668_s3 + $0xb4] ss:$8 sps:$4 sm:$0xff]  }
  0xb4   :  { %1787 = vmatpush1.bf16.msra.mxu0 %v3295_v21  ;;  %1870 = vmatprep.subr.bf16.mxu1 %v3306_v24  ;;  %v3357_v21 = vld [vmem:[%s4666_s1 + $0x58c] ss:$16 sps:$4 sm:$0xff]   ;;  %v3448_v24 = vld [vmem:[%s4668_s3 + $0xb0] ss:$8 sps:$4 sm:$0xff]  }
  0xb5   :  { %1788 = vmatprep.subr.bf16.mxu0 %v3303_v23  ;;  %v3355_v23 = vld [vmem:[%s4666_s1 + $0x588] ss:$16 sps:$4 sm:$0xff]  }
  0xb7   :  { %1871 = vmatpush1.bf16.msra.mxu1 %v3304_v27  ;;  %v3453_v27 = vld [vmem:[%s4668_s3 + $0xc4] ss:$8 sps:$4 sm:$0xff]  }
  0xb8   :  { %1789 = vmatpush1.bf16.msra.mxu0 %v3301_v8  ;;  %1872 = vmatprep.subr.bf16.mxu1 %v3312_v29  ;;  %v3360_v8 = vld [vmem:[%s4666_s1 + $0x5ac] ss:$16 sps:$4 sm:$0xff]   ;;  %v3451_v29 = vld [vmem:[%s4668_s3 + $0xc0] ss:$8 sps:$4 sm:$0xff]  }
  0xb9   :  { %1790 = vmatprep.subr.bf16.mxu0 %v3309_v28  ;;  %v3358_v28 = vld [vmem:[%s4666_s1 + $0x5a8] ss:$16 sps:$4 sm:$0xff]  }
  0xbb   :  { %1873 = vmatpush1.bf16.msra.mxu1 %v3310_v30  ;;  %v3456_v30 = vld [vmem:[%s4668_s3 + $0xd4] ss:$8 sps:$4 sm:$0xff]  }
  0xbc   :  { %1791 = vmatpush1.bf16.msra.mxu0 %v3307_v49  ;;  %1874 = vmatprep.subr.bf16.mxu1 %v3318_v33  ;;  %v3363_v49 = vld [vmem:[%s4666_s1 + $0x5cc] ss:$16 sps:$4 sm:$0xff]   ;;  %v3454_v33 = vld [vmem:[%s4668_s3 + $0xd0] ss:$8 sps:$4 sm:$0xff]  }
  0xbd   :  { %1792 = vmatprep.subr.bf16.mxu0 %v3315_v32  ;;  %v3361_v32 = vld [vmem:[%s4666_s1 + $0x5c8] ss:$16 sps:$4 sm:$0xff]  }
  0xbf   :  { %1875 = vmatpush1.bf16.msra.mxu1 %v3316_v13  ;;  %v3364_v13 = vld [vmem:[%s4666_s1 + $0x5e8] ss:$16 sps:$4 sm:$0xff]  }
  0xc0   :  { %1793 = vmatpush1.bf16.msra.mxu0 %v3313_v34  ;;  %1885 = vmatprep.subr.bf16.mxu1 %v3321_v36  ;;  %v3366_v34 = vld [vmem:[%s4666_s1 + $0x5ec] ss:$16 sps:$4 sm:$0xff]  }
  0xc1   :  { %v3369_v36 = vld [vmem:[%s4666_s1 + $0x60c] ss:$16 sps:$4 sm:$0xff]  }
  0xc2   :  { %1877 = vmatmul.mubr.bf16.vlgmr.msra.gmra.mrb[4].mxu1 %v3792_v20  ;;  %v3417_v20 = vld [vmem:[%s4668_s3 + $0x4] ss:$8 sps:$4 sm:$0xff]  }
  0xc3   :  { %1795 = vmatmul.mubr.bf16.vlgmr.msra.gmra.mrb[0].mxu0 %v4199_v37  ;;  %1886 = vmatpush1.bf16.msra.mxu1 %v3319_v38  ;;  %v3367_v38 = vld [vmem:[%s4666_s1 + $0x608] ss:$16 sps:$4 sm:$0xff]  }
  0xc4   :  { %1917 = vmatprep.mubr.bf16.mxu1 %v3806_v25  ;;  %1887 = vmatprep.subr.bf16.mxu1 %v3324_v19  ;;  %v3330_v25 = vld [vmem:[%s4666_s1 + $0x46c] ss:$16 sps:$4 sm:$0xff]  }
  0xc5   :  { %2371 = vmatprep.subr.bf16.mxu0 %v3417_v20  ;;  %v3372_v19 = vld [vmem:[%s4666_s1 + $0x62c] ss:$16 sps:$4 sm:$0xff]  }
  0xc6   :  { %2372 = vmatpush1.bf16.msra.mxu0 %v3415_v40  ;;  %v3373_v40 = vld [vmem:[%s4666_s1 + $0x648] ss:$16 sps:$4 sm:$0xff]   ;;  %v3381_v20 = vld [vmem:[%s4666_s1 + $0x68c] ss:$16 sps:$4 sm:$0xff]  }
  0xc7   :  { %1888 = vmatpush1.bf16.msra.mxu1 %v3322_v26  ;;  %2373 = vmatprep.subr.bf16.mxu0 %v3420_v41  ;;  %v3370_v26 = vld [vmem:[%s4666_s1 + $0x628] ss:$16 sps:$4 sm:$0xff]  }
  0xc8   :  { %1889 = vmatprep.subr.bf16.mxu1 %v3327_v39  ;;  %v3375_v39 = vld [vmem:[%s4666_s1 + $0x64c] ss:$16 sps:$4 sm:$0xff]   ;;  %v3379_v41 = vld [vmem:[%s4666_s1 + $0x688] ss:$16 sps:$4 sm:$0xff]  }
  0xca   :  { %2374 = vmatpush1.bf16.msra.mxu0 %v3418_v42  ;;  %v3387_v42 = vld [vmem:[%s4666_s1 + $0x6cc] ss:$16 sps:$4 sm:$0xff]  }
  0xcb   :  { %1890 = vmatpush1.bf16.msra.mxu1 %v3325_v3  ;;  %2375 = vmatprep.subr.bf16.mxu0 %v3423_v44  ;;  %v3384_v3 = vld [vmem:[%s4666_s1 + $0x6ac] ss:$16 sps:$4 sm:$0xff]  }
  0xcc   :  { %1891 = vmatprep.subr.bf16.mxu1 %v3330_v25  ;;  %v3382_v25 = vld [vmem:[%s4666_s1 + $0x6a8] ss:$16 sps:$4 sm:$0xff]   ;;  %v3459_v44 = vld [vmem:[%s4668_s3 + $0xe4] ss:$8 sps:$4 sm:$0xff]  }
  0xce   :  { %2376 = vmatpush1.bf16.msra.mxu0 %v3421_v47 }
  0xcf   :  { %1892 = vmatpush1.bf16.msra.mxu1 %v3328_v45  ;;  %2377 = vmatprep.subr.bf16.mxu0 %v3426_v48 }
  0xd0   :  { %1893 = vmatprep.subr.bf16.mxu1 %v3333_v46  ;;  %v3457_v46 = vld [vmem:[%s4668_s3 + $0xe0] ss:$8 sps:$4 sm:$0xff]  }
  0xd2   :  { %2378 = vmatpush1.bf16.msra.mxu0 %v3424_v52  ;;  %v3390_v52 = vld [vmem:[%s4666_s1 + $0x6ec] ss:$16 sps:$4 sm:$0xff]  }
  0xd3   :  { %1894 = vmatpush1.bf16.msra.mxu1 %v3331_v50  ;;  %2379 = vmatprep.subr.bf16.mxu0 %v3429_v53  ;;  %v3385_v50 = vld [vmem:[%s4666_s1 + $0x6c8] ss:$16 sps:$4 sm:$0xff]   ;;  %v3462_v53 = vld [vmem:[%s4668_s3 + $0xf4] ss:$8 sps:$4 sm:$0xff]  }
  0xd4   :  { %1895 = vmatprep.subr.bf16.mxu1 %v3336_v51 }
  0xd6   :  { %2380 = vmatpush1.bf16.msra.mxu0 %v3427_v56  ;;  %v3393_v56 = vld [vmem:[%s4666_s1 + $0x70c] ss:$16 sps:$4 sm:$0xff]  }
  0xd7   :  { %1896 = vmatpush1.bf16.msra.mxu1 %v3334_v54  ;;  %2381 = vmatprep.subr.bf16.mxu0 %v3432_v57  ;;  %v3460_v54 = vld [vmem:[%s4668_s3 + $0xf0] ss:$8 sps:$4 sm:$0xff]   ;;  %v3465_v57 = vld [vmem:[%s4668_s3 + $0x104] ss:$8 sps:$4 sm:$0xff]  }
  0xd8   :  { %1897 = vmatprep.subr.bf16.mxu1 %v3339_v55  ;;  %v3388_v55 = vld [vmem:[%s4666_s1 + $0x6e8] ss:$16 sps:$4 sm:$0xff]  }
  0xda   :  { %2382 = vmatpush1.bf16.msra.mxu0 %v3430_v59  ;;  %v3396_v59 = vld [vmem:[%s4666_s1 + $0x72c] ss:$16 sps:$4 sm:$0xff]  }
  0xdb   :  { %1898 = vmatpush1.bf16.msra.mxu1 %v3337_v58  ;;  %2383 = vmatprep.subr.bf16.mxu0 %v3435_v61  ;;  %v3391_v58 = vld [vmem:[%s4666_s1 + $0x708] ss:$16 sps:$4 sm:$0xff]   ;;  %v3399_v61 = vld [vmem:[%s4666_s1 + $0x74c] ss:$16 sps:$4 sm:$0xff]  }
  0xdc   :  { %1899 = vmatprep.subr.bf16.mxu1 %v3342_v60  ;;  %v3394_v60 = vld [vmem:[%s4666_s1 + $0x728] ss:$16 sps:$4 sm:$0xff]  }
  0xde   :  { %2384 = vmatpush1.bf16.msra.mxu0 %v3433_v63  ;;  %v3402_v63 = vld [vmem:[%s4666_s1 + $0x76c] ss:$16 sps:$4 sm:$0xff]  }
  0xdf   :  { %1900 = vmatpush1.bf16.msra.mxu1 %v3340_v62  ;;  %2385 = vmatprep.subr.bf16.mxu0 %v3438_v1  ;;  %v3397_v62 = vld [vmem:[%s4666_s1 + $0x748] ss:$16 sps:$4 sm:$0xff]   ;;  %v3405_v1 = vld [vmem:[%s4666_s1 + $0x78c] ss:$16 sps:$4 sm:$0xff]  }
  0xe0   :  { %1901 = vmatprep.subr.bf16.mxu1 %v3345_v0  ;;  %v3400_v0 = vld [vmem:[%s4666_s1 + $0x768] ss:$16 sps:$4 sm:$0xff]  }
  0xe2   :  { %2386 = vmatpush1.bf16.msra.mxu0 %v3436_v4  ;;  %v3408_v4 = vld [vmem:[%s4666_s1 + $0x7ac] ss:$16 sps:$4 sm:$0xff]  }
  0xe3   :  { %1902 = vmatpush1.bf16.msra.mxu1 %v3343_v2  ;;  %2387 = vmatprep.subr.bf16.mxu0 %v3441_v6  ;;  %v3403_v2 = vld [vmem:[%s4666_s1 + $0x788] ss:$16 sps:$4 sm:$0xff]   ;;  %v3411_v6 = vld [vmem:[%s4666_s1 + $0x7cc] ss:$16 sps:$4 sm:$0xff]  }
  0xe4   :  { %1903 = vmatprep.subr.bf16.mxu1 %v3348_v5  ;;  %v3406_v5 = vld [vmem:[%s4666_s1 + $0x7a8] ss:$16 sps:$4 sm:$0xff]  }
  0xe6   :  { %2388 = vmatpush1.bf16.msra.mxu0 %v3439_v9  ;;  %v3414_v9 = vld [vmem:[%s4666_s1 + $0x7ec] ss:$16 sps:$4 sm:$0xff]  }
  0xe7   :  { %1904 = vmatpush1.bf16.msra.mxu1 %v3346_v7  ;;  %2389 = vmatprep.subr.bf16.mxu0 %v3444_v11  ;;  %v3409_v7 = vld [vmem:[%s4666_s1 + $0x7c8] ss:$16 sps:$4 sm:$0xff]   ;;  %v341_v11 = vsub.s32 0, %v3685_v43 }
  0xe8   :  { %1905 = vmatprep.subr.bf16.mxu1 %v3351_v10  ;;  %v3412_v10 = vld [vmem:[%s4666_s1 + $0x7e8] ss:$16 sps:$4 sm:$0xff]  }
  0xea   :  { %2390 = vmatpush1.bf16.msra.mxu0 %v3442_v14  ;;  %v345_v14 = vsub.s32 1, %v3685_v43 }
  0xeb   :  { %1906 = vmatpush1.bf16.msra.mxu1 %v3349_v12  ;;  %2391 = vmatprep.subr.bf16.mxu0 %v3447_v16  ;;  %v4499_v12 = vld [vmem:[%s4669_s2] sm:$0xf] }
  0xec   :  { %1907 = vmatprep.subr.bf16.mxu1 %v3354_v15  ;;  %v342_v15 = vrot.slane %v4499_v12, %v341_v11  ;;  %v346_v16 = vrot.slane %v4499_v12, %v345_v14 }
  0xee   :  { %2392 = vmatpush1.bf16.msra.mxu0 %v3445_v18 }
  0xef   :  { %1908 = vmatpush1.bf16.msra.mxu1 %v3352_v17  ;;  %2393 = vmatprep.subr.bf16.mxu0 %v3450_v22 }
  0xf0   :  { %1909 = vmatprep.subr.bf16.mxu1 %v3357_v21 }
  0xf2   :  { %2394 = vmatpush1.bf16.msra.mxu0 %v3448_v24 }
  0xf3   :  { %1910 = vmatpush1.bf16.msra.mxu1 %v3355_v23  ;;  %2395 = vmatprep.subr.bf16.mxu0 %v3453_v27 }
  0xf4   :  { %1911 = vmatprep.subr.bf16.mxu1 %v3360_v8 }
  0xf6   :  { %2396 = vmatpush1.bf16.msra.mxu0 %v3451_v29 }
  0xf7   :  { %1912 = vmatpush1.bf16.msra.mxu1 %v3358_v28  ;;  %2397 = vmatprep.subr.bf16.mxu0 %v3456_v30 }
  0xf8   :  { %1913 = vmatprep.subr.bf16.mxu1 %v3363_v49  ;;  %v3463_v49 = vld [vmem:[%s4668_s3 + $0x100] ss:$8 sps:$4 sm:$0xff]  }
  0xfa   :  { %2398 = vmatpush1.bf16.msra.mxu0 %v3454_v33  ;;  %v3466_v33 = vld [vmem:[%s4668_s3 + $0x110] ss:$8 sps:$4 sm:$0xff]  }
  0xfb   :  { %1914 = vmatpush1.bf16.msra.mxu1 %v3361_v32  ;;  %2399 = vmatprep.subr.bf16.mxu0 %v3459_v44  ;;  %v3468_v32 = vld [vmem:[%s4668_s3 + $0x114] ss:$8 sps:$4 sm:$0xff]   ;;  %v3519_v44 = vld [vmem:[%s4670_s5 + $0x60] sm:$0xff]  }
  0xfc   :  { %1915 = vmatprep.subr.bf16.mxu1 %v3366_v34  ;;  %v3471_v34 = vld [vmem:[%s4668_s3 + $0x124] ss:$8 sps:$4 sm:$0xff]  }
  0xfe   :  { %2400 = vmatpush1.bf16.msra.mxu0 %v3457_v46  ;;  %v3478_v46 = vld [vmem:[%s4668_s3 + $0x150] ss:$8 sps:$4 sm:$0xff]  }
  0xff   :  { %1916 = vmatpush1.bf16.msra.mxu1 %v3364_v13  ;;  %2401 = vmatprep.subr.bf16.mxu0 %v3462_v53  ;;  %v3511_v13 = vld [vmem:[%s4670_s5 + $0x40] sm:$0xff]   ;;  %v3484_v53 = vld [vmem:[%s4668_s3 + $0x170] ss:$8 sps:$4 sm:$0xff]  }
 0x100   :  { %1926 = vmatprep.subr.bf16.mxu1 %v3369_v36  ;;  %v3512_v36 = vld [vmem:[%s4670_s5] sm:$0xff]  }
 0x102   :  { %1918 = vmatmul.mubr.bf16.vlgmr.msra.gmra.mrb[4].mxu1 %v4000_v31  ;;  %v3378_v31 = vld [vmem:[%s4666_s1 + $0x66c] ss:$16 sps:$4 sm:$0xff]   ;;  %2402 = vmatpush1.bf16.msra.mxu0 %v3460_v54 }
 0x103   :  { %1927 = vmatpush1.bf16.msra.mxu1 %v3367_v38  ;;  %1958 = vmatprep.mubr.bf16.mxu1 %v4014_v35  ;;  %v3376_v35 = vld [vmem:[%s4666_s1 + $0x668] ss:$16 sps:$4 sm:$0xff]   ;;  %v3489_v54 = vld [vmem:[%s4668_s3 + $0x184] ss:$8 sps:$4 sm:$0xff]  }
 0x104   :  { %1928 = vmatprep.subr.bf16.mxu1 %v3372_v19  ;;  %2412 = vmatprep.subr.bf16.mxu0 %v3465_v57  ;;  %v3469_v38 = vld [vmem:[%s4668_s3 + $0x120] ss:$8 sps:$4 sm:$0xff]   ;;  %v3490_v57 = vld [vmem:[%s4668_s3 + $0x190] ss:$8 sps:$4 sm:$0xff]  }
 0x105   :  { %v3513_v19 = vld [vmem:[%s4670_s5 + $0x48] sm:$0xff]  }
 0x107   :  { %1929 = vmatpush1.bf16.msra.mxu1 %v3370_v26  ;;  %v3514_v26 = vld [vmem:[%s4670_s5 + $0x8] sm:$0xff]  }
 0x108   :  { %1930 = vmatprep.subr.bf16.mxu1 %v3375_v39  ;;  %v3515_v39 = vld [vmem:[%s4670_s5 + $0x50] sm:$0xff]  }
 0x10b   :  { %1931 = vmatpush1.bf16.msra.mxu1 %v3373_v40  ;;  %v3474_v40 = vld [vmem:[%s4668_s3 + $0x134] ss:$8 sps:$4 sm:$0xff]  }
 0x10c   :  { %1932 = vmatprep.subr.bf16.mxu1 %v3378_v31  ;;  %v3472_v31 = vld [vmem:[%s4668_s3 + $0x130] ss:$8 sps:$4 sm:$0xff]  }
 0x10f   :  { %1933 = vmatpush1.bf16.msra.mxu1 %v3376_v35  ;;  %v3516_v35 = vld [vmem:[%s4670_s5 + $0x10] sm:$0xff]  }
 0x110   :  { %1934 = vmatprep.subr.bf16.mxu1 %v3381_v20  ;;  %v3517_v20 = vld [vmem:[%s4670_s5 + $0x58] sm:$0xff]  }
 0x113   :  { %1935 = vmatpush1.bf16.msra.mxu1 %v3379_v41  ;;  %v3477_v41 = vld [vmem:[%s4668_s3 + $0x144] ss:$8 sps:$4 sm:$0xff]  }
 0x114   :  { %1936 = vmatprep.subr.bf16.mxu1 %v3384_v3  ;;  %v3475_v3 = vld [vmem:[%s4668_s3 + $0x140] ss:$8 sps:$4 sm:$0xff]  }
 0x115   :  { %v1673_v45 = vpop.f32.mrb[0].mxu1 }
 0x116   :  { %v1675_v47 = vpop.f32.mrb[1].mxu1  ;;  %v1674_v17 = vadd.f32 %v1673_v45, %v342_v15  ;;  %v3520_v45 = vld [vmem:[%s4670_s5 + $0x20] sm:$0xff]  }
 0x117   :  { %v1677_v48 = vpop.f32.mrb[2].mxu1  ;;  %1937 = vmatpush1.bf16.msra.mxu1 %v3382_v25  ;;  %v1676_v18 = vadd.f32 %v1675_v47, %v346_v16  ;;  %v3480_v25 = vld [vmem:[%s4668_s3 + $0x154] ss:$8 sps:$4 sm:$0xff]   ;;  %v3521_v47 = vld [vmem:[%s4670_s5 + $0x68] sm:$0xff]  }
 0x118   :  { %v1678_v51 = vpop.f32.mrb[3].mxu1  ;;  %1938 = vmatprep.subr.bf16.mxu1 %v3387_v42  ;;  %v3518_v42 = vld [vmem:[%s4670_s5 + $0x18] sm:$0xff]   ;;  %v3483_v48 = vld [vmem:[%s4668_s3 + $0x164] ss:$8 sps:$4 sm:$0xff]  }
 0x119   :  { %v3481_v51 = vld [vmem:[%s4668_s3 + $0x160] ss:$8 sps:$4 sm:$0xff]  }
 0x11b   :  { %1939 = vmatpush1.bf16.msra.mxu1 %v3385_v50  ;;  %v3522_v50 = vld [vmem:[%s4670_s5 + $0x28] sm:$0xff]  }
 0x11c   :  { %1940 = vmatprep.subr.bf16.mxu1 %v3390_v52  ;;  %v3486_v52 = vld [vmem:[%s4668_s3 + $0x174] ss:$8 sps:$4 sm:$0xff]  }
 0x11f   :  { %1941 = vmatpush1.bf16.msra.mxu1 %v3388_v55  ;;  %v3487_v55 = vld [vmem:[%s4668_s3 + $0x180] ss:$8 sps:$4 sm:$0xff]  }
 0x120   :  { %1942 = vmatprep.subr.bf16.mxu1 %v3393_v56  ;;  %v3492_v56 = vld [vmem:[%s4668_s3 + $0x194] ss:$8 sps:$4 sm:$0xff]  }
 0x123   :  { %1943 = vmatpush1.bf16.msra.mxu1 %v3391_v58  ;;  %v3495_v58 = vld [vmem:[%s4668_s3 + $0x1a4] ss:$8 sps:$4 sm:$0xff]  }
 0x124   :  { %1944 = vmatprep.subr.bf16.mxu1 %v3396_v59  ;;  %v3493_v59 = vld [vmem:[%s4668_s3 + $0x1a0] ss:$8 sps:$4 sm:$0xff]  }
 0x127   :  { %1945 = vmatpush1.bf16.msra.mxu1 %v3394_v60  ;;  %v3498_v60 = vld [vmem:[%s4668_s3 + $0x1b4] ss:$8 sps:$4 sm:$0xff]  }
 0x128   :  { %1946 = vmatprep.subr.bf16.mxu1 %v3399_v61  ;;  %v3496_v61 = vld [vmem:[%s4668_s3 + $0x1b0] ss:$8 sps:$4 sm:$0xff]  }
 0x12b   :  { %1947 = vmatpush1.bf16.msra.mxu1 %v3397_v62  ;;  %v3501_v62 = vld [vmem:[%s4668_s3 + $0x1c4] ss:$8 sps:$4 sm:$0xff]  }
 0x12c   :  { %1948 = vmatprep.subr.bf16.mxu1 %v3402_v63  ;;  %v3499_v63 = vld [vmem:[%s4668_s3 + $0x1c0] ss:$8 sps:$4 sm:$0xff]  }
 0x12f   :  { %1949 = vmatpush1.bf16.msra.mxu1 %v3400_v0  ;;  %v3504_v0 = vld [vmem:[%s4668_s3 + $0x1d4] ss:$8 sps:$4 sm:$0xff]  }
 0x130   :  { %1950 = vmatprep.subr.bf16.mxu1 %v3405_v1  ;;  %v3502_v1 = vld [vmem:[%s4668_s3 + $0x1d0] ss:$8 sps:$4 sm:$0xff]  }
 0x133   :  { %1951 = vmatpush1.bf16.msra.mxu1 %v3403_v2  ;;  %v3507_v2 = vld [vmem:[%s4668_s3 + $0x1e4] ss:$8 sps:$4 sm:$0xff]  }
 0x134   :  { %1952 = vmatprep.subr.bf16.mxu1 %v3408_v4  ;;  %v3505_v4 = vld [vmem:[%s4668_s3 + $0x1e0] ss:$8 sps:$4 sm:$0xff]  }
 0x137   :  { %1953 = vmatpush1.bf16.msra.mxu1 %v3406_v5  ;;  %v3510_v5 = vld [vmem:[%s4668_s3 + $0x1f4] ss:$8 sps:$4 sm:$0xff]  }
 0x138   :  { %1954 = vmatprep.subr.bf16.mxu1 %v3411_v6  ;;  %v3508_v6 = vld [vmem:[%s4668_s3 + $0x1f0] ss:$8 sps:$4 sm:$0xff]  }
 0x13b   :  { %1955 = vmatpush1.bf16.msra.mxu1 %v3409_v7  ;;  %v349_v7 = vsub.s32 2, %v3685_v43 }
 0x13c   :  { %1956 = vmatprep.subr.bf16.mxu1 %v3414_v9  ;;  %v353_v9 = vsub.s32 3, %v3685_v43 }
 0x13e   :  { %v354_v15 = vrot.slane %v4499_v12, %v353_v9 }
 0x13f   :  { %1957 = vmatpush1.bf16.msra.mxu1 %v3412_v10  ;;  %v350_v10 = vrot.slane %v4499_v12, %v349_v7  ;;  %v3524_v12 = vld [vmem:[%s4670_s5 + $0x30] sm:$0xff]  }
 0x140   :  { %2974 = vmatprep.subr.bf16.mxu1 %v3511_v13 }
 0x142   :  { %1959 = vmatmul.mubr.bf16.vlgmr.msra.gmra.mrb[4].mxu1 %v4199_v37 }
 0x143   :  { %2975 = vmatpush3.bf16.msra.mxu1 %v3512_v36 }
 0x144   :  { %2976 = vmatprep.subr.bf16.mxu1 %v3513_v19 }
 0x147   :  { %2977 = vmatpush3.bf16.msra.mxu1 %v3514_v26 }
 0x148   :  { %2978 = vmatprep.subr.bf16.mxu1 %v3515_v39 }
 0x14b   :  { %2979 = vmatpush3.bf16.msra.mxu1 %v3516_v35 }
 0x14c   :  { %2980 = vmatprep.subr.bf16.mxu1 %v3517_v20 }
 0x14f   :  { %2981 = vmatpush3.bf16.msra.mxu1 %v3518_v42 }
 0x150   :  { %2982 = vmatprep.subr.bf16.mxu1 %v3519_v44 }
 0x153   :  { %2983 = vmatpush3.bf16.msra.mxu1 %v3520_v45 }
 0x154   :  { %2984 = vmatprep.subr.bf16.mxu1 %v3521_v47 }
 0x157   :  { %2985 = vmatpush3.bf16.msra.mxu1 %v3522_v50 }
 0x196   :  { %v1796_v37 = vpop.f32.mrb[0].mxu0 }
 0x197   :  { %v2997_v21 = vadd.f32 %v1796_v37, %v1674_v17  ;;  %v1798_v22 = vpop.f32.mrb[1].mxu0 }
 0x198   :  { %v2999_v23 = vadd.f32 %v1798_v22, %v1676_v18  ;;  %v1800_v24 = vpop.f32.mrb[2].mxu0 }
 0x199   :  { %v1967_v8 = vmax.f32 %v2997_v21, 0.0  ;;  %v1801_v27 = vpop.f32.mrb[3].mxu0 }
 0x19a   :  { %v1968_v28 = vmax.f32 %v2999_v23, 0.0 }
 0x19b   :  { %v1971_v30 = vpack.c.bf16 %v1967_v8, %v1967_v8 }
 0x19c   :  { %v1972_v29 = vpack.c.bf16 %v1968_v28, %v1968_v28  ;;  %v3523_v28 = vld [vmem:[%s4670_s5 + $0x70] sm:$0xff]  }
 0x19d   :  { %2986 = vmatprep.subr.bf16.mxu1 %v3523_v28 }
 0x19e   :  { %2403 = vmatprep.mubr.bf16.mxu0 %v1972_v29  ;;  %2987 = vmatpush3.bf16.msra.mxu1 %v3524_v12  ;;  %v3525_v29 = vld [vmem:[%s4670_s5 + $0x78] sm:$0xff]  }
 0x19f   :  { %2404 = vmatmul.mubr.bf16.vlgmr.msra.gmra.mrb[4].mxu0 %v1971_v30  ;;  %2988 = vmatprep.subr.bf16.mxu1 %v3525_v29  ;;  %v2039_v30 = vld [vmem:[%s4671_s4] sm:$0x3] }
 0x1a0   :  { %2413 = vmatpush1.bf16.msra.mxu0 %v3463_v49  ;;  %v3526_v49 = vld [vmem:[%s4670_s5 + $0x38] sm:$0xff]  }
 0x1a1   :  { %2414 = vmatprep.subr.bf16.mxu0 %v3468_v32  ;;  %v2044_v32 = vrot.slane %v2039_v30, %v341_v11  ;;  %v2957_v11 = vld [vmem:[%s4672_s6] ss:$0 sm:$0xff] }
 0x1a2   :  { %2989 = vmatpush3.bf16.msra.mxu1 %v3526_v49 }
 0x1a4   :  { %2415 = vmatpush1.bf16.msra.mxu0 %v3466_v33  ;;  %v2048_v33 = vrot.slane %v2039_v30, %v345_v14 }
 0x1a5   :  { %2416 = vmatprep.subr.bf16.mxu0 %v3471_v34 }
 0x1a8   :  { %2417 = vmatpush1.bf16.msra.mxu0 %v3469_v38 }
 0x1a9   :  { %2418 = vmatprep.subr.bf16.mxu0 %v3474_v40 }
 0x1ac   :  { %2419 = vmatpush1.bf16.msra.mxu0 %v3472_v31 }
 0x1ad   :  { %2420 = vmatprep.subr.bf16.mxu0 %v3477_v41 }
 0x1b0   :  { %2421 = vmatpush1.bf16.msra.mxu0 %v3475_v3 }
 0x1b1   :  { %2422 = vmatprep.subr.bf16.mxu0 %v3480_v25 }
 0x1b4   :  { %2423 = vmatpush1.bf16.msra.mxu0 %v3478_v46 }
 0x1b5   :  { %2424 = vmatprep.subr.bf16.mxu0 %v3483_v48 }
 0x1b8   :  { %2425 = vmatpush1.bf16.msra.mxu0 %v3481_v51 }
 0x1b9   :  { %2426 = vmatprep.subr.bf16.mxu0 %v3486_v52 }
 0x1bc   :  { %2427 = vmatpush1.bf16.msra.mxu0 %v3484_v53 }
 0x1bd   :  { %2428 = vmatprep.subr.bf16.mxu0 %v3489_v54 }
 0x1c0   :  { %2429 = vmatpush1.bf16.msra.mxu0 %v3487_v55 }
 0x1c1   :  { %2430 = vmatprep.subr.bf16.mxu0 %v3492_v56 }
 0x1c4   :  { %2431 = vmatpush1.bf16.msra.mxu0 %v3490_v57 }
 0x1c5   :  { %2432 = vmatprep.subr.bf16.mxu0 %v3495_v58 }
 0x1c8   :  { %2433 = vmatpush1.bf16.msra.mxu0 %v3493_v59 }
 0x1c9   :  { %2434 = vmatprep.subr.bf16.mxu0 %v3498_v60 }
 0x1cc   :  { %2435 = vmatpush1.bf16.msra.mxu0 %v3496_v61 }
 0x1cd   :  { %2436 = vmatprep.subr.bf16.mxu0 %v3501_v62 }
 0x1d0   :  { %2437 = vmatpush1.bf16.msra.mxu0 %v3499_v63 }
 0x1d1   :  { %2438 = vmatprep.subr.bf16.mxu0 %v3504_v0 }
 0x1d4   :  { %2439 = vmatpush1.bf16.msra.mxu0 %v3502_v1 }
 0x1d5   :  { %2440 = vmatprep.subr.bf16.mxu0 %v3507_v2 }
 0x1d8   :  { %2441 = vmatpush1.bf16.msra.mxu0 %v3505_v4 }
 0x1d9   :  { %2442 = vmatprep.subr.bf16.mxu0 %v3510_v5 }
 0x1dc   :  { %2443 = vmatpush1.bf16.msra.mxu0 %v3508_v6 }
 0x215   :  { %v1960_v16 = vpop.f32.mrb[4].mxu1 }
 0x216   :  { %v3000_v17 = vadd.f32 %v1960_v16, %v350_v10  ;;  %v1962_v18 = vpop.f32.mrb[5].mxu1 }
 0x217   :  { %v3001_v37 = vadd.f32 %v1962_v18, %v354_v15  ;;  %v1964_v21 = vpop.f32.mrb[6].mxu1 }
 0x218   :  { %v1969_v22 = vmax.f32 %v3000_v17, 0.0  ;;  %v1965_v23 = vpop.f32.mrb[7].mxu1 }
 0x219   :  { %v1970_v24 = vmax.f32 %v3001_v37, 0.0 }
 0x21a   :  { %v1973_v27 = vpack.c.bf16 %v1969_v22, %v1969_v22 }
 0x21b   :  { %v1974_v8 = vpack.c.bf16 %v1970_v24, %v1970_v24 }
 0x21d   :  { %2444 = vmatprep.mubr.bf16.mxu0 %v1974_v8 }
 0x21e   :  { %2445 = vmatmul.mubr.bf16.vlgmr.msra.gmra.mrb[4].mxu0 %v1973_v27 }
 0x2f1   :  { %v2446_v34 = vpop.f32.mrb[4].mxu0 }
 0x2f2   :  { %v3002_v13 = vadd.f32 %v2446_v34, %v2044_v32  ;;  %v2448_v36 = vpop.f32.mrb[5].mxu0 }
 0x2f3   :  { %v3003_v38 = vadd.f32 %v2448_v36, %v2048_v33  ;;  %v2450_v19 = vpop.f32.mrb[6].mxu0 }
 0x2f4   :  { %v2453_v26 = vmax.f32 %v3002_v13, 0.0  ;;  %v2451_v39 = vpop.f32.mrb[7].mxu0 }
 0x2f5   :  { %v2454_v40 = vmax.f32 %v3003_v38, 0.0 }
 0x2f6   :  { %v2455_v35 = vpack.c.bf16 %v2453_v26, %v2453_v26 }
 0x2f7   :  { %v2456_v31 = vpack.c.bf16 %v2454_v40, %v2454_v40 }
 0x2f9   :  { %2624 = vmatprep.mubr.bf16.mxu1 %v2456_v31 }
 0x2fa   :  { %2625 = vmatmul.mubr.bf16.vlgmr.msra.gmra.mrb[8].mxu1 %v2455_v35 }
 0x3cd   :  { %v2990_v20 = vpop.f32.mrb[8].mxu1 }
 0x3ce   :  { %v2991_v41 = vpop.f32.mrb[9].mxu1 }
 0x3cf   :  { %v2992_v43 = vadd.f32 %v2991_v41, %v2990_v20  ;;  %v2993_v14 = vpop.f32.mrb[10].mxu1 }
 0x3d0   :  { %v2994_v3 = vpop.f32.mrb[11].mxu1 }
 0x3d1   :  { %v2627_v25 = vadd.f32 %v2992_v43, %v2957_v11 }
 0x3d3   :  { %2632 = vst [vmem:[%s4673_s7] sm:$0x3] %v2627_v25 }

</bundles_post_ra>
